<compile_context>
chip_gen: v7x
topology: tpu7x:2x2x1
jax: 0.10.0
libtpu: 0.0.40
codegen_flags: <defaults>
</compile_context>

<pallas_src>
import functools

import jax
import jax.numpy as jnp
from jax import lax
from jax.experimental import pallas as pl
from jax.experimental.pallas import tpu as pltpu


def _round_up(x, m):
    return (x + m - 1) // m * m


def _vmem_capacity_bytes():
    try:
        info = pltpu.get_tpu_info()
        cap = getattr(info, "vmem_capacity_bytes", None)
        if cap:
            return int(cap)
    except Exception:
        pass
    return 64 * 1024 * 1024       # conservative fallback (v7x-sized)


_VMEM_CAP = _vmem_capacity_bytes()
# 96 MiB on 128-MiB chips (v5e/v6e), 48 MiB on 64-MiB chips (v7x).
_VMEM_LIMIT = min(_VMEM_CAP * 3 // 4, 100 * 1024 * 1024)


# --------------------------------------------------------------------------- #
# Pallas kernel 1: fused 3x3 (stride-1, any pad/dilation) conv + bias + ReLU
#   x_ref : [Hp, Wp, Cin]          (full padded input, resident in VMEM)
#   w_ref : [KH*KW, Cin, Cout]     (resident in VMEM)
#   b_ref : [1, Cout]              (f32)
#   o_ref : [TH*Wo, Cout]          (bf16, row-flattened output tile)
# Per tap (kh, kw): one MXU matmul of [TH*Wo, Cin] x [Cin, Cout].
# --------------------------------------------------------------------------- #
def _conv3x3_kernel(x_ref, w_ref, b_ref, o_ref, *, KH, KW, dil, Wo, relu):
    M, Cout = o_ref.shape                      # M = TH * Wo
    TH = M // Wo
    Cin = x_ref.shape[-1]
    row0 = pl.multiple_of(pl.program_id(0) * TH, 8)

    acc = jnp.zeros((M, Cout), jnp.float32)
    for kh in range(KH):
        for kw in range(KW):
            a = x_ref[pl.ds(row0 + kh * dil, TH),
                      kw * dil:kw * dil + Wo, :]          # [TH, Wo, Cin]
            acc = acc + jnp.dot(a.reshape(M, Cin), w_ref[kh * KW + kw],
                                preferred_element_type=jnp.float32)
    acc = acc + b_ref[...]
    if relu:
        acc = jnp.maximum(acc, 0.0)
    o_ref[...] = acc.astype(o_ref.dtype)


def _pick_th(Wo):
    """Output rows per grid step so that M = TH*Wo >= ~256 (TH multiple of 8)."""
    if Wo >= 32:
        return 8
    if Wo >= 16:
        return 16
    return 32


def _conv_fused_call(xc, w_flat, b, KH, KW, dil, ho_p, Wo, TH, relu):
    Hp, Wp, Cin = xc.shape
    Cout = w_flat.shape[-1]
    M = TH * Wo
    kernel = functools.partial(_conv3x3_kernel, KH=KH, KW=KW, dil=dil, Wo=Wo,
                               relu=relu)
    out = pl.pallas_call(
        kernel,
        out_shape=jax.ShapeDtypeStruct((ho_p * Wo, Cout), jnp.bfloat16),
        grid_spec=pltpu.PrefetchScalarGridSpec(
            num_scalar_prefetch=0,
            grid=(ho_p // TH,),                 # leading parallel row axis (megacore)
            in_specs=[
                pl.BlockSpec((Hp, Wp, Cin), lambda i: (0, 0, 0)),          # resident
                pl.BlockSpec((KH * KW, Cin, Cout), lambda i: (0, 0, 0)),   # resident
                pl.BlockSpec((1, Cout), lambda i: (0, 0)),
            ],
            out_specs=pl.BlockSpec((M, Cout), lambda i: (i, 0)),
        ),
        compiler_params=pltpu.CompilerParams(
            dimension_semantics=("parallel",),
            vmem_limit_bytes=_VMEM_LIMIT),
    )(xc, w_flat, b.reshape(1, Cout))
    return out.reshape(ho_p, Wo, Cout)


def _fused_x_bytes(rows_out, W, pad, Cin, halo, TH):
    """bf16 VMEM footprint estimate (lane/sublane-padded) of the resident input."""
    hp = _round_up(rows_out, TH) + halo
    wp = W + 2 * pad
    return hp * _round_up(wp, 16) * _round_up(Cin, 128) * 2


def _conv_fused_single(x, w_flat, b, KH, KW, dil, pad, Ho, Wo, relu):
    """x: [H, W, Cin] bf16 (one image) -> [Ho, Wo, Cout] bf16."""
    H, W, Cin = x.shape
    Cout = w_flat.shape[-1]
    halo = (KH - 1) * dil
    TH = _pick_th(Wo)
    M = TH * Wo

    # VMEM not taken by the resident input: double-buffered weights / output
    # tiles plus kernel-local accumulator & operand temporaries, plus headroom.
    w_vmem = KH * KW * _round_up(Cin, 16) * _round_up(Cout, 128) * 2
    out_vmem = _round_up(M, 16) * _round_up(Cout, 128) * 2
    tmp_vmem = M * _round_up(Cout, 128) * 4 + 2 * M * _round_up(Cin, 128) * 2
    budget = max(_VMEM_LIMIT - (2 * w_vmem + 2 * out_vmem + tmp_vmem + (6 << 20)),
                 8 << 20)

    # chunk over output rows only if the (double-buffered) resident input would
    # not fit the per-chip VMEM budget — single chunk on 128-MiB chips.
    # TODO(synk): on v5e the per-layer jnp.pad HBM copy could be avoided by
    # writing conv outputs directly into pre-padded buffers.
    n_chunks = 1
    while (n_chunks < Ho and
           2 * _fused_x_bytes(-(-Ho // n_chunks), W, pad, Cin, halo, TH) > budget):
        n_chunks += 1
    chunk = _round_up(-(-Ho // n_chunks), TH)
    n_chunks = -(-Ho // chunk)

    last_r0 = (n_chunks - 1) * chunk
    rows_needed = last_r0 + _round_up(Ho - last_r0, TH) + halo
    x_pad = jnp.pad(x, ((pad, rows_needed - pad - H), (pad, pad), (0, 0)))

    outs = []
    for c in range(n_chunks):
        r0 = c * chunk
        rows_out = min(chunk, Ho - r0)
        ho_p = _round_up(rows_out, TH)
        hp = ho_p + halo
        xc = x_pad if n_chunks == 1 else x_pad[r0:r0 + hp]
        oc = _conv_fused_call(xc, w_flat, b, KH, KW, dil, ho_p, Wo, TH, relu)
        outs.append(oc[:rows_out])
    return outs[0] if n_chunks == 1 else jnp.concatenate(outs, axis=0)


# --------------------------------------------------------------------------- #
# Pallas kernel 2: tiled matmul + bias + optional ReLU (generic conv fallback)
# --------------------------------------------------------------------------- #
def _matmul_bias_act_kernel(a_ref, b_ref, bias_ref, o_ref, acc_ref, *, relu):
    k = pl.program_id(2)

    @pl.when(k == 0)
    def _():
        acc_ref[...] = jnp.zeros_like(acc_ref)

    acc_ref[...] += jnp.dot(a_ref[...], b_ref[...],
                            preferred_element_type=jnp.float32)

    @pl.when(k == pl.num_programs(2) - 1)
    def _():
        out = acc_ref[...] + bias_ref[...]
        if relu:
            out = jnp.maximum(out, 0.0)
        o_ref[...] = out.astype(o_ref.dtype)


def matmul_bias_act(a, b, bias, relu, out_dtype=jnp.bfloat16):
    """a: [M, K], b: [K, N], bias: [N] -> act(a @ b + bias): [M, N] (bf16)."""
    M, K = a.shape
    _, N = b.shape
    a = a.astype(jnp.bfloat16)
    b = b.astype(jnp.bfloat16)
    bias = bias.astype(jnp.float32)

    # K tiling (no padding when K fits one tile)
    if K <= 512:
        TK, Kp = K, K
    else:
        TK, Kp = 512, _round_up(K, 512)
    # N tiling: keep the output lane-dense (>=128 lanes) -> pad small N to 128
    if N < 128:
        TN, Np = 128, 128
    elif N % 256 == 0:
        TN, Np = 256, N
    else:
        TN, Np = 128, _round_up(N, 128)
    # M tiling: ~12 MiB working set; prefer an exact divisor of M
    row_bytes = 4 * max(TK, 128) + 8 * max(TN, 128)
    cap = min(4096, max(8, (12 * 1024 * 1024 // row_bytes) // 8 * 8))
    if M > cap:
        TM = cap
        for t in range(cap, 7, -8):
            if M % t == 0:
                TM = t
                break
        Mp = _round_up(M, TM)
    else:
        TM = _round_up(M, 8)
        Mp = TM

    a_p = a if (Mp == M and Kp == K) else jnp.pad(a, ((0, Mp - M), (0, Kp - K)))
    b_p = b if (Kp == K and Np == N) else jnp.pad(b, ((0, Kp - K), (0, Np - N)))
    bias_p = (bias if Np == N else jnp.pad(bias, (0, Np - N))).reshape(1, Np)

    out = pl.pallas_call(
        functools.partial(_matmul_bias_act_kernel, relu=relu),
        out_shape=jax.ShapeDtypeStruct((Mp, Np), out_dtype),
        grid_spec=pltpu.PrefetchScalarGridSpec(
            num_scalar_prefetch=0,
            grid=(Mp // TM, Np // TN, Kp // TK),
            in_specs=[
                pl.BlockSpec((TM, TK), lambda i, j, k: (i, k)),
                pl.BlockSpec((TK, TN), lambda i, j, k: (k, j)),
                pl.BlockSpec((1, TN), lambda i, j, k: (0, j)),
            ],
            out_specs=pl.BlockSpec((TM, TN), lambda i, j, k: (i, j)),
            scratch_shapes=[pltpu.VMEM((TM, TN), jnp.float32)],
        ),
        compiler_params=pltpu.CompilerParams(
            dimension_semantics=("parallel", "parallel", "arbitrary"),
            vmem_limit_bytes=_VMEM_LIMIT),
    )(a_p, b_p, bias_p)
    if Mp != M or Np != N:
        out = out[:M, :N]
    return out


# --------------------------------------------------------------------------- #
# Conv2d wrapper
# --------------------------------------------------------------------------- #
def conv2d(x, w, b, stride=1, padding=0, dilation=1, relu=False):
    """x: [N,H,W,Cin], w: [KH,KW,Cin,Cout], b: [Cout] -> [N,Ho,Wo,Cout] (bf16)."""
    N, H, W, Cin = x.shape
    KH, KW, _, Cout = w.shape
    Ho = (H + 2 * padding - dilation * (KH - 1) - 1) // stride + 1
    Wo = (W + 2 * padding - dilation * (KW - 1) - 1) // stride + 1
    x = x.astype(jnp.bfloat16)
    w = w.astype(jnp.bfloat16)
    b = b.astype(jnp.float32)

    if stride == 1 and KH == KW and KH > 1 and Ho >= 8 and Cin >= 16:
        w_flat = w.reshape(KH * KW, Cin, Cout)
        outs = [_conv_fused_single(x[n], w_flat, b, KH, KW, dilation,
                                   padding, Ho, Wo, relu) for n in range(N)]
        return jnp.stack(outs, axis=0)

    # generic path: im2col (only small layers reach this) + fused matmul kernel
    xp = jnp.pad(x, ((0, 0), (padding, padding), (padding, padding), (0, 0)))
    cols = []
    for kh in range(KH):
        for kw in range(KW):
            h0, w0 = kh * dilation, kw * dilation
            cols.append(xp[:, h0:h0 + (Ho - 1) * stride + 1:stride,
                            w0:w0 + (Wo - 1) * stride + 1:stride, :])
    patches = cols[0] if len(cols) == 1 else jnp.concatenate(cols, axis=-1)
    patches = patches.reshape(N * Ho * Wo, KH * KW * Cin)
    wm = w.reshape(KH * KW * Cin, Cout)
    out = matmul_bias_act(patches, wm, b, relu=relu)
    return out.reshape(N, Ho, Wo, Cout)


# --------------------------------------------------------------------------- #
# Pallas kernel 3: fused 2x2 stride-2 max-pool (no window stacking in HBM)
#   x_ref : [TH, 2, Wo, 2C]  (free reshape of the NHWC map)
#   o_ref : [TH, Wo, C]
# --------------------------------------------------------------------------- #
def _maxpool2x2_kernel(x_ref, o_ref):
    r = jnp.maximum(x_ref[:, 0], x_ref[:, 1])          # max over the row pair
    C = o_ref.shape[-1]
    o_ref[...] = jnp.maximum(r[:, :, :C], r[:, :, C:])  # max over the column pair


def _maxpool2x2_call(xr, C):
    Ho, _, Wo, C2 = xr.shape
    row_bytes = 2 * Wo * C2 * xr.dtype.itemsize
    TH = 1
    for d in range(1, Ho + 1):
        if Ho % d == 0 and d * row_bytes <= 4 * 1024 * 1024:
            TH = d
    return pl.pallas_call(
        _maxpool2x2_kernel,
        out_shape=jax.ShapeDtypeStruct((Ho, Wo, C), xr.dtype),
        grid_spec=pltpu.PrefetchScalarGridSpec(
            num_scalar_prefetch=0,
            grid=(Ho // TH,),
            in_specs=[pl.BlockSpec((TH, 2, Wo, C2), lambda i: (i, 0, 0, 0))],
            out_specs=pl.BlockSpec((TH, Wo, C), lambda i: (i, 0, 0)),
        ),
        compiler_params=pltpu.CompilerParams(dimension_semantics=("parallel",),
                                             vmem_limit_bytes=_VMEM_LIMIT),
    )(xr)


def _maxpool2x2(x, ceil_mode=False):
    N, H, W, C = x.shape
    if ceil_mode:
        Ho = -(-(H - 2) // 2) + 1
        Wo = -(-(W - 2) // 2) + 1
    else:
        Ho = (H - 2) // 2 + 1
        Wo = (W - 2) // 2 + 1
    nh, nw = 2 * Ho, 2 * Wo
    x = x[:, :min(nh, H), :min(nw, W), :]
    ph, pw = nh - x.shape[1], nw - x.shape[2]
    if ph or pw:
        x = jnp.pad(x, ((0, 0), (0, ph), (0, pw), (0, 0)),
                    constant_values=-jnp.inf)
    outs = []
    for n in range(N):
        xr = x[n].reshape(Ho, 2, Wo, 2 * C)             # free row-major regroup
        outs.append(_maxpool2x2_call(xr, C))
    return jnp.stack(outs, axis=0)


# --------------------------------------------------------------------------- #
# Pallas kernel 4: VMEM-resident 3x3 stride-1 max-pool (pool5, map fits VMEM)
# --------------------------------------------------------------------------- #
def _pool3x3s1_kernel(x_ref, o_ref):
    Ho, Wo, _ = o_ref.shape
    r = x_ref[0:Ho, 0:Wo, :]
    for kh in range(3):
        for kw in range(3):
            if kh == 0 and kw == 0:
                continue
            r = jnp.maximum(r, x_ref[kh:kh + Ho, kw:kw + Wo, :])
    o_ref[...] = r


def _maxpool3x3s1(x, padding):
    N, H, W, C = x.shape
    Ho, Wo = H + 2 * padding - 2, W + 2 * padding - 2
    Hp, Wp = H + 2 * padding, W + 2 * padding
    outs = []
    for n in range(N):
        xp = jnp.pad(x[n], ((padding, padding), (padding, padding), (0, 0)),
                     constant_values=-jnp.inf)          # torch pads max-pool with -inf
        o = pl.pallas_call(
            _pool3x3s1_kernel,
            out_shape=jax.ShapeDtypeStruct((Ho, Wo, C), x.dtype),
            grid_spec=pltpu.PrefetchScalarGridSpec(
                num_scalar_prefetch=0,
                grid=(1,),
                in_specs=[pl.BlockSpec((Hp, Wp, C), lambda i: (0, 0, 0))],
                out_specs=pl.BlockSpec((Ho, Wo, C), lambda i: (0, 0, 0)),
            ),
            compiler_params=pltpu.CompilerParams(
                dimension_semantics=("arbitrary",),
                vmem_limit_bytes=_VMEM_LIMIT),
        )(xp)
        outs.append(o)
    return jnp.stack(outs, axis=0)


# --------------------------------------------------------------------------- #
# Pallas kernel 5: max over pooling-window axis (generic pool fallback)
# --------------------------------------------------------------------------- #
def _max_reduce_kernel(x_ref, o_ref):
    o_ref[...] = jnp.max(x_ref[...], axis=0)


def _max_over_windows(stacked):
    Wn, M, C = stacked.shape
    TM = 512 if M >= 512 else _round_up(M, 8)
    Mp = _round_up(M, TM)
    x_p = stacked if Mp == M else jnp.pad(
        stacked, ((0, 0), (0, Mp - M), (0, 0)), constant_values=-jnp.inf)
    out = pl.pallas_call(
        _max_reduce_kernel,
        out_shape=jax.ShapeDtypeStruct((Mp, C), stacked.dtype),
        grid_spec=pltpu.PrefetchScalarGridSpec(
            num_scalar_prefetch=0,
            grid=(Mp // TM,),
            in_specs=[pl.BlockSpec((Wn, TM, C), lambda i: (0, i, 0))],
            out_specs=pl.BlockSpec((TM, C), lambda i: (i, 0)),
        ),
        compiler_params=pltpu.CompilerParams(dimension_semantics=("parallel",),
                                             vmem_limit_bytes=_VMEM_LIMIT),
    )(x_p)
    return out if Mp == M else out[:M]


def _maxpool_generic(x, kernel, stride, padding, ceil_mode):
    N, H, W, C = x.shape
    if ceil_mode:
        Ho = -(-(H + 2 * padding - kernel) // stride) + 1
        Wo = -(-(W + 2 * padding - kernel) // stride) + 1
    else:
        Ho = (H + 2 * padding - kernel) // stride + 1
        Wo = (W + 2 * padding - kernel) // stride + 1
    need_h = (Ho - 1) * stride + kernel
    need_w = (Wo - 1) * stride + kernel
    xp = jnp.pad(x, ((0, 0), (padding, need_h - H - padding),
                     (padding, need_w - W - padding), (0, 0)),
                 constant_values=-jnp.inf)
    windows = []
    for kh in range(kernel):
        for kw in range(kernel):
            windows.append(xp[:, kh:kh + (Ho - 1) * stride + 1:stride,
                              kw:kw + (Wo - 1) * stride + 1:stride, :])
    stacked = jnp.stack(windows, axis=0).reshape(kernel * kernel, N * Ho * Wo, C)
    return _max_over_windows(stacked).reshape(N, Ho, Wo, C)


def maxpool2d(x, kernel=2, stride=2, padding=0, ceil_mode=False):
    if kernel == 2 and stride == 2 and padding == 0:
        return _maxpool2x2(x, ceil_mode)
    N, H, W, C = x.shape
    if (kernel == 3 and stride == 1 and not ceil_mode
            and ((H + 2 * padding) * _round_up(W + 2 * padding, 16)
                 * _round_up(C, 128) * x.dtype.itemsize) < 8 * 1024 * 1024):
        return _maxpool3x3s1(x, padding)
    return _maxpool_generic(x, kernel, stride, padding, ceil_mode)


# --------------------------------------------------------------------------- #
# Pallas kernel 6: L2Norm over the channel axis (torch L2Norm(512, 20))
# --------------------------------------------------------------------------- #
def _l2norm_kernel(x_ref, w_ref, o_ref, *, eps):
    x = x_ref[...].astype(jnp.float32)
    norm = jnp.sqrt(jnp.sum(x * x, axis=-1, keepdims=True)) + eps
    o_ref[...] = (x / norm) * w_ref[...]


def l2norm(x_nhwc, weight, eps=1e-10):
    N, H, W, C = x_nhwc.shape
    M = N * H * W
    x2 = x_nhwc.reshape(M, C)
    TM = _round_up(M, 8) if M <= 1024 else 512
    Mp = _round_up(M, TM)
    x_p = x2 if Mp == M else jnp.pad(x2, ((0, Mp - M), (0, 0)))
    out = pl.pallas_call(
        functools.partial(_l2norm_kernel, eps=eps),
        out_shape=jax.ShapeDtypeStruct((Mp, C), jnp.float32),
        grid_spec=pltpu.PrefetchScalarGridSpec(
            num_scalar_prefetch=0,
            grid=(Mp // TM,),
            in_specs=[pl.BlockSpec((TM, C), lambda i: (i, 0)),
                      pl.BlockSpec((1, C), lambda i: (0, 0))],
            out_specs=pl.BlockSpec((TM, C), lambda i: (i, 0)),
        ),
        compiler_params=pltpu.CompilerParams(dimension_semantics=("parallel",),
                                             vmem_limit_bytes=_VMEM_LIMIT),
    )(x_p, weight.reshape(1, C).astype(jnp.float32))
    out = out if Mp == M else out[:M]
    return out.reshape(N, H, W, C)


# --------------------------------------------------------------------------- #
# Parameter construction (deterministic, He-style init) and forward pass
# --------------------------------------------------------------------------- #
VGG_CFG = [(3, 64), (64, 64),                    # conv1_x
           (64, 128), (128, 128),                # conv2_x
           (128, 256), (256, 256), (256, 256),   # conv3_x
           (256, 512), (512, 512), (512, 512),   # conv4_x
           (512, 512), (512, 512), (512, 512)]   # conv5_x

# extras from add_extras(extras_cfg['300'], 1024): (cin, cout, k, stride, pad)
EXTRAS_CFG = [(1024, 256, 1, 1, 0), (256, 512, 3, 2, 1),
              (512, 128, 1, 1, 0), (128, 256, 3, 2, 1),
              (256, 128, 1, 1, 0), (128, 256, 3, 1, 0),
              (256, 128, 1, 1, 0), (128, 256, 3, 1, 0)]


def init_params(key):
    keys = iter(jax.random.split(key, 64))

    def conv_param(k, kh, kw, cin, cout):
        std = (2.0 / (kh * kw * cin)) ** 0.5
        w = (jax.random.normal(k, (kh, kw, cin, cout), jnp.float32) * std
             ).astype(jnp.bfloat16)
        bb = jnp.zeros((cout,), jnp.float32)
        return (w, bb)

    return {
        "vgg": [conv_param(next(keys), 3, 3, ci, co) for ci, co in VGG_CFG],
        "conv6": conv_param(next(keys), 3, 3, 512, 1024),
        "conv7": conv_param(next(keys), 1, 1, 1024, 1024),
        # L2Norm.reset_parameters(): init.constant_(weight, 20)
        "l2norm_weight": jnp.full((512,), 20.0, jnp.float32),
        "extras": [conv_param(next(keys), k_, k_, ci, co)
                   for (ci, co, k_, s, p) in EXTRAS_CFG],
    }


def vgg16_extractor_forward(x_nchw, params):
    """Mirrors VGG16Extractor.forward; returns the 6 SSD source maps (NCHW, f32)."""
    x = jnp.transpose(x_nchw, (0, 2, 3, 1)).astype(jnp.bfloat16)   # -> NHWC bf16
    vw = params["vgg"]
    sources = []

    # vgg[0:23]  (conv1_1 .. conv4_3 + ReLU)
    x = conv2d(x, *vw[0], padding=1, relu=True)
    x = conv2d(x, *vw[1], padding=1, relu=True)
    x = maxpool2d(x, 2, 2)
    x = conv2d(x, *vw[2], padding=1, relu=True)
    x = conv2d(x, *vw[3], padding=1, relu=True)
    x = maxpool2d(x, 2, 2)
    x = conv2d(x, *vw[4], padding=1, relu=True)
    x = conv2d(x, *vw[5], padding=1, relu=True)
    x = conv2d(x, *vw[6], padding=1, relu=True)
    x = maxpool2d(x, 2, 2, ceil_mode=True)              # 'C'
    x = conv2d(x, *vw[7], padding=1, relu=True)
    x = conv2d(x, *vw[8], padding=1, relu=True)
    x = conv2d(x, *vw[9], padding=1, relu=True)

    sources.append(l2norm(x, params["l2norm_weight"]))  # L2Norm(512, 20)

    # vgg[23:]  (pool4, conv5_x, pool5, conv6+ReLU, conv7+ReLU)
    x = maxpool2d(x, 2, 2)
    x = conv2d(x, *vw[10], padding=1, relu=True)
    x = conv2d(x, *vw[11], padding=1, relu=True)
    x = conv2d(x, *vw[12], padding=1, relu=True)
    x = maxpool2d(x, 3, 1, padding=1)                   # pool5 (VMEM-resident)
    x = conv2d(x, *params["conv6"], padding=6, dilation=6, relu=True)
    x = conv2d(x, *params["conv7"], relu=True)
    sources.append(x)

    # extras: relu after every conv, collect every odd layer's output
    for k, ((w, b), (_ci, _co, _k, s, p)) in enumerate(zip(params["extras"],
                                                           EXTRAS_CFG)):
        x = conv2d(x, w, b, stride=s, padding=p, relu=True)
        if k % 2 == 1:
            sources.append(x)

    return [jnp.transpose(s, (0, 3, 1, 2)).astype(jnp.float32) for s in sources]


if __name__ == "__main__":
    # ---- small self-checks of the Pallas conv / pool paths vs XLA references ----
    kx, kw1, kb1, kw2, kb2 = jax.random.split(jax.random.PRNGKey(42), 5)
    tx = jax.random.normal(kx, (1, 20, 20, 64), jnp.float32)

    # fused batched-row 3x3 conv kernel
    tw = jax.random.normal(kw1, (3, 3, 64, 128), jnp.float32)
    tb = jax.random.normal(kb1, (128,), jnp.float32)
    ref = lax.conv_general_dilated(
        tx, tw, (1, 1), [(1, 1), (1, 1)],
        dimension_numbers=("NHWC", "HWIO", "NHWC")) + tb
    got = conv2d(tx, tw, tb, stride=1, padding=1, relu=False).astype(jnp.float32)
    assert float(jnp.max(jnp.abs(ref - got))) < \
        2e-2 * float(jnp.max(jnp.abs(ref)) + 1e-6)

    # generic matmul path (1x1 conv, N < 128 -> lane-padded output)
    tx2 = jax.random.normal(kx, (1, 8, 8, 16), jnp.float32)
    tw2 = jax.random.normal(kw2, (1, 1, 16, 32), jnp.float32)
    tb2 = jax.random.normal(kb2, (32,), jnp.float32)
    ref2 = lax.conv_general_dilated(
        tx2, tw2, (1, 1), [(0, 0), (0, 0)],
        dimension_numbers=("NHWC", "HWIO", "NHWC")) + tb2
    got2 = conv2d(tx2, tw2, tb2, relu=False).astype(jnp.float32)
    assert float(jnp.max(jnp.abs(ref2 - got2))) < \
        2e-2 * float(jnp.max(jnp.abs(ref2)) + 1e-6)

    # fused 2x2/s2 max-pool kernel
    refp = lax.reduce_window(tx, -jnp.inf, lax.max,
                             (1, 2, 2, 1), (1, 2, 2, 1), "VALID")
    gotp = maxpool2d(tx, 2, 2)
    assert float(jnp.max(jnp.abs(refp - gotp))) < 1e-6

    # VMEM-resident 3x3/s1 max-pool kernel (pool5 path)
    refp5 = lax.reduce_window(tx, -jnp.inf, lax.max, (1, 3, 3, 1), (1, 1, 1, 1),
                              [(0, 0), (1, 1), (1, 1), (0, 0)])
    gotp5 = maxpool2d(tx, 3, 1, padding=1)
    assert float(jnp.max(jnp.abs(refp5 - gotp5))) < 1e-6

    # ---- full forward ----
    key = jax.random.PRNGKey(0)
    pkey, xkey = jax.random.split(key)
    params = init_params(pkey)
    # smallest input consistent with VGG16Extractor(300): the extras' VALID 3x3
    # convs force ~300x300 spatial; canonical SSD300 input with batch=1.
    x = jax.random.normal(xkey, (1, 3, 300, 300), jnp.float32)

    fwd = jax.jit(vgg16_extractor_forward)
    sources = fwd(x, params)
    sources = jax.block_until_ready(sources)

    expected = [(1, 512, 38, 38), (1, 1024, 19, 19), (1, 512, 10, 10),
                (1, 256, 5, 5), (1, 256, 3, 3), (1, 256, 1, 1)]
    got_shapes = [tuple(s.shape) for s in sources]
    assert got_shapes == expected, got_shapes
    assert all(bool(jnp.isfinite(s).all()) for s in sources)
    print("KERNEL_OK")
</pallas_src>

<mosaic_0001>
module attributes {stable_mosaic.version = 11 : i64} {
  func.func @_conv3x3_kernel(%arg0: i32, %arg1: memref<34x22x64xbf16, #tpu.memory_space<vmem>>, %arg2: memref<9x64x128xbf16, #tpu.memory_space<vmem>>, %arg3: memref<1x128xf32, #tpu.memory_space<vmem>>, %arg4: memref<320x128xbf16, #tpu.memory_space<vmem>>) attributes {dimension_semantics = [#tpu.dimension_semantics<parallel>], iteration_bounds = array<i64: 2>, scalar_prefetch = 0 : i64, scratch_operands = 0 : i64, tpu.core_type = #tpu.core_type<tc>, window_params = [{pipeline_mode = #tpu.pipeline_mode<synchronous>, transform_indices = @transform_0, window_bounds = array<i64: 34, 22, 64>}, {pipeline_mode = #tpu.pipeline_mode<synchronous>, transform_indices = @transform_1, window_bounds = array<i64: 9, 64, 128>}, {pipeline_mode = #tpu.pipeline_mode<synchronous>, transform_indices = @transform_2, window_bounds = array<i64: 1, 128>}, {transform_indices = @transform_3, window_bounds = array<i64: 320, 128>}]} {
    %c16_i32 = arith.constant 16 : i32
    %0 = arith.muli %arg0, %c16_i32 : i32
    %1 = tpu.assume_multiple %0, 8 : i32
    %cst = arith.constant 0.000000e+00 : f32
    %2 = vector.broadcast %cst : f32 to vector<320x128xf32>
    %c0_i32 = arith.constant 0 : i32
    %3 = arith.addi %1, %c0_i32 : i32
    %4 = arith.index_cast %3 : i32 to index
    %c0 = arith.constant 0 : index
    %c0_0 = arith.constant 0 : index
    %5 = vector.load %arg1[%4, %c0, %c0_0] : memref<34x22x64xbf16, #tpu.memory_space<vmem>>, vector<16x20x64xbf16>
    %6 = vector.shape_cast %5 : vector<16x20x64xbf16> to vector<320x64xbf16>
    %c0_1 = arith.constant 0 : index
    %c0_2 = arith.constant 0 : index
    %c0_3 = arith.constant 0 : index
    %7 = vector.load %arg2[%c0_1, %c0_2, %c0_3] : memref<9x64x128xbf16, #tpu.memory_space<vmem>>, vector<1x64x128xbf16>
    %8 = vector.shape_cast %7 : vector<1x64x128xbf16> to vector<64x128xbf16>
    %cst_4 = arith.constant dense<0.000000e+00> : vector<320x128xf32>
    %9 = tpu.matmul %6, %8, %cst_4 {dimension_numbers = #tpu.dot_dimension_numbers<[1], [0], [0], [1], [0, 0, 1, 1], [], []>} : vector<320x64xbf16>, vector<64x128xbf16>, vector<320x128xf32> -> vector<320x128xf32>
    %10 = arith.addf %2, %9 : vector<320x128xf32>
    %c0_i32_5 = arith.constant 0 : i32
    %11 = arith.addi %1, %c0_i32_5 : i32
    %12 = arith.index_cast %11 : i32 to index
    %c1 = arith.constant 1 : index
    %c0_6 = arith.constant 0 : index
    %13 = vector.load %arg1[%12, %c1, %c0_6] : memref<34x22x64xbf16, #tpu.memory_space<vmem>>, vector<16x20x64xbf16>
    %14 = vector.shape_cast %13 : vector<16x20x64xbf16> to vector<320x64xbf16>
    %c1_7 = arith.constant 1 : index
    %c0_8 = arith.constant 0 : index
    %c0_9 = arith.constant 0 : index
    %15 = vector.load %arg2[%c1_7, %c0_8, %c0_9] : memref<9x64x128xbf16, #tpu.memory_space<vmem>>, vector<1x64x128xbf16>
    %16 = vector.shape_cast %15 : vector<1x64x128xbf16> to vector<64x128xbf16>
    %cst_10 = arith.constant dense<0.000000e+00> : vector<320x128xf32>
    %17 = tpu.matmul %14, %16, %cst_10 {dimension_numbers = #tpu.dot_dimension_numbers<[1], [0], [0], [1], [0, 0, 1, 1], [], []>} : vector<320x64xbf16>, vector<64x128xbf16>, vector<320x128xf32> -> vector<320x128xf32>
    %18 = arith.addf %10, %17 : vector<320x128xf32>
    %c0_i32_11 = arith.constant 0 : i32
    %19 = arith.addi %1, %c0_i32_11 : i32
    %20 = arith.index_cast %19 : i32 to index
    %c2 = arith.constant 2 : index
    %c0_12 = arith.constant 0 : index
    %21 = vector.load %arg1[%20, %c2, %c0_12] : memref<34x22x64xbf16, #tpu.memory_space<vmem>>, vector<16x20x64xbf16>
    %22 = vector.shape_cast %21 : vector<16x20x64xbf16> to vector<320x64xbf16>
    %c2_13 = arith.constant 2 : index
    %c0_14 = arith.constant 0 : index
    %c0_15 = arith.constant 0 : index
    %23 = vector.load %arg2[%c2_13, %c0_14, %c0_15] : memref<9x64x128xbf16, #tpu.memory_space<vmem>>, vector<1x64x128xbf16>
    %24 = vector.shape_cast %23 : vector<1x64x128xbf16> to vector<64x128xbf16>
    %cst_16 = arith.constant dense<0.000000e+00> : vector<320x128xf32>
    %25 = tpu.matmul %22, %24, %cst_16 {dimension_numbers = #tpu.dot_dimension_numbers<[1], [0], [0], [1], [0, 0, 1, 1], [], []>} : vector<320x64xbf16>, vector<64x128xbf16>, vector<320x128xf32> -> vector<320x128xf32>
    %26 = arith.addf %18, %25 : vector<320x128xf32>
    %c1_i32 = arith.constant 1 : i32
    %27 = arith.addi %1, %c1_i32 : i32
    %28 = arith.index_cast %27 : i32 to index
    %c0_17 = arith.constant 0 : index
    %c0_18 = arith.constant 0 : index
    %29 = vector.load %arg1[%28, %c0_17, %c0_18] : memref<34x22x64xbf16, #tpu.memory_space<vmem>>, vector<16x20x64xbf16>
    %30 = vector.shape_cast %29 : vector<16x20x64xbf16> to vector<320x64xbf16>
    %c3 = arith.constant 3 : index
    %c0_19 = arith.constant 0 : index
    %c0_20 = arith.constant 0 : index
    %31 = vector.load %arg2[%c3, %c0_19, %c0_20] : memref<9x64x128xbf16, #tpu.memory_space<vmem>>, vector<1x64x128xbf16>
    %32 = vector.shape_cast %31 : vector<1x64x128xbf16> to vector<64x128xbf16>
    %cst_21 = arith.constant dense<0.000000e+00> : vector<320x128xf32>
    %33 = tpu.matmul %30, %32, %cst_21 {dimension_numbers = #tpu.dot_dimension_numbers<[1], [0], [0], [1], [0, 0, 1, 1], [], []>} : vector<320x64xbf16>, vector<64x128xbf16>, vector<320x128xf32> -> vector<320x128xf32>
    %34 = arith.addf %26, %33 : vector<320x128xf32>
    %c1_i32_22 = arith.constant 1 : i32
    %35 = arith.addi %1, %c1_i32_22 : i32
    %36 = arith.index_cast %35 : i32 to index
    %c1_23 = arith.constant 1 : index
    %c0_24 = arith.constant 0 : index
    %37 = vector.load %arg1[%36, %c1_23, %c0_24] : memref<34x22x64xbf16, #tpu.memory_space<vmem>>, vector<16x20x64xbf16>
    %38 = vector.shape_cast %37 : vector<16x20x64xbf16> to vector<320x64xbf16>
    %c4 = arith.constant 4 : index
    %c0_25 = arith.constant 0 : index
    %c0_26 = arith.constant 0 : index
    %39 = vector.load %arg2[%c4, %c0_25, %c0_26] : memref<9x64x128xbf16, #tpu.memory_space<vmem>>, vector<1x64x128xbf16>
    %40 = vector.shape_cast %39 : vector<1x64x128xbf16> to vector<64x128xbf16>
    %cst_27 = arith.constant dense<0.000000e+00> : vector<320x128xf32>
    %41 = tpu.matmul %38, %40, %cst_27 {dimension_numbers = #tpu.dot_dimension_numbers<[1], [0], [0], [1], [0, 0, 1, 1], [], []>} : vector<320x64xbf16>, vector<64x128xbf16>, vector<320x128xf32> -> vector<320x128xf32>
    %42 = arith.addf %34, %41 : vector<320x128xf32>
    %c1_i32_28 = arith.constant 1 : i32
    %43 = arith.addi %1, %c1_i32_28 : i32
    %44 = arith.index_cast %43 : i32 to index
    %c2_29 = arith.constant 2 : index
    %c0_30 = arith.constant 0 : index
    %45 = vector.load %arg1[%44, %c2_29, %c0_30] : memref<34x22x64xbf16, #tpu.memory_space<vmem>>, vector<16x20x64xbf16>
    %46 = vector.shape_cast %45 : vector<16x20x64xbf16> to vector<320x64xbf16>
    %c5 = arith.constant 5 : index
    %c0_31 = arith.constant 0 : index
    %c0_32 = arith.constant 0 : index
    %47 = vector.load %arg2[%c5, %c0_31, %c0_32] : memref<9x64x128xbf16, #tpu.memory_space<vmem>>, vector<1x64x128xbf16>
    %48 = vector.shape_cast %47 : vector<1x64x128xbf16> to vector<64x128xbf16>
    %cst_33 = arith.constant dense<0.000000e+00> : vector<320x128xf32>
    %49 = tpu.matmul %46, %48, %cst_33 {dimension_numbers = #tpu.dot_dimension_numbers<[1], [0], [0], [1], [0, 0, 1, 1], [], []>} : vector<320x64xbf16>, vector<64x128xbf16>, vector<320x128xf32> -> vector<320x128xf32>
    %50 = arith.addf %42, %49 : vector<320x128xf32>
    %c2_i32 = arith.constant 2 : i32
    %51 = arith.addi %1, %c2_i32 : i32
    %52 = arith.index_cast %51 : i32 to index
    %c0_34 = arith.constant 0 : index
    %c0_35 = arith.constant 0 : index
    %53 = vector.load %arg1[%52, %c0_34, %c0_35] : memref<34x22x64xbf16, #tpu.memory_space<vmem>>, vector<16x20x64xbf16>
    %54 = vector.shape_cast %53 : vector<16x20x64xbf16> to vector<320x64xbf16>
    %c6 = arith.constant 6 : index
    %c0_36 = arith.constant 0 : index
    %c0_37 = arith.constant 0 : index
    %55 = vector.load %arg2[%c6, %c0_36, %c0_37] : memref<9x64x128xbf16, #tpu.memory_space<vmem>>, vector<1x64x128xbf16>
    %56 = vector.shape_cast %55 : vector<1x64x128xbf16> to vector<64x128xbf16>
    %cst_38 = arith.constant dense<0.000000e+00> : vector<320x128xf32>
    %57 = tpu.matmul %54, %56, %cst_38 {dimension_numbers = #tpu.dot_dimension_numbers<[1], [0], [0], [1], [0, 0, 1, 1], [], []>} : vector<320x64xbf16>, vector<64x128xbf16>, vector<320x128xf32> -> vector<320x128xf32>
    %58 = arith.addf %50, %57 : vector<320x128xf32>
    %c2_i32_39 = arith.constant 2 : i32
    %59 = arith.addi %1, %c2_i32_39 : i32
    %60 = arith.index_cast %59 : i32 to index
    %c1_40 = arith.constant 1 : index
    %c0_41 = arith.constant 0 : index
    %61 = vector.load %arg1[%60, %c1_40, %c0_41] : memref<34x22x64xbf16, #tpu.memory_space<vmem>>, vector<16x20x64xbf16>
    %62 = vector.shape_cast %61 : vector<16x20x64xbf16> to vector<320x64xbf16>
    %c7 = arith.constant 7 : index
    %c0_42 = arith.constant 0 : index
    %c0_43 = arith.constant 0 : index
    %63 = vector.load %arg2[%c7, %c0_42, %c0_43] : memref<9x64x128xbf16, #tpu.memory_space<vmem>>, vector<1x64x128xbf16>
    %64 = vector.shape_cast %63 : vector<1x64x128xbf16> to vector<64x128xbf16>
    %cst_44 = arith.constant dense<0.000000e+00> : vector<320x128xf32>
    %65 = tpu.matmul %62, %64, %cst_44 {dimension_numbers = #tpu.dot_dimension_numbers<[1], [0], [0], [1], [0, 0, 1, 1], [], []>} : vector<320x64xbf16>, vector<64x128xbf16>, vector<320x128xf32> -> vector<320x128xf32>
    %66 = arith.addf %58, %65 : vector<320x128xf32>
    %c2_i32_45 = arith.constant 2 : i32
    %67 = arith.addi %1, %c2_i32_45 : i32
    %68 = arith.index_cast %67 : i32 to index
    %c2_46 = arith.constant 2 : index
    %c0_47 = arith.constant 0 : index
    %69 = vector.load %arg1[%68, %c2_46, %c0_47] : memref<34x22x64xbf16, #tpu.memory_space<vmem>>, vector<16x20x64xbf16>
    %70 = vector.shape_cast %69 : vector<16x20x64xbf16> to vector<320x64xbf16>
    %c8 = arith.constant 8 : index
    %c0_48 = arith.constant 0 : index
    %c0_49 = arith.constant 0 : index
    %71 = vector.load %arg2[%c8, %c0_48, %c0_49] : memref<9x64x128xbf16, #tpu.memory_space<vmem>>, vector<1x64x128xbf16>
    %72 = vector.shape_cast %71 : vector<1x64x128xbf16> to vector<64x128xbf16>
    %cst_50 = arith.constant dense<0.000000e+00> : vector<320x128xf32>
    %73 = tpu.matmul %70, %72, %cst_50 {dimension_numbers = #tpu.dot_dimension_numbers<[1], [0], [0], [1], [0, 0, 1, 1], [], []>} : vector<320x64xbf16>, vector<64x128xbf16>, vector<320x128xf32> -> vector<320x128xf32>
    %74 = arith.addf %66, %73 : vector<320x128xf32>
    %c0_51 = arith.constant 0 : index
    %c0_52 = arith.constant 0 : index
    %75 = vector.load %arg3[%c0_51, %c0_52] : memref<1x128xf32, #tpu.memory_space<vmem>>, vector<1x128xf32>
    %76 = vector.broadcast %75 : vector<1x128xf32> to vector<320x128xf32>
    %77 = arith.addf %74, %76 : vector<320x128xf32>
    %78 = arith.truncf %77 : vector<320x128xf32> to vector<320x128xbf16>
    %c0_53 = arith.constant 0 : index
    %c0_54 = arith.constant 0 : index
    %79 = vector.load %arg4[%c0_53, %c0_54] : memref<320x128xbf16, #tpu.memory_space<vmem>>, vector<320x128xbf16>
    tpu.vector_store %arg4[%c0_53, %c0_54], %78 {strides = array<i32>} : memref<320x128xbf16, #tpu.memory_space<vmem>>, vector<320x128xbf16>,
    return
  }
  func.func @transform_0(%arg0: i32) -> (i32, i32, i32) {
    %c0_i32 = arith.constant 0 : i32
    %c0_i32_0 = arith.constant 0 : i32
    %c0_i32_1 = arith.constant 0 : i32
    %c0_i32_2 = arith.constant 0 : i32
    return %c0_i32, %c0_i32_0, %c0_i32_1 : i32, i32, i32
  }
  func.func @transform_1(%arg0: i32) -> (i32, i32, i32) {
    %c0_i32 = arith.constant 0 : i32
    %c0_i32_0 = arith.constant 0 : i32
    %c0_i32_1 = arith.constant 0 : i32
    %c0_i32_2 = arith.constant 0 : i32
    return %c0_i32, %c0_i32_0, %c0_i32_1 : i32, i32, i32
  }
  func.func @transform_2(%arg0: i32) -> (i32, i32) {
    %c0_i32 = arith.constant 0 : i32
    %c0_i32_0 = arith.constant 0 : i32
    %c0_i32_1 = arith.constant 0 : i32
    return %c0_i32, %c0_i32_0 : i32, i32
  }
  func.func @transform_3(%arg0: i32) -> (i32, i32) {
    %c0_i32 = arith.constant 0 : i32
    %c0_i32_0 = arith.constant 0 : i32
    return %arg0, %c0_i32 : i32, i32
  }
}

</mosaic_0001>

<bundles_post_ra>
// kernel: tpu_custom_call.1
= control target key start
LH: loop header
LB: loop body
LE: loop exit
PB: predicated region body
PF: predicated region fallthrough
CT: control target
= control target key end

     0   :  { %8 = vsyncpa [#allocation3], 0  ;;  %s19382_s0 = inlined_call_operand.hbm [shape: bf16[34,22,64], index: 0, kind: input, shape index: {}]   ;;  %s19383_s1 = inlined_call_operand.hbm [shape: bf16[9,64,128], index: 1, kind: input, shape index: {}]   ;;  %s19384_s2 = inlined_call_operand.vmem [shape: f32[1,128], index: 2, kind: input, shape index: {}]   ;;  %s19385_s3 = inlined_call_operand.hbm [shape: bf16[640,128], index: 3, kind: output, shape index: {}]  }
   0x1   :  { %9 = vsyncpa [#allocation6], 0 }
   0x2   :  { %10 = vsyncpa [#allocation4], 0 }
   0x3   :  { %12 = vsyncpa [#allocation4 + $0x1], 0  ;;  %s16225_s12 = smov 0   ;;  %s16227_s13 = smov 0  }
   0x4   :  { %s16229_s14 = smov 0   ;;  %s16231_s15 = smov 0  }
   0x5 LB: > { %s16246_s16 = sadd.s32 4294967295, %s16195_s15   ;;  %s13776_s17 = sadd.s32 4294967294, %s16195_s15   ;;  %s16195_s15 = sphi %s16231_s15, %s19452_s15   ;;  %s16191_s14 = sphi %s16229_s14, %s19451_s14   ;;  %s16187_s13 = sphi %s16227_s13, %s19450_s13   ;;  %s16183_s12 = sphi %s16225_s12, %s19449_s12  }
   0x6   : > { %s16250_s18 = sadd.s32 1, %s16195_s15   ;;  %s88_s19 = sadd.s32 1, %s16191_s14 }
   0x7   : > { %s85_s20 = ssub.s32 %s16195_s15, %s16250_s18  ;;  %p98_p0 = scmp.ne.s32.totalorder %s16191_s14, %s16187_s13 }
   0x8   : > { %p86_p1 = scmp.eq.s32.totalorder %s85_s20, 0  ;;  %p99_p2 = scmp.eq.s32.totalorder %s16246_s16, 1 }
   0x9   : > { %p104_p3 = scmp.ne.s32.totalorder %s16187_s13, %s16183_s12  ;;  %p105_p4 = scmp.eq.s32.totalorder %s13776_s17, 1 }
   0xa   : > { %s16261_s21 = scalar_select %p86_p1, %s16191_s14, %s88_s19  }
   0xb   : > { %p16263_p5 = por %p99_p2, %p98_p0  ;;  %p16267_p6 = por %p105_p4, %p104_p3 }
   0xc   : > { %p13777_p7 = scmp.ge.s32.totalorder %s16195_s15, 1  ;;  %p112_p8 = scmp.lt.s32.totalorder %s16195_s15, 3 }
   0xd   : > { %s19404_s22 = scalar_select %p16263_p5, 1, 0 }
   0xe   : > { %s19405_s23 = scalar_select %p16267_p6, 1, 0 }
   0xf   : > { %p19386_p9 = scmp.eq.s32.totalorder %s16246_s16, 0  ;;  %p16274_p10 = pnand %p13777_p7, %p112_p8 }
  0x10   : > { %s16197_s25 = smov [#allocation2]   ;;  %s16198_s28 = smov [#allocation5]  }
  0x11   : > { %s19406_s24 = scalar_select %p16274_p10, 1, 0 }
  0x12   : > { %s124_s26 = sshll.u32 %s16197_s25, 4  ;;  %p15934_p11 = pneg %p16274_p10  ;;  %s125_s26 = int_to_ptr.vmem [resolvable:$true] %s124_s26 }
  0x13   : > { %s137_s29 = sshll.u32 %s16198_s28, 4  ;;  %s16069_s5 = scalar_lea.hbm %s19382_s0, 6528  ;;  %s16286_s29 = int_to_ptr.vmem [resolvable:$true] %s137_s29 }
  0x14   : > { %p16282_p12 = pnand %p19386_p9, %p15934_p11  ;;  %p16070_p13 = scmp.ne.s32.totalorder %s19382_s0, %s16069_s5 }
  0x15   : > { %p16076_p3 = scmp.lt.u32.totalorder %s16069_s5, %s19382_s0 }
  0x16   : > { %p16071_p0 = pneg %p16282_p12 }
  0x18   : > { %p16072_p1 = pnand %p16071_p0, %p16070_p13 }
  0x1a   : > { %p16073_p2 = pneg %p16072_p1 }
  0x1c   : > { %p16078_p4 = pnand %p16076_p3, %p16073_p2 }
  0x1e   : > { %16081 = shalt.err (!%p16078_p4)
}
  0x1f   : > { %s16082_s10 = scalar_lea.vmem %s125_s26, 6528  ;;  %p16090_p9 = scmp.lt.s32.totalorder %s125_s26, %s125_s26 }
  0x20   : > { %p16083_p7 = scmp.ne.s32.totalorder %s125_s26, %s16082_s10  ;;  %p16091_p6 = scmp.lt.s32.totalorder %s16082_s10, %s16082_s10 }
  0x22   : > { %p16085_p8 = pnand %p16083_p7, %p16071_p0  ;;  %p16092_p5 = por %p16091_p6, %p16090_p9 }
  0x24   : > { %p16086_p11 = pneg %p16085_p8 }
  0x26   : > { %p16093_p10 = pnand %p16092_p5, %p16086_p11 }
  0x28   : > { %16096 = shalt.err (!%p16093_p10)
}
  0x29   : > { %s16199_s11 = smov 64   ;;  %s16200_s17 = smov 4  }
  0x2a   : > { %15937 = dma.hbm_to_vmem [thread:$0]  (!%p16282_p12), %s19382_s0, 6528, %s125_s26, [#allocation3], %s16199_s11, %s16199_s11, %s16200_s17  }
  0x2b   : > { %s16097_s30 = scalar_lea.hbm %s19383_s1, 4608 }
  0x2c   : > { %p16098_p13 = scmp.ne.s32.totalorder %s19383_s1, %s16097_s30  ;;  %p16104_p9 = scmp.lt.u32.totalorder %s16097_s30, %s19383_s1 }
  0x2e   : > { %p16100_p5 = pnand %p16098_p13, %p16071_p0 }
  0x30   : > { %p16101_p6 = pneg %p16100_p5 }
  0x32   : > { %p16106_p10 = pnand %p16104_p9, %p16101_p6 }
  0x34   : > { %16109 = shalt.err (!%p16106_p10)
}
  0x35   : > { %s16110_s26 = scalar_lea.vmem %s16286_s29, 4608  ;;  %p16118_p4 = scmp.lt.s32.totalorder %s16286_s29, %s16286_s29 }
  0x36   : > { %p16111_p1 = scmp.ne.s32.totalorder %s16286_s29, %s16110_s26  ;;  %p16119_p7 = scmp.lt.s32.totalorder %s16110_s26, %s16110_s26 }
  0x38   : > { %p16113_p2 = pnand %p16111_p1, %p16071_p0  ;;  %p16120_p8 = por %p16119_p7, %p16118_p4 }
  0x3a   : > { %p16114_p3 = pneg %p16113_p2 }
  0x3c   : > { %p16121_p11 = pnand %p16120_p8, %p16114_p3 }
  0x3e   : > { %16124 = shalt.err (!%p16121_p11)
}
  0x3f   : > { %15940 = dma.hbm_to_vmem [thread:$0]  (!%p16282_p12), %s19383_s1, 4608, %s16286_s29, [#allocation6], %s16199_s11, %s16199_s11, %s16200_s17  }
  0x40   : > { %p19408_p13 = scmp.ne.s32.totalorder %s19406_s24, 0 }
  0x42   : > { %156 = sbr.rel (%p19408_p13) target bundleno = 1173 (0x495), region = 32 }
  0x49   : > { %p19409_p5 = scmp.eq.s32.totalorder %s16246_s16, 0 }
  0x4b   : > { %16170 = dma.done.wait (%p19409_p5), [#allocation3], 6528   ;;  %p19410_p0 = pmov %p19409_p5 }
  0x4d   : > { %16172 = vsyncadd (%p19410_p0), [#allocation3], 4294960768  ;;  %p19411_p6 = pmov %p19410_p0 }
  0x4e   : > { %p19412_p9 = pmov %p19410_p0 }
  0x4f   : > { %16174 = dma.done.wait (%p19411_p6), [#allocation6], 4608  }
  0x50   : > { %16176 = vsyncadd (%p19412_p9), [#allocation6], 4294962688  ;;  %vm817_vm0 = vsmask.f32 1280  ;;  %vm818_vm1 = vsmask.f32 3336  ;;  %v1702_v4 = vlaneseq }
  0x51   : > { %v15989_v0 = vld [vmem:[#allocation5 + $0x20] sm:$0xff]   ;;  %vm820_vm2 = vsmask.f32 5392  ;;  %s14786_s24 = smul.u32 192, %s16246_s16  ;;  %v15991_v2 = vld [vmem:[#allocation5 + $0x28] sm:$0xff]   ;;  %v15993_v5 = vld [vmem:[#allocation5 + $0x30] sm:$0xff]  }
  0x52   : > { %v15990_v1 = vld [vmem:[#allocation5 + $0x80] sm:$0xff]   ;;  %15163 = vmatprep.subr.bf16.mxu1 %v15989_v0  ;;  %v15992_v3 = vld [vmem:[#allocation5 + $0x88] sm:$0xff]   ;;  %vm822_vm3 = vsmask.f32 7448  ;;  %v15994_v6 = vld [vmem:[#allocation5 + $0x90] sm:$0xff]   ;;  %v1703_v11 = vshrl.u32 %v1702_v4, 7 }
  0x53   : > { %15355 = vmatprep.subr.bf16.mxu0 %v15990_v1  ;;  %15164 = vmatpush3.bf16.msra.mxu1 %v15989_v0  ;;  %v15995_v7 = vld [vmem:[#allocation5 + $0x38] sm:$0xff]   ;;  %v16201_v8 = vmov 1983009808   ;;  %s16346_s27 = scalar_lea.vmem [#allocation2], %s14786_s24  ;;  %vm819_vm4 = vmor %vm817_vm0, %vm818_vm1  ;;  %v16363_v27 = vld [vmem:[#allocation5] sm:$0xff]   ;;  %v19415_v37 = vmov 0 }
  0x54   : > { %15356 = vmatpush3.bf16.msra.mxu0 %v15990_v1  ;;  %15165 = vmatprep.subr.bf16.mxu1 %v15991_v2  ;;  %v1700_v9 = vunpack.c.l.s4 %v16201_v8  ;;  %v15996_v10 = vld [vmem:[#allocation5 + $0x98] sm:$0xff]   ;;  %v13786_v12 = vld.sshfl [vmem:[%s16346_s27] sm:$0x33 pattern:$0x76325410]  ;;  %vm16358_vm5 = vmor %vm819_vm4, %vm820_vm2  ;;  %vm2061_vm7 = vcmask 523264  }
  0x55   : > { %15357 = vmatprep.subr.bf16.mxu0 %v15992_v3  ;;  %v13787_v13 = vld.sshfl [vmem:[%s16346_s27 + $0x4] sm:$0x33 pattern:$0x76325410]  ;;  %v16352_v14 = vcombine.high %v13786_v12, %v13786_v12  ;;  %v825_v15 = vshrl.u32 %v13786_v12, 16  ;;  %v828_v16 = vshll.u32 %v13786_v12, 16  ;;  %vm16373_vm6 = vmor %vm16358_vm5, %vm822_vm3 }
  0x56   : > { %v16354_v17 = vcombine.high %v13787_v13, %v13787_v13  ;;  %v13834_v18 = vld.sshfl [vmem:[%s16346_s27 + $0x8] sm:$0x13 pattern:$0x76325410]  ;;  %v844_v19 = vshll.u32 %v13787_v13, 16  ;;  %v848_v20 = vshrl.u32 %v13787_v13, 16  ;;  %v1701_v21 = vunpack.c.0.s8 %v1700_v9 }
  0x57   : > { %15166 = vmatpush3.bf16.msra.mxu1 %v15991_v2  ;;  %v696_v22 = vcombine.high %v13834_v18, %v13834_v18  ;;  %v827_v24 = vrot.slane %v825_v15, 6  ;;  %v830_v25 = vrot.slane %v828_v16, 7  ;;  %v834_v26 = vshll.u32 %v16352_v14, 16  ;;  %v16368_v36 = vld [vmem:[#allocation5 + $0xa0] sm:$0xff]   ;;  %s176_s29 = sand.u32 1, %s16187_s13   ;;  %s14827_s20 = smul.u32 2560, %s16246_s16 }
  0x58   : > { %15358 = vmatpush3.bf16.msra.mxu0 %v15992_v3  ;;  %15167 = vmatprep.subr.bf16.mxu1 %v15993_v5  ;;  %v838_v28 = vshrl.u32 %v16352_v14, 16  ;;  %v846_v29 = vrot.slane %v844_v19, 7  ;;  %v850_v30 = vrot.slane %v848_v20, 6  ;;  %v854_v31 = vshll.u32 %v16354_v17, 16  ;;  %s15923_s17 = smul.u32 160, %s176_s29  ;;  %s19341_s16 = scalar_lea.sflag [#allocation4], %s176_s29 }
  0x59   : > { %15359 = vmatprep.subr.bf16.mxu0 %v15994_v6  ;;  %v831_v32 = vor.u32 %v830_v25, %v827_v24  ;;  %v836_v33 = vrot.slane %v834_v26, 7  ;;  %v858_v34 = vshrl.u32 %v16354_v17, 16  ;;  %v864_v35 = vshll.u32 %v13834_v18, 16  ;;  %s19333_s4 = scalar_lea.hbm %s19385_s3, %s14827_s20  ;;  %p19447_p10 = scmp.ne.s32.totalorder %s19404_s22, 0 }
  0x5a   : > { %v19416_v37 = vsel %vm16373_vm6, 4294967295, %v19415_v37  ;;  %v840_v38 = vrot.slane %v838_v28, 6  ;;  %v851_v39 = vor.u32 %v850_v30, %v846_v29  ;;  %v856_v40 = vrot.slane %v854_v31, 7  ;;  %s19256_s19 = scalar_lea.vmem [#allocation7], %s15923_s17  ;;  %s16202_s6 = smov [#allocation7]  }
  0x5b   : > { %15168 = vmatpush3.bf16.msra.mxu1 %v15993_v5  ;;  %19417 = vst [vmem:[#allocation11_spill] sm:$0xff] %v19416_v37  ;;  %v868_v41 = vshrl.u32 %v13834_v18, 16  ;;  %v832_v42 = vrot.slane %v831_v32, 2  ;;  %v860_v43 = vrot.slane %v858_v34, 6  ;;  %v866_v44 = vrot.slane %v864_v35, 7  ;;  %s13694_s25 = sshll.u32 %s19256_s19, 4  ;;  %s19335_s25 = int_to_ptr.vmem [resolvable:$true] %s13694_s25 }
  0x5c   : > { %15360 = vmatpush3.bf16.msra.mxu0 %v15994_v6  ;;  %15169 = vmatprep.subr.bf16.mxu1 %v15995_v7  ;;  %v16377_v45 = vshll.u32 %v696_v22, 16  ;;  %v841_v46 = vor.u32 %v840_v38, %v836_v33  ;;  %v852_v47 = vrot.slane %v851_v39, 2  ;;  %v16379_v49 = vsub.s32 %v1701_v21, %v1703_v11  ;;  %v14156_v50 = vld.sshfl [vmem:[%s16346_s27 + $0xc] sm:$0x33 pattern:$0x76325410] }
  0x5d   : > { %15361 = vmatprep.subr.bf16.mxu0 %v15996_v10  ;;  %v870_v48 = vrot.slane %v868_v41, 6  ;;  %v837_v51 = vsel %vm16373_vm6, %v832_v42, %v836_v33  ;;  %v861_v52 = vor.u32 %v860_v43, %v856_v40  ;;  %v14157_v53 = vld.sshfl [vmem:[%s16346_s27 + $0x10] sm:$0x33 pattern:$0x76325410]  ;;  %v16386_v54 = vcombine.high %v14156_v50, %v14156_v50  ;;  %s16125_s5 = scalar_lea.vmem %s19335_s25, 2560 }
  0x5e   : > { %v5956_v55 = vshrl.u32 %v14156_v50, 16  ;;  %v842_v56 = vrot.slane %v841_v46, 2  ;;  %v857_v57 = vsel %vm16373_vm6, %v852_v47, %v856_v40  ;;  %v14158_v59 = vld.sshfl [vmem:[%s16346_s27 + $0x14] sm:$0x13 pattern:$0x76325410]  ;;  %v16392_v60 = vcombine.high %v14157_v53, %v14157_v53  ;;  %p16126_p12 = scmp.ne.s32.totalorder %s19335_s25, %s16125_s5 }
  0x5f   : > { %15170 = vmatpush3.bf16.msra.mxu1 %v15995_v7  ;;  %v871_v58 = vor.u32 %v870_v48, %v866_v44  ;;  %v862_v61 = vrot.slane %v861_v52, 2  ;;  %v5594_v62 = vcombine.high %v14158_v59, %v14158_v59  ;;  %v5959_v0 = vshll.u32 %v14156_v50, 16  ;;  %v14159_v32 = vld.sshfl [vmem:[%s16346_s27 + $0x18] sm:$0x33 pattern:$0x76325410] }
  0x60   : > { %15362 = vmatpush3.bf16.msra.mxu0 %v15996_v10  ;;  %15211 = vmatprep.subr.bf16.mxu1 %v16363_v27  ;;  %v5958_v63 = vrot.slane %v5956_v55, 6  ;;  %v847_v1 = vsel %vm16373_vm6, %v842_v56, %v846_v29  ;;  %v5965_v3 = vshll.u32 %v16386_v54, 16  ;;  %v5969_v4 = vshrl.u32 %v16386_v54, 16  ;;  %p16127_p1 = pnand %p16126_p12, %p19447_p10  ;;  %s16129_s7 = sshll.u32 %s16202_s6, 4  ;;  %s16130_s7 = int_to_ptr.vmem [resolvable:$false] %s16129_s7 }
  0x61   : > { %15403 = vmatprep.subr.bf16.mxu0 %v16368_v36  ;;  %v872_v2 = vrot.slane %v871_v58, 2  ;;  %v867_v5 = vsel %vm16373_vm6, %v862_v61, %v866_v44  ;;  %v1697_v6 = vcombine.low %v837_v51, %v847_v1  ;;  %v5961_v7 = vrot.slane %v5959_v0, 7  ;;  %v14160_v43 = vld.sshfl [vmem:[%s16346_s27 + $0x1c] sm:$0x33 pattern:$0x76325410]  ;;  %p16132_p3 = scmp.lt.s32.totalorder %s19335_s25, %s16130_s7 }
  0x62   : > { %v5975_v8 = vshll.u32 %v14157_v53, 16  ;;  %v1698_v9 = vcombine.low %v857_v57, %v867_v5  ;;  %v5967_v10 = vrot.slane %v5965_v3, 7  ;;  %v5971_v11 = vrot.slane %v5969_v4, 6  ;;  %v16000_v3 = vld [vmem:[#allocation5 + $0x8] sm:$0xff]   ;;  %p16128_p2 = pneg %p16127_p1  ;;  %s16131_s26 = scalar_lea.vmem %s16130_s7, 5120 }
  0x63   : > { %v5979_v12 = vshrl.u32 %v14157_v53, 16  ;;  %v1705_v13 = vrot.slane %v1697_v6, %v16379_v49  ;;  %v5962_v15 = vor.u32 %v5961_v7, %v5958_v63  ;;  %v5985_v18 = vshll.u32 %v16392_v60, 16  ;;  %v17119_v37 = vld.sshfl [vmem:[%s16346_s27 + $0x90] sm:$0x32 pattern:$0x76325410]  ;;  %p16133_p4 = scmp.lt.s32.totalorder %s16131_s26, %s16125_s5 }
  0x64   : > { %v5977_v16 = vrot.slane %v5975_v8, 7  ;;  %v1712_v19 = vrot.slane %v1698_v9, %v16379_v49  ;;  %v5972_v20 = vor.u32 %v5971_v11, %v5967_v10  ;;  %v5989_v22 = vshrl.u32 %v16392_v60, 16 }
  0x65   : > { %v5981_v21 = vrot.slane %v5979_v12, 6  ;;  %v5963_v23 = vrot.slane %v5962_v15, 2  ;;  %v5987_v24 = vrot.slane %v5985_v18, 7  ;;  %v5995_v25 = vshll.u32 %v14158_v59, 16  ;;  %p16134_p7 = por %p16133_p4, %p16132_p3 }
  0x66   : > { %v5999_v26 = vshrl.u32 %v14158_v59, 16  ;;  %v1713_v28 = vcombine.low %v1705_v13, %v1712_v19  ;;  %v5973_v29 = vrot.slane %v5972_v20, 2  ;;  %v5991_v31 = vrot.slane %v5989_v22, 6 }
  0x67   : > { %v5982_v30 = vor.u32 %v5981_v21, %v5977_v16  ;;  %v5968_v33 = vsel %vm16373_vm6, %v5963_v23, %v5967_v10  ;;  %v5997_v34 = vrot.slane %v5995_v25, 7  ;;  %v6005_v38 = vshll.u32 %v5594_v62, 16  ;;  %v14161_v12 = vld.sshfl [vmem:[%s16346_s27 + $0x20] sm:$0x13 pattern:$0x76325410]  ;;  %p16135_p8 = pnand %p16134_p7, %p16128_p2 }
  0x68   : > { %v6001_v35 = vrot.slane %v5999_v26, 6  ;;  %15171 = vmatprep.mubr.msk.bf16.mxu1 %vm2061_vm7, %v1713_v28  ;;  %v5978_v39 = vsel %vm16373_vm6, %v5973_v29, %v5977_v16  ;;  %v5992_v41 = vor.u32 %v5991_v31, %v5987_v24  ;;  %v876_v42 = vrot.slane %v16377_v45, 7  ;;  %v14162_v19 = vld.sshfl [vmem:[%s16346_s27 + $0x24] sm:$0x33 pattern:$0x76325410] }
  0x69   : > { %v5983_v40 = vrot.slane %v5982_v30, 2  ;;  %v6828_v46 = vcombine.low %v5968_v33, %v5978_v39  ;;  %v16412_v47 = vcombine.high %v14159_v32, %v14159_v32  ;;  %v16414_v48 = vcombine.high %v14160_v43, %v14160_v43 }
  0x6a   : > { %v6002_v44 = vor.u32 %v6001_v35, %v5997_v34  ;;  %v5993_v51 = vrot.slane %v5992_v41, 2  ;;  %v877_v52 = vsel %vm16373_vm6, %v872_v2, %v876_v42  ;;  %v6007_v53 = vrot.slane %v6005_v38, 7 }
  0x6b   : > { %v5988_v50 = vsel %vm16373_vm6, %v5983_v40, %v5987_v24  ;;  %v6836_v56 = vrot.slane %v6828_v46, %v16379_v49  ;;  %v1714_v57 = vcombine.low %v877_v52, %v5968_v33  ;;  %v6010_v59 = vshrl.u32 %v14159_v32, 16  ;;  %v16003_v33 = vld [vmem:[#allocation5 + $0x10] sm:$0xff]  }
  0x6c   : > { %v6003_v55 = vrot.slane %v6002_v44, 2  ;;  %v1715_v45 = vcombine.low %v5978_v39, %v5988_v50  ;;  %v5998_v58 = vsel %vm16373_vm6, %v5993_v51, %v5997_v34  ;;  %v6013_v61 = vshll.u32 %v14159_v32, 16 }
  0x6d   : > { %v6019_v62 = vshll.u32 %v16412_v47, 16  ;;  %v6829_v63 = vcombine.low %v5988_v50, %v5998_v58  ;;  %v1722_v0 = vrot.slane %v1714_v57, %v16379_v49  ;;  %v6012_v4 = vrot.slane %v6010_v59, 6  ;;  %v14163_v57 = vld.sshfl [vmem:[%s16346_s27 + $0x28] sm:$0x33 pattern:$0x76325410] }
  0x6e   : > { %v1729_v1 = vrot.slane %v1715_v45, %v16379_v49  ;;  %v6008_v2 = vsel %vm16373_vm6, %v6003_v55, %v6007_v53  ;;  %v6015_v5 = vrot.slane %v6013_v61, 7  ;;  %v6023_v7 = vshrl.u32 %v16412_v47, 16 }
  0x6f   : > { %v6021_v6 = vrot.slane %v6019_v62, 7  ;;  %v6843_v8 = vrot.slane %v6829_v63, %v16379_v49  ;;  %v6029_v10 = vshll.u32 %v14160_v43, 16  ;;  %v6033_v11 = vshrl.u32 %v14160_v43, 16 }
  0x70   : > { %v1730_v9 = vcombine.low %v1722_v0, %v1729_v1  ;;  %v6016_v13 = vor.u32 %v6015_v5, %v6012_v4  ;;  %v6025_v15 = vrot.slane %v6023_v7, 6  ;;  %v6039_v16 = vshll.u32 %v16414_v48, 16 }
  0x71   : > { %v1731_v18 = vcombine.low %v5998_v58, %v6008_v2  ;;  %v6844_v20 = vcombine.low %v6836_v56, %v6843_v8  ;;  %v6031_v21 = vrot.slane %v6029_v10, 7  ;;  %v6035_v22 = vrot.slane %v6033_v11, 6 }
  0x72   : > { %15172 = vmatmul.mubr.msk.bf16.vlgmr.msra.gmra.mrb[0].mxu1 %vm2061_vm7, %v1730_v9  ;;  %v5618_v23 = vcombine.high %v14161_v12, %v14161_v12  ;;  %v6017_v24 = vrot.slane %v6016_v13, 2  ;;  %v6026_v25 = vor.u32 %v6025_v15, %v6021_v6  ;;  %v6041_v26 = vrot.slane %v6039_v16, 7  ;;  %v14164_v13 = vld.sshfl [vmem:[%s16346_s27 + $0x2c] sm:$0x13 pattern:$0x76325410] }
  0x73   : > { %15212 = vmatpush3.bf16.msra.mxu1 %v16363_v27  ;;  %v1739_v28 = vrot.slane %v1731_v18, %v16379_v49  ;;  %15363 = vmatprep.mubr.msk.bf16.mxu0 %vm2061_vm7, %v6844_v20  ;;  %v6036_v29 = vor.u32 %v6035_v22, %v6031_v21  ;;  %v16437_v30 = vcombine.high %v14162_v19, %v14162_v19  ;;  %v6043_v31 = vshrl.u32 %v16414_v48, 16  ;;  %v15999_v15 = vld [vmem:[#allocation5 + $0xa8] sm:$0xff]   ;;  %v14165_v20 = vld.sshfl [vmem:[%s16346_s27 + $0x30] sm:$0x33 pattern:$0x76325410] }
  0x74   : > { %v6049_v32 = vshll.u32 %v14161_v12, 16  ;;  %15213 = vmatprep.subr.bf16.mxu1 %v16000_v3  ;;  %v6022_v34 = vsel %vm16373_vm6, %v6017_v24, %v6021_v6  ;;  %v6027_v35 = vrot.slane %v6026_v25, 2  ;;  %v6053_v38 = vshrl.u32 %v14161_v12, 16 }
  0x75   : > { %v6059_v39 = vshll.u32 %v5618_v23, 16  ;;  %v6037_v27 = vrot.slane %v6036_v29, 2  ;;  %v6845_v40 = vcombine.low %v6008_v2, %v6022_v34  ;;  %v6045_v41 = vrot.slane %v6043_v31, 6 }
  0x76   : > { %v6051_v42 = vrot.slane %v6049_v32, 7  ;;  %v6032_v43 = vsel %vm16373_vm6, %v6027_v35, %v6031_v21  ;;  %v6055_v44 = vrot.slane %v6053_v38, 6  ;;  %v6064_v50 = vshrl.u32 %v14162_v19, 16  ;;  %v16001_v38 = vld [vmem:[#allocation5 + $0xb0] sm:$0xff]  }
  0x77   : > { %v6061_v46 = vrot.slane %v6059_v39, 7  ;;  %15214 = vmatpush3.bf16.msra.mxu1 %v16000_v3  ;;  %v6042_v51 = vsel %vm16373_vm6, %v6037_v27, %v6041_v26  ;;  %v6853_v52 = vrot.slane %v6845_v40, %v16379_v49  ;;  %v1732_v53 = vcombine.low %v6022_v34, %v6032_v43 }
  0x78   : > { %v6046_v55 = vor.u32 %v6045_v41, %v6041_v26  ;;  %15215 = vmatprep.subr.bf16.mxu1 %v16003_v33  ;;  %v6846_v56 = vcombine.low %v6032_v43, %v6042_v51  ;;  %v6056_v45 = vor.u32 %v6055_v44, %v6051_v42  ;;  %v6066_v58 = vrot.slane %v6064_v50, 6 }
  0x79   : > { %v6067_v59 = vshll.u32 %v14162_v19, 16  ;;  %v1746_v61 = vrot.slane %v1732_v53, %v16379_v49  ;;  %v6073_v63 = vshll.u32 %v16437_v30, 16  ;;  %v6077_v0 = vshrl.u32 %v16437_v30, 16  ;;  %v16002_v53 = vld [vmem:[#allocation5 + $0xb8] sm:$0xff]  }
  0x7a   : > { %v6047_v62 = vrot.slane %v6046_v55, 2  ;;  %v6860_v1 = vrot.slane %v6846_v56, %v16379_v49  ;;  %v6057_v2 = vrot.slane %v6056_v45, 2  ;;  %v6083_v4 = vshll.u32 %v14163_v57, 16 }
  0x7b   : > { %v6069_v3 = vrot.slane %v6067_v59, 7  ;;  %15216 = vmatpush3.bf16.msra.mxu1 %v16003_v33  ;;  %v1747_v5 = vcombine.low %v1739_v28, %v1746_v61  ;;  %v6075_v7 = vrot.slane %v6073_v63, 7  ;;  %v6079_v8 = vrot.slane %v6077_v0, 6 }
  0x7c   : > { %v6052_v6 = vsel %vm16373_vm6, %v6047_v62, %v6051_v42  ;;  %v6861_v9 = vcombine.low %v6853_v52, %v6860_v1  ;;  %v6062_v10 = vsel %vm16373_vm6, %v6057_v2, %v6061_v46  ;;  %v6085_v12 = vrot.slane %v6083_v4, 7 }
  0x7d   : > { %v6070_v11 = vor.u32 %v6069_v3, %v6066_v58  ;;  %15175 = vmatprep.mubr.msk.bf16.mxu1 %vm2061_vm7, %v1747_v5  ;;  %v6080_v16 = vor.u32 %v6079_v8, %v6075_v7  ;;  %v6862_v18 = vcombine.low %v6052_v6, %v6062_v10  ;;  %v1748_v19 = vcombine.low %v6042_v51, %v6052_v6  ;;  %v14166_v58 = vld.sshfl [vmem:[%s16346_s27 + $0x34] sm:$0x33 pattern:$0x76325410] }
  0x7e   : > { %v16459_v21 = vcombine.high %v14163_v57, %v14163_v57  ;;  %15364 = vmatmul.mubr.msk.bf16.vlgmr.msra.gmra.mrb[0].mxu0 %vm2061_vm7, %v6861_v9  ;;  %v5642_v23 = vcombine.high %v14164_v13, %v14164_v13  ;;  %v16462_v24 = vcombine.high %v14165_v20, %v14165_v20  ;;  %v6087_v25 = vshrl.u32 %v14163_v57, 16 }
  0x7f   : > { %v6071_v22 = vrot.slane %v6070_v11, 2  ;;  %15404 = vmatpush3.bf16.msra.mxu0 %v16368_v36  ;;  %v6081_v26 = vrot.slane %v6080_v16, 2  ;;  %v6870_v28 = vrot.slane %v6862_v18, %v16379_v49  ;;  %v1756_v29 = vrot.slane %v1748_v19, %v16379_v49 }
  0x80   : > { %v6093_v31 = vshll.u32 %v16459_v21, 16  ;;  %v6089_v33 = vrot.slane %v6087_v25, 6  ;;  %v6097_v34 = vshrl.u32 %v16459_v21, 16  ;;  %v6103_v35 = vshll.u32 %v14164_v13, 16  ;;  %15405 = vmatprep.subr.bf16.mxu0 %v15999_v15 }
  0x81   : > { %v6076_v32 = vsel %vm16373_vm6, %v6071_v22, %v6075_v7  ;;  %v6086_v39 = vsel %vm16373_vm6, %v6081_v26, %v6085_v12  ;;  %v6107_v40 = vshrl.u32 %v14164_v13, 16  ;;  %v6113_v51 = vshll.u32 %v5642_v23, 16  ;;  %v14167_v7 = vld.sshfl [vmem:[%s16346_s27 + $0x38] sm:$0x13 pattern:$0x76325410] }
  0x82   : > { %v1749_v36 = vcombine.low %v6062_v10, %v6076_v32  ;;  %v6095_v27 = vrot.slane %v6093_v31, 7  ;;  %v6863_v41 = vcombine.low %v6076_v32, %v6086_v39  ;;  %v6090_v42 = vor.u32 %v6089_v33, %v6085_v12  ;;  %v16487_v13 = vld [vmem:[#allocation5 + $0xc0] sm:$0xff]  }
  0x83   : > { %v6099_v43 = vrot.slane %v6097_v34, 6  ;;  %v6105_v44 = vrot.slane %v6103_v35, 7  ;;  %v6109_v50 = vrot.slane %v6107_v40, 6  ;;  %v6118_v52 = vshrl.u32 %v14165_v20, 16  ;;  %15406 = vmatpush3.bf16.msra.mxu0 %v15999_v15 }
  0x84   : > { %v1763_v46 = vrot.slane %v1749_v36, %v16379_v49  ;;  %v6877_v55 = vrot.slane %v6863_v41, %v16379_v49  ;;  %v6091_v56 = vrot.slane %v6090_v42, 2  ;;  %v6121_v45 = vshll.u32 %v14165_v20, 16  ;;  %15407 = vmatprep.subr.bf16.mxu0 %v16001_v38 }
  0x85   : > { %v6100_v57 = vor.u32 %v6099_v43, %v6095_v27  ;;  %v6110_v61 = vor.u32 %v6109_v50, %v6105_v44  ;;  %v6115_v62 = vrot.slane %v6113_v51, 7  ;;  %v6120_v63 = vrot.slane %v6118_v52, 6 }
  0x86   : > { %v1764_v59 = vcombine.low %v1756_v29, %v1763_v46  ;;  %v6878_v0 = vcombine.low %v6870_v28, %v6877_v55  ;;  %v6096_v1 = vsel %vm16373_vm6, %v6091_v56, %v6095_v27  ;;  %v6123_v3 = vrot.slane %v6121_v45, 7 }
  0x87   : > { %v6101_v2 = vrot.slane %v6100_v57, 2  ;;  %v6111_v4 = vrot.slane %v6110_v61, 2  ;;  %v6127_v5 = vshll.u32 %v16462_v24, 16  ;;  %v1765_v6 = vcombine.low %v6086_v39, %v6096_v1  ;;  %15408 = vmatpush3.bf16.msra.mxu0 %v16001_v38 }
  0x88   : > { %15176 = vmatmul.mubr.msk.bf16.gmra.mrb[4].mxu1 %vm2061_vm7, %v1764_v59  ;;  %v16481_v8 = vcombine.high %v14166_v58, %v14166_v58  ;;  %15367 = vmatprep.mubr.msk.bf16.mxu0 %vm2061_vm7, %v6878_v0  ;;  %v6124_v10 = vor.u32 %v6123_v3, %v6120_v63  ;;  %v5666_v11 = vcombine.high %v14167_v7, %v14167_v7  ;;  %v6131_v12 = vshrl.u32 %v16462_v24, 16  ;;  %v14168_v38 = vld.sshfl [vmem:[%s16346_s27 + $0x3c] sm:$0x33 pattern:$0x76325410] }
  0x89   : > { %v6106_v9 = vsel %vm16373_vm6, %v6101_v2, %v6105_v44  ;;  %15409 = vmatprep.subr.bf16.mxu0 %v16002_v53  ;;  %v6116_v15 = vsel %vm16373_vm6, %v6111_v4, %v6115_v62  ;;  %v6129_v16 = vrot.slane %v6127_v5, 7  ;;  %v1773_v19 = vrot.slane %v1765_v6, %v16379_v49 }
  0x8a   : > { %v6879_v18 = vcombine.low %v6096_v1, %v6106_v9  ;;  %v6125_v20 = vrot.slane %v6124_v10, 2  ;;  %v1766_v22 = vcombine.low %v6106_v9, %v6116_v15  ;;  %v6133_v23 = vrot.slane %v6131_v12, 6 }
  0x8b   : > { %v6137_v25 = vshll.u32 %v14166_v58, 16  ;;  %v6141_v28 = vshrl.u32 %v14166_v58, 16  ;;  %v6147_v29 = vshll.u32 %v16481_v8, 16  ;;  %v6151_v31 = vshrl.u32 %v16481_v8, 16  ;;  %15410 = vmatpush3.bf16.msra.mxu0 %v16002_v53 }
  0x8c   : > { %v6887_v26 = vrot.slane %v6879_v18, %v16379_v49  ;;  %v6130_v32 = vsel %vm16373_vm6, %v6125_v20, %v6129_v16  ;;  %v1780_v33 = vrot.slane %v1766_v22, %v16379_v49  ;;  %v6134_v34 = vor.u32 %v6133_v23, %v6129_v16  ;;  %15451 = vmatprep.subr.bf16.mxu0 %v16487_v13  ;;  %v14169_v53 = vld.sshfl [vmem:[%s16346_s27 + $0x40] sm:$0x33 pattern:$0x76325410] }
  0x8d   : > { %v6139_v35 = vrot.slane %v6137_v25, 7  ;;  %v6880_v39 = vcombine.low %v6116_v15, %v6130_v32  ;;  %v6143_v36 = vrot.slane %v6141_v28, 6  ;;  %v6149_v27 = vrot.slane %v6147_v29, 7 }
  0x8e   : > { %v6153_v40 = vrot.slane %v6151_v31, 6  ;;  %v1781_v41 = vcombine.low %v1773_v19, %v1780_v33  ;;  %v6135_v42 = vrot.slane %v6134_v34, 2  ;;  %v6157_v43 = vshll.u32 %v14167_v7, 16 }
  0x8f   : > { %v6161_v44 = vshrl.u32 %v14167_v7, 16  ;;  %v6894_v46 = vrot.slane %v6880_v39, %v16379_v49  ;;  %v6144_v50 = vor.u32 %v6143_v36, %v6139_v35  ;;  %v6167_v52 = vshll.u32 %v5666_v11, 16  ;;  %v14170_v23 = vld.sshfl [vmem:[%s16346_s27 + $0x44] sm:$0x13 pattern:$0x76325410] }
  0x90   : > { %v6154_v51 = vor.u32 %v6153_v40, %v6149_v27  ;;  %15179 = vmatprep.mubr.msk.bf16.mxu1 %vm2061_vm7, %v1781_v41  ;;  %v6140_v55 = vsel %vm16373_vm6, %v6135_v42, %v6139_v35  ;;  %v6159_v56 = vrot.slane %v6157_v43, 7  ;;  %v16505_v45 = vcombine.high %v14168_v38, %v14168_v38  ;;  %v16005_v39 = vld [vmem:[#allocation5 + $0x18] sm:$0xff]   ;;  %v14172_v42 = vld.sshfl [vmem:[%s16346_s27 + $0x4c] sm:$0x33 pattern:$0x76325410] }
  0x91   : > { %v6163_v57 = vrot.slane %v6161_v44, 6  ;;  %v6895_v58 = vcombine.low %v6887_v26, %v6894_v46  ;;  %v6145_v59 = vrot.slane %v6144_v50, 2  ;;  %v6169_v62 = vrot.slane %v6167_v52, 7  ;;  %15217 = vmatprep.subr.bf16.mxu1 %v16005_v39 }
  0x92   : > { %v6155_v61 = vrot.slane %v6154_v51, 2  ;;  %v1782_v0 = vcombine.low %v6130_v32, %v6140_v55  ;;  %v16507_v1 = vcombine.high %v14169_v53, %v14169_v53  ;;  %v6172_v2 = vshrl.u32 %v14168_v38, 16  ;;  %v14171_v32 = vld.sshfl [vmem:[%s16346_s27 + $0x48] sm:$0x33 pattern:$0x76325410]  ;;  %15218 = vmatpush3.bf16.msra.mxu1 %v16005_v39 }
  0x93   : > { %v6164_v63 = vor.u32 %v6163_v57, %v6159_v56  ;;  %15368 = vmatmul.mubr.msk.bf16.gmra.mrb[4].mxu0 %vm2061_vm7, %v6895_v58  ;;  %v6150_v3 = vsel %vm16373_vm6, %v6145_v59, %v6149_v27  ;;  %v6175_v5 = vshll.u32 %v14168_v38, 16  ;;  %v6181_v6 = vshll.u32 %v16505_v45, 16 }
  0x94   : > { %v6160_v4 = vsel %vm16373_vm6, %v6155_v61, %v6159_v56  ;;  %v6896_v9 = vcombine.low %v6140_v55, %v6150_v3  ;;  %v1790_v11 = vrot.slane %v1782_v0, %v16379_v49  ;;  %v6174_v12 = vrot.slane %v6172_v2, 6 }
  0x95   : > { %v6165_v7 = vrot.slane %v6164_v63, 2  ;;  %v1783_v10 = vcombine.low %v6150_v3, %v6160_v4  ;;  %v6177_v15 = vrot.slane %v6175_v5, 7  ;;  %v6183_v16 = vrot.slane %v6181_v6, 7 }
  0x96   : > { %v6185_v18 = vshrl.u32 %v16505_v45, 16  ;;  %v6904_v20 = vrot.slane %v6896_v9, %v16379_v49  ;;  %v6191_v25 = vshll.u32 %v14169_v53, 16  ;;  %v6195_v31 = vshrl.u32 %v14169_v53, 16 }
  0x97   : > { %v6170_v19 = vsel %vm16373_vm6, %v6165_v7, %v6169_v62  ;;  %v1797_v22 = vrot.slane %v1783_v10, %v16379_v49  ;;  %v6178_v28 = vor.u32 %v6177_v15, %v6174_v12  ;;  %v6201_v35 = vshll.u32 %v16507_v1, 16 }
  0x98   : > { %v6897_v26 = vcombine.low %v6160_v4, %v6170_v19  ;;  %v6187_v29 = vrot.slane %v6185_v18, 6  ;;  %v6193_v34 = vrot.slane %v6191_v25, 7  ;;  %v6205_v38 = vshrl.u32 %v16507_v1, 16 }
  0x99   : > { %v1798_v33 = vcombine.low %v1790_v11, %v1797_v22  ;;  %v6179_v27 = vrot.slane %v6178_v28, 2  ;;  %v6197_v41 = vrot.slane %v6195_v31, 6  ;;  %v6203_v43 = vrot.slane %v6201_v35, 7 }
  0x9a   : > { %v6911_v36 = vrot.slane %v6897_v26, %v16379_v49  ;;  %v6188_v40 = vor.u32 %v6187_v29, %v6183_v16  ;;  %v6207_v44 = vrot.slane %v6205_v38, 6  ;;  %v6211_v46 = vshll.u32 %v14170_v23, 16 }
  0x9b   : > { %15180 = vmatmul.mubr.msk.bf16.gmra.mrb[8].mxu1 %vm2061_vm7, %v1798_v33  ;;  %v5690_v50 = vcombine.high %v14170_v23, %v14170_v23  ;;  %v6184_v52 = vsel %vm16373_vm6, %v6179_v27, %v6183_v16  ;;  %v6198_v55 = vor.u32 %v6197_v41, %v6193_v34  ;;  %v16530_v59 = vcombine.high %v14171_v32, %v14171_v32 }
  0x9c   : > { %v6912_v51 = vcombine.low %v6904_v20, %v6911_v36  ;;  %v6189_v53 = vrot.slane %v6188_v40, 2  ;;  %v6208_v56 = vor.u32 %v6207_v44, %v6203_v43  ;;  %v6213_v57 = vrot.slane %v6211_v46, 7  ;;  %v14173_v44 = vld.sshfl [vmem:[%s16346_s27 + $0x50] sm:$0x13 pattern:$0x76325410] }
  0x9d   : > { %v1799_v58 = vcombine.low %v6170_v19, %v6184_v52  ;;  %v6199_v62 = vrot.slane %v6198_v55, 2  ;;  %v16535_v63 = vcombine.high %v14172_v42, %v14172_v42  ;;  %v6215_v0 = vshrl.u32 %v14170_v23, 16 }
  0x9e   : > { %15371 = vmatprep.mubr.msk.bf16.mxu0 %vm2061_vm7, %v6912_v51  ;;  %v6194_v61 = vsel %vm16373_vm6, %v6189_v53, %v6193_v34  ;;  %v6209_v2 = vrot.slane %v6208_v56, 2  ;;  %v6221_v5 = vshll.u32 %v5690_v50, 16  ;;  %v6226_v9 = vshrl.u32 %v14171_v32, 16 }
  0x9f   : > { %19418 = vst [vmem:[#allocation12_spill] sm:$0xff] %v16535_v63  ;;  %v6913_v3 = vcombine.low %v6184_v52, %v6194_v61  ;;  %v1807_v4 = vrot.slane %v1799_v58, %v16379_v49  ;;  %v6204_v6 = vsel %vm16373_vm6, %v6199_v62, %v6203_v43  ;;  %v6217_v7 = vrot.slane %v6215_v0, 6  ;;  %v14174_v34 = vld.sshfl [vmem:[%s16346_s27 + $0x54] sm:$0x33 pattern:$0x76325410] }
  0xa0   : > { %v6229_v10 = vshll.u32 %v14171_v32, 16  ;;  %v6214_v11 = vsel %vm16373_vm6, %v6209_v2, %v6213_v57  ;;  %v1800_v15 = vcombine.low %v6194_v61, %v6204_v6  ;;  %v6223_v16 = vrot.slane %v6221_v5, 7 }
  0xa1   : > { %v6921_v12 = vrot.slane %v6913_v3, %v16379_v49  ;;  %v6914_v18 = vcombine.low %v6204_v6, %v6214_v11  ;;  %v6218_v19 = vor.u32 %v6217_v7, %v6213_v57  ;;  %v6228_v20 = vrot.slane %v6226_v9, 6 }
  0xa2   : > { %v6231_v22 = vrot.slane %v6229_v10, 7  ;;  %v1814_v23 = vrot.slane %v1800_v15, %v16379_v49  ;;  %v6235_v25 = vshll.u32 %v16530_v59, 16  ;;  %v6239_v26 = vshrl.u32 %v16530_v59, 16 }
  0xa3   : > { %v6245_v28 = vshll.u32 %v14172_v42, 16  ;;  %v6928_v29 = vrot.slane %v6914_v18, %v16379_v49  ;;  %v6219_v31 = vrot.slane %v6218_v19, 2  ;;  %v6249_v33 = vshrl.u32 %v14172_v42, 16 }
  0xa4   : > { %v6232_v32 = vor.u32 %v6231_v22, %v6228_v20  ;;  %v1815_v35 = vcombine.low %v1807_v4, %v1814_v23  ;;  %v6237_v38 = vrot.slane %v6235_v25, 7  ;;  %v6241_v39 = vrot.slane %v6239_v26, 6 }
  0xa5   : > { %v6247_v36 = vrot.slane %v6245_v28, 7  ;;  %v6929_v27 = vcombine.low %v6921_v12, %v6928_v29  ;;  %v6224_v40 = vsel %vm16373_vm6, %v6219_v31, %v6223_v16  ;;  %v6251_v43 = vrot.slane %v6249_v33, 6  ;;  %v14175_v12 = vld.sshfl [vmem:[%s16346_s27 + $0x58] sm:$0x33 pattern:$0x76325410] }
  0xa6   : > { %v6233_v41 = vrot.slane %v6232_v32, 2  ;;  %15183 = vmatprep.mubr.msk.bf16.mxu1 %vm2061_vm7, %v1815_v35  ;;  %v6242_v46 = vor.u32 %v6241_v39, %v6237_v38  ;;  %v6255_v50 = vshll.u32 %v16535_v63, 16  ;;  %v1816_v51 = vcombine.low %v6214_v11, %v6224_v40  ;;  %v14176_v35 = vld.sshfl [vmem:[%s16346_s27 + $0x5c] sm:$0x13 pattern:$0x76325410] }
  0xa7   : > { %v5714_v52 = vcombine.high %v14173_v44, %v14173_v44  ;;  %15372 = vmatmul.mubr.msk.bf16.gmra.mrb[8].mxu0 %vm2061_vm7, %v6929_v27  ;;  %v6252_v53 = vor.u32 %v6251_v43, %v6247_v36  ;;  %v16556_v55 = vcombine.high %v14174_v34, %v14174_v34  ;;  %v6259_v56 = vshrl.u32 %v16535_v63, 16 }
  0xa8   : > { %v6238_v42 = vsel %vm16373_vm6, %v6233_v41, %v6237_v38  ;;  %v6243_v57 = vrot.slane %v6242_v46, 2  ;;  %v6257_v58 = vrot.slane %v6255_v50, 7  ;;  %v1824_v62 = vrot.slane %v1816_v51, %v16379_v49 }
  0xa9   : > { %19419 = vst [vmem:[#allocation13_spill] sm:$0xff] %v16556_v55  ;;  %v6930_v61 = vcombine.low %v6224_v40, %v6238_v42  ;;  %v6253_v0 = vrot.slane %v6252_v53, 2  ;;  %v6261_v2 = vrot.slane %v6259_v56, 6  ;;  %v6265_v3 = vshll.u32 %v14173_v44, 16 }
  0xaa   : > { %v6269_v4 = vshrl.u32 %v14173_v44, 16  ;;  %v6248_v5 = vsel %vm16373_vm6, %v6243_v57, %v6247_v36  ;;  %v6275_v7 = vshll.u32 %v5714_v52, 16  ;;  %v6280_v9 = vshrl.u32 %v14174_v34, 16 }
  0xab   : > { %v6938_v6 = vrot.slane %v6930_v61, %v16379_v49  ;;  %v6258_v10 = vsel %vm16373_vm6, %v6253_v0, %v6257_v58  ;;  %v1817_v11 = vcombine.low %v6238_v42, %v6248_v5  ;;  %v6262_v15 = vor.u32 %v6261_v2, %v6257_v58  ;;  %v14177_v40 = vld.sshfl [vmem:[%s16346_s27 + $0x60] sm:$0x33 pattern:$0x76325410] }
  0xac   : > { %v6267_v16 = vrot.slane %v6265_v3, 7  ;;  %v6931_v18 = vcombine.low %v6248_v5, %v6258_v10  ;;  %v6271_v19 = vrot.slane %v6269_v4, 6  ;;  %v6277_v20 = vrot.slane %v6275_v7, 7 }
  0xad   : > { %v6282_v22 = vrot.slane %v6280_v9, 6  ;;  %v1831_v23 = vrot.slane %v1817_v11, %v16379_v49  ;;  %v6263_v25 = vrot.slane %v6262_v15, 2  ;;  %v6283_v26 = vshll.u32 %v14174_v34, 16 }
  0xae   : > { %v6289_v28 = vshll.u32 %v16556_v55, 16  ;;  %v6945_v29 = vrot.slane %v6931_v18, %v16379_v49  ;;  %v6272_v31 = vor.u32 %v6271_v19, %v6267_v16  ;;  %v6293_v32 = vshrl.u32 %v16556_v55, 16 }
  0xaf   : > { %v6299_v33 = vshll.u32 %v14175_v12, 16  ;;  %v1832_v38 = vcombine.low %v1824_v62, %v1831_v23  ;;  %v6268_v39 = vsel %vm16373_vm6, %v6263_v25, %v6267_v16  ;;  %v6285_v36 = vrot.slane %v6283_v26, 7 }
  0xb0   : > { %v6291_v27 = vrot.slane %v6289_v28, 7  ;;  %v6946_v41 = vcombine.low %v6938_v6, %v6945_v29  ;;  %v6273_v43 = vrot.slane %v6272_v31, 2  ;;  %v6295_v44 = vrot.slane %v6293_v32, 6 }
  0xb1   : > { %v6301_v34 = vrot.slane %v6299_v33, 7  ;;  %15184 = vmatmul.mubr.msk.bf16.gmra.mrb[12].mxu1 %vm2061_vm7, %v1832_v38  ;;  %v6286_v46 = vor.u32 %v6285_v36, %v6282_v22  ;;  %v1833_v50 = vcombine.low %v6258_v10, %v6268_v39  ;;  %v16575_v51 = vcombine.high %v14175_v12, %v14175_v12 }
  0xb2   : > { %v5738_v52 = vcombine.high %v14176_v35, %v14176_v35  ;;  %15375 = vmatprep.mubr.msk.bf16.mxu0 %vm2061_vm7, %v6946_v41  ;;  %v6278_v42 = vsel %vm16373_vm6, %v6273_v43, %v6277_v20  ;;  %v6296_v53 = vor.u32 %v6295_v44, %v6291_v27  ;;  %v16580_v56 = vcombine.high %v14177_v40, %v14177_v40  ;;  %v14179_v41 = vld.sshfl [vmem:[%s16346_s27 + $0x68] sm:$0x13 pattern:$0x76325410] }
  0xb3   : > { %19420 = vst [vmem:[#allocation14_spill] sm:$0xff] %v16575_v51  ;;  %v6303_v57 = vshrl.u32 %v14175_v12, 16  ;;  %v6287_v58 = vrot.slane %v6286_v46, 2  ;;  %v6947_v61 = vcombine.low %v6268_v39, %v6278_v42  ;;  %v1841_v62 = vrot.slane %v1833_v50, %v16379_v49 }
  0xb4   : > { %19421 = vst [vmem:[#allocation15_spill] sm:$0xff] %v16580_v56  ;;  %v6309_v0 = vshll.u32 %v16575_v51, 16  ;;  %v6297_v2 = vrot.slane %v6296_v53, 2  ;;  %v6313_v4 = vshrl.u32 %v16575_v51, 16  ;;  %v6319_v5 = vshll.u32 %v14176_v35, 16 }
  0xb5   : > { %v6305_v3 = vrot.slane %v6303_v57, 6  ;;  %v6292_v6 = vsel %vm16373_vm6, %v6287_v58, %v6291_v27  ;;  %v6955_v7 = vrot.slane %v6947_v61, %v16379_v49  ;;  %v6323_v10 = vshrl.u32 %v14176_v35, 16  ;;  %v14178_v35 = vld.sshfl [vmem:[%s16346_s27 + $0x64] sm:$0x33 pattern:$0x76325410] }
  0xb6   : > { %v6311_v9 = vrot.slane %v6309_v0, 7  ;;  %v6302_v11 = vsel %vm16373_vm6, %v6297_v2, %v6301_v34  ;;  %v1834_v12 = vcombine.low %v6278_v42, %v6292_v6  ;;  %v6315_v16 = vrot.slane %v6313_v4, 6 }
  0xb7   : > { %v6306_v15 = vor.u32 %v6305_v3, %v6301_v34  ;;  %vm3412_vm8 = vcmask 1040384   ;;  %vm3413_vm9 = vcmask 1042434   ;;  %v6948_v18 = vcombine.low %v6292_v6, %v6302_v11 }
  0xb8   : > { %v6321_v19 = vrot.slane %v6319_v5, 7  ;;  %v6325_v20 = vrot.slane %v6323_v10, 6  ;;  %v6329_v22 = vshll.u32 %v5738_v52, 16  ;;  %v1848_v23 = vrot.slane %v1834_v12, %v16379_v49  ;;  %vm3414_vm12 = vmor %vm3412_vm8, %vm3413_vm9 }
  0xb9   : > { %v6307_v25 = vrot.slane %v6306_v15, 2  ;;  %v6316_v26 = vor.u32 %v6315_v16, %v6311_v9  ;;  %v6334_v28 = vshrl.u32 %v14177_v40, 16  ;;  %v6962_v29 = vrot.slane %v6948_v18, %v16379_v49  ;;  %v14277_v16 = vld.sshfl [vmem:[%s16346_s27 + $0x10] sm:$0x33 pattern:$0x76325410] }
  0xba   : > { %v6326_v31 = vor.u32 %v6325_v20, %v6321_v19  ;;  %v6331_v32 = vrot.slane %v6329_v22, 7  ;;  %v6337_v33 = vshll.u32 %v14177_v40, 16  ;;  %vm3415_vm10 = vcmask 1044484  }
  0xbb   : > { %v1849_v38 = vcombine.low %v1841_v62, %v1848_v23  ;;  %v6312_v39 = vsel %vm16373_vm6, %v6307_v25, %v6311_v9  ;;  %v6317_v36 = vrot.slane %v6316_v26, 2  ;;  %v6336_v27 = vrot.slane %v6334_v28, 6  ;;  %v14276_v9 = vld.sshfl [vmem:[%s16346_s27 + $0xc] sm:$0x32 pattern:$0x76325410]  ;;  %vm3416_vm13 = vmor %vm3414_vm12, %vm3415_vm10 }
  0xbc   : > { %v6963_v43 = vcombine.low %v6955_v7, %v6962_v29  ;;  %v6327_v44 = vrot.slane %v6326_v31, 2  ;;  %v6339_v34 = vrot.slane %v6337_v33, 7  ;;  %v6343_v46 = vshll.u32 %v16580_v56, 16 }
  0xbd   : > { %15187 = vmatprep.mubr.msk.bf16.mxu1 %vm2061_vm7, %v1849_v38  ;;  %v6322_v50 = vsel %vm16373_vm6, %v6317_v36, %v6321_v19  ;;  %v1850_v40 = vcombine.low %v6302_v11, %v6312_v39  ;;  %v16600_v52 = vcombine.high %v14178_v35, %v14178_v35  ;;  %v5762_v42 = vcombine.high %v14179_v41, %v14179_v41  ;;  %v14278_v29 = vld.sshfl [vmem:[%s16346_s27 + $0x14] sm:$0x13 pattern:$0x76325410] }
  0xbe   : > { %vm3417_vm11 = vcmask 1046534   ;;  %15376 = vmatmul.mubr.msk.bf16.gmra.mrb[12].mxu0 %vm2061_vm7, %v6963_v43  ;;  %v6332_v53 = vsel %vm16373_vm6, %v6327_v44, %v6331_v32  ;;  %v6340_v57 = vor.u32 %v6339_v34, %v6336_v27  ;;  %v6345_v58 = vrot.slane %v6343_v46, 7 }
  0xbf   : > { %19422 = vst [vmem:[#allocation16_spill] sm:$0xff] %v16600_v52  ;;  %v6964_v61 = vcombine.low %v6312_v39, %v6322_v50  ;;  %v1851_v62 = vcombine.low %v6322_v50, %v6332_v53  ;;  %v1858_v0 = vrot.slane %v1850_v40, %v16379_v49  ;;  %v6347_v2 = vshrl.u32 %v16580_v56, 16  ;;  %vm16626_vm14 = vmor %vm3416_vm13, %vm3417_vm11 }
  0xc0   : > { %v6353_v3 = vshll.u32 %v14178_v35, 16  ;;  %v6341_v4 = vrot.slane %v6340_v57, 2  ;;  %v6357_v6 = vshrl.u32 %v14178_v35, 16  ;;  %v6363_v7 = vshll.u32 %v16600_v52, 16 }
  0xc1   : > { %v6972_v5 = vrot.slane %v6964_v61, %v16379_v49  ;;  %v1865_v10 = vrot.slane %v1851_v62, %v16379_v49  ;;  %v6349_v11 = vrot.slane %v6347_v2, 6  ;;  %v6367_v15 = vshrl.u32 %v16600_v52, 16  ;;  %v14297_v52 = vld.sshfl [vmem:[%s16346_s27 + $0x60] sm:$0x32 pattern:$0x76325410] }
  0xc2   : > { %v6355_v12 = vrot.slane %v6353_v3, 7  ;;  %v6346_v18 = vsel %vm16373_vm6, %v6341_v4, %v6345_v58  ;;  %v6359_v19 = vrot.slane %v6357_v6, 6  ;;  %v6365_v20 = vrot.slane %v6363_v7, 7 }
  0xc3   : > { %v6373_v22 = vshll.u32 %v14179_v41, 16  ;;  %v6965_v23 = vcombine.low %v6332_v53, %v6346_v18  ;;  %v1866_v25 = vcombine.low %v1858_v0, %v1865_v10  ;;  %v6350_v26 = vor.u32 %v6349_v11, %v6345_v58 }
  0xc4   : > { %v6369_v28 = vrot.slane %v6367_v15, 6  ;;  %v6360_v31 = vor.u32 %v6359_v19, %v6355_v12  ;;  %v6377_v33 = vshrl.u32 %v14179_v41, 16  ;;  %v6383_v35 = vshll.u32 %v5762_v42, 16 }
  0xc5   : > { %v6375_v32 = vrot.slane %v6373_v22, 7  ;;  %v6979_v38 = vrot.slane %v6965_v23, %v16379_v49  ;;  %15188 = vmatmul.mubr.msk.bf16.gmra.mrb[16].mxu1 %vm2061_vm7, %v1866_v25  ;;  %v6351_v39 = vrot.slane %v6350_v26, 2  ;;  %v7588_v27 = vcombine.high %v14276_v9, %v14276_v9  ;;  %v13813_v22 = vld.sshfl [vmem:[%s16346_s27 + $0x6c] sm:$0x33 pattern:$0x76325410] }
  0xc6   : > { %v6370_v36 = vor.u32 %v6369_v28, %v6365_v20  ;;  %v6361_v43 = vrot.slane %v6360_v31, 2  ;;  %v6379_v44 = vrot.slane %v6377_v33, 6  ;;  %v6385_v34 = vrot.slane %v6383_v35, 7 }
  0xc7   : > { %v7596_v46 = vcombine.high %v14277_v16, %v14277_v16  ;;  %v6980_v50 = vcombine.low %v6972_v5, %v6979_v38  ;;  %v6356_v40 = vsel %vm16373_vm6, %v6351_v39, %v6355_v12  ;;  %v7604_v41 = vcombine.high %v14278_v29, %v14278_v29  ;;  %v13814_v31 = vld.sshfl [vmem:[%s16346_s27 + $0x70] sm:$0x33 pattern:$0x76325410] }
  0xc8   : > { %v6371_v53 = vrot.slane %v6370_v36, 2  ;;  %v6366_v42 = vsel %vm16373_vm6, %v6361_v43, %v6365_v20  ;;  %v6380_v57 = vor.u32 %v6379_v44, %v6375_v32  ;;  %v1867_v58 = vcombine.low %v6346_v18, %v6356_v40  ;;  %v14279_v43 = vld.sshfl [vmem:[%s16346_s27 + $0x18] sm:$0x32 pattern:$0x76325410] }
  0xc9   : > { %v14324_v62 = vrot.slane %v14276_v9, 9  ;;  %15379 = vmatprep.mubr.msk.bf16.mxu0 %vm2061_vm7, %v6980_v50  ;;  %v6981_v2 = vcombine.low %v6356_v40, %v6366_v42  ;;  %v7967_v3 = vrot.slane %v7588_v27, 7  ;;  %v7970_v4 = vrot.slane %v14277_v16, 7 }
  0xca   : > { %v6376_v0 = vsel %vm16373_vm6, %v6371_v53, %v6375_v32  ;;  %v6381_v5 = vrot.slane %v6380_v57, 2  ;;  %v1875_v7 = vrot.slane %v1867_v58, %v16379_v49  ;;  %v7973_v10 = vrot.slane %v7596_v46, 7  ;;  %v14280_v57 = vld.sshfl [vmem:[%s16346_s27 + $0x1c] sm:$0x33 pattern:$0x76325410] }
  0xcb   : > { %v1868_v6 = vcombine.low %v6366_v42, %v6376_v0  ;;  %v6989_v11 = vrot.slane %v6981_v2, %v16379_v49  ;;  %v7968_v9 = vsel %vm16626_vm14, %v14324_v62, %v7967_v3  ;;  %v7969_v12 = vrot.slane %v7967_v3, 2 }
  0xcc   : > { %v7972_v15 = vrot.slane %v7970_v4, 2  ;;  %v16639_v18 = vsel %vm16373_vm6, %v6381_v5, %v6385_v34  ;;  %v7975_v16 = vrot.slane %v7973_v10, 2  ;;  %v7976_v20 = vrot.slane %v14278_v29, 7 }
  0xcd   : > { %v1882_v19 = vrot.slane %v1868_v6, %v16379_v49  ;;  %v6982_v23 = vcombine.low %v6376_v0, %v16639_v18  ;;  %v7971_v25 = vsel %vm16626_vm14, %v7969_v12, %v7970_v4  ;;  %v7979_v28 = vrot.slane %v7604_v41, 7  ;;  %v13816_v12 = vld.sshfl [vmem:[%s16346_s27 + $0x78] sm:$0x33 pattern:$0x76325410] }
  0xce   : > { %v7974_v26 = vsel %vm16626_vm14, %v7972_v15, %v7973_v10  ;;  %v7977_v33 = vsel %vm16626_vm14, %v7975_v16, %v7976_v20  ;;  %v7978_v35 = vrot.slane %v7976_v20, 2  ;;  %v8230_v38 = vcombine.low %v7968_v9, %v7971_v25 }
  0xcf   : > { %v1883_v32 = vcombine.low %v1875_v7, %v1882_v19  ;;  %v6996_v29 = vrot.slane %v6982_v23, %v16379_v49  ;;  %v8231_v39 = vcombine.low %v7974_v26, %v7977_v33  ;;  %v16652_v36 = vcombine.high %v13813_v22, %v13813_v22 }
  0xd0   : > { %v16654_v27 = vcombine.high %v13814_v31, %v13814_v31  ;;  %v8238_v44 = vrot.slane %v8230_v38, %v16379_v49  ;;  %v1311_v34 = vshrl.u32 %v13813_v22, 16  ;;  %v1314_v46 = vshll.u32 %v13813_v22, 16  ;;  %v13843_v22 = vld.sshfl [vmem:[%s16346_s27 + $0x74] sm:$0x13 pattern:$0x76325410] }
  0xd1   : > { %19425 = vst [vmem:[#allocation17_spill] sm:$0xff] %v16652_v36  ;;  %15191 = vmatprep.mubr.msk.bf16.mxu1 %vm2061_vm7, %v1883_v32  ;;  %v1330_v50 = vshll.u32 %v13814_v31, 16  ;;  %v6997_v40 = vcombine.low %v6989_v11, %v6996_v29  ;;  %v8245_v53 = vrot.slane %v8231_v39, %v16379_v49  ;;  %v1320_v41 = vshll.u32 %v16652_v36, 16 }
  0xd2   : > { %19426 = vst [vmem:[#allocation18_spill] sm:$0xff] %v16654_v27  ;;  %v1324_v42 = vshrl.u32 %v16652_v36, 16  ;;  %v1313_v58 = vrot.slane %v1311_v34, 6  ;;  %v1316_v62 = vrot.slane %v1314_v46, 7  ;;  %v1334_v2 = vshrl.u32 %v13814_v31, 16 }
  0xd3   : > { %v1332_v0 = vrot.slane %v1330_v50, 7  ;;  %15380 = vmatmul.mubr.msk.bf16.gmra.mrb[16].mxu0 %vm2061_vm7, %v6997_v40  ;;  %v8246_v3 = vcombine.low %v8238_v44, %v8245_v53  ;;  %v1322_v4 = vrot.slane %v1320_v41, 7  ;;  %v1340_v6 = vshll.u32 %v16654_v27, 16  ;;  %v16007_v40 = vld [vmem:[#allocation5 + $0x40] sm:$0xff]  }
  0xd4   : > { %v1326_v5 = vrot.slane %v1324_v42, 6  ;;  %v1317_v7 = vor.u32 %v1316_v62, %v1313_v58  ;;  %v1336_v10 = vrot.slane %v1334_v2, 6  ;;  %v7612_v11 = vcombine.high %v14279_v43, %v14279_v43  ;;  %15259 = vmatprep.subr.bf16.mxu1 %v16007_v40 }
  0xd5   : > { %v7620_v9 = vcombine.high %v14280_v57, %v14280_v57  ;;  %15411 = vmatprep.mubr.msk.bf16.mxu0 %vm2061_vm7, %v8246_v3  ;;  %v1342_v19 = vrot.slane %v1340_v6, 7  ;;  %v7980_v16 = vsel %vm16626_vm14, %v7978_v35, %v7979_v28  ;;  %v14325_v20 = vrot.slane %v14279_v43, 9  ;;  %v14281_v6 = vld.sshfl [vmem:[%s16346_s27 + $0x20] sm:$0x13 pattern:$0x76325410] }
  0xd6   : > { %v1327_v15 = vor.u32 %v1326_v5, %v1322_v4  ;;  %v1318_v23 = vrot.slane %v1317_v7, 2  ;;  %v1337_v25 = vor.u32 %v1336_v10, %v1332_v0  ;;  %v7983_v26 = vrot.slane %v7612_v11, 7 }
  0xd7   : > { %v7986_v31 = vrot.slane %v14280_v57, 7  ;;  %v16670_v33 = vrot.slane %v7620_v9, 7  ;;  %v16672_v38 = vcombine.high %v13816_v12, %v13816_v12  ;;  %v768_v29 = vcombine.high %v13843_v22, %v13843_v22 }
  0xd8   : > { %v1328_v32 = vrot.slane %v1327_v15, 2  ;;  %v1323_v39 = vsel %vm16373_vm6, %v1318_v23, %v1322_v4  ;;  %v1338_v44 = vrot.slane %v1337_v25, 2  ;;  %v7984_v34 = vsel %vm16626_vm14, %v14325_v20, %v7983_v26 }
  0xd9   : > { %19427 = vst [vmem:[#allocation19_spill] sm:$0xff] %v16672_v38  ;;  %v7985_v28 = vrot.slane %v7983_v26, 2  ;;  %v1884_v43 = vcombine.low %v16639_v18, %v1323_v39  ;;  %v7988_v46 = vrot.slane %v7986_v31, 2  ;;  %v8247_v50 = vcombine.low %v7980_v16, %v7984_v34 }
  0xda   : > { %v1333_v35 = vsel %vm16373_vm6, %v1328_v32, %v1332_v0  ;;  %v1343_v53 = vsel %vm16373_vm6, %v1338_v44, %v1342_v19  ;;  %v1344_v42 = vshrl.u32 %v16654_v27, 16  ;;  %v1350_v57 = vshll.u32 %v13843_v22, 16  ;;  %v13817_v16 = vld.sshfl [vmem:[%s16346_s27 + $0x7c] sm:$0x33 pattern:$0x76325410] }
  0xdb   : > { %v7987_v41 = vsel %vm16626_vm14, %v7985_v28, %v7986_v31  ;;  %v1885_v58 = vcombine.low %v1333_v35, %v1343_v53  ;;  %v1892_v62 = vrot.slane %v1884_v43, %v16379_v49  ;;  %v7990_v18 = vsel %vm16626_vm14, %v7988_v46, %v16670_v33  ;;  %v14282_v26 = vld.sshfl [vmem:[%s16346_s27 + $0x24] sm:$0x32 pattern:$0x76325410] }
  0xdc   : > { %v8255_v0 = vrot.slane %v8247_v50, %v16379_v49  ;;  %v8248_v2 = vcombine.low %v7987_v41, %v7990_v18  ;;  %v1346_v3 = vrot.slane %v1344_v42, 6  ;;  %v1352_v4 = vrot.slane %v1350_v57, 7 }
  0xdd   : > { %v1354_v5 = vshrl.u32 %v13843_v22, 16  ;;  %v1899_v7 = vrot.slane %v1885_v58, %v16379_v49  ;;  %v1360_v10 = vshll.u32 %v768_v29, 16  ;;  %v1365_v11 = vshrl.u32 %v13816_v12, 16  ;;  %v16006_v29 = vld [vmem:[#allocation5 + $0xc8] sm:$0xff]  }
  0xde   : > { %v1368_v9 = vshll.u32 %v13816_v12, 16  ;;  %v8262_v15 = vrot.slane %v8248_v2, %v16379_v49  ;;  %v1347_v20 = vor.u32 %v1346_v3, %v1342_v19  ;;  %v1374_v25 = vshll.u32 %v16672_v38, 16 }
  0xdf   : > { %v1356_v23 = vrot.slane %v1354_v5, 6  ;;  %v1900_v31 = vcombine.low %v1892_v62, %v1899_v7  ;;  %v1362_v32 = vrot.slane %v1360_v10, 7  ;;  %v1367_v39 = vrot.slane %v1365_v11, 6 }
  0xe0   : > { %v1370_v44 = vrot.slane %v1368_v9, 7  ;;  %v8263_v34 = vcombine.low %v8255_v0, %v8262_v15  ;;  %v1348_v22 = vrot.slane %v1347_v20, 2  ;;  %v1376_v35 = vrot.slane %v1374_v25, 7 }
  0xe1   : > { %v1357_v28 = vor.u32 %v1356_v23, %v1352_v4  ;;  %15192 = vmatmul.mubr.msk.bf16.gmra.mrb[20].mxu1 %vm2061_vm7, %v1900_v31  ;;  %v1378_v43 = vshrl.u32 %v16672_v38, 16  ;;  %v1384_v19 = vshll.u32 %v13817_v16, 16  ;;  %v7628_v46 = vcombine.high %v14281_v6, %v14281_v6  ;;  %v16705_v62 = vld.sshfl [vmem:[%s16346_s27 + $0x28] sm:$0x33 pattern:$0x76325410] }
  0xe2   : > { %v1371_v12 = vor.u32 %v1370_v44, %v1367_v39  ;;  %15412 = vmatmul.mubr.msk.bf16.vlgmr.msra.gmra.mrb[0].mxu0 %vm2061_vm7, %v8263_v34  ;;  %v1353_v50 = vsel %vm16373_vm6, %v1348_v22, %v1352_v4  ;;  %v7636_v53 = vcombine.high %v14282_v26, %v14282_v26  ;;  %v7991_v41 = vrot.slane %v16670_v33, 2  ;;  %v16008_v4 = vld [vmem:[#allocation5 + $0xd0] sm:$0xff]   ;;  %v13819_v11 = vld.sshfl [vmem:[%s16346_s27 + $0x84] sm:$0x33 pattern:$0x76325410] }
  0xe3   : > { %v1358_v40 = vrot.slane %v1357_v28, 2  ;;  %15452 = vmatpush3.bf16.msra.mxu0 %v16487_v13  ;;  %v1380_v57 = vrot.slane %v1378_v43, 6  ;;  %v1386_v58 = vrot.slane %v1384_v19, 7  ;;  %v7992_v18 = vrot.slane %v14281_v6, 7 }
  0xe4   : > { %v1372_v42 = vrot.slane %v1371_v12, 2  ;;  %v7995_v2 = vrot.slane %v7628_v46, 7  ;;  %v14326_v3 = vrot.slane %v14282_v26, 9  ;;  %v7999_v5 = vrot.slane %v7636_v53, 7  ;;  %15453 = vmatprep.subr.bf16.mxu0 %v16006_v29 }
  0xe5   : > { %v1363_v0 = vsel %vm16373_vm6, %v1358_v40, %v1362_v32  ;;  %v1381_v13 = vor.u32 %v1380_v57, %v1376_v35  ;;  %v7993_v10 = vsel %vm16626_vm14, %v7991_v41, %v7992_v18  ;;  %v7994_v9 = vrot.slane %v7992_v18, 2  ;;  %v13844_v32 = vld.sshfl [vmem:[%s16346_s27 + $0x80] sm:$0x13 pattern:$0x76325410] }
  0xe6   : > { %v1377_v33 = vsel %vm16373_vm6, %v1372_v42, %v1376_v35  ;;  %v1901_v7 = vcombine.low %v1353_v50, %v1363_v0  ;;  %v8000_v6 = vsel %vm16626_vm14, %v14326_v3, %v7999_v5  ;;  %v8001_v15 = vrot.slane %v7999_v5, 2 }
  0xe7   : > { %v8002_v20 = vrot.slane %v16705_v62, 7  ;;  %v1382_v23 = vrot.slane %v1381_v13, 2  ;;  %v16718_v26 = vcombine.high %v13817_v16, %v13817_v16  ;;  %v16720_v31 = vcombine.high %v13819_v11, %v13819_v11  ;;  %15454 = vmatpush3.bf16.msra.mxu0 %v16006_v29 }
  0xe8   : > { %v1909_v25 = vrot.slane %v1901_v7, %v16379_v49  ;;  %v7996_v39 = vsel %vm16626_vm14, %v7994_v9, %v7995_v2  ;;  %v776_v34 = vcombine.high %v13844_v32, %v13844_v32  ;;  %v1388_v22 = vshrl.u32 %v13817_v16, 16  ;;  %15455 = vmatprep.subr.bf16.mxu0 %v16008_v4  ;;  %v14284_v2 = vld.sshfl [vmem:[%s16346_s27 + $0x2c] sm:$0x13 pattern:$0x76325410] }
  0xe9   : > { %19428 = vst [vmem:[#allocation20_spill] sm:$0xff] %v16718_v26  ;;  %19429 = vst [vmem:[#allocation21_spill] sm:$0xff] %v16720_v31  ;;  %v8003_v44 = vsel %vm16626_vm14, %v8001_v15, %v8002_v20  ;;  %v1387_v28 = vsel %vm16373_vm6, %v1382_v23, %v1386_v58  ;;  %v8264_v35 = vcombine.low %v7993_v10, %v7996_v39  ;;  %v1394_v43 = vshll.u32 %v16718_v26, 16 }
  0xea   : > { %v8265_v12 = vcombine.low %v8000_v6, %v8003_v44  ;;  %v1902_v19 = vcombine.low %v1377_v33, %v1387_v28  ;;  %v1390_v46 = vrot.slane %v1388_v22, 6  ;;  %v1398_v29 = vshrl.u32 %v16718_v26, 16  ;;  %v14285_v15 = vld.sshfl [vmem:[%s16346_s27 + $0x30] sm:$0x32 pattern:$0x76325410] }
  0xeb   : > { %v1404_v50 = vshll.u32 %v13844_v32, 16  ;;  %v8272_v40 = vrot.slane %v8264_v35, %v16379_v49  ;;  %v1396_v41 = vrot.slane %v1394_v43, 7  ;;  %v1408_v16 = vshrl.u32 %v13844_v32, 16  ;;  %15456 = vmatpush3.bf16.msra.mxu0 %v16008_v4 }
  0xec   : > { %v8279_v53 = vrot.slane %v8265_v12, %v16379_v49  ;;  %v1916_v42 = vrot.slane %v1902_v19, %v16379_v49  ;;  %v1391_v57 = vor.u32 %v1390_v46, %v1386_v58  ;;  %v1400_v18 = vrot.slane %v1398_v29, 6  ;;  %v16746_v29 = vld.sshfl [vmem:[%s16346_s27 + $0x88] sm:$0x33 pattern:$0x76325410] }
  0xed   : > { %v1406_v0 = vrot.slane %v1404_v50, 7  ;;  %v1410_v5 = vrot.slane %v1408_v16, 6  ;;  %v1414_v33 = vshll.u32 %v776_v34, 16  ;;  %v1419_v13 = vshrl.u32 %v13819_v11, 16 }
  0xee   : > { %v8280_v3 = vcombine.low %v8272_v40, %v8279_v53  ;;  %v1917_v7 = vcombine.low %v1909_v25, %v1916_v42  ;;  %v1392_v10 = vrot.slane %v1391_v57, 2  ;;  %v1401_v9 = vor.u32 %v1400_v18, %v1396_v41 }
  0xef   : > { %v1422_v6 = vshll.u32 %v13819_v11, 16  ;;  %v1411_v23 = vor.u32 %v1410_v5, %v1406_v0  ;;  %v1416_v32 = vrot.slane %v1414_v33, 7  ;;  %v1421_v4 = vrot.slane %v1419_v13, 6 }
  0xf0   : > { %15415 = vmatprep.mubr.msk.bf16.mxu0 %vm2061_vm7, %v8280_v3  ;;  %v1428_v58 = vshll.u32 %v16720_v31, 16  ;;  %15195 = vmatprep.mubr.msk.bf16.mxu1 %vm2061_vm7, %v1917_v7  ;;  %v1397_v39 = vsel %vm16373_vm6, %v1392_v10, %v1396_v41  ;;  %v1402_v44 = vrot.slane %v1401_v9, 2  ;;  %v7644_v25 = vcombine.high %v16705_v62, %v16705_v62  ;;  %v16758_v5 = vld.sshfl [vmem:[%s16346_s27 + $0x8c] sm:$0x13 pattern:$0x76325410] }
  0xf1   : > { %v1424_v34 = vrot.slane %v1422_v6, 7  ;;  %v1412_v11 = vrot.slane %v1411_v23, 2  ;;  %v7652_v28 = vcombine.high %v14284_v2, %v14284_v2  ;;  %v7660_v35 = vcombine.high %v14285_v15, %v14285_v15  ;;  %v16010_v23 = vld [vmem:[#allocation5 + $0xd8] sm:$0xff]  }
  0xf2   : > { %v1430_v22 = vrot.slane %v1428_v58, 7  ;;  %v1407_v12 = vsel %vm16373_vm6, %v1402_v44, %v1406_v0  ;;  %v8004_v19 = vrot.slane %v8002_v20, 2  ;;  %v8005_v46 = vrot.slane %v7644_v25, 7  ;;  %15457 = vmatprep.subr.bf16.mxu0 %v16010_v23 }
  0xf3   : > { %v1425_v43 = vor.u32 %v1424_v34, %v1421_v4  ;;  %v1417_v50 = vsel %vm16373_vm6, %v1412_v11, %v1416_v32  ;;  %v1918_v40 = vcombine.low %v1397_v39, %v1407_v12  ;;  %v8008_v53 = vrot.slane %v14284_v2, 7  ;;  %15458 = vmatpush3.bf16.msra.mxu0 %v16010_v23 }
  0xf4   : > { %v8011_v41 = vrot.slane %v7652_v28, 7  ;;  %v8006_v16 = vsel %vm16626_vm14, %v8004_v19, %v8005_v46  ;;  %v8007_v42 = vrot.slane %v8005_v46, 2  ;;  %v14327_v57 = vrot.slane %v14285_v15, 9 }
  0xf5   : > { %v1426_v62 = vrot.slane %v1425_v43, 2  ;;  %v1926_v18 = vrot.slane %v1918_v40, %v16379_v49  ;;  %v8010_v0 = vrot.slane %v8008_v53, 2  ;;  %v8015_v3 = vrot.slane %v7660_v35, 7 }
  0xf6   : > { %v16755_v20 = vcombine.high %v16746_v29, %v16746_v29  ;;  %v8009_v33 = vsel %vm16626_vm14, %v8007_v42, %v8008_v53  ;;  %v16766_v13 = vcombine.high %v16758_v5, %v16758_v5  ;;  %v1432_v7 = vshrl.u32 %v16720_v31, 16  ;;  %v14286_v28 = vld.sshfl [vmem:[%s16346_s27 + $0x34] sm:$0x33 pattern:$0x76325410] }
  0xf7   : > { %v1431_v2 = vsel %vm16373_vm6, %v1426_v62, %v1430_v22  ;;  %v8012_v9 = vsel %vm16626_vm14, %v8010_v0, %v8011_v41  ;;  %v8016_v6 = vsel %vm16626_vm14, %v14327_v57, %v8015_v3  ;;  %v8281_v15 = vcombine.low %v8006_v16, %v8009_v33  ;;  %v14287_v46 = vld.sshfl [vmem:[%s16346_s27 + $0x38] sm:$0x13 pattern:$0x76325410] }
  0xf8   : > { %v1919_v10 = vcombine.low %v1417_v50, %v1431_v2  ;;  %v8282_v32 = vcombine.low %v8012_v9, %v8016_v6  ;;  %v1434_v4 = vrot.slane %v1432_v7, 6  ;;  %v1438_v58 = vshll.u32 %v16746_v29, 16  ;;  %v13822_v6 = vld.sshfl [vmem:[%s16346_s27 + $0x90] sm:$0x33 pattern:$0x76325410] }
  0xf9   : > { %v1442_v39 = vshrl.u32 %v16746_v29, 16  ;;  %v8289_v34 = vrot.slane %v8281_v15, %v16379_v49  ;;  %v1448_v25 = vshll.u32 %v16755_v20, 16  ;;  %v1452_v11 = vshrl.u32 %v16755_v20, 16 }
  0xfa   : > { %v1933_v44 = vrot.slane %v1919_v10, %v16379_v49  ;;  %v8296_v35 = vrot.slane %v8282_v32, %v16379_v49  ;;  %v1435_v12 = vor.u32 %v1434_v4, %v1430_v22  ;;  %v1440_v43 = vrot.slane %v1438_v58, 7 }
  0xfb   : > { %v1444_v19 = vrot.slane %v1442_v39, 6  ;;  %v1450_v40 = vrot.slane %v1448_v25, 7  ;;  %v1454_v53 = vrot.slane %v1452_v11, 6  ;;  %v1458_v41 = vshll.u32 %v16758_v5, 16 }
  0xfc   : > { %v1934_v50 = vcombine.low %v1926_v18, %v1933_v44  ;;  %v8297_v62 = vcombine.low %v8289_v34, %v8296_v35  ;;  %v1436_v16 = vrot.slane %v1435_v12, 2  ;;  %v1462_v57 = vshrl.u32 %v16758_v5, 16  ;;  %v16793_v25 = vld.sshfl [vmem:[%s16346_s27 + $0x94] sm:$0x33 pattern:$0x76325410] }
  0xfd   : > { %v1445_v42 = vor.u32 %v1444_v19, %v1440_v43  ;;  %v1455_v0 = vor.u32 %v1454_v53, %v1450_v40  ;;  %v1460_v2 = vrot.slane %v1458_v41, 7  ;;  %v1468_v22 = vshll.u32 %v16766_v13, 16 }
  0xfe   : > { %15196 = vmatmul.mubr.msk.bf16.gmra.mrb[24].mxu1 %vm2061_vm7, %v1934_v50  ;;  %v7668_v33 = vcombine.high %v14286_v28, %v14286_v28  ;;  %15416 = vmatmul.mubr.msk.bf16.gmra.mrb[4].mxu0 %vm2061_vm7, %v8297_v62  ;;  %v1441_v18 = vsel %vm16373_vm6, %v1436_v16, %v1440_v43  ;;  %v1464_v10 = vrot.slane %v1462_v57, 6  ;;  %v7676_v9 = vcombine.high %v14287_v46, %v14287_v46 }
  0xff   : > { %v1446_v7 = vrot.slane %v1445_v42, 2  ;;  %v1456_v15 = vrot.slane %v1455_v0, 2  ;;  %v1470_v23 = vrot.slane %v1468_v22, 7  ;;  %v8017_v32 = vrot.slane %v8015_v3, 2 }
 0x100   : > { %v8018_v4 = vrot.slane %v14286_v28, 7  ;;  %v1465_v39 = vor.u32 %v1464_v10, %v1460_v2  ;;  %v8021_v44 = vrot.slane %v7668_v33, 7  ;;  %v8024_v34 = vrot.slane %v14287_v46, 7 }
 0x101   : > { %v1451_v58 = vsel %vm16373_vm6, %v1446_v7, %v1450_v40  ;;  %v1461_v11 = vsel %vm16373_vm6, %v1456_v15, %v1460_v2  ;;  %v8027_v50 = vrot.slane %v7676_v9, 7  ;;  %v16802_v53 = vcombine.high %v13822_v6, %v13822_v6  ;;  %v16815_v22 = vld.sshfl [vmem:[%s16346_s27 + $0x98] sm:$0x13 pattern:$0x76325410] }
 0x102   : > { %v1935_v35 = vcombine.low %v1441_v18, %v1451_v58  ;;  %v8019_v12 = vsel %vm16626_vm14, %v8017_v32, %v8018_v4  ;;  %v8020_v43 = vrot.slane %v8018_v4, 2  ;;  %v1466_v19 = vrot.slane %v1465_v39, 2 }
 0x103   : > { %v8023_v3 = vrot.slane %v8021_v44, 2  ;;  %v8026_v28 = vrot.slane %v8024_v34, 2  ;;  %19430 = vst [vmem:[#allocation22_spill] sm:$0xff] %v16802_v53  ;;  %v16806_v41 = vcombine.high %v16793_v25, %v16793_v25  ;;  %v1473_v33 = vshrl.u32 %v13822_v6, 16 }
 0x104   : > { %v1943_v40 = vrot.slane %v1935_v35, %v16379_v49  ;;  %v8022_v46 = vsel %vm16626_vm14, %v8020_v43, %v8021_v44  ;;  %v1471_v62 = vsel %vm16373_vm6, %v1466_v19, %v1470_v23  ;;  %v1476_v18 = vshll.u32 %v13822_v6, 16  ;;  %v14288_v23 = vld.sshfl [vmem:[%s16346_s27 + $0x3c] sm:$0x32 pattern:$0x76325410] }
 0x105   : > { %v8025_v16 = vsel %vm16626_vm14, %v8023_v3, %v8024_v34  ;;  %v8028_v42 = vsel %vm16626_vm14, %v8026_v28, %v8027_v50  ;;  %v8298_v57 = vcombine.low %v8019_v12, %v8022_v46  ;;  %v1936_v0 = vcombine.low %v1461_v11, %v1471_v62  ;;  %v14289_v44 = vld.sshfl [vmem:[%s16346_s27 + $0x40] sm:$0x33 pattern:$0x76325410] }
 0x106   : > { %v8299_v2 = vcombine.low %v8025_v16, %v8028_v42  ;;  %v1482_v10 = vshll.u32 %v16802_v53, 16  ;;  %v1486_v9 = vshrl.u32 %v16802_v53, 16  ;;  %v1492_v15 = vshll.u32 %v16793_v25, 16 }
 0x107   : > { %v8306_v7 = vrot.slane %v8298_v57, %v16379_v49  ;;  %v1950_v32 = vrot.slane %v1936_v0, %v16379_v49  ;;  %v1475_v58 = vrot.slane %v1473_v33, 6  ;;  %v1478_v39 = vrot.slane %v1476_v18, 7  ;;  %v16832_v57 = vld.sshfl [vmem:[%s16346_s27 + $0x44] sm:$0x13 pattern:$0x76325410] }
 0x108   : > { %v8313_v4 = vrot.slane %v8299_v2, %v16379_v49  ;;  %v1484_v34 = vrot.slane %v1482_v10, 7  ;;  %v1488_v11 = vrot.slane %v1486_v9, 6  ;;  %v1494_v6 = vrot.slane %v1492_v15, 7 }
 0x109   : > { %v1496_v35 = vshrl.u32 %v16793_v25, 16  ;;  %v1951_v12 = vcombine.low %v1943_v40, %v1950_v32  ;;  %v1479_v19 = vor.u32 %v1478_v39, %v1475_v58  ;;  %v1502_v3 = vshll.u32 %v16806_v41, 16 }
 0x10a   : > { %v8314_v43 = vcombine.low %v8306_v7, %v8313_v4  ;;  %v1489_v28 = vor.u32 %v1488_v11, %v1484_v34  ;;  %v1506_v46 = vshrl.u32 %v16806_v41, 16  ;;  %v1512_v62 = vshll.u32 %v16815_v22, 16 }
 0x10b   : > { %v1498_v50 = vrot.slane %v1496_v35, 6  ;;  %15199 = vmatprep.mubr.msk.bf16.mxu1 %vm2061_vm7, %v1951_v12  ;;  %v1480_v16 = vrot.slane %v1479_v19, 2  ;;  %v1504_v42 = vrot.slane %v1502_v3, 7  ;;  %v7684_v40 = vcombine.high %v14288_v23, %v14288_v23 }
 0x10c   : > { %15419 = vmatprep.mubr.msk.bf16.mxu0 %vm2061_vm7, %v8314_v43  ;;  %v7692_v0 = vcombine.high %v14289_v44, %v14289_v44  ;;  %v1490_v2 = vrot.slane %v1489_v28, 2  ;;  %v1508_v18 = vrot.slane %v1506_v46, 6  ;;  %v1514_v7 = vrot.slane %v1512_v62, 7 }
 0x10d   : > { %v1499_v33 = vor.u32 %v1498_v50, %v1494_v6  ;;  %v1485_v10 = vsel %vm16373_vm6, %v1480_v16, %v1484_v34  ;;  %v14328_v9 = vrot.slane %v14288_v23, 9  ;;  %v8031_v15 = vrot.slane %v7684_v40, 7  ;;  %v13825_v35 = vld.sshfl [vmem:[%s16346_s27 + $0x9c] sm:$0x33 pattern:$0x76325410] }
 0x10e   : > { %v8034_v32 = vrot.slane %v14289_v44, 7  ;;  %v1495_v4 = vsel %vm16373_vm6, %v1490_v2, %v1494_v6  ;;  %v1509_v39 = vor.u32 %v1508_v18, %v1504_v42  ;;  %v8037_v11 = vrot.slane %v7692_v0, 7  ;;  %v16842_v28 = vld.sshfl [vmem:[%s16346_s27 + $0xa0] sm:$0x33 pattern:$0x76325410] }
 0x10f   : > { %v1500_v58 = vrot.slane %v1499_v33, 2  ;;  %v1952_v12 = vcombine.low %v1485_v10, %v1495_v4  ;;  %v8032_v43 = vsel %vm16626_vm14, %v14328_v9, %v8031_v15  ;;  %v8033_v19 = vrot.slane %v8031_v15, 2 }
 0x110   : > { %v8036_v3 = vrot.slane %v8034_v32, 2  ;;  %v1510_v34 = vrot.slane %v1509_v39, 2  ;;  %v8039_v44 = vrot.slane %v8037_v11, 2  ;;  %v8040_v50 = vrot.slane %v16832_v57, 7 }
 0x111   : > { %v1505_v23 = vsel %vm16373_vm6, %v1500_v58, %v1504_v42  ;;  %v1960_v6 = vrot.slane %v1952_v12, %v16379_v49  ;;  %v8035_v46 = vsel %vm16626_vm14, %v8033_v19, %v8034_v32  ;;  %v16852_v16 = vcombine.high %v13825_v35, %v13825_v35  ;;  %v14291_v39 = vld.sshfl [vmem:[%s16346_s27 + $0x48] sm:$0x32 pattern:$0x76325410] }
 0x112   : > { %v8038_v62 = vsel %vm16626_vm14, %v8036_v3, %v8037_v11  ;;  %v1515_v40 = vsel %vm16373_vm6, %v1510_v34, %v1514_v7  ;;  %v8041_v42 = vsel %vm16626_vm14, %v8039_v44, %v8040_v50  ;;  %v8315_v0 = vcombine.low %v8032_v43, %v8035_v46  ;;  %v16012_v3 = vld [vmem:[#allocation5 + $0xe0] sm:$0xff]  }
 0x113   : > { %19431 = vst [vmem:[#allocation23_spill] sm:$0xff] %v16852_v16  ;;  %v16860_v2 = vcombine.high %v16842_v28, %v16842_v28  ;;  %v1953_v33 = vcombine.low %v1505_v23, %v1515_v40  ;;  %v8316_v18 = vcombine.low %v8038_v62, %v8041_v42  ;;  %v16864_v10 = vcombine.high %v16815_v22, %v16815_v22 }
 0x114   : > { %v1516_v9 = vshrl.u32 %v16815_v22, 16  ;;  %v8323_v15 = vrot.slane %v8315_v0, %v16379_v49  ;;  %v1527_v32 = vshrl.u32 %v13825_v35, 16  ;;  %v1530_v4 = vshll.u32 %v13825_v35, 16  ;;  %15499 = vmatprep.subr.bf16.mxu0 %v16012_v3 }
 0x115   : > { %v1536_v58 = vshll.u32 %v16852_v16, 16  ;;  %v1967_v11 = vrot.slane %v1953_v33, %v16379_v49  ;;  %v8330_v12 = vrot.slane %v8316_v18, %v16379_v49  ;;  %v1522_v19 = vshll.u32 %v16864_v10, 16  ;;  %v14292_v0 = vld.sshfl [vmem:[%s16346_s27 + $0x4c] sm:$0x33 pattern:$0x76325410] }
 0x116   : > { %v1518_v43 = vrot.slane %v1516_v9, 6  ;;  %v1529_v23 = vrot.slane %v1527_v32, 6  ;;  %v1532_v34 = vrot.slane %v1530_v4, 7  ;;  %v1540_v46 = vshrl.u32 %v16852_v16, 16 }
 0x117   : > { %v1538_v44 = vrot.slane %v1536_v58, 7  ;;  %v1968_v62 = vcombine.low %v1960_v6, %v1967_v11  ;;  %v8331_v40 = vcombine.low %v8323_v15, %v8330_v12  ;;  %v1524_v42 = vrot.slane %v1522_v19, 7 }
 0x118   : > { %v1519_v35 = vor.u32 %v1518_v43, %v1514_v7  ;;  %v1533_v53 = vor.u32 %v1532_v34, %v1529_v23  ;;  %v1542_v31 = vrot.slane %v1540_v46, 6  ;;  %v1546_v33 = vshll.u32 %v16842_v28, 16 }
 0x119   : > { %v1550_v18 = vshrl.u32 %v16842_v28, 16  ;;  %15200 = vmatmul.mubr.msk.bf16.gmra.mrb[28].mxu1 %vm2061_vm7, %v1968_v62  ;;  %15420 = vmatmul.mubr.msk.bf16.gmra.mrb[8].mxu0 %vm2061_vm7, %v8331_v40  ;;  %v1556_v32 = vshll.u32 %v16860_v2, 16  ;;  %v7700_v7 = vcombine.high %v16832_v57, %v16832_v57  ;;  %v7708_v6 = vcombine.high %v14291_v39, %v14291_v39  ;;  %v13828_v40 = vld.sshfl [vmem:[%s16346_s27 + $0xa8] sm:$0x33 pattern:$0x76325410] }
 0x11a   : > { %v1520_v9 = vrot.slane %v1519_v35, 2  ;;  %v1534_v15 = vrot.slane %v1533_v53, 2  ;;  %v1543_v4 = vor.u32 %v1542_v31, %v1538_v44  ;;  %v1548_v58 = vrot.slane %v1546_v33, 7 }
 0x11b   : > { %v1552_v11 = vrot.slane %v1550_v18, 6  ;;  %v1558_v43 = vrot.slane %v1556_v32, 7  ;;  %v7716_v19 = vcombine.high %v14292_v0, %v14292_v0  ;;  %v8042_v3 = vrot.slane %v8040_v50, 2 }
 0x11c   : > { %v1525_v12 = vsel %vm16373_vm6, %v1520_v9, %v1524_v42  ;;  %v1539_v23 = vsel %vm16373_vm6, %v1534_v15, %v1538_v44  ;;  %v1544_v34 = vrot.slane %v1543_v4, 2  ;;  %v8043_v62 = vrot.slane %v7700_v7, 7  ;;  %v16897_v7 = vld.sshfl [vmem:[%s16346_s27 + $0xa4] sm:$0x13 pattern:$0x76325410] }
 0x11d   : > { %v1553_v46 = vor.u32 %v1552_v11, %v1548_v58  ;;  %v1969_v57 = vcombine.low %v1525_v12, %v1539_v23  ;;  %v14329_v35 = vrot.slane %v14291_v39, 9  ;;  %v8047_v53 = vrot.slane %v7708_v6, 7 }
 0x11e   : > { %v8050_v31 = vrot.slane %v14292_v0, 7  ;;  %v1549_v33 = vsel %vm16373_vm6, %v1544_v34, %v1548_v58  ;;  %v8044_v42 = vsel %vm16626_vm14, %v8042_v3, %v8043_v62  ;;  %v16891_v50 = vrot.slane %v7716_v19, 7  ;;  %v16915_v34 = vld.sshfl [vmem:[%s16346_s27 + $0xac] sm:$0x33 pattern:$0x76325410] }
 0x11f   : > { %v1554_v18 = vrot.slane %v1553_v46, 2  ;;  %v1977_v44 = vrot.slane %v1969_v57, %v16379_v49  ;;  %v8048_v9 = vsel %vm16626_vm14, %v14329_v35, %v8047_v53  ;;  %v8049_v32 = vrot.slane %v8047_v53, 2  ;;  %v14293_v57 = vld.sshfl [vmem:[%s16346_s27 + $0x50] sm:$0x13 pattern:$0x76325410] }
 0x120   : > { %v8052_v39 = vrot.slane %v8050_v31, 2  ;;  %v8332_v6 = vcombine.low %v8044_v42, %v8048_v9  ;;  %v16901_v15 = vcombine.high %v13828_v40, %v13828_v40  ;;  %v16905_v4 = vcombine.high %v16897_v7, %v16897_v7 }
 0x121   : > { %v1559_v0 = vsel %vm16373_vm6, %v1554_v18, %v1558_v43  ;;  %v8051_v11 = vsel %vm16626_vm14, %v8049_v32, %v8050_v31  ;;  %v1560_v19 = vshrl.u32 %v16860_v2, 16  ;;  %v1566_v46 = vshll.u32 %v16897_v7, 16 }
 0x122   : > { %19432 = vst [vmem:[#allocation24_spill] sm:$0xff] %v16901_v15  ;;  %v1970_v58 = vcombine.low %v1549_v33, %v1559_v0  ;;  %v8054_v12 = vsel %vm16626_vm14, %v8052_v39, %v16891_v50  ;;  %v8340_v23 = vrot.slane %v8332_v6, %v16379_v49  ;;  %v1570_v62 = vshrl.u32 %v16897_v7, 16 }
 0x123   : > { %v8333_v3 = vcombine.low %v8051_v11, %v8054_v12  ;;  %v1562_v53 = vrot.slane %v1560_v19, 6  ;;  %v1576_v31 = vshll.u32 %v16905_v4, 16  ;;  %v1581_v33 = vshrl.u32 %v13828_v40, 16 }
 0x124   : > { %v1984_v35 = vrot.slane %v1970_v58, %v16379_v49  ;;  %v1568_v42 = vrot.slane %v1566_v46, 7  ;;  %v1572_v9 = vrot.slane %v1570_v62, 6  ;;  %v1584_v32 = vshll.u32 %v13828_v40, 16 }
 0x125   : > { %v8347_v18 = vrot.slane %v8333_v3, %v16379_v49  ;;  %v1563_v0 = vor.u32 %v1562_v53, %v1558_v43  ;;  %v1578_v6 = vrot.slane %v1576_v31, 7  ;;  %v1583_v11 = vrot.slane %v1581_v33, 6  ;;  %v14294_v12 = vld.sshfl [vmem:[%s16346_s27 + $0x54] sm:$0x32 pattern:$0x76325410] }
 0x126   : > { %v1985_v39 = vcombine.low %v1977_v44, %v1984_v35  ;;  %v1573_v26 = vor.u32 %v1572_v9, %v1568_v42  ;;  %v1586_v38 = vrot.slane %v1584_v32, 7  ;;  %v1590_v58 = vshll.u32 %v16901_v15, 16  ;;  %v16930_v62 = vld.sshfl [vmem:[%s16346_s27 + $0x58] sm:$0x33 pattern:$0x76325410] }
 0x127   : > { %v8348_v16 = vcombine.low %v8340_v23, %v8347_v18  ;;  %v1564_v19 = vrot.slane %v1563_v0, 2  ;;  %v1594_v27 = vshrl.u32 %v16901_v15, 16  ;;  %v1600_v3 = vshll.u32 %v16915_v34, 16 }
 0x128   : > { %15203 = vmatprep.mubr.msk.bf16.mxu1 %vm2061_vm7, %v1985_v39  ;;  %v7724_v46 = vcombine.high %v14293_v57, %v14293_v57  ;;  %v1574_v43 = vrot.slane %v1573_v26, 2  ;;  %v1587_v40 = vor.u32 %v1586_v38, %v1583_v11  ;;  %v1592_v44 = vrot.slane %v1590_v58, 7  ;;  %v13831_v11 = vld.sshfl [vmem:[%s16346_s27 + $0xb4] sm:$0x33 pattern:$0x76325410] }
 0x129   : > { %15423 = vmatprep.mubr.msk.bf16.mxu0 %vm2061_vm7, %v8348_v16  ;;  %v7732_v23 = vcombine.high %v14294_v12, %v14294_v12  ;;  %v1569_v35 = vsel %vm16373_vm6, %v1564_v19, %v1568_v42  ;;  %v1596_v53 = vrot.slane %v1594_v27, 6  ;;  %v1602_v31 = vrot.slane %v1600_v3, 7 }
 0x12a   : > { %v8055_v33 = vrot.slane %v16891_v50, 2  ;;  %v1579_v18 = vsel %vm16373_vm6, %v1574_v43, %v1578_v6  ;;  %v1588_v9 = vrot.slane %v1587_v40, 2  ;;  %v8056_v16 = vrot.slane %v14293_v57, 7 }
 0x12b   : > { %v8059_v26 = vrot.slane %v7724_v46, 7  ;;  %v1597_v38 = vor.u32 %v1596_v53, %v1592_v44  ;;  %v1986_v32 = vcombine.low %v1569_v35, %v1579_v18  ;;  %v14330_v39 = vrot.slane %v14294_v12, 9  ;;  %v16947_v46 = vld.sshfl [vmem:[%s16346_s27 + $0xb0] sm:$0x13 pattern:$0x76325410] }
 0x12c   : > { %v8063_v0 = vrot.slane %v7732_v23, 7  ;;  %v1593_v58 = vsel %vm16373_vm6, %v1588_v9, %v1592_v44  ;;  %v8057_v27 = vsel %vm16626_vm14, %v8055_v33, %v8056_v16  ;;  %v8058_v42 = vrot.slane %v8056_v16, 2 }
 0x12d   : > { %v8066_v50 = vrot.slane %v16930_v62, 7  ;;  %v1598_v19 = vrot.slane %v1597_v38, 2  ;;  %v1994_v6 = vrot.slane %v1986_v32, %v16379_v49  ;;  %v16953_v43 = vcombine.high %v16915_v34, %v16915_v34 }
 0x12e   : > { %v8064_v57 = vsel %vm16626_vm14, %v14330_v39, %v8063_v0  ;;  %v8065_v3 = vrot.slane %v8063_v0, 2  ;;  %v8060_v12 = vsel %vm16626_vm14, %v8058_v42, %v8059_v26  ;;  %v16955_v40 = vcombine.high %v13831_v11, %v13831_v11 }
 0x12f   : > { %v16959_v44 = vcombine.high %v16947_v46, %v16947_v46  ;;  %v1603_v23 = vsel %vm16373_vm6, %v1598_v19, %v1602_v31  ;;  %v8349_v53 = vcombine.low %v8057_v27, %v8060_v12  ;;  %v1604_v33 = vshrl.u32 %v16915_v34, 16 }
 0x130   : > { %v8067_v35 = vsel %vm16626_vm14, %v8065_v3, %v8066_v50  ;;  %v1987_v18 = vcombine.low %v1593_v58, %v1603_v23  ;;  %v1610_v16 = vshll.u32 %v16953_v43, 16  ;;  %v1614_v26 = vshrl.u32 %v16953_v43, 16  ;;  %v14296_v58 = vld.sshfl [vmem:[%s16346_s27 + $0x5c] sm:$0x13 pattern:$0x76325410] }
 0x131   : > { %v8350_v9 = vcombine.low %v8064_v57, %v8067_v35  ;;  %v8357_v38 = vrot.slane %v8349_v53, %v16379_v49  ;;  %v1606_v32 = vrot.slane %v1604_v33, 6  ;;  %v1620_v39 = vshll.u32 %v16947_v46, 16 }
 0x132   : > { %v1624_v0 = vshrl.u32 %v16947_v46, 16  ;;  %v2001_v42 = vrot.slane %v1987_v18, %v16379_v49  ;;  %v1612_v19 = vrot.slane %v1610_v16, 7  ;;  %v1616_v3 = vrot.slane %v1614_v26, 6 }
 0x133   : > { %v8364_v27 = vrot.slane %v8350_v9, %v16379_v49  ;;  %v1607_v57 = vor.u32 %v1606_v32, %v1602_v31  ;;  %v1622_v12 = vrot.slane %v1620_v39, 7  ;;  %v1630_v35 = vshll.u32 %v16959_v44, 16 }
 0x134   : > { %v1626_v23 = vrot.slane %v1624_v0, 6  ;;  %v2002_v15 = vcombine.low %v1994_v6, %v2001_v42  ;;  %v1617_v33 = vor.u32 %v1616_v3, %v1612_v19  ;;  %v1635_v36 = vshrl.u32 %v13831_v11, 16 }
 0x135   : > { %v8365_v53 = vcombine.low %v8357_v38, %v8364_v27  ;;  %v1608_v56 = vrot.slane %v1607_v57, 2  ;;  %v1632_v55 = vrot.slane %v1630_v35, 7  ;;  %v1638_v63 = vshll.u32 %v13831_v11, 16 }
 0x136   : > { %v1627_v51 = vor.u32 %v1626_v23, %v1622_v12  ;;  %15204 = vmatmul.mubr.msk.bf16.gmra.mrb[32].mxu1 %vm2061_vm7, %v2002_v15  ;;  %v1618_v18 = vrot.slane %v1617_v33, 2  ;;  %v1637_v31 = vrot.slane %v1635_v36, 6  ;;  %v1644_v9 = vshll.u32 %v16955_v40, 16 }
 0x137   : > { %15424 = vmatmul.mubr.msk.bf16.gmra.mrb[12].mxu0 %vm2061_vm7, %v8365_v53  ;;  %v7740_v6 = vcombine.high %v16930_v62, %v16930_v62  ;;  %v1613_v16 = vsel %vm16373_vm6, %v1608_v56, %v1612_v19  ;;  %v1640_v38 = vrot.slane %v1638_v63, 7  ;;  %v7748_v32 = vcombine.high %v14296_v58, %v14296_v58  ;;  %v16988_v62 = vld.sshfl [vmem:[%s16346_s27 + $0xb8] sm:$0x33 pattern:$0x76325410] }
 0x138   : > { %v1628_v26 = vrot.slane %v1627_v51, 2  ;;  %v1623_v11 = vsel %vm16373_vm6, %v1618_v18, %v1622_v12  ;;  %v1646_v15 = vrot.slane %v1644_v9, 7  ;;  %v7756_v39 = vcombine.high %v14297_v52, %v14297_v52  ;;  %v16996_v35 = vld.sshfl [vmem:[%s16346_s27 + $0xbc] sm:$0x13 pattern:$0x76325410] }
 0x139   : > { %v8068_v0 = vrot.slane %v8066_v50, 2  ;;  %v1641_v42 = vor.u32 %v1640_v38, %v1637_v31  ;;  %v2003_v27 = vcombine.low %v1613_v16, %v1623_v11  ;;  %v8069_v3 = vrot.slane %v7740_v6, 7 }
 0x13a   : > { %v1633_v36 = vsel %vm16373_vm6, %v1628_v26, %v1632_v55  ;;  %v8072_v57 = vrot.slane %v14296_v58, 7  ;;  %v8075_v56 = vrot.slane %v7748_v32, 7  ;;  %v14331_v51 = vrot.slane %v14297_v52, 9 }
 0x13b   : > { %v16990_v63 = vrot.slane %v7756_v39, 7  ;;  %v1642_v19 = vrot.slane %v1641_v42, 2  ;;  %v2011_v12 = vrot.slane %v2003_v27, %v16379_v49  ;;  %v8070_v23 = vsel %vm16626_vm14, %v8068_v0, %v8069_v3 }
 0x13c   : > { %v8071_v50 = vrot.slane %v8069_v3, 2  ;;  %v8074_v55 = vrot.slane %v8072_v57, 2  ;;  %v17003_v58 = vcombine.high %v16988_v62, %v16988_v62  ;;  %v17007_v52 = vcombine.high %v16996_v35, %v16996_v35 }
 0x13d   : > { %v8080_v53 = vsel %vm16626_vm14, %v14331_v51, %v16990_v63  ;;  %v1647_v33 = vsel %vm16373_vm6, %v1642_v19, %v1646_v15  ;;  %v1648_v31 = vshrl.u32 %v16955_v40, 16  ;;  %v1654_v9 = vshll.u32 %v16988_v62, 16 }
 0x13e   : > { %v8073_v18 = vsel %vm16626_vm14, %v8071_v50, %v8072_v57  ;;  %v2004_v6 = vcombine.low %v1633_v36, %v1647_v33  ;;  %v8076_v16 = vsel %vm16626_vm14, %v8074_v55, %v8075_v56  ;;  %v1658_v38 = vshrl.u32 %v16988_v62, 16 }
 0x13f   : > { %v8366_v26 = vcombine.low %v8070_v23, %v8073_v18  ;;  %v8367_v32 = vcombine.low %v8076_v16, %v8080_v53  ;;  %v1650_v11 = vrot.slane %v1648_v31, 6  ;;  %v1656_v39 = vrot.slane %v1654_v9, 7  ;;  %v17025_v23 = vld.sshfl [vmem:[%s16346_s27 + $0x64] sm:$0x33 pattern:$0x76325410] }
 0x140   : > { %v1664_v0 = vshll.u32 %v17003_v58, 16  ;;  %v2018_v42 = vrot.slane %v2004_v6, %v16379_v49  ;;  %v1660_v3 = vrot.slane %v1658_v38, 6  ;;  %v1668_v36 = vshrl.u32 %v17003_v58, 16 }
 0x141   : > { %v8374_v27 = vrot.slane %v8366_v26, %v16379_v49  ;;  %v8381_v57 = vrot.slane %v8367_v32, %v16379_v49  ;;  %v1651_v51 = vor.u32 %v1650_v11, %v1646_v15  ;;  %v1674_v19 = vshll.u32 %v16996_v35, 16  ;;  %v14299_v18 = vld.sshfl [vmem:[%s16346_s27 + $0x68] sm:$0x13 pattern:$0x76325410] }
 0x142   : > { %v1666_v56 = vrot.slane %v1664_v0, 7  ;;  %v2019_v50 = vcombine.low %v2011_v12, %v2018_v42  ;;  %v1661_v55 = vor.u32 %v1660_v3, %v1656_v39  ;;  %v1670_v53 = vrot.slane %v1668_v36, 6 }
 0x143   : > { %v1678_v33 = vshrl.u32 %v16996_v35, 16  ;;  %v8382_v31 = vcombine.low %v8374_v27, %v8381_v57  ;;  %v1652_v9 = vrot.slane %v1651_v51, 2  ;;  %v1676_v6 = vrot.slane %v1674_v19, 7 }
 0x144   : > { %v1684_v16 = vshll.u32 %v17007_v52, 16  ;;  %15207 = vmatprep.mubr.msk.bf16.mxu1 %vm2061_vm7, %v2019_v50  ;;  %v1662_v15 = vrot.slane %v1661_v55, 2  ;;  %v1671_v26 = vor.u32 %v1670_v53, %v1666_v56  ;;  %v17033_v32 = vcombine.high %v17025_v23, %v17025_v23  ;;  %v14300_v51 = vld.sshfl [vmem:[%s16346_s27 + $0x6c] sm:$0x32 pattern:$0x76325410] }
 0x145   : > { %v1680_v38 = vrot.slane %v1678_v33, 6  ;;  %15427 = vmatprep.mubr.msk.bf16.mxu0 %vm2061_vm7, %v8382_v31  ;;  %v1657_v12 = vsel %vm16373_vm6, %v1652_v9, %v1656_v39  ;;  %v7772_v0 = vcombine.high %v14299_v18, %v14299_v18  ;;  %v8081_v42 = vrot.slane %v16990_v63, 2 }
 0x146   : > { %v1686_v11 = vrot.slane %v1684_v16, 7  ;;  %v1667_v27 = vsel %vm16373_vm6, %v1662_v15, %v1666_v56  ;;  %v1672_v3 = vrot.slane %v1671_v26, 2  ;;  %v8082_v57 = vrot.slane %v17025_v23, 7 }
 0x147   : > { %v1681_v36 = vor.u32 %v1680_v38, %v1676_v6  ;;  %v2020_v19 = vcombine.low %v1657_v12, %v1667_v27  ;;  %v8085_v50 = vrot.slane %v17033_v32, 7  ;;  %v8088_v55 = vrot.slane %v14299_v18, 7  ;;  %v16025_v15 = vld.sshfl [vmem:[%s16346_s27] sm:$0x33 pattern:$0x76325410] }
 0x148   : > { %v8091_v39 = vrot.slane %v7772_v0, 7  ;;  %v1677_v53 = vsel %vm16373_vm6, %v1672_v3, %v1676_v6  ;;  %v8083_v56 = vsel %vm16626_vm14, %v8081_v42, %v8082_v57  ;;  %v8084_v33 = vrot.slane %v8082_v57, 2  ;;  %v17052_v38 = vld.sshfl [vmem:[%s16346_s27 + $0x70] sm:$0x33 pattern:$0x76325410] }
 0x149   : > { %v1682_v63 = vrot.slane %v1681_v36, 2  ;;  %v2028_v31 = vrot.slane %v2020_v19, %v16379_v49  ;;  %v8087_v9 = vrot.slane %v8085_v50, 2  ;;  %v8090_v16 = vrot.slane %v8088_v55, 2 }
 0x14a   : > { %v2315_v26 = vcombine.low %v16025_v15, %v16352_v14  ;;  %v8086_v6 = vsel %vm16626_vm14, %v8084_v33, %v8085_v50  ;;  %v16026_v12 = vld.sshfl [vmem:[%s16346_s27 + $0x4] sm:$0x33 pattern:$0x76325410]  ;;  %v7780_v42 = vcombine.high %v14300_v51, %v14300_v51 }
 0x14b   : > { %v1687_v18 = vsel %vm16373_vm6, %v1682_v63, %v1686_v11  ;;  %v2316_v0 = vcombine.low %v16026_v12, %v16354_v17  ;;  %v8089_v3 = vsel %vm16626_vm14, %v8087_v9, %v8088_v55  ;;  %v8092_v14 = vsel %vm16626_vm14, %v8090_v16, %v8091_v39  ;;  %v14302_v50 = vld.sshfl [vmem:[%s16346_s27 + $0x74] sm:$0x13 pattern:$0x76325410] }
 0x14c   : > { %v2021_v27 = vcombine.low %v1677_v53, %v1687_v18  ;;  %v8383_v36 = vcombine.low %v8083_v56, %v8086_v6  ;;  %v8384_v57 = vcombine.low %v8089_v3, %v8092_v14  ;;  %v2323_v11 = vrot.slane %v2315_v26, %v16379_v49  ;;  %v13788_v39 = vld.sshfl [vmem:[%s16346_s27 + $0x8] sm:$0x3 pattern:$0x76325410] }
 0x14d   : > { %v2330_v19 = vrot.slane %v2316_v0, %v16379_v49  ;;  %v17069_v63 = vcombine.high %v17052_v38, %v17052_v38  ;;  %v14332_v55 = vrot.slane %v14300_v51, 9  ;;  %v8095_v33 = vrot.slane %v7780_v42, 7  ;;  %v14303_v26 = vld.sshfl [vmem:[%s16346_s27 + $0x78] sm:$0x32 pattern:$0x76325410] }
 0x14e   : > { %v2035_v17 = vrot.slane %v2021_v27, %v16379_v49  ;;  %v8391_v53 = vrot.slane %v8383_v36, %v16379_v49  ;;  %v8398_v56 = vrot.slane %v8384_v57, %v16379_v49  ;;  %v8098_v16 = vrot.slane %v17052_v38, 7  ;;  %v16027_v3 = vld.sshfl [vmem:[%s16346_s27 + $0xc] sm:$0x33 pattern:$0x76325410] }
 0x14f   : > { %v2331_v9 = vcombine.low %v2323_v11, %v2330_v19  ;;  %v8101_v15 = vrot.slane %v17069_v63, 7  ;;  %v8096_v6 = vsel %vm16626_vm14, %v14332_v55, %v8095_v33  ;;  %v8097_v12 = vrot.slane %v8095_v33, 2  ;;  %v17082_v36 = vld.sshfl [vmem:[%s16346_s27 + $0x7c] sm:$0x33 pattern:$0x76325410] }
 0x150   : > { %v2036_v18 = vcombine.low %v2028_v31, %v2035_v17  ;;  %v8104_v0 = vrot.slane %v14302_v50, 7  ;;  %v8399_v27 = vcombine.low %v8391_v53, %v8398_v56  ;;  %v8100_v51 = vrot.slane %v8098_v16, 2  ;;  %v16028_v31 = vld.sshfl [vmem:[%s16346_s27 + $0x10] sm:$0x33 pattern:$0x76325410] }
 0x151   : > { %v8103_v42 = vrot.slane %v8101_v15, 2  ;;  %v2332_v14 = vcombine.low %v13788_v39, %v16027_v3  ;;  %v8099_v57 = vsel %vm16626_vm14, %v8097_v12, %v8098_v16  ;;  %v2333_v11 = vcombine.low %v16386_v54, %v16028_v31 }
 0x152   : > { %15208 = vmatmul.mubr.msk.bf16.gmra.mrb[36].mxu1 %vm2061_vm7, %v2036_v18  ;;  %v7796_v19 = vcombine.high %v14302_v50, %v14302_v50  ;;  %v7804_v17 = vcombine.high %v14303_v26, %v14303_v26  ;;  %15428 = vmatmul.mubr.msk.bf16.gmra.mrb[16].mxu0 %vm2061_vm7, %v8399_v27  ;;  %v8102_v53 = vsel %vm16626_vm14, %v8100_v51, %v8101_v15  ;;  %v8106_v39 = vrot.slane %v8104_v0, 2  ;;  %v13791_v18 = vld.sshfl [vmem:[%s16346_s27 + $0x14] sm:$0x3 pattern:$0x76325410] }
 0x153   : > { %15219 = vmatprep.mubr.msk.bf16.mxu1 %vm2061_vm7, %v2331_v9  ;;  %v8105_v55 = vsel %vm16626_vm14, %v8103_v42, %v8104_v0  ;;  %v8400_v33 = vcombine.low %v8096_v6, %v8099_v57  ;;  %v2340_v16 = vrot.slane %v2332_v14, %v16379_v49  ;;  %v2347_v54 = vrot.slane %v2333_v11, %v16379_v49  ;;  %v14306_v9 = vld.sshfl [vmem:[%s16346_s27 + $0x84] sm:$0x32 pattern:$0x76325410] }
 0x154   : > { %v8401_v56 = vcombine.low %v8102_v53, %v8105_v55  ;;  %v17099_v50 = vcombine.high %v17082_v36, %v17082_v36  ;;  %v8107_v15 = vrot.slane %v7796_v19, 7  ;;  %v14333_v27 = vrot.slane %v14303_v26, 9  ;;  %v14305_v14 = vld.sshfl [vmem:[%s16346_s27 + $0x80] sm:$0x13 pattern:$0x76325410] }
 0x155   : > { %v8408_v12 = vrot.slane %v8400_v33, %v16379_v49  ;;  %v8111_v51 = vrot.slane %v7804_v17, 7  ;;  %v2348_v0 = vcombine.low %v2340_v16, %v2347_v54  ;;  %v8114_v42 = vrot.slane %v17082_v36, 7  ;;  %v16029_v55 = vld.sshfl [vmem:[%s16346_s27 + $0x18] sm:$0x33 pattern:$0x76325410] }
 0x156   : > { %v8415_v6 = vrot.slane %v8401_v56, %v16379_v49  ;;  %v8117_v3 = vrot.slane %v17099_v50, 7  ;;  %v8108_v57 = vsel %vm16626_vm14, %v8106_v39, %v8107_v15  ;;  %v2349_v19 = vcombine.low %v16392_v60, %v13791_v18  ;;  %v16009_v56 = vld [vmem:[#allocation5 + $0x48] sm:$0xff]  }
 0x157   : > { %v8112_v31 = vsel %vm16626_vm14, %v14333_v27, %v8111_v51  ;;  %v8113_v11 = vrot.slane %v8111_v51, 2  ;;  %v8116_v17 = vrot.slane %v8114_v42, 2  ;;  %v2350_v33 = vcombine.low %v16029_v55, %v16412_v47  ;;  %v17128_v27 = vld.sshfl [vmem:[%s16346_s27 + $0x20] sm:$0x3 pattern:$0x76325410] }
 0x158   : > { %v8416_v26 = vcombine.low %v8408_v12, %v8415_v6  ;;  %v8417_v53 = vcombine.low %v8108_v57, %v8112_v31  ;;  %v2357_v54 = vrot.slane %v2349_v19, %v16379_v49  ;;  %v7820_v39 = vcombine.high %v14305_v14, %v14305_v14  ;;  %v16030_v6 = vld [vmem:[#allocation5 + $0x40] sm:$0xff]  }
 0x159   : > { %v8115_v16 = vsel %vm16626_vm14, %v8113_v11, %v8114_v42  ;;  %v7828_v15 = vcombine.high %v14306_v9, %v14306_v9  ;;  %v8118_v60 = vsel %vm16626_vm14, %v8116_v17, %v8117_v3  ;;  %v2364_v18 = vrot.slane %v2350_v33, %v16379_v49 }
 0x15a   : > { %15431 = vmatprep.mubr.msk.bf16.mxu0 %vm2061_vm7, %v8416_v26  ;;  %15220 = vmatmul.mubr.msk.bf16.vlgmr.msra.gmra.mrb[0].mxu1 %vm2061_vm7, %v2348_v0  ;;  %v8425_v47 = vrot.slane %v8417_v53, %v16379_v49  ;;  %v8119_v12 = vrot.slane %v8117_v3, 2  ;;  %v8418_v51 = vcombine.low %v8115_v16, %v8118_v60  ;;  %v8120_v42 = vrot.slane %v14305_v14, 7  ;;  %v16031_v26 = vld.sshfl [vmem:[%s16346_s27 + $0x1c] sm:$0x33 pattern:$0x76325410] }
 0x15b   : > { %15260 = vmatpush3.bf16.msra.mxu1 %v16030_v6  ;;  %v8123_v57 = vrot.slane %v7820_v39, 7  ;;  %v14334_v31 = vrot.slane %v14306_v9, 9  ;;  %v2365_v11 = vcombine.low %v2357_v54, %v2364_v18  ;;  %v8127_v19 = vrot.slane %v7828_v15, 7  ;;  %v16011_v53 = vld [vmem:[#allocation5 + $0x50] sm:$0xff]  }
 0x15c   : > { %v8130_v0 = vrot.slane %v16746_v29, 7  ;;  %v2366_v17 = vcombine.low %v16031_v26, %v16414_v48  ;;  %15261 = vmatprep.subr.bf16.mxu1 %v16009_v56  ;;  %v8432_v3 = vrot.slane %v8418_v51, %v16379_v49  ;;  %v8121_v55 = vsel %vm16626_vm14, %v8119_v12, %v8120_v42  ;;  %v16032_v16 = vld.sshfl [vmem:[%s16346_s27 + $0x24] sm:$0x33 pattern:$0x76325410] }
 0x15d   : > { %v8122_v33 = vrot.slane %v8120_v42, 2  ;;  %v2367_v14 = vcombine.low %v17128_v27, %v16032_v16  ;;  %15223 = vmatprep.mubr.msk.bf16.mxu1 %vm2061_vm7, %v2365_v11  ;;  %v8128_v29 = vsel %vm16626_vm14, %v14334_v31, %v8127_v19  ;;  %v8129_v9 = vrot.slane %v8127_v19, 2  ;;  %v17152_v31 = vld.sshfl [vmem:[%s16346_s27 + $0x2c] sm:$0x3 pattern:$0x76325410] }
 0x15e   : > { %v2374_v48 = vrot.slane %v2366_v17, %v16379_v49  ;;  %v7852_v54 = vcombine.high %v17119_v37, %v17119_v37  ;;  %v8433_v39 = vcombine.low %v8425_v47, %v8432_v3  ;;  %v8132_v18 = vrot.slane %v8130_v0, 2  ;;  %v16013_v19 = vld [vmem:[#allocation5 + $0x58] sm:$0xff]  }
 0x15f   : > { %v8124_v15 = vsel %vm16626_vm14, %v8122_v33, %v8123_v57  ;;  %v2381_v60 = vrot.slane %v2367_v14, %v16379_v49  ;;  %15262 = vmatpush3.bf16.msra.mxu1 %v16009_v56  ;;  %v8131_v12 = vsel %vm16626_vm14, %v8129_v9, %v8130_v0  ;;  %v8133_v6 = vrot.slane %v16755_v20, 7  ;;  %v16033_v33 = vld.sshfl [vmem:[%s16346_s27 + $0x28] sm:$0x33 pattern:$0x76325410] }
 0x160   : > { %v8434_v51 = vcombine.low %v8121_v55, %v8124_v15  ;;  %v8136_v42 = vrot.slane %v16758_v5, 7  ;;  %15263 = vmatprep.subr.bf16.mxu1 %v16011_v53  ;;  %15432 = vmatmul.mubr.msk.bf16.gmra.mrb[20].mxu0 %vm2061_vm7, %v8433_v39  ;;  %v8435_v47 = vcombine.low %v8128_v29, %v8131_v12  ;;  %v8139_v11 = vrot.slane %v16766_v13, 7 }
 0x161   : > { %v2382_v57 = vcombine.low %v2374_v48, %v2381_v60  ;;  %v14335_v56 = vrot.slane %v17119_v37, 9  ;;  %v8134_v26 = vsel %vm16626_vm14, %v8132_v18, %v8133_v6  ;;  %v8135_v17 = vrot.slane %v8133_v6, 2 }
 0x162   : > { %v8442_v0 = vrot.slane %v8434_v51, %v16379_v49  ;;  %v8138_v5 = vrot.slane %v8136_v42, 2  ;;  %v8449_v3 = vrot.slane %v8435_v47, %v16379_v49  ;;  %v8143_v55 = vrot.slane %v7852_v54, 7 }
 0x163   : > { %15224 = vmatmul.mubr.msk.bf16.gmra.mrb[4].mxu1 %vm2061_vm7, %v2382_v57  ;;  %v2383_v16 = vcombine.low %v16437_v30, %v16033_v33  ;;  %v2384_v13 = vcombine.low %v16459_v21, %v17152_v31  ;;  %v8137_v37 = vsel %vm16626_vm14, %v8135_v17, %v8136_v42  ;;  %v8146_v29 = vrot.slane %v16793_v25, 7  ;;  %v17175_v21 = vld [vmem:[#allocation5 + $0x60] sm:$0xff]  }
 0x164   : > { %v8140_v14 = vsel %vm16626_vm14, %v8138_v5, %v8139_v11  ;;  %v8149_v9 = vrot.slane %v16806_v41, 7  ;;  %15264 = vmatpush3.bf16.msra.mxu1 %v16011_v53  ;;  %v8450_v48 = vcombine.low %v8442_v0, %v8449_v3  ;;  %v8144_v54 = vsel %vm16626_vm14, %v14335_v56, %v8143_v55  ;;  %v14312_v25 = vld.sshfl [vmem:[%s16346_s27 + $0x9c] sm:$0x32 pattern:$0x76325410] }
 0x165   : > { %v8451_v30 = vcombine.low %v8134_v26, %v8137_v37  ;;  %v2391_v39 = vrot.slane %v2383_v16, %v16379_v49  ;;  %15265 = vmatprep.subr.bf16.mxu1 %v16013_v19  ;;  %v8452_v15 = vcombine.low %v8140_v14, %v8144_v54  ;;  %v2398_v60 = vrot.slane %v2384_v13, %v16379_v49  ;;  %v16034_v5 = vld.sshfl [vmem:[%s16346_s27 + $0x30] sm:$0x33 pattern:$0x76325410] }
 0x166   : > { %v8145_v18 = vrot.slane %v8143_v55, 2  ;;  %v8148_v12 = vrot.slane %v8146_v29, 2  ;;  %15435 = vmatprep.mubr.msk.bf16.mxu0 %vm2061_vm7, %v8450_v48  ;;  %v8151_v51 = vrot.slane %v8149_v9, 2  ;;  %v8152_v6 = vrot.slane %v16815_v22, 7 }
 0x167   : > { %v8459_v53 = vrot.slane %v8451_v30, %v16379_v49  ;;  %v8155_v42 = vrot.slane %v16864_v10, 7  ;;  %v8466_v47 = vrot.slane %v8452_v15, %v16379_v49  ;;  %v2399_v57 = vcombine.low %v2391_v39, %v2398_v60  ;;  %v16035_v3 = vld.sshfl [vmem:[%s16346_s27 + $0x34] sm:$0x33 pattern:$0x76325410] }
 0x168   : > { %v8147_v11 = vsel %vm16626_vm14, %v8145_v18, %v8146_v29  ;;  %v8150_v56 = vsel %vm16626_vm14, %v8148_v12, %v8149_v9  ;;  %15266 = vmatpush3.bf16.msra.mxu1 %v16013_v19  ;;  %v8153_v0 = vsel %vm16626_vm14, %v8151_v51, %v8152_v6  ;;  %v8154_v26 = vrot.slane %v8152_v6, 2  ;;  %v17197_v16 = vld.sshfl [vmem:[%s16346_s27 + $0x38] sm:$0x3 pattern:$0x76325410] }
 0x169   : > { %v8468_v17 = vcombine.low %v8147_v11, %v8150_v56  ;;  %v2400_v22 = vcombine.low %v16034_v5, %v16462_v24  ;;  %15307 = vmatprep.subr.bf16.mxu1 %v17175_v21  ;;  %v8467_v10 = vcombine.low %v8459_v53, %v8466_v47  ;;  %15227 = vmatprep.mubr.msk.bf16.mxu1 %vm2061_vm7, %v2399_v57  ;;  %v14336_v19 = vrot.slane %v14312_v25, 9  ;;  %v16036_v39 = vld.sshfl [vmem:[%s16346_s27 + $0x3c] sm:$0x33 pattern:$0x76325410] }
 0x16a   : > { %v2401_v55 = vcombine.low %v16035_v3, %v16481_v8  ;;  %v7876_v33 = vcombine.high %v14312_v25, %v14312_v25  ;;  %v8156_v13 = vsel %vm16626_vm14, %v8154_v26, %v8155_v42  ;;  %v8162_v14 = vrot.slane %v16842_v28, 7  ;;  %v16037_v60 = vld.sshfl [vmem:[%s16346_s27 + $0x40] sm:$0x33 pattern:$0x76325410] }
 0x16b   : > { %v8476_v24 = vrot.slane %v8468_v17, %v16379_v49  ;;  %v2408_v37 = vrot.slane %v2400_v22, %v16379_v49  ;;  %15436 = vmatmul.mubr.msk.bf16.gmra.mrb[24].mxu0 %vm2061_vm7, %v8467_v10  ;;  %v8469_v29 = vcombine.low %v8153_v0, %v8156_v13  ;;  %v8165_v48 = vrot.slane %v16860_v2, 7  ;;  %v14315_v12 = vld.sshfl [vmem:[%s16346_s27 + $0xa8] sm:$0x32 pattern:$0x76325410] }
 0x16c   : > { %v2415_v8 = vrot.slane %v2401_v55, %v16379_v49  ;;  %v8159_v9 = vrot.slane %v7876_v33, 7  ;;  %v8164_v54 = vrot.slane %v8162_v14, 2  ;;  %v8168_v30 = vrot.slane %v16897_v7, 7 }
 0x16d   : > { %v2417_v15 = vcombine.low %v17197_v16, %v16036_v39  ;;  %v2418_v18 = vcombine.low %v16505_v45, %v16037_v60  ;;  %v8483_v28 = vrot.slane %v8469_v29, %v16379_v49  ;;  %v8167_v7 = vrot.slane %v8165_v48, 2  ;;  %v17224_v0 = vld.sshfl [vmem:[%s16346_s27 + $0x44] sm:$0x3 pattern:$0x76325410] }
 0x16e   : > { %v2416_v25 = vcombine.low %v2408_v37, %v2415_v8  ;;  %v8160_v53 = vsel %vm16626_vm14, %v14336_v19, %v8159_v9  ;;  %v8161_v51 = vrot.slane %v8159_v9, 2  ;;  %v8166_v6 = vsel %vm16626_vm14, %v8164_v54, %v8165_v48  ;;  %v14318_v10 = vld.sshfl [vmem:[%s16346_s27 + $0xb4] sm:$0x32 pattern:$0x76325410] }
 0x16f   : > { %v2425_v42 = vrot.slane %v2417_v15, %v16379_v49  ;;  %v2432_v47 = vrot.slane %v2418_v18, %v16379_v49  ;;  %v8484_v57 = vcombine.low %v8476_v24, %v8483_v28  ;;  %v7900_v11 = vcombine.high %v14315_v12, %v14315_v12  ;;  %v16038_v48 = vld.sshfl [vmem:[%s16346_s27 + $0x48] sm:$0x33 pattern:$0x76325410] }
 0x170   : > { %15228 = vmatmul.mubr.msk.bf16.gmra.mrb[8].mxu1 %vm2061_vm7, %v2416_v25  ;;  %v8163_v45 = vsel %vm16626_vm14, %v8161_v51, %v8162_v14  ;;  %v8170_v56 = vrot.slane %v8168_v30, 2  ;;  %v8169_v26 = vsel %vm16626_vm14, %v8167_v7, %v8168_v30  ;;  %v8171_v22 = vrot.slane %v16905_v4, 7  ;;  %v17254_v51 = vld.sshfl [vmem:[%s16346_s27 + $0x50] sm:$0x3 pattern:$0x76325410] }
 0x171   : > { %v8485_v17 = vcombine.low %v8160_v53, %v8163_v45  ;;  %v2433_v5 = vcombine.low %v2425_v42, %v2432_v47  ;;  %15439 = vmatprep.mubr.msk.bf16.mxu0 %vm2061_vm7, %v8484_v57  ;;  %v8486_v3 = vcombine.low %v8166_v6, %v8169_v26  ;;  %v14337_v55 = vrot.slane %v14315_v12, 9  ;;  %v14321_v12 = vld.sshfl [vmem:[%s16346_s27 + $0xc0] sm:$0x32 pattern:$0x76325410] }
 0x172   : > { %v8175_v33 = vrot.slane %v7900_v11, 7  ;;  %v8178_v19 = vrot.slane %v16915_v34, 7  ;;  %v8172_v24 = vsel %vm16626_vm14, %v8170_v56, %v8171_v22  ;;  %v8181_v37 = vrot.slane %v16953_v43, 7 }
 0x173   : > { %v8493_v13 = vrot.slane %v8485_v17, %v16379_v49  ;;  %15231 = vmatprep.mubr.msk.bf16.mxu1 %vm2061_vm7, %v2433_v5  ;;  %v2434_v4 = vcombine.low %v16507_v1, %v17224_v0  ;;  %v8500_v14 = vrot.slane %v8486_v3, %v16379_v49  ;;  %v2435_v54 = vcombine.low %v16038_v48, %v16530_v59  ;;  %v16039_v17 = vld.sshfl [vmem:[%s16346_s27 + $0x4c] sm:$0x33 pattern:$0x76325410]  ;;  %v19433_v5 = vld [vmem:[#allocation12_spill] sm:$0xff] }
 0x174   : > { %v8176_v29 = vsel %vm16626_vm14, %v14337_v55, %v8175_v33  ;;  %v8177_v8 = vrot.slane %v8175_v33, 2  ;;  %v8180_v34 = vrot.slane %v8178_v19, 2  ;;  %v7924_v39 = vcombine.high %v14318_v10, %v14318_v10  ;;  %v16040_v22 = vld.sshfl [vmem:[%s16346_s27 + $0x54] sm:$0x33 pattern:$0x76325410] }
 0x175   : > { %v8502_v9 = vcombine.low %v8172_v24, %v8176_v29  ;;  %v2442_v30 = vrot.slane %v2434_v4, %v16379_v49  ;;  %v8501_v15 = vcombine.low %v8493_v13, %v8500_v14  ;;  %v8183_v18 = vrot.slane %v8181_v37, 2  ;;  %v17277_v14 = vld.sshfl [vmem:[%s16346_s27 + $0x5c] sm:$0x3 pattern:$0x76325410] }
 0x176   : > { %v8179_v60 = vsel %vm16626_vm14, %v8177_v8, %v8178_v19  ;;  %v8182_v1 = vsel %vm16626_vm14, %v8180_v34, %v8181_v37  ;;  %v2449_v53 = vrot.slane %v2435_v54, %v16379_v49  ;;  %v8184_v59 = vrot.slane %v16947_v46, 7  ;;  %v14322_v19 = vld.sshfl [vmem:[%s16346_s27 + $0xc4] sm:$0x33 pattern:$0x76325410] }
 0x177   : > { %v8503_v28 = vcombine.low %v8179_v60, %v8182_v1  ;;  %v8510_v25 = vrot.slane %v8502_v9, %v16379_v49  ;;  %15440 = vmatmul.mubr.msk.bf16.gmra.mrb[28].mxu0 %vm2061_vm7, %v8501_v15  ;;  %v8187_v6 = vrot.slane %v16959_v44, 7  ;;  %v14338_v7 = vrot.slane %v14318_v10, 9  ;;  %v14323_v15 = vld.sshfl [vmem:[%s16346_s27 + $0xc8] sm:$0x13 pattern:$0x76325410] }
 0x178   : > { %v8191_v42 = vrot.slane %v7924_v39, 7  ;;  %v8194_v47 = vrot.slane %v16988_v62, 7  ;;  %v2450_v45 = vcombine.low %v2442_v30, %v2449_v53  ;;  %v8185_v11 = vsel %vm16626_vm14, %v8183_v18, %v8184_v59 }
 0x179   : > { %v8517_v57 = vrot.slane %v8503_v28, %v16379_v49  ;;  %v8186_v56 = vrot.slane %v8184_v59, 2  ;;  %v2451_v44 = vcombine.low %v16039_v17, %v19433_v5  ;;  %v2452_v10 = vcombine.low %v17254_v51, %v16040_v22 }
 0x17a   : > { %v8192_v46 = vsel %vm16626_vm14, %v14338_v7, %v8191_v42  ;;  %v8193_v26 = vrot.slane %v8191_v42, 2  ;;  %15232 = vmatmul.mubr.msk.bf16.gmra.mrb[12].mxu1 %vm2061_vm7, %v2450_v45  ;;  %v7948_v55 = vcombine.high %v14321_v12, %v14321_v12  ;;  %v8196_v33 = vrot.slane %v8194_v47, 2 }
 0x17b   : > { %v8518_v62 = vcombine.low %v8510_v25, %v8517_v57  ;;  %v8188_v3 = vsel %vm16626_vm14, %v8186_v56, %v8187_v6  ;;  %v2459_v37 = vrot.slane %v2451_v44, %v16379_v49  ;;  %v2466_v4 = vrot.slane %v2452_v10, %v16379_v49  ;;  %v19434_v25 = vld [vmem:[#allocation13_spill] sm:$0xff] }
 0x17c   : > { %v8195_v13 = vsel %vm16626_vm14, %v8193_v26, %v8194_v47  ;;  %v8519_v24 = vcombine.low %v8185_v11, %v8188_v3  ;;  %v8197_v8 = vrot.slane %v17003_v58, 7  ;;  %v8200_v34 = vrot.slane %v16996_v35, 7  ;;  %v14414_v26 = vld.sshfl [vmem:[%s16346_s27 + $0x18] sm:$0x33 pattern:$0x76325410] }
 0x17d   : > { %15443 = vmatprep.mubr.msk.bf16.mxu0 %vm2061_vm7, %v8518_v62  ;;  %v8520_v29 = vcombine.low %v8192_v46, %v8195_v13  ;;  %v8203_v9 = vrot.slane %v17007_v52, 7  ;;  %v2467_v54 = vcombine.low %v2459_v37, %v2466_v4  ;;  %v14339_v30 = vrot.slane %v14321_v12, 9  ;;  %v16041_v52 = vld.sshfl [vmem:[%s16346_s27 + $0x58] sm:$0x33 pattern:$0x76325410] }
 0x17e   : > { %v8527_v48 = vrot.slane %v8519_v24, %v16379_v49  ;;  %v8207_v39 = vrot.slane %v7948_v55, 7  ;;  %v8198_v1 = vsel %vm16626_vm14, %v8196_v33, %v8197_v8  ;;  %v8199_v18 = vrot.slane %v8197_v8, 2  ;;  %v19435_v12 = vld [vmem:[#allocation14_spill] sm:$0xff]  ;;  %v19436_v8 = vld [vmem:[#allocation15_spill] sm:$0xff] }
 0x17f   : > { %v8534_v60 = vrot.slane %v8520_v29, %v16379_v49  ;;  %v8202_v28 = vrot.slane %v8200_v34, 2  ;;  %15235 = vmatprep.mubr.msk.bf16.mxu1 %vm2061_vm7, %v2467_v54  ;;  %v2468_v53 = vcombine.low %v19434_v25, %v16041_v52  ;;  %v2469_v59 = vcombine.low %v19435_v12, %v17277_v14  ;;  %v17306_v33 = vld.sshfl [vmem:[%s16346_s27 + $0x1c] sm:$0x33 pattern:$0x76325410] }
 0x180   : > { %v8208_v35 = vsel %vm16626_vm14, %v14339_v30, %v8207_v39  ;;  %v7956_v6 = vcombine.high %v14322_v19, %v14322_v19  ;;  %v8201_v42 = vsel %vm16626_vm14, %v8199_v18, %v8200_v34  ;;  %v7964_v57 = vcombine.high %v14323_v15, %v14323_v15  ;;  %v16042_v29 = vld.sshfl [vmem:[%s16346_s27 + $0x60] sm:$0x33 pattern:$0x76325410] }
 0x181   : > { %v8535_v7 = vcombine.low %v8527_v48, %v8534_v60  ;;  %v8204_v47 = vsel %vm16626_vm14, %v8202_v28, %v8203_v9  ;;  %v8536_v45 = vcombine.low %v8198_v1, %v8201_v42  ;;  %v2476_v56 = vrot.slane %v2468_v53, %v16379_v49  ;;  %v16043_v9 = vld.sshfl [vmem:[%s16346_s27 + $0x64] sm:$0x33 pattern:$0x76325410] }
 0x182   : > { %v8537_v11 = vcombine.low %v8204_v47, %v8208_v35  ;;  %v2483_v46 = vrot.slane %v2469_v59, %v16379_v49  ;;  %v8209_v17 = vrot.slane %v8207_v39, 2  ;;  %v8210_v5 = vrot.slane %v14322_v19, 7  ;;  %v19437_v48 = vld [vmem:[#allocation16_spill] sm:$0xff] }
 0x183   : > { %15444 = vmatmul.mubr.msk.bf16.gmra.mrb[32].mxu0 %vm2061_vm7, %v8535_v7  ;;  %v8213_v44 = vrot.slane %v7956_v6, 7  ;;  %v8216_v22 = vrot.slane %v14323_v15, 7  ;;  %v8544_v10 = vrot.slane %v8536_v45, %v16379_v49  ;;  %v8219_v55 = vrot.slane %v7964_v57, 7  ;;  %v19438_v57 = vld [vmem:[#allocation17_spill] sm:$0xff] }
 0x184   : > { %v8551_v62 = vrot.slane %v8537_v11, %v16379_v49  ;;  %v2484_v3 = vcombine.low %v2476_v56, %v2483_v46  ;;  %v8211_v13 = vsel %vm16626_vm14, %v8209_v17, %v8210_v5  ;;  %v8212_v24 = vrot.slane %v8210_v5, 2  ;;  %v17316_v39 = vld.sshfl [vmem:[%s16346_s27 + $0x68] sm:$0x3 pattern:$0x76325410] }
 0x185   : > { %v8215_v37 = vrot.slane %v8213_v44, 2  ;;  %v8218_v4 = vrot.slane %v8216_v22, 2  ;;  %v2485_v34 = vcombine.low %v16042_v29, %v19436_v8  ;;  %v2486_v54 = vcombine.low %v16043_v9, %v19437_v48  ;;  %v14417_v28 = vld.sshfl [vmem:[%s16346_s27 + $0x24] sm:$0x33 pattern:$0x76325410] }
 0x186   : > { %v8552_v19 = vcombine.low %v8544_v10, %v8551_v62  ;;  %15236 = vmatmul.mubr.msk.bf16.gmra.mrb[16].mxu1 %vm2061_vm7, %v2484_v3  ;;  %v8994_v30 = vcombine.high %v14414_v26, %v14414_v26  ;;  %v8214_v15 = vsel %vm16626_vm14, %v8212_v24, %v8213_v44  ;;  %v17326_v18 = vcombine.high %v17306_v33, %v17306_v33  ;;  %v17333_v12 = vld.sshfl [vmem:[%s16346_s27 + $0x28] sm:$0x33 pattern:$0x76325410]  ;;  %v19440_v9 = vld [vmem:[#allocation19_spill] sm:$0xff] }
 0x187   : > { %v8217_v60 = vsel %vm16626_vm14, %v8215_v37, %v8216_v22  ;;  %v8220_v1 = vsel %vm16626_vm14, %v8218_v4, %v8219_v55  ;;  %v8553_v35 = vcombine.low %v8211_v13, %v8214_v15  ;;  %v2493_v25 = vrot.slane %v2485_v34, %v16379_v49  ;;  %v16044_v7 = vld.sshfl [vmem:[%s16346_s27 + $0x6c] sm:$0x33 pattern:$0x76325410]  ;;  %v19439_v37 = vld [vmem:[#allocation18_spill] sm:$0xff] }
 0x188   : > { %15447 = vmatprep.mubr.msk.bf16.mxu0 %vm2061_vm7, %v8552_v19  ;;  %v8554_v52 = vcombine.low %v8217_v60, %v8220_v1  ;;  %v2500_v53 = vrot.slane %v2486_v54, %v16379_v49  ;;  %v9364_v59 = vcombine.low %v14414_v26, %v8994_v30  ;;  %v9365_v6 = vcombine.low %v17306_v33, %v17326_v18  ;;  %v16045_v47 = vld.sshfl [vmem:[%s16346_s27 + $0x70] sm:$0x33 pattern:$0x76325410] }
 0x189   : > { %v2502_v42 = vcombine.low %v17316_v39, %v16044_v7  ;;  %v2503_v45 = vcombine.low %v19438_v57, %v16045_v47  ;;  %v17342_v11 = vld.sshfl [vmem:[%s16346_s27 + $0x74] sm:$0x3 pattern:$0x76325410]  ;;  %v8561_v56 = vrot.slane %v8553_v35, %v16379_v49  ;;  %v9017_v26 = vcombine.high %v14417_v28, %v14417_v28 }
 0x18a   : > { %v8568_v46 = vrot.slane %v8554_v52, %v16379_v49  ;;  %v2501_v17 = vcombine.low %v2493_v25, %v2500_v53  ;;  %v14420_v5 = vld.sshfl [vmem:[%s16346_s27 + $0x30] sm:$0x33 pattern:$0x76325410]  ;;  %v9372_v44 = vrot.slane %v9364_v59, %v16379_v49  ;;  %v9379_v22 = vrot.slane %v9365_v6, %v16379_v49  ;;  %v19441_v53 = vld [vmem:[#allocation20_spill] sm:$0xff] }
 0x18b   : > { %v2510_v10 = vrot.slane %v2502_v42, %v16379_v49  ;;  %v2517_v62 = vrot.slane %v2503_v45, %v16379_v49  ;;  %v17352_v3 = vld.sshfl [vmem:[%s16346_s27 + $0x80] sm:$0x3 pattern:$0x76325410]  ;;  %v9381_v13 = vcombine.low %v17128_v27, %v14417_v28  ;;  %v9382_v24 = vcombine.low %v9017_v26, %v17333_v12 }
 0x18c   : > { %v8569_v55 = vcombine.low %v8561_v56, %v8568_v46  ;;  %15239 = vmatprep.mubr.msk.bf16.mxu1 %vm2061_vm7, %v2501_v17  ;;  %v2519_v4 = vcombine.low %v19439_v37, %v17342_v11  ;;  %v17360_v19 = vld.sshfl [vmem:[%s16346_s27 + $0x34] sm:$0x33 pattern:$0x76325410]  ;;  %v9380_v29 = vcombine.low %v9372_v44, %v9379_v22  ;;  %v17366_v54 = vcombine.high %v17333_v12, %v17333_v12 }
 0x18d   : > { %v2518_v8 = vcombine.low %v2510_v10, %v2517_v62  ;;  %v16046_v34 = vld.sshfl [vmem:[%s16346_s27 + $0x78] sm:$0x33 pattern:$0x76325410]  ;;  %v9389_v27 = vrot.slane %v9381_v13, %v16379_v49  ;;  %v9396_v15 = vrot.slane %v9382_v24, %v16379_v49  ;;  %v9040_v1 = vcombine.high %v14420_v5, %v14420_v5 }
 0x18e   : > { %v2520_v48 = vcombine.low %v16046_v34, %v19440_v9  ;;  %v14423_v30 = vld.sshfl [vmem:[%s16346_s27 + $0x3c] sm:$0x33 pattern:$0x76325410]  ;;  %15448 = vmatmul.mubr.msk.bf16.gmra.mrb[36].mxu0 %vm2061_vm7, %v8569_v55  ;;  %v2527_v60 = vrot.slane %v2519_v4, %v16379_v49  ;;  %v9398_v52 = vcombine.low %v17366_v54, %v17152_v31  ;;  %v17391_v56 = vcombine.high %v17360_v19, %v17360_v19  ;;  %v19442_v55 = vld [vmem:[#allocation21_spill] sm:$0xff] }
 0x18f   : > { %v17374_v28 = vld.sshfl [vmem:[%s16346_s27] sm:$0x32 pattern:$0x76325410]  ;;  %15459 = vmatprep.mubr.msk.bf16.mxu0 %vm2061_vm7, %v9380_v29  ;;  %15240 = vmatmul.mubr.msk.bf16.gmra.mrb[20].mxu1 %vm2061_vm7, %v2518_v8  ;;  %v9397_v42 = vcombine.low %v9389_v27, %v9396_v15  ;;  %v9399_v47 = vcombine.low %v14420_v5, %v9040_v1  ;;  %v9416_v44 = vcombine.low %v17197_v16, %v14423_v30  ;;  %v19443_v1 = vld [vmem:[#allocation22_spill] sm:$0xff] }
 0x190   : > { %v2534_v35 = vrot.slane %v2520_v48, %v16379_v49  ;;  %v16047_v25 = vld.sshfl [vmem:[%s16346_s27 + $0x7c] sm:$0x33 pattern:$0x76325410]  ;;  %v13946_v7 = vrot.slane %v17374_v28, 9  ;;  %v9406_v17 = vrot.slane %v9398_v52, %v16379_v49  ;;  %v9415_v10 = vcombine.low %v17360_v19, %v17391_v56  ;;  %v16014_v52 = vld [vmem:[#allocation5 + $0xe8] sm:$0xff]  }
 0x191   : > { %v2536_v59 = vcombine.low %v16047_v25, %v19441_v53  ;;  %v17384_v6 = vld.sshfl [vmem:[%s16346_s27 + $0x8c] sm:$0x3 pattern:$0x76325410]  ;;  %v9413_v22 = vrot.slane %v9399_v47, %v16379_v49  ;;  %v17408_v37 = vrot.slane %v9416_v44, %v16379_v49  ;;  %v9063_v4 = vcombine.high %v14423_v30, %v14423_v30 }
 0x192   : > { %v16048_v57 = vld.sshfl [vmem:[%s16346_s27 + $0x84] sm:$0x33 pattern:$0x76325410]  ;;  %v2535_v31 = vcombine.low %v2527_v60, %v2534_v35  ;;  %v2554_v16 = vcombine.low %v16755_v20, %v17384_v6  ;;  %v17420_v48 = vrot.slane %v9415_v10, %v16379_v49 }
 0x193   : > { %v2537_v45 = vcombine.low %v17352_v3, %v16048_v57  ;;  %v17394_v46 = vld.sshfl [vmem:[%s16346_s27 + $0x40] sm:$0x33 pattern:$0x76325410]  ;;  %v2544_v26 = vrot.slane %v2536_v59, %v16379_v49  ;;  %v9414_v34 = vcombine.low %v9406_v17, %v9413_v22 }
 0x194   : > { %v16049_v62 = vld.sshfl [vmem:[%s16346_s27 + $0x88] sm:$0x33 pattern:$0x76325410]  ;;  %15243 = vmatprep.mubr.msk.bf16.mxu1 %vm2061_vm7, %v2535_v31  ;;  %v17414_v29 = vcombine.high %v17394_v46, %v17394_v46  ;;  %v2568_v15 = vrot.slane %v2554_v16, %v16379_v49  ;;  %v9432_v20 = vcombine.low %v9063_v4, %v17394_v46  ;;  %v9431_v53 = vcombine.low %v17420_v48, %v17408_v37  ;;  %v16052_v31 = vld [vmem:[#allocation5 + $0xe0] sm:$0xff]  }
 0x195   : > { %v2551_v5 = vrot.slane %v2537_v45, %v16379_v49  ;;  %v2553_v13 = vcombine.low %v19442_v55, %v16049_v62  ;;  %v14426_v24 = vld.sshfl [vmem:[%s16346_s27 + $0x48] sm:$0x33 pattern:$0x76325410] }
 0x196   : > { %v17417_v8 = vld.sshfl [vmem:[%s16346_s27 + $0x4c] sm:$0x33 pattern:$0x76325410]  ;;  %v9433_v30 = vcombine.low %v17414_v29, %v17224_v0  ;;  %15460 = vmatmul.mubr.msk.bf16.vlgmr.msra.gmra.mrb[0].mxu0 %vm2061_vm7, %v9397_v42  ;;  %v9086_v57 = vcombine.high %v14426_v24, %v14426_v24  ;;  %v9440_v17 = vrot.slane %v9432_v20, %v16379_v49 }
 0x197   : > { %v2552_v9 = vcombine.low %v2544_v26, %v2551_v5  ;;  %v2561_v27 = vrot.slane %v2553_v13, %v16379_v49  ;;  %v16050_v60 = vld.sshfl [vmem:[%s16346_s27 + $0x90] sm:$0x33 pattern:$0x76325410]  ;;  %v17439_v0 = vcombine.high %v17417_v8, %v17417_v8  ;;  %15500 = vmatpush3.bf16.msra.mxu0 %v16052_v31  ;;  %15463 = vmatprep.mubr.msk.bf16.mxu0 %vm2061_vm7, %v9414_v34  ;;  %v16016_v13 = vld [vmem:[#allocation5 + $0xf0] sm:$0xff]  }
 0x198   : > { %v2570_v35 = vcombine.low %v16050_v60, %v19443_v1  ;;  %v17430_v25 = vld.sshfl [vmem:[%s16346_s27 + $0x98] sm:$0x3 pattern:$0x76325410]  ;;  %v9447_v26 = vrot.slane %v9433_v30, %v16379_v49  ;;  %v9449_v10 = vcombine.low %v14426_v24, %v9086_v57  ;;  %15501 = vmatprep.subr.bf16.mxu0 %v16014_v52 }
 0x199   : > { %v16051_v59 = vld.sshfl [vmem:[%s16346_s27 + $0x94] sm:$0x33 pattern:$0x76325410]  ;;  %v2569_v42 = vcombine.low %v2561_v27, %v2568_v15  ;;  %15244 = vmatmul.mubr.msk.bf16.gmra.mrb[24].mxu1 %vm2061_vm7, %v2552_v9  ;;  %v9450_v62 = vcombine.low %v17417_v8, %v17439_v0  ;;  %v19444_v9 = vld [vmem:[#allocation23_spill] sm:$0xff] }
 0x19a   : > { %v2571_v47 = vcombine.low %v16051_v59, %v16806_v41  ;;  %v17442_v45 = vld.sshfl [vmem:[%s16346_s27 + $0x4] sm:$0x33 pattern:$0x76325410]  ;;  %v2578_v22 = vrot.slane %v2570_v35, %v16379_v49  ;;  %v9448_v37 = vcombine.low %v9440_v17, %v9447_v26  ;;  %v9457_v20 = vrot.slane %v9449_v10, %v16379_v49 }
 0x19b   : > { %v14429_v41 = vld.sshfl [vmem:[%s16346_s27 + $0x54] sm:$0x33 pattern:$0x76325410]  ;;  %v3424_v44 = vrot.slane %v17442_v45, 7  ;;  %15247 = vmatprep.mubr.msk.bf16.mxu1 %vm2061_vm7, %v2569_v42  ;;  %v9464_v30 = vrot.slane %v9450_v62, %v16379_v49  ;;  %15502 = vmatpush3.bf16.msra.mxu0 %v16014_v52 }
 0x19c   : > { %v2585_v5 = vrot.slane %v2571_v47, %v16379_v49  ;;  %v17455_v55 = vld.sshfl [vmem:[%s16346_s27 + $0xa4] sm:$0x3 pattern:$0x76325410]  ;;  %v9109_v60 = vcombine.high %v14429_v41, %v14429_v41  ;;  %v9466_v47 = vcombine.low %v17254_v51, %v14429_v41  ;;  %15503 = vmatprep.subr.bf16.mxu0 %v16016_v13 }
 0x19d   : > { %v16053_v16 = vld.sshfl [vmem:[%s16346_s27 + $0x9c] sm:$0x33 pattern:$0x76325410]  ;;  %v17467_v27 = vrot.slane %v3424_v44, 2  ;;  %v2604_v57 = vcombine.low %v16860_v2, %v17455_v55  ;;  %v9465_v42 = vcombine.low %v9457_v20, %v9464_v30 }
 0x19e   : > { %v2587_v4 = vcombine.low %v17430_v25, %v16053_v16  ;;  %v16054_v34 = vld.sshfl [vmem:[%s16346_s27 + $0xa0] sm:$0x33 pattern:$0x76325410]  ;;  %v2586_v15 = vcombine.low %v2578_v22, %v2585_v5  ;;  %v9474_v2 = vrot.slane %v9466_v47, %v16379_v49  ;;  %15464 = vmatmul.mubr.msk.bf16.gmra.mrb[4].mxu0 %vm2061_vm7, %v9431_v53  ;;  %v9500_v53 = vcombine.low %v17025_v23, %v17033_v32  ;;  %v16018_v47 = vld [vmem:[#allocation5 + $0xf8] sm:$0xff]  }
 0x19f   : > { %v2588_v48 = vcombine.low %v19444_v9, %v16054_v34  ;;  %v17463_v24 = vld.sshfl [vmem:[%s16346_s27 + $0x58] sm:$0x33 pattern:$0x76325410]  ;;  %v19445_v22 = vld [vmem:[#allocation24_spill] sm:$0xff]  ;;  %v2612_v41 = vrot.slane %v2604_v57, %v16379_v49  ;;  %15467 = vmatprep.mubr.msk.bf16.mxu0 %vm2061_vm7, %v9448_v37  ;;  %15504 = vmatpush3.bf16.msra.mxu0 %v16016_v13 }
 0x1a0   : > { %v14432_v1 = vld.sshfl [vmem:[%s16346_s27 + $0x60] sm:$0x33 pattern:$0x76325410]  ;;  %v2595_v35 = vrot.slane %v2587_v4, %v16379_v49  ;;  %v9467_v17 = vcombine.low %v9109_v60, %v17463_v24  ;;  %v17485_v52 = vcombine.high %v17463_v24, %v17463_v24  ;;  %v17513_v32 = vrot.slane %v9500_v53, %v16379_v49  ;;  %15505 = vmatprep.subr.bf16.mxu0 %v16018_v47  ;;  %v17538_v13 = vld [vmem:[#allocation5 + $0x100] sm:$0xff]  }
 0x1a1   : > { %v2602_v59 = vrot.slane %v2588_v48, %v16379_v49  ;;  %v17478_v31 = vld.sshfl [vmem:[%s16346_s27 + $0xb0] sm:$0x3 pattern:$0x76325410]  ;;  %v9132_v62 = vcombine.high %v14432_v1, %v14432_v1  ;;  %15248 = vmatmul.mubr.msk.bf16.gmra.mrb[28].mxu1 %vm2061_vm7, %v2586_v15 }
 0x1a2   : > { %v16055_v26 = vld.sshfl [vmem:[%s16346_s27 + $0xa8] sm:$0x33 pattern:$0x76325410]  ;;  %v9481_v16 = vrot.slane %v9467_v17, %v16379_v49  ;;  %v9483_v34 = vcombine.low %v17485_v52, %v17277_v14 }
 0x1a3   : > { %v2605_v5 = vcombine.low %v16055_v26, %v19445_v22  ;;  %v14435_v10 = vld.sshfl [vmem:[%s16346_s27 + $0x6c] sm:$0x33 pattern:$0x76325410]  ;;  %v2603_v51 = vcombine.low %v2595_v35, %v2602_v59  ;;  %v9484_v20 = vcombine.low %v14432_v1, %v9132_v62  ;;  %15506 = vmatpush3.bf16.msra.mxu0 %v16018_v47 }
 0x1a4   : > { %v16056_v9 = vld.sshfl [vmem:[%s16346_s27 + $0xac] sm:$0x33 pattern:$0x76325410]  ;;  %v9501_v35 = vcombine.low %v17316_v39, %v14435_v10  ;;  %v9482_v14 = vcombine.low %v9474_v2, %v9481_v16  ;;  %v9491_v37 = vrot.slane %v9483_v34, %v16379_v49  ;;  %v9155_v22 = vcombine.high %v14435_v10, %v14435_v10  ;;  %15547 = vmatprep.subr.bf16.mxu0 %v17538_v13 }
 0x1a5   : > { %v2619_v4 = vrot.slane %v2605_v5, %v16379_v49  ;;  %v2621_v48 = vcombine.low %v16056_v9, %v16953_v43  ;;  %v16057_v30 = vld.sshfl [vmem:[%s16346_s27 + $0xb4] sm:$0x33 pattern:$0x76325410]  ;;  %15251 = vmatprep.mubr.msk.bf16.mxu1 %vm2061_vm7, %v2603_v51  ;;  %v9498_v57 = vrot.slane %v9484_v20, %v16379_v49  ;;  %v9518_v5 = vcombine.low %v17069_v63, %v17342_v11 }
 0x1a6   : > { %v2622_v60 = vcombine.low %v17478_v31, %v16057_v30  ;;  %v17504_v59 = vld.sshfl [vmem:[%s16346_s27 + $0xbc] sm:$0x3 pattern:$0x76325410]  ;;  %v17516_v39 = vrot.slane %v9501_v35, %v16379_v49  ;;  %v3035_v16 = vcombine.high %v17374_v28, %v17374_v28  ;;  %v9517_v63 = vcombine.low %v9155_v22, %v17052_v38  ;;  %15468 = vmatmul.mubr.msk.bf16.gmra.mrb[8].mxu0 %vm2061_vm7, %v9465_v42 }
 0x1a7   : > { %v2620_v43 = vcombine.low %v2612_v41, %v2619_v4  ;;  %v2629_v1 = vrot.slane %v2621_v48, %v16379_v49  ;;  %v16058_v15 = vld.sshfl [vmem:[%s16346_s27 + $0xb8] sm:$0x33 pattern:$0x76325410]  ;;  %v2639_v26 = vcombine.low %v17003_v58, %v17504_v59  ;;  %v9499_v2 = vcombine.low %v9491_v37, %v9498_v57  ;;  %15471 = vmatprep.mubr.msk.bf16.mxu0 %vm2061_vm7, %v9482_v14 }
 0x1a8   : > { %v2636_v23 = vrot.slane %v2622_v60, %v16379_v49  ;;  %v2638_v17 = vcombine.low %v16955_v40, %v16058_v15  ;;  %v13900_v51 = vld.sshfl [vmem:[%s16346_s27 + $0x8] sm:$0x13 pattern:$0x76325410]  ;;  %v9516_v62 = vcombine.low %v17513_v32, %v17516_v39  ;;  %v9532_v11 = vrot.slane %v9518_v5, %v16379_v49 }
 0x1a9   : > { %v14438_v4 = vld.sshfl [vmem:[%s16346_s27 + $0x78] sm:$0x33 pattern:$0x76325410]  ;;  %v17534_v58 = vrot.slane %v2639_v26, %v16379_v49  ;;  %v3043_v10 = vcombine.high %v17442_v45, %v17442_v45  ;;  %v3051_v34 = vcombine.high %v13900_v51, %v13900_v51  ;;  %v3421_v9 = vrot.slane %v3035_v16, 7  ;;  %15252 = vmatmul.mubr.msk.bf16.gmra.mrb[32].mxu1 %vm2061_vm7, %v2620_v43 }
 0x1aa   : > { %v2637_v41 = vcombine.low %v2629_v1, %v2636_v23  ;;  %v17531_v40 = vrot.slane %v2638_v17, %v16379_v49  ;;  %v3430_v48 = vrot.slane %v13900_v51, 7  ;;  %v13901_v20 = vld.sshfl [vmem:[%s16346_s27 + $0xc] sm:$0x32 pattern:$0x76325410]  ;;  %v9525_v60 = vrot.slane %v9517_v63, %v16379_v49 }
 0x1ab   : > { %v9178_v53 = vcombine.high %v14438_v4, %v14438_v4  ;;  %v9535_v38 = vcombine.low %v17082_v36, %v17099_v50  ;;  %v13902_v35 = vld.sshfl [vmem:[%s16346_s27 + $0x10] sm:$0x33 pattern:$0x76325410]  ;;  %v3422_v37 = vsel %vm16626_vm14, %v13946_v7, %v3421_v9  ;;  %v3423_v1 = vrot.slane %v3421_v9, 2 }
 0x1ac   : > { %v2654_v30 = vcombine.low %v17531_v40, %v17534_v58  ;;  %v3427_v42 = vrot.slane %v3043_v10, 7  ;;  %v3432_v57 = vrot.slane %v3430_v48, 2  ;;  %v17556_v23 = vcombine.low %v9525_v60, %v9532_v11  ;;  %15255 = vmatprep.mubr.msk.bf16.mxu1 %vm2061_vm7, %v2637_v41  ;;  %v14441_v32 = vld.sshfl [vmem:[%s16346_s27 + $0x84] sm:$0x33 pattern:$0x76325410] }
 0x1ad   : > { %v3433_v36 = vrot.slane %v3051_v34, 7  ;;  %v9534_v50 = vcombine.low %v14438_v4, %v9178_v53  ;;  %v9549_v14 = vrot.slane %v9535_v38, %v16379_v49  ;;  %v3425_v28 = vsel %vm16626_vm14, %v3423_v1, %v3424_v44  ;;  %v14442_v22 = vld.sshfl [vmem:[%s16346_s27 + $0x88] sm:$0x33 pattern:$0x76325410] }
 0x1ae   : > { %v3428_v7 = vsel %vm16626_vm14, %v17467_v27, %v3427_v42  ;;  %v3429_v47 = vrot.slane %v3427_v42, 2  ;;  %v3059_v43 = vcombine.high %v13901_v20, %v13901_v20  ;;  %v3684_v39 = vcombine.low %v3422_v37, %v3425_v28  ;;  %v13903_v45 = vld.sshfl [vmem:[%s16346_s27 + $0x14] sm:$0x13 pattern:$0x76325410]  ;;  %15472 = vmatmul.mubr.msk.bf16.gmra.mrb[12].mxu0 %vm2061_vm7, %v9499_v2 }
 0x1af   : > { %v9542_v15 = vrot.slane %v9534_v50, %v16379_v49  ;;  %v3067_v17 = vcombine.high %v13902_v35, %v13902_v35  ;;  %v3434_v26 = vsel %vm16626_vm14, %v3432_v57, %v3433_v36  ;;  %v13947_v5 = vrot.slane %v13901_v20, 9  ;;  %v13904_v58 = vld.sshfl [vmem:[%s16346_s27 + $0x18] sm:$0x32 pattern:$0x76325410]  ;;  %15475 = vmatprep.mubr.msk.bf16.mxu0 %vm2061_vm7, %v9516_v62 }
 0x1b0   : > { %v3431_v44 = vsel %vm16626_vm14, %v3429_v47, %v3430_v48  ;;  %v3437_v51 = vrot.slane %v3059_v43, 7  ;;  %v3440_v41 = vrot.slane %v13902_v35, 7  ;;  %v3692_v16 = vrot.slane %v3684_v39, %v16379_v49  ;;  %v14444_v1 = vld.sshfl [vmem:[%s16346_s27 + $0x90] sm:$0x33 pattern:$0x76325410] }
 0x1b1   : > { %v3685_v27 = vcombine.low %v3428_v7, %v3431_v44  ;;  %v9550_v4 = vcombine.low %v9542_v15, %v9549_v14  ;;  %v3443_v40 = vrot.slane %v3067_v17, 7  ;;  %v9201_v34 = vcombine.high %v14441_v32, %v14441_v32  ;;  %15256 = vmatmul.mubr.msk.bf16.gmra.mrb[36].mxu1 %vm2061_vm7, %v2654_v30  ;;  %v17593_v36 = vld.sshfl [vmem:[%s16346_s27 + $0x20] sm:$0x13 pattern:$0x76325410] }
 0x1b2   : > { %v3438_v63 = vsel %vm16626_vm14, %v13947_v5, %v3437_v51  ;;  %v3439_v11 = vrot.slane %v3437_v51, 2  ;;  %v3442_v10 = vrot.slane %v3440_v41, 2  ;;  %v9551_v20 = vcombine.low %v17352_v3, %v14441_v32  ;;  %v13907_v62 = vld.sshfl [vmem:[%s16346_s27 + $0x24] sm:$0x32 pattern:$0x76325410] }
 0x1b3   : > { %v3699_v9 = vrot.slane %v3685_v27, %v16379_v49  ;;  %v3701_v48 = vcombine.low %v3434_v26, %v3438_v63  ;;  %v3075_v60 = vcombine.high %v13903_v45, %v13903_v45  ;;  %v9552_v35 = vcombine.low %v9201_v34, %v14442_v22 }
 0x1b4   : > { %v3441_v53 = vsel %vm16626_vm14, %v3439_v11, %v3440_v41  ;;  %v3444_v38 = vsel %vm16626_vm14, %v3442_v10, %v3443_v40  ;;  %v3083_v37 = vcombine.high %v13904_v58, %v13904_v58  ;;  %v9559_v3 = vrot.slane %v9551_v20, %v16379_v49  ;;  %v14445_v11 = vld.sshfl [vmem:[%s16346_s27 + $0x94] sm:$0x33 pattern:$0x76325410]  ;;  %v16017_v10 = vld [vmem:[#allocation5 + $0x68] sm:$0xff]  }
 0x1b5   : > { %v3700_v2 = vcombine.low %v3692_v16, %v3699_v9  ;;  %v3702_v42 = vcombine.low %v3441_v53, %v3444_v38  ;;  %v3709_v57 = vrot.slane %v3701_v48, %v16379_v49  ;;  %v9566_v50 = vrot.slane %v9552_v35, %v16379_v49  ;;  %v14447_v20 = vld.sshfl [vmem:[%s16346_s27 + $0x9c] sm:$0x33 pattern:$0x76325410] }
 0x1b6   : > { %v3445_v14 = vrot.slane %v3443_v40, 2  ;;  %v3446_v28 = vrot.slane %v13903_v45, 7  ;;  %v3449_v7 = vrot.slane %v3075_v60, 7  ;;  %v13948_v43 = vrot.slane %v13904_v58, 9  ;;  %15476 = vmatmul.mubr.msk.bf16.gmra.mrb[16].mxu0 %vm2061_vm7, %v17556_v23 }
 0x1b7   : > { %15267 = vmatprep.mubr.msk.bf16.mxu1 %vm2061_vm7, %v3700_v2  ;;  %v3716_v47 = vrot.slane %v3702_v42, %v16379_v49  ;;  %v3453_v30 = vrot.slane %v3083_v37, 7  ;;  %v3456_v32 = vrot.slane %v17306_v33, 7  ;;  %v9567_v39 = vcombine.low %v9559_v3, %v9566_v50  ;;  %15479 = vmatprep.mubr.msk.bf16.mxu0 %vm2061_vm7, %v9550_v4  ;;  %v17626_v35 = vld.sshfl [vmem:[%s16346_s27 + $0x2c] sm:$0x13 pattern:$0x76325410] }
 0x1b8   : > { %v3447_v15 = vsel %vm16626_vm14, %v3445_v14, %v3446_v28  ;;  %v3448_v17 = vrot.slane %v3446_v28, 2  ;;  %v9209_v26 = vcombine.high %v14442_v22, %v14442_v22  ;;  %v9224_v51 = vcombine.high %v14444_v1, %v14444_v1  ;;  %v16019_v50 = vld [vmem:[#allocation5 + $0x70] sm:$0xff]  }
 0x1b9   : > { %v3717_v44 = vcombine.low %v3709_v57, %v3716_v47  ;;  %v3454_v45 = vsel %vm16626_vm14, %v13948_v43, %v3453_v30  ;;  %v3455_v5 = vrot.slane %v3453_v30, 2  ;;  %v17609_v33 = vcombine.high %v17593_v36, %v17593_v36  ;;  %v14448_v30 = vld.sshfl [vmem:[%s16346_s27 + $0xa0] sm:$0x33 pattern:$0x76325410] }
 0x1ba   : > { %v3450_v41 = vsel %vm16626_vm14, %v3448_v17, %v3449_v7  ;;  %v9568_v27 = vcombine.low %v9209_v26, %v17384_v6  ;;  %v3107_v16 = vcombine.high %v13907_v62, %v13907_v62  ;;  %v9569_v58 = vcombine.low %v14444_v1, %v9224_v51 }
 0x1bb   : > { %v3457_v22 = vsel %vm16626_vm14, %v3455_v5, %v3456_v32  ;;  %v3718_v40 = vcombine.low %v3447_v15, %v3450_v41  ;;  %v3458_v63 = vrot.slane %v3456_v32, 2  ;;  %v3459_v9 = vrot.slane %v17326_v18, 7  ;;  %15268 = vmatmul.mubr.msk.bf16.vlgmr.msra.gmra.mrb[0].mxu1 %vm2061_vm7, %v3717_v44  ;;  %v13910_v41 = vld.sshfl [vmem:[%s16346_s27 + $0x30] sm:$0x32 pattern:$0x76325410] }
 0x1bc   : > { %v3719_v6 = vcombine.low %v3454_v45, %v3457_v22  ;;  %v9576_v34 = vrot.slane %v9568_v27, %v16379_v49  ;;  %v3462_v48 = vrot.slane %v17593_v36, 7  ;;  %v9583_v60 = vrot.slane %v9569_v58, %v16379_v49  ;;  %15308 = vmatpush3.bf16.msra.mxu1 %v17175_v21 }
 0x1bd   : > { %v3726_v23 = vrot.slane %v3718_v40, %v16379_v49  ;;  %v3465_v53 = vrot.slane %v17609_v33, 7  ;;  %v13949_v38 = vrot.slane %v13907_v62, 9  ;;  %v3460_v18 = vsel %vm16626_vm14, %v3458_v63, %v3459_v9  ;;  %15309 = vmatprep.subr.bf16.mxu1 %v16017_v10  ;;  %v16021_v63 = vld [vmem:[#allocation5 + $0x78] sm:$0xff]  }
 0x1be   : > { %v3733_v4 = vrot.slane %v3719_v6, %v16379_v49  ;;  %v3461_v37 = vrot.slane %v3459_v9, 2  ;;  %v3464_v1 = vrot.slane %v3462_v48, 2  ;;  %v9584_v2 = vcombine.low %v9576_v34, %v9583_v60  ;;  %15480 = vmatmul.mubr.msk.bf16.gmra.mrb[20].mxu0 %vm2061_vm7, %v9567_v39  ;;  %v17663_v34 = vld.sshfl [vmem:[%s16346_s27 + $0x38] sm:$0x13 pattern:$0x76325410] }
 0x1bf   : > { %v3469_v42 = vrot.slane %v3107_v16, 7  ;;  %v9232_v57 = vcombine.high %v14445_v11, %v14445_v11  ;;  %v9586_v3 = vcombine.low %v17430_v25, %v14447_v20  ;;  %v17639_v28 = vcombine.high %v17626_v35, %v17626_v35 }
 0x1c0   : > { %v3734_v62 = vcombine.low %v3726_v23, %v3733_v4  ;;  %v3463_v14 = vsel %vm16626_vm14, %v3461_v37, %v3462_v48  ;;  %v3466_v21 = vsel %vm16626_vm14, %v3464_v1, %v3465_v53  ;;  %v3472_v17 = vrot.slane %v17333_v12, 7  ;;  %15310 = vmatpush3.bf16.msra.mxu1 %v16017_v10  ;;  %15483 = vmatprep.mubr.msk.bf16.mxu0 %vm2061_vm7, %v9584_v2  ;;  %v14450_v53 = vld.sshfl [vmem:[%s16346_s27 + $0xa8] sm:$0x33 pattern:$0x76325410] }
 0x1c1   : > { %v3470_v7 = vsel %vm16626_vm14, %v13949_v38, %v3469_v42  ;;  %v3735_v47 = vcombine.low %v3460_v18, %v3463_v14  ;;  %v9585_v43 = vcombine.low %v14445_v11, %v9232_v57  ;;  %v9600_v25 = vrot.slane %v9586_v3, %v16379_v49  ;;  %15311 = vmatprep.subr.bf16.mxu1 %v16019_v50  ;;  %v14451_v3 = vld.sshfl [vmem:[%s16346_s27 + $0xac] sm:$0x33 pattern:$0x76325410] }
 0x1c2   : > { %15271 = vmatprep.mubr.msk.bf16.mxu1 %vm2061_vm7, %v3734_v62  ;;  %v3736_v32 = vcombine.low %v3466_v21, %v3470_v7  ;;  %v3471_v15 = vrot.slane %v3469_v42, 2  ;;  %v3475_v26 = vrot.slane %v17366_v54, 7  ;;  %v3478_v5 = vrot.slane %v17626_v35, 7 }
 0x1c3   : > { %v3743_v44 = vrot.slane %v3735_v47, %v16379_v49  ;;  %v9593_v45 = vrot.slane %v9585_v43, %v16379_v49  ;;  %v3481_v51 = vrot.slane %v17639_v28, 7  ;;  %v3474_v27 = vrot.slane %v3472_v17, 2  ;;  %v13913_v43 = vld.sshfl [vmem:[%s16346_s27 + $0x3c] sm:$0x32 pattern:$0x76325410] }
 0x1c4   : > { %v3750_v12 = vrot.slane %v3736_v32, %v16379_v49  ;;  %v3473_v54 = vsel %vm16626_vm14, %v3471_v15, %v3472_v17  ;;  %v3477_v39 = vrot.slane %v3475_v26, 2  ;;  %v3480_v22 = vrot.slane %v3478_v5, 2  ;;  %15312 = vmatpush3.bf16.msra.mxu1 %v16019_v50 }
 0x1c5   : > { %v9601_v16 = vcombine.low %v9593_v45, %v9600_v25  ;;  %v9247_v40 = vcombine.high %v14447_v20, %v14447_v20  ;;  %v9255_v58 = vcombine.high %v14448_v30, %v14448_v30  ;;  %v3476_v10 = vsel %vm16626_vm14, %v3474_v27, %v3475_v26  ;;  %15313 = vmatprep.subr.bf16.mxu1 %v16021_v63  ;;  %v16059_v25 = vld [vmem:[#allocation5 + $0x80] sm:$0xff]  }
 0x1c6   : > { %v3751_v11 = vcombine.low %v3743_v44, %v3750_v12  ;;  %v3479_v6 = vsel %vm16626_vm14, %v3477_v39, %v3478_v5  ;;  %v3131_v9 = vcombine.high %v13910_v41, %v13910_v41  ;;  %v3482_v48 = vsel %vm16626_vm14, %v3480_v22, %v3481_v51 }
 0x1c7   : > { %v3752_v23 = vcombine.low %v3473_v54, %v3476_v10  ;;  %v9602_v60 = vcombine.low %v9247_v40, %v14448_v30  ;;  %v9603_v20 = vcombine.low %v9255_v58, %v17455_v55  ;;  %v3753_v38 = vcombine.low %v3479_v6, %v3482_v48  ;;  %15484 = vmatmul.mubr.msk.bf16.gmra.mrb[24].mxu0 %vm2061_vm7, %v9601_v16  ;;  %v14453_v54 = vld.sshfl [vmem:[%s16346_s27 + $0xb4] sm:$0x33 pattern:$0x76325410] }
 0x1c8   : > { %15272 = vmatmul.mubr.msk.bf16.gmra.mrb[4].mxu1 %vm2061_vm7, %v3751_v11  ;;  %v13950_v4 = vrot.slane %v13910_v41, 9  ;;  %v3485_v18 = vrot.slane %v3131_v9, 7  ;;  %v3488_v37 = vrot.slane %v17360_v19, 7  ;;  %v3491_v57 = vrot.slane %v17391_v56, 7 }
 0x1c9   : > { %v3760_v1 = vrot.slane %v3752_v23, %v16379_v49  ;;  %v9610_v2 = vrot.slane %v9602_v60, %v16379_v49  ;;  %v9617_v42 = vrot.slane %v9603_v20, %v16379_v49  ;;  %v3767_v55 = vrot.slane %v3753_v38, %v16379_v49  ;;  %15314 = vmatpush3.bf16.msra.mxu1 %v16021_v63  ;;  %v14454_v40 = vld.sshfl [vmem:[%s16346_s27 + $0xb8] sm:$0x33 pattern:$0x76325410] }
 0x1ca   : > { %v3486_v50 = vsel %vm16626_vm14, %v13950_v4, %v3485_v18  ;;  %v3487_v62 = vrot.slane %v3485_v18, 2  ;;  %v3490_v14 = vrot.slane %v3488_v37, 2  ;;  %v3493_v21 = vrot.slane %v3491_v57, 2  ;;  %15595 = vmatprep.subr.bf16.mxu1 %v16059_v25 }
 0x1cb   : > { %v9618_v19 = vcombine.low %v9610_v2, %v9617_v42  ;;  %v3494_v7 = vrot.slane %v17663_v34, 7  ;;  %v9270_v47 = vcombine.high %v14450_v53, %v14450_v53  ;;  %v3768_v56 = vcombine.low %v3760_v1, %v3767_v55  ;;  %v17703_v6 = vld.sshfl [vmem:[%s16346_s27 + $0x44] sm:$0x13 pattern:$0x76325410] }
 0x1cc   : > { %v3489_v30 = vsel %vm16626_vm14, %v3487_v62, %v3488_v37  ;;  %v3492_v32 = vsel %vm16626_vm14, %v3490_v14, %v3491_v57  ;;  %v9278_v15 = vcombine.high %v14451_v3, %v14451_v3  ;;  %v17691_v45 = vcombine.high %v17663_v34, %v17663_v34  ;;  %v13916_v20 = vld.sshfl [vmem:[%s16346_s27 + $0x48] sm:$0x32 pattern:$0x76325410] }
 0x1cd   : > { %15487 = vmatprep.mubr.msk.bf16.mxu0 %vm2061_vm7, %v9618_v19  ;;  %v3495_v17 = vsel %vm16626_vm14, %v3493_v21, %v3494_v7  ;;  %v3769_v26 = vcombine.low %v3486_v50, %v3489_v30  ;;  %v9619_v44 = vcombine.low %v14450_v53, %v9270_v47  ;;  %15275 = vmatprep.mubr.msk.bf16.mxu1 %vm2061_vm7, %v3768_v56  ;;  %v3496_v12 = vrot.slane %v3494_v7, 2  ;;  %v17723_v55 = vld.sshfl [vmem:[%s16346_s27 + $0x50] sm:$0x13 pattern:$0x76325410] }
 0x1ce   : > { %v3770_v5 = vcombine.low %v3492_v32, %v3495_v17  ;;  %v9620_v51 = vcombine.low %v14451_v3, %v9278_v15  ;;  %v3155_v41 = vcombine.high %v13913_v43, %v13913_v43  ;;  %v3497_v16 = vrot.slane %v17691_v45, 7  ;;  %v14456_v3 = vld.sshfl [vmem:[%s16346_s27 + $0xc0] sm:$0x33 pattern:$0x76325410] }
 0x1cf   : > { %v3777_v27 = vrot.slane %v3769_v26, %v16379_v49  ;;  %v9627_v39 = vrot.slane %v9619_v44, %v16379_v49  ;;  %v13951_v22 = vrot.slane %v13913_v43, 9  ;;  %v3504_v10 = vrot.slane %v17394_v46, 7  ;;  %v13919_v21 = vld.sshfl [vmem:[%s16346_s27 + $0x54] sm:$0x32 pattern:$0x76325410] }
 0x1d0   : > { %v3784_v58 = vrot.slane %v3770_v5, %v16379_v49  ;;  %v9634_v63 = vrot.slane %v9620_v51, %v16379_v49  ;;  %v3501_v11 = vrot.slane %v3155_v41, 7  ;;  %v3498_v9 = vsel %vm16626_vm14, %v3496_v12, %v3497_v16 }
 0x1d1   : > { %v3507_v48 = vrot.slane %v17414_v29, 7  ;;  %v9293_v23 = vcombine.high %v14453_v54, %v14453_v54  ;;  %v9636_v60 = vcombine.low %v17478_v31, %v14453_v54  ;;  %v3506_v46 = vrot.slane %v3504_v10, 2 }
 0x1d2   : > { %v3785_v53 = vcombine.low %v3777_v27, %v3784_v58  ;;  %v9635_v38 = vcombine.low %v9627_v39, %v9634_v63  ;;  %v3502_v4 = vsel %vm16626_vm14, %v13951_v22, %v3501_v11  ;;  %v3503_v18 = vrot.slane %v3501_v11, 2  ;;  %v14457_v22 = vld.sshfl [vmem:[%s16346_s27 + $0xc4] sm:$0x33 pattern:$0x76325410] }
 0x1d3   : > { %v3786_v37 = vcombine.low %v3498_v9, %v3502_v4  ;;  %v9637_v1 = vcombine.low %v9293_v23, %v14454_v40  ;;  %v9644_v2 = vrot.slane %v9636_v60, %v16379_v49  ;;  %v17719_v31 = vcombine.high %v17703_v6, %v17703_v6  ;;  %v13921_v4 = vld.sshfl [vmem:[%s16346_s27 + $0x5c] sm:$0x13 pattern:$0x76325410] }
 0x1d4   : > { %15276 = vmatmul.mubr.msk.bf16.gmra.mrb[8].mxu1 %vm2061_vm7, %v3785_v53  ;;  %15488 = vmatmul.mubr.msk.bf16.gmra.mrb[28].mxu0 %vm2061_vm7, %v9635_v38  ;;  %v3505_v29 = vsel %vm16626_vm14, %v3503_v18, %v3504_v10  ;;  %v3179_v42 = vcombine.high %v13916_v20, %v13916_v20  ;;  %v3509_v57 = vrot.slane %v3507_v48, 2  ;;  %v3508_v50 = vsel %vm16626_vm14, %v3506_v46, %v3507_v48  ;;  %v14458_v10 = vld.sshfl [vmem:[%s16346_s27 + $0xc8] sm:$0x3 pattern:$0x76325410] }
 0x1d5   : > { %v3794_v62 = vrot.slane %v3786_v37, %v16379_v49  ;;  %v9651_v14 = vrot.slane %v9637_v1, %v16379_v49  ;;  %v3510_v19 = vrot.slane %v17703_v6, 7  ;;  %v3787_v7 = vcombine.low %v3505_v29, %v3508_v50 }
 0x1d6   : > { %v3513_v47 = vrot.slane %v17719_v31, 7  ;;  %v13952_v43 = vrot.slane %v13916_v20, 9  ;;  %v3517_v25 = vrot.slane %v3179_v42, 7  ;;  %v3520_v15 = vrot.slane %v17417_v8, 7 }
 0x1d7   : > { %v9652_v56 = vcombine.low %v9644_v2, %v9651_v14  ;;  %v3511_v30 = vsel %vm16626_vm14, %v3509_v57, %v3510_v19  ;;  %v3512_v32 = vrot.slane %v3510_v19, 2  ;;  %v3801_v17 = vrot.slane %v3787_v7, %v16379_v49  ;;  %v14459_v20 = vld.sshfl [vmem:[%s16346_s27 + $0xcc] sm:$0x33 pattern:$0x76325410] }
 0x1d8   : > { %v3518_v26 = vsel %vm16626_vm14, %v13952_v43, %v3517_v25  ;;  %v3519_v44 = vrot.slane %v3517_v25, 2  ;;  %v9301_v5 = vcombine.high %v14454_v40, %v14454_v40  ;;  %v9316_v41 = vcombine.high %v14456_v3, %v14456_v3  ;;  %v14460_v43 = vld.sshfl [vmem:[%s16346_s27 + $0xd0] sm:$0x33 pattern:$0x76325410] }
 0x1d9   : > { %15491 = vmatprep.mubr.msk.bf16.mxu0 %vm2061_vm7, %v9652_v56  ;;  %v3514_v51 = vsel %vm16626_vm14, %v3512_v32, %v3513_v47  ;;  %v17743_v12 = vcombine.high %v17723_v55, %v17723_v55  ;;  %v3203_v54 = vcombine.high %v13919_v21, %v13919_v21  ;;  %v3802_v8 = vcombine.low %v3794_v62, %v3801_v17 }
 0x1da   : > { %v3521_v27 = vsel %vm16626_vm14, %v3519_v44, %v3520_v15  ;;  %v3803_v39 = vcombine.low %v3511_v30, %v3514_v51  ;;  %v9653_v16 = vcombine.low %v9301_v5, %v17504_v59  ;;  %v9654_v58 = vcombine.low %v14456_v3, %v9316_v41  ;;  %v13923_v51 = vld.sshfl [vmem:[%s16346_s27 + $0x64] sm:$0x33 pattern:$0x76325410] }
 0x1db   : > { %v3804_v40 = vcombine.low %v3518_v26, %v3521_v27  ;;  %v3522_v63 = vrot.slane %v3520_v15, 2  ;;  %v3523_v11 = vrot.slane %v17439_v0, 7  ;;  %15279 = vmatprep.mubr.msk.bf16.mxu1 %vm2061_vm7, %v3802_v8  ;;  %v3526_v23 = vrot.slane %v17723_v55, 7 }
 0x1dc   : > { %v3811_v9 = vrot.slane %v3803_v39, %v16379_v49  ;;  %v9661_v48 = vrot.slane %v9653_v16, %v16379_v49  ;;  %v3529_v60 = vrot.slane %v17743_v12, 7  ;;  %v9668_v53 = vrot.slane %v9654_v58, %v16379_v49  ;;  %v13922_v15 = vld.sshfl [vmem:[%s16346_s27 + $0x60] sm:$0x32 pattern:$0x76325410] }
 0x1dd   : > { %v3818_v59 = vrot.slane %v3804_v40, %v16379_v49  ;;  %v3524_v38 = vsel %vm16626_vm14, %v3522_v63, %v3523_v11  ;;  %v3525_v0 = vrot.slane %v3523_v11, 2  ;;  %v3528_v18 = vrot.slane %v3526_v23, 2  ;;  %v14461_v39 = vld.sshfl [vmem:[%s16346_s27 + $0xd4] sm:$0x3 pattern:$0x76325410] }
 0x1de   : > { %v13953_v46 = vrot.slane %v13919_v21, 9  ;;  %v3533_v37 = vrot.slane %v3203_v54, 7  ;;  %v9324_v1 = vcombine.high %v14457_v22, %v14457_v22  ;;  %v9669_v29 = vcombine.low %v9661_v48, %v9668_v53  ;;  %v17788_v63 = vld.sshfl [vmem:[%s16346_s27 + $0x68] sm:$0x13 pattern:$0x76325410] }
 0x1df   : > { %v3819_v2 = vcombine.low %v3811_v9, %v3818_v59  ;;  %v3527_v42 = vsel %vm16626_vm14, %v3525_v0, %v3526_v23  ;;  %v9671_v57 = vcombine.low %v14458_v10, %v14459_v20  ;;  %v3530_v3 = vsel %vm16626_vm14, %v3528_v18, %v3529_v60  ;;  %v14534_v9 = vld.sshfl [vmem:[%s16346_s27 + $0x18] sm:$0x33 pattern:$0x76325410] }
 0x1e0   : > { %v3534_v50 = vsel %vm16626_vm14, %v13953_v46, %v3533_v37  ;;  %v3820_v62 = vcombine.low %v3524_v38, %v3527_v42  ;;  %v9670_v14 = vcombine.low %v14457_v22, %v9324_v1  ;;  %15492 = vmatmul.mubr.msk.bf16.gmra.mrb[32].mxu0 %vm2061_vm7, %v9669_v29  ;;  %v3219_v7 = vcombine.high %v13921_v4, %v13921_v4  ;;  %v14535_v59 = vld.sshfl [vmem:[%s16346_s27 + $0x1c] sm:$0x33 pattern:$0x76325410] }
 0x1e1   : > { %15280 = vmatmul.mubr.msk.bf16.gmra.mrb[12].mxu1 %vm2061_vm7, %v3819_v2  ;;  %v3821_v19 = vcombine.low %v3530_v3, %v3534_v50  ;;  %v9685_v21 = vrot.slane %v9671_v57, %v16379_v49  ;;  %v3535_v47 = vrot.slane %v3533_v37, 2  ;;  %v3536_v30 = vrot.slane %v17463_v24, 7 }
 0x1e2   : > { %v3828_v25 = vrot.slane %v3820_v62, %v16379_v49  ;;  %v9678_v56 = vrot.slane %v9670_v14, %v16379_v49  ;;  %v3539_v32 = vrot.slane %v17485_v52, 7  ;;  %v3542_v26 = vrot.slane %v13921_v4, 7 }
 0x1e3   : > { %v3835_v17 = vrot.slane %v3821_v19, %v16379_v49  ;;  %v3545_v44 = vrot.slane %v3219_v7, 7  ;;  %v9339_v5 = vcombine.high %v14459_v20, %v14459_v20  ;;  %v3537_v54 = vsel %vm16626_vm14, %v3535_v47, %v3536_v30 }
 0x1e4   : > { %v9686_v41 = vcombine.low %v9678_v56, %v9685_v21  ;;  %v3538_v8 = vrot.slane %v3536_v30, 2  ;;  %v3541_v27 = vrot.slane %v3539_v32, 2  ;;  %v3544_v24 = vrot.slane %v3542_v26, 2 }
 0x1e5   : > { %v3836_v16 = vcombine.low %v3828_v25, %v3835_v17  ;;  %v9347_v52 = vcombine.high %v14460_v43, %v14460_v43  ;;  %v9687_v22 = vcombine.low %v9339_v5, %v14460_v43  ;;  %v3227_v11 = vcombine.high %v13922_v15, %v13922_v15 }
 0x1e6   : > { %15495 = vmatprep.mubr.msk.bf16.mxu0 %vm2061_vm7, %v9686_v41  ;;  %v3540_v40 = vsel %vm16626_vm14, %v3538_v8, %v3539_v32  ;;  %v3543_v58 = vsel %vm16626_vm14, %v3541_v27, %v3542_v26  ;;  %v3235_v10 = vcombine.high %v13923_v51, %v13923_v51  ;;  %v3546_v48 = vsel %vm16626_vm14, %v3544_v24, %v3545_v44 }
 0x1e7   : > { %15283 = vmatprep.mubr.msk.bf16.mxu1 %vm2061_vm7, %v3836_v16  ;;  %v3837_v23 = vcombine.low %v3537_v54, %v3540_v40  ;;  %v9688_v60 = vcombine.low %v9347_v52, %v14461_v39  ;;  %v9695_v20 = vrot.slane %v9687_v22, %v16379_v49  ;;  %v3838_v53 = vcombine.low %v3543_v58, %v3546_v48  ;;  %v13925_v16 = vld.sshfl [vmem:[%s16346_s27 + $0x6c] sm:$0x32 pattern:$0x76325410] }
 0x1e8   : > { %v13954_v38 = vrot.slane %v13922_v15, 9  ;;  %v3549_v0 = vrot.slane %v3227_v11, 7  ;;  %v3552_v4 = vrot.slane %v13923_v51, 7  ;;  %v3555_v37 = vrot.slane %v3235_v10, 7 }
 0x1e9   : > { %v3845_v18 = vrot.slane %v3837_v23, %v16379_v49  ;;  %v9702_v46 = vrot.slane %v9688_v60, %v16379_v49  ;;  %v3558_v1 = vrot.slane %v17788_v63, 7  ;;  %v3852_v2 = vrot.slane %v3838_v53, %v16379_v49  ;;  %v13926_v48 = vld.sshfl [vmem:[%s16346_s27 + $0x70] sm:$0x33 pattern:$0x76325410] }
 0x1ea   : > { %v3550_v29 = vsel %vm16626_vm14, %v13954_v38, %v3549_v0  ;;  %v3551_v42 = vrot.slane %v3549_v0, 2  ;;  %v3554_v57 = vrot.slane %v3552_v4, 2  ;;  %v3557_v50 = vrot.slane %v3555_v37, 2 }
 0x1eb   : > { %v9703_v3 = vcombine.low %v9695_v20, %v9702_v46  ;;  %v10124_v62 = vcombine.high %v14534_v9, %v14534_v9  ;;  %v10132_v14 = vcombine.high %v14535_v59, %v14535_v59  ;;  %v3853_v19 = vcombine.low %v3845_v18, %v3852_v2 }
 0x1ec   : > { %v3553_v21 = vsel %vm16626_vm14, %v3551_v42, %v3552_v4  ;;  %v3556_v7 = vsel %vm16626_vm14, %v3554_v57, %v3555_v37  ;;  %v10502_v47 = vshrl.u32 %v14534_v9, 16  ;;  %v3559_v43 = vsel %vm16626_vm14, %v3557_v50, %v3558_v1 }
 0x1ed   : > { %15496 = vmatmul.mubr.msk.bf16.gmra.mrb[36].mxu0 %vm2061_vm7, %v9703_v3  ;;  %v3854_v25 = vcombine.low %v3550_v29, %v3553_v21  ;;  %v10505_v56 = vshll.u32 %v14534_v9, 16  ;;  %v10511_v30 = vshll.u32 %v10124_v62, 16  ;;  %15284 = vmatmul.mubr.msk.bf16.gmra.mrb[16].mxu1 %vm2061_vm7, %v3853_v19  ;;  %v3855_v32 = vcombine.low %v3556_v7, %v3559_v43 }
 0x1ee   : > { %v10504_v15 = vrot.slane %v10502_v47, 6  ;;  %v10515_v17 = vshrl.u32 %v10124_v62, 16  ;;  %v10521_v26 = vshll.u32 %v14535_v59, 16  ;;  %v10525_v41 = vshrl.u32 %v14535_v59, 16 }
 0x1ef   : > { %v3862_v44 = vrot.slane %v3854_v25, %v16379_v49  ;;  %v10507_v5 = vrot.slane %v10505_v56, 7  ;;  %v10513_v51 = vrot.slane %v10511_v30, 7  ;;  %v3869_v54 = vrot.slane %v3855_v32, %v16379_v49 }
 0x1f0   : > { %v10517_v8 = vrot.slane %v10515_v17, 6  ;;  %v10523_v27 = vrot.slane %v10521_v26, 7  ;;  %v10531_v39 = vshll.u32 %v10132_v14, 16  ;;  %v10527_v52 = vrot.slane %v10525_v41, 6 }
 0x1f1   : > { %v10508_v24 = vor.u32 %v10507_v5, %v10504_v15  ;;  %v10535_v22 = vshrl.u32 %v10132_v14, 16  ;;  %v10541_v40 = vshll.u32 %v17593_v36, 16  ;;  %v3870_v58 = vcombine.low %v3862_v44, %v3869_v54  ;;  %v14537_v14 = vld.sshfl [vmem:[%s16346_s27 + $0x24] sm:$0x33 pattern:$0x76325410] }
 0x1f2   : > { %v10518_v11 = vor.u32 %v10517_v8, %v10513_v51  ;;  %v10533_v10 = vrot.slane %v10531_v39, 7  ;;  %v10545_v9 = vshrl.u32 %v17593_v36, 16  ;;  %v10528_v60 = vor.u32 %v10527_v52, %v10523_v27  ;;  %v14538_v26 = vld.sshfl [vmem:[%s16346_s27 + $0x28] sm:$0x33 pattern:$0x76325410] }
 0x1f3   : > { %v10509_v23 = vrot.slane %v10508_v24, 2  ;;  %v10537_v20 = vrot.slane %v10535_v22, 6  ;;  %v10543_v59 = vrot.slane %v10541_v40, 7  ;;  %15287 = vmatprep.mubr.msk.bf16.mxu1 %vm2061_vm7, %v3870_v58  ;;  %v10551_v0 = vshll.u32 %v17609_v33, 16 }
 0x1f4   : > { %v10519_v53 = vrot.slane %v10518_v11, 2  ;;  %v10547_v38 = vrot.slane %v10545_v9, 6  ;;  %v3243_v4 = vcombine.high %v17788_v63, %v17788_v63  ;;  %v10529_v37 = vrot.slane %v10528_v60, 2 }
 0x1f5   : > { %v10514_v46 = vsel %vm16373_vm6, %v10509_v23, %v10513_v51  ;;  %v10538_v36 = vor.u32 %v10537_v20, %v10533_v10  ;;  %v3251_v2 = vcombine.high %v13925_v16, %v13925_v16  ;;  %v17824_v57 = vrot.slane %v10551_v0, 7  ;;  %v17850_v40 = vld.sshfl [vmem:[%s16346_s27 + $0x74] sm:$0x13 pattern:$0x76325410] }
 0x1f6   : > { %v10524_v29 = vsel %vm16373_vm6, %v10519_v53, %v10523_v27  ;;  %v10548_v42 = vor.u32 %v10547_v38, %v10543_v59  ;;  %v3259_v3 = vcombine.high %v13926_v48, %v13926_v48  ;;  %v10534_v50 = vsel %vm16373_vm6, %v10529_v37, %v10533_v10 }
 0x1f7   : > { %v10539_v33 = vrot.slane %v10538_v36, 2  ;;  %v11374_v62 = vcombine.low %v10514_v46, %v10524_v29  ;;  %v3560_v63 = vrot.slane %v3558_v1, 2  ;;  %v3561_v21 = vrot.slane %v3243_v4, 7 }
 0x1f8   : > { %v17829_v19 = vrot.slane %v10548_v42, 2  ;;  %v13955_v7 = vrot.slane %v13925_v16, 9  ;;  %v3565_v47 = vrot.slane %v3251_v2, 7  ;;  %v3568_v56 = vrot.slane %v13926_v48, 7 }
 0x1f9   : > { %v10544_v43 = vsel %vm16373_vm6, %v10539_v33, %v10543_v59  ;;  %v11382_v25 = vrot.slane %v11374_v62, %v16379_v49  ;;  %v3571_v30 = vrot.slane %v3259_v3, 7  ;;  %v3562_v15 = vsel %vm16626_vm14, %v3560_v63, %v3561_v21  ;;  %v13928_v48 = vld.sshfl [vmem:[%s16346_s27 + $0x78] sm:$0x32 pattern:$0x76325410] }
 0x1fa   : > { %v11375_v32 = vcombine.low %v10534_v50, %v10544_v43  ;;  %v3566_v1 = vsel %vm16626_vm14, %v13955_v7, %v3565_v47  ;;  %v3567_v17 = vrot.slane %v3565_v47, 2  ;;  %v3570_v44 = vrot.slane %v3568_v56, 2  ;;  %v17860_v3 = vld.sshfl [vmem:[%s16346_s27 + $0x7c] sm:$0x33 pattern:$0x76325410] }
 0x1fb   : > { %v3871_v5 = vcombine.low %v3562_v15, %v3566_v1  ;;  %v10148_v51 = vcombine.high %v14537_v14, %v14537_v14  ;;  %v10156_v41 = vcombine.high %v14538_v26, %v14538_v26  ;;  %v10554_v27 = vsel %vm16373_vm6, %v17829_v19, %v17824_v57  ;;  %v14540_v33 = vld.sshfl [vmem:[%s16346_s27 + $0x30] sm:$0x33 pattern:$0x76325410] }
 0x1fc   : > { %v11389_v54 = vrot.slane %v11375_v32, %v16379_v49  ;;  %v3569_v8 = vsel %vm16626_vm14, %v3567_v17, %v3568_v56  ;;  %v10556_v39 = vshrl.u32 %v14537_v14, 16  ;;  %v3572_v16 = vsel %vm16626_vm14, %v3570_v44, %v3571_v30 }
 0x1fd   : > { %v3879_v24 = vrot.slane %v3871_v5, %v16379_v49  ;;  %v10559_v52 = vshll.u32 %v14537_v14, 16  ;;  %v10565_v22 = vshll.u32 %v10148_v51, 16  ;;  %v3872_v11 = vcombine.low %v3569_v8, %v3572_v16 }
 0x1fe   : > { %v11390_v58 = vcombine.low %v11382_v25, %v11389_v54  ;;  %v10558_v10 = vrot.slane %v10556_v39, 6  ;;  %v10569_v9 = vshrl.u32 %v10148_v51, 16  ;;  %v10575_v20 = vshll.u32 %v14538_v26, 16 }
 0x1ff   : > { %v10561_v23 = vrot.slane %v10559_v52, 7  ;;  %v10567_v60 = vrot.slane %v10565_v22, 7  ;;  %v10579_v59 = vshrl.u32 %v14538_v26, 16  ;;  %v3886_v53 = vrot.slane %v3872_v11, %v16379_v49 }
 0x200   : > { %15507 = vmatprep.mubr.msk.bf16.mxu0 %vm2061_vm7, %v11390_v58  ;;  %v10571_v38 = vrot.slane %v10569_v9, 6  ;;  %v10585_v0 = vshll.u32 %v10156_v41, 16  ;;  %v17857_v4 = vcombine.high %v17850_v40, %v17850_v40  ;;  %v10577_v37 = vrot.slane %v10575_v20, 7 }
 0x201   : > { %v10562_v46 = vor.u32 %v10561_v23, %v10558_v10  ;;  %v10581_v36 = vrot.slane %v10579_v59, 6  ;;  %v3275_v2 = vcombine.high %v13928_v48, %v13928_v48  ;;  %v3887_v29 = vcombine.low %v3879_v24, %v3886_v53  ;;  %v17889_v23 = vld.sshfl [vmem:[%s16346_s27 + $0x34] sm:$0x33 pattern:$0x76325410] }
 0x202   : > { %v10572_v42 = vor.u32 %v10571_v38, %v10567_v60  ;;  %v10587_v57 = vrot.slane %v10585_v0, 7  ;;  %v3573_v50 = vrot.slane %v3571_v30, 2  ;;  %v3574_v14 = vrot.slane %v17850_v40, 7 }
 0x203   : > { %v10563_v62 = vrot.slane %v10562_v46, 2  ;;  %v10582_v63 = vor.u32 %v10581_v36, %v10577_v37  ;;  %v3577_v19 = vrot.slane %v17857_v4, 7  ;;  %15288 = vmatmul.mubr.msk.bf16.gmra.mrb[20].mxu1 %vm2061_vm7, %v3887_v29  ;;  %v13956_v7 = vrot.slane %v13928_v48, 9 }
 0x204   : > { %v10573_v21 = vrot.slane %v10572_v42, 2  ;;  %v3581_v47 = vrot.slane %v3275_v2, 7  ;;  %v3584_v43 = vrot.slane %v17860_v3, 7  ;;  %v3575_v30 = vsel %vm16626_vm14, %v3573_v50, %v3574_v14 }
 0x205   : > { %v10568_v25 = vsel %vm16373_vm6, %v10563_v62, %v10567_v60  ;;  %v10583_v56 = vrot.slane %v10582_v63, 2  ;;  %v3576_v32 = vrot.slane %v3574_v14, 2  ;;  %v10172_v51 = vcombine.high %v14540_v33, %v14540_v33  ;;  %v17892_v53 = vld.sshfl [vmem:[%s16346_s27 + $0x80] sm:$0x13 pattern:$0x76325410] }
 0x206   : > { %v10578_v15 = vsel %vm16373_vm6, %v10573_v21, %v10577_v37  ;;  %v11391_v1 = vcombine.low %v10554_v27, %v10568_v25  ;;  %v3582_v17 = vsel %vm16626_vm14, %v13956_v7, %v3581_v47  ;;  %v3583_v26 = vrot.slane %v3581_v47, 2  ;;  %v16022_v37 = vld [vmem:[#allocation5 + $0x108] sm:$0xff]  }
 0x207   : > { %v10588_v44 = vsel %vm16373_vm6, %v10583_v56, %v10587_v57  ;;  %v3578_v5 = vsel %vm16626_vm14, %v3576_v32, %v3577_v19  ;;  %v10589_v54 = vshrl.u32 %v10156_v41, 16  ;;  %v10595_v22 = vshll.u32 %v17626_v35, 16  ;;  %v13931_v42 = vld.sshfl [vmem:[%s16346_s27 + $0x84] sm:$0x32 pattern:$0x76325410] }
 0x208   : > { %v11392_v8 = vcombine.low %v10578_v15, %v10588_v44  ;;  %v11399_v39 = vrot.slane %v11391_v1, %v16379_v49  ;;  %v3585_v27 = vsel %vm16626_vm14, %v3583_v26, %v3584_v43  ;;  %v3888_v16 = vcombine.low %v3575_v30, %v3578_v5  ;;  %v16023_v44 = vld [vmem:[#allocation5 + $0x110] sm:$0xff]  }
 0x209   : > { %v3889_v24 = vcombine.low %v3582_v17, %v3585_v27  ;;  %v10591_v52 = vrot.slane %v10589_v54, 6  ;;  %v10599_v58 = vshrl.u32 %v17626_v35, 16  ;;  %v10605_v41 = vshll.u32 %v17639_v28, 16 }
 0x20a   : > { %v11406_v11 = vrot.slane %v11392_v8, %v16379_v49  ;;  %v3896_v10 = vrot.slane %v3888_v16, %v16379_v49  ;;  %v10610_v9 = vshrl.u32 %v14540_v33, 16  ;;  %v10597_v20 = vrot.slane %v10595_v22, 7 }
 0x20b   : > { %v3903_v48 = vrot.slane %v3889_v24, %v16379_v49  ;;  %v10592_v60 = vor.u32 %v10591_v52, %v10587_v57  ;;  %v10601_v59 = vrot.slane %v10599_v58, 6  ;;  %v10607_v0 = vrot.slane %v10605_v41, 7  ;;  %v14543_v24 = vld.sshfl [vmem:[%s16346_s27 + $0x3c] sm:$0x33 pattern:$0x76325410] }
 0x20c   : > { %v11407_v38 = vcombine.low %v11399_v39, %v11406_v11  ;;  %v10612_v35 = vrot.slane %v10610_v9, 6  ;;  %v10613_v46 = vshll.u32 %v14540_v33, 16  ;;  %v10619_v28 = vshll.u32 %v10172_v51, 16 }
 0x20d   : > { %v3904_v36 = vcombine.low %v3896_v10, %v3903_v48  ;;  %v10593_v2 = vrot.slane %v10592_v60, 2  ;;  %v10602_v29 = vor.u32 %v10601_v59, %v10597_v20  ;;  %v10623_v62 = vshrl.u32 %v10172_v51, 16 }
 0x20e   : > { %15508 = vmatmul.mubr.msk.bf16.vlgmr.msra.gmra.mrb[0].mxu0 %vm2061_vm7, %v11407_v38  ;;  %v10615_v50 = vrot.slane %v10613_v46, 7  ;;  %v10629_v57 = vshll.u32 %v17889_v23, 16  ;;  %v3283_v63 = vcombine.high %v17860_v3, %v17860_v3  ;;  %v10621_v19 = vrot.slane %v10619_v28, 7 }
 0x20f   : > { %15548 = vmatpush3.bf16.msra.mxu0 %v17538_v13  ;;  %15291 = vmatprep.mubr.msk.bf16.mxu1 %vm2061_vm7, %v3904_v36  ;;  %v10598_v33 = vsel %vm16373_vm6, %v10593_v2, %v10597_v20  ;;  %v10603_v14 = vrot.slane %v10602_v29, 2  ;;  %v17905_v21 = vcombine.high %v17892_v53, %v17892_v53  ;;  %v10625_v47 = vrot.slane %v10623_v62, 6 }
 0x210   : > { %v10616_v7 = vor.u32 %v10615_v50, %v10612_v35  ;;  %v10631_v25 = vrot.slane %v10629_v57, 7  ;;  %v3299_v56 = vcombine.high %v13931_v42, %v13931_v42  ;;  %15549 = vmatprep.subr.bf16.mxu0 %v16022_v37  ;;  %v3586_v13 = vrot.slane %v3584_v43, 2 }
 0x211   : > { %v10608_v3 = vsel %vm16373_vm6, %v10603_v14, %v10607_v0  ;;  %v3587_v30 = vrot.slane %v3283_v63, 7  ;;  %v3590_v32 = vrot.slane %v17892_v53, 7  ;;  %v10626_v1 = vor.u32 %v10625_v47, %v10621_v19 }
 0x212   : > { %v10617_v15 = vrot.slane %v10616_v7, 2  ;;  %v11408_v17 = vcombine.low %v10598_v33, %v10608_v3  ;;  %v3593_v26 = vrot.slane %v17905_v21, 7  ;;  %v13957_v8 = vrot.slane %v13931_v42, 9 }
 0x213   : > { %v3588_v5 = vsel %vm16626_vm14, %v3586_v13, %v3587_v30  ;;  %v3589_v51 = vrot.slane %v3587_v30, 2  ;;  %v3592_v54 = vrot.slane %v3590_v32, 2  ;;  %15550 = vmatpush3.bf16.msra.mxu0 %v16022_v37  ;;  %v10627_v39 = vrot.slane %v10626_v1, 2 }
 0x214   : > { %v10622_v43 = vsel %vm16373_vm6, %v10617_v15, %v10621_v19  ;;  %v11416_v27 = vrot.slane %v11408_v17, %v16379_v49  ;;  %v3597_v16 = vrot.slane %v3299_v56, 7  ;;  %15551 = vmatprep.subr.bf16.mxu0 %v16023_v44  ;;  %v10180_v58 = vcombine.high %v17889_v23, %v17889_v23  ;;  %v17940_v7 = vld.sshfl [vmem:[%s16346_s27 + $0x8c] sm:$0x13 pattern:$0x76325410] }
 0x215   : > { %v3591_v52 = vsel %vm16626_vm14, %v3589_v51, %v3590_v32  ;;  %v3594_v22 = vsel %vm16626_vm14, %v3592_v54, %v3593_v26  ;;  %v17923_v11 = vcombine.high %v14543_v24, %v14543_v24  ;;  %v10632_v10 = vsel %vm16373_vm6, %v10627_v39, %v10631_v25  ;;  %v14544_v26 = vld.sshfl [vmem:[%s16346_s27 + $0x40] sm:$0x33 pattern:$0x76325410] }
 0x216   : > { %v3598_v41 = vsel %vm16626_vm14, %v13957_v8, %v3597_v16  ;;  %v3905_v9 = vcombine.low %v3588_v5, %v3591_v52  ;;  %v10633_v48 = vshrl.u32 %v17889_v23, 16  ;;  %v11409_v60 = vcombine.low %v10622_v43, %v10632_v10  ;;  %v17936_v23 = vld.sshfl [vmem:[%s16346_s27 + $0x88] sm:$0x33 pattern:$0x76325410] }
 0x217   : > { %v3906_v20 = vcombine.low %v3594_v22, %v3598_v41  ;;  %v10639_v59 = vshll.u32 %v10180_v58, 16  ;;  %v10643_v38 = vshrl.u32 %v10180_v58, 16  ;;  %15552 = vmatpush3.bf16.msra.mxu0 %v16023_v44  ;;  %v10649_v46 = vshll.u32 %v17663_v34, 16 }
 0x218   : > { %v3913_v0 = vrot.slane %v3905_v9, %v16379_v49  ;;  %v10635_v35 = vrot.slane %v10633_v48, 6  ;;  %v10653_v37 = vshrl.u32 %v17663_v34, 16  ;;  %v11423_v36 = vrot.slane %v11409_v60, %v16379_v49 }
 0x219   : > { %v3920_v2 = vrot.slane %v3906_v20, %v16379_v49  ;;  %v10641_v29 = vrot.slane %v10639_v59, 7  ;;  %v10645_v28 = vrot.slane %v10643_v38, 6  ;;  %v10651_v50 = vrot.slane %v10649_v46, 7 }
 0x21a   : > { %v10636_v42 = vor.u32 %v10635_v35, %v10631_v25  ;;  %v10655_v62 = vrot.slane %v10653_v37, 6  ;;  %v10659_v57 = vshll.u32 %v17691_v45, 16  ;;  %v11424_v63 = vcombine.low %v11416_v27, %v11423_v36 }
 0x21b   : > { %v3921_v33 = vcombine.low %v3913_v0, %v3920_v2  ;;  %v10646_v14 = vor.u32 %v10645_v28, %v10641_v29  ;;  %v10664_v19 = vshrl.u32 %v14543_v24, 16  ;;  %v10667_v3 = vshll.u32 %v14543_v24, 16 }
 0x21c   : > { %v10637_v34 = vrot.slane %v10636_v42, 2  ;;  %v10656_v47 = vor.u32 %v10655_v62, %v10651_v50  ;;  %v10661_v56 = vrot.slane %v10659_v57, 7  ;;  %15511 = vmatprep.mubr.msk.bf16.mxu0 %vm2061_vm7, %v11424_v63  ;;  %v10673_v30 = vshll.u32 %v17923_v11, 16 }
 0x21d   : > { %15292 = vmatmul.mubr.msk.bf16.gmra.mrb[24].mxu1 %vm2061_vm7, %v3921_v33  ;;  %v10647_v25 = vrot.slane %v10646_v14, 2  ;;  %v10666_v13 = vrot.slane %v10664_v19, 6  ;;  %v17947_v45 = vcombine.high %v17936_v23, %v17936_v23  ;;  %v10669_v1 = vrot.slane %v10667_v3, 7 }
 0x21e   : > { %v10642_v32 = vsel %vm16373_vm6, %v10637_v34, %v10641_v29  ;;  %v10657_v15 = vrot.slane %v10656_v47, 2  ;;  %v17953_v17 = vcombine.high %v17940_v7, %v17940_v7  ;;  %v10675_v5 = vrot.slane %v10673_v30, 7  ;;  %v13934_v14 = vld.sshfl [vmem:[%s16346_s27 + $0x90] sm:$0x32 pattern:$0x76325410] }
 0x21f   : > { %v10652_v44 = vsel %vm16373_vm6, %v10647_v25, %v10651_v50  ;;  %v3599_v51 = vrot.slane %v3597_v16, 2  ;;  %v3600_v54 = vrot.slane %v17936_v23, 7  ;;  %v10670_v43 = vor.u32 %v10669_v1, %v10666_v13  ;;  %v17983_v3 = vld.sshfl [vmem:[%s16346_s27 + $0x94] sm:$0x33 pattern:$0x76325410] }
 0x220   : > { %v10662_v8 = vsel %vm16373_vm6, %v10657_v15, %v10661_v56  ;;  %v11425_v39 = vcombine.low %v10642_v32, %v10652_v44  ;;  %v3603_v27 = vrot.slane %v17947_v45, 7  ;;  %v3606_v22 = vrot.slane %v17940_v7, 7  ;;  %v14546_v15 = vld.sshfl [vmem:[%s16346_s27 + $0x48] sm:$0x33 pattern:$0x76325410] }
 0x221   : > { %v3601_v24 = vsel %vm16626_vm14, %v3599_v51, %v3600_v54  ;;  %v3602_v52 = vrot.slane %v3600_v54, 2  ;;  %v3609_v58 = vrot.slane %v17953_v17, 7  ;;  %v10671_v10 = vrot.slane %v10670_v43, 2 }
 0x222   : > { %v11433_v16 = vrot.slane %v11425_v39, %v16379_v49  ;;  %v3605_v41 = vrot.slane %v3603_v27, 2  ;;  %v10204_v9 = vcombine.high %v14544_v26, %v14544_v26  ;;  %v3608_v60 = vrot.slane %v3606_v22, 2 }
 0x223   : > { %v3604_v48 = vsel %vm16626_vm14, %v3602_v52, %v3603_v27  ;;  %v10677_v20 = vshrl.u32 %v17923_v11, 16  ;;  %v10683_v59 = vshll.u32 %v14544_v26, 16  ;;  %v10676_v38 = vsel %vm16373_vm6, %v10671_v10, %v10675_v5  ;;  %v14547_v52 = vld.sshfl [vmem:[%s16346_s27 + $0x4c] sm:$0x33 pattern:$0x76325410] }
 0x224   : > { %v3607_v0 = vsel %vm16626_vm14, %v3605_v41, %v3606_v22  ;;  %v3922_v35 = vcombine.low %v3601_v24, %v3604_v48  ;;  %v10687_v46 = vshrl.u32 %v14544_v26, 16  ;;  %v11426_v37 = vcombine.low %v10662_v8, %v10676_v38 }
 0x225   : > { %v3610_v36 = vsel %vm16626_vm14, %v3608_v60, %v3609_v58  ;;  %v10679_v2 = vrot.slane %v10677_v20, 6  ;;  %v10685_v29 = vrot.slane %v10683_v59, 7  ;;  %v10693_v50 = vshll.u32 %v10204_v9, 16 }
 0x226   : > { %v3923_v28 = vcombine.low %v3607_v0, %v3610_v36  ;;  %v3930_v11 = vrot.slane %v3922_v35, %v16379_v49  ;;  %v10689_v42 = vrot.slane %v10687_v46, 6  ;;  %v11440_v62 = vrot.slane %v11426_v37, %v16379_v49 }
 0x227   : > { %v10680_v57 = vor.u32 %v10679_v2, %v10675_v5  ;;  %v10697_v63 = vshrl.u32 %v10204_v9, 16  ;;  %v10703_v33 = vshll.u32 %v17703_v6, 16  ;;  %v10695_v47 = vrot.slane %v10693_v50, 7 }
 0x228   : > { %v3937_v19 = vrot.slane %v3923_v28, %v16379_v49  ;;  %v10690_v34 = vor.u32 %v10689_v42, %v10685_v29  ;;  %v10707_v56 = vshrl.u32 %v17703_v6, 16  ;;  %v11441_v25 = vcombine.low %v11433_v16, %v11440_v62  ;;  %v17991_v6 = vld.sshfl [vmem:[%s16346_s27 + $0x98] sm:$0x13 pattern:$0x76325410] }
 0x229   : > { %v10681_v13 = vrot.slane %v10680_v57, 2  ;;  %v10699_v30 = vrot.slane %v10697_v63, 6  ;;  %v10705_v32 = vrot.slane %v10703_v33, 7  ;;  %v10713_v5 = vshll.u32 %v17719_v31, 16 }
 0x22a   : > { %v3938_v1 = vcombine.low %v3930_v11, %v3937_v19  ;;  %v10691_v26 = vrot.slane %v10690_v34, 2  ;;  %v10709_v44 = vrot.slane %v10707_v56, 6  ;;  %15512 = vmatmul.mubr.msk.bf16.gmra.mrb[4].mxu0 %vm2061_vm7, %v11441_v25  ;;  %v3323_v8 = vcombine.high %v13934_v14, %v13934_v14 }
 0x22b   : > { %v10686_v51 = vsel %vm16373_vm6, %v10681_v13, %v10685_v29  ;;  %v10700_v54 = vor.u32 %v10699_v30, %v10695_v47  ;;  %v17995_v43 = vcombine.high %v17983_v3, %v17983_v3  ;;  %v10715_v31 = vrot.slane %v10713_v5, 7  ;;  %v13937_v13 = vld.sshfl [vmem:[%s16346_s27 + $0x9c] sm:$0x32 pattern:$0x76325410] }
 0x22c   : > { %15295 = vmatprep.mubr.msk.bf16.mxu1 %vm2061_vm7, %v3938_v1  ;;  %v10696_v39 = vsel %vm16373_vm6, %v10691_v26, %v10695_v47  ;;  %v10710_v27 = vor.u32 %v10709_v44, %v10705_v32  ;;  %v13958_v24 = vrot.slane %v13934_v14, 9  ;;  %v3613_v10 = vrot.slane %v3323_v8, 7  ;;  %v18022_v26 = vld.sshfl [vmem:[%s16346_s27 + $0xa0] sm:$0x33 pattern:$0x76325410] }
 0x22d   : > { %v10701_v22 = vrot.slane %v10700_v54, 2  ;;  %v11442_v58 = vcombine.low %v10686_v51, %v10696_v39  ;;  %v3616_v16 = vrot.slane %v17983_v3, 7  ;;  %v3619_v9 = vrot.slane %v17995_v43, 7 }
 0x22e   : > { %v10711_v41 = vrot.slane %v10710_v27, 2  ;;  %v3622_v48 = vrot.slane %v17991_v6, 7  ;;  %v10220_v60 = vcombine.high %v14546_v15, %v14546_v15  ;;  %v3614_v38 = vsel %vm16626_vm14, %v13958_v24, %v3613_v10 }
 0x22f   : > { %v10706_v20 = vsel %vm16373_vm6, %v10701_v22, %v10705_v32  ;;  %v11450_v59 = vrot.slane %v11442_v58, %v16379_v49  ;;  %v3615_v0 = vrot.slane %v3613_v10, 2  ;;  %v3618_v46 = vrot.slane %v3616_v16, 2 }
 0x230   : > { %v10716_v35 = vsel %vm16373_vm6, %v10711_v41, %v10715_v31  ;;  %v3621_v37 = vrot.slane %v3619_v9, 2  ;;  %v10228_v36 = vcombine.high %v14547_v52, %v14547_v52  ;;  %v10718_v28 = vshrl.u32 %v14546_v15, 16 }
 0x231   : > { %v11443_v2 = vcombine.low %v10706_v20, %v10716_v35  ;;  %v3617_v29 = vsel %vm16626_vm14, %v3615_v0, %v3616_v16  ;;  %v10721_v11 = vshll.u32 %v14546_v15, 16  ;;  %v3620_v42 = vsel %vm16626_vm14, %v3618_v46, %v3619_v9  ;;  %v14549_v0 = vld.sshfl [vmem:[%s16346_s27 + $0x54] sm:$0x33 pattern:$0x76325410] }
 0x232   : > { %v3623_v50 = vsel %vm16626_vm14, %v3621_v37, %v3622_v48  ;;  %v3939_v62 = vcombine.low %v3614_v38, %v3617_v29  ;;  %v10727_v57 = vshll.u32 %v10220_v60, 16  ;;  %v10720_v14 = vrot.slane %v10718_v28, 6  ;;  %v14550_v35 = vld.sshfl [vmem:[%s16346_s27 + $0x58] sm:$0x33 pattern:$0x76325410] }
 0x233   : > { %v11457_v63 = vrot.slane %v11443_v2, %v16379_v49  ;;  %v3940_v33 = vcombine.low %v3620_v42, %v3623_v50  ;;  %v10723_v19 = vrot.slane %v10721_v11, 7  ;;  %v10731_v56 = vshrl.u32 %v10220_v60, 16  ;;  %v16024_v50 = vld [vmem:[#allocation5 + $0x118] sm:$0xff]  }
 0x234   : > { %v3947_v34 = vrot.slane %v3939_v62, %v16379_v49  ;;  %v10729_v47 = vrot.slane %v10727_v57, 7  ;;  %v10737_v25 = vshll.u32 %v14547_v52, 16  ;;  %v10741_v1 = vshrl.u32 %v14547_v52, 16  ;;  %15553 = vmatprep.subr.bf16.mxu0 %v16024_v50 }
 0x235   : > { %v11458_v30 = vcombine.low %v11450_v59, %v11457_v63  ;;  %v3954_v32 = vrot.slane %v3940_v33, %v16379_v49  ;;  %v10724_v15 = vor.u32 %v10723_v19, %v10720_v14  ;;  %v10733_v44 = vrot.slane %v10731_v56, 6  ;;  %15554 = vmatpush3.bf16.msra.mxu0 %v16024_v50 }
 0x236   : > { %v10739_v5 = vrot.slane %v10737_v25, 7  ;;  %v10747_v51 = vshll.u32 %v10228_v36, 16  ;;  %v10751_v54 = vshrl.u32 %v10228_v36, 16  ;;  %v10743_v27 = vrot.slane %v10741_v1, 6 }
 0x237   : > { %15515 = vmatprep.mubr.msk.bf16.mxu0 %vm2061_vm7, %v11458_v30  ;;  %v3955_v8 = vcombine.low %v3947_v34, %v3954_v32  ;;  %v10725_v39 = vrot.slane %v10724_v15, 2  ;;  %v10757_v31 = vshll.u32 %v17723_v55, 16  ;;  %v10734_v24 = vor.u32 %v10733_v44, %v10729_v47 }
 0x238   : > { %v10749_v22 = vrot.slane %v10747_v51, 7  ;;  %v10753_v58 = vrot.slane %v10751_v54, 6  ;;  %v18028_v52 = vcombine.high %v17991_v6, %v17991_v6  ;;  %v10744_v16 = vor.u32 %v10743_v27, %v10739_v5 }
 0x239   : > { %15296 = vmatmul.mubr.msk.bf16.gmra.mrb[28].mxu1 %vm2061_vm7, %v3955_v8  ;;  %v10730_v10 = vsel %vm16373_vm6, %v10725_v39, %v10729_v47  ;;  %v10759_v41 = vrot.slane %v10757_v31, 7  ;;  %v3347_v9 = vcombine.high %v13937_v13, %v13937_v13  ;;  %v10735_v60 = vrot.slane %v10734_v24, 2  ;;  %v13940_v24 = vld.sshfl [vmem:[%s16346_s27 + $0xa8] sm:$0x32 pattern:$0x76325410] }
 0x23a   : > { %v10754_v20 = vor.u32 %v10753_v58, %v10749_v22  ;;  %v18035_v59 = vcombine.high %v18022_v26, %v18022_v26  ;;  %v3624_v38 = vrot.slane %v3622_v48, 2  ;;  %v10745_v46 = vrot.slane %v10744_v16, 2 }
 0x23b   : > { %v3625_v37 = vrot.slane %v18028_v52, 7  ;;  %v13959_v36 = vrot.slane %v13937_v13, 9  ;;  %v3629_v2 = vrot.slane %v3347_v9, 7  ;;  %v10740_v29 = vsel %vm16373_vm6, %v10735_v60, %v10739_v5 }
 0x23c   : > { %v10755_v28 = vrot.slane %v10754_v20, 2  ;;  %v3632_v11 = vrot.slane %v18022_v26, 7  ;;  %v3635_v42 = vrot.slane %v18035_v59, 7  ;;  %v10750_v62 = vsel %vm16373_vm6, %v10745_v46, %v10749_v22 }
 0x23d   : > { %v11459_v48 = vcombine.low %v10730_v10, %v10740_v29  ;;  %v3626_v57 = vsel %vm16626_vm14, %v3624_v38, %v3625_v37  ;;  %v3630_v63 = vsel %vm16626_vm14, %v13959_v36, %v3629_v2  ;;  %v3631_v14 = vrot.slane %v3629_v2, 2  ;;  %v18066_v9 = vld.sshfl [vmem:[%s16346_s27 + $0xa4] sm:$0x13 pattern:$0x76325410] }
 0x23e   : > { %v10760_v33 = vsel %vm16373_vm6, %v10755_v28, %v10759_v41  ;;  %v3634_v19 = vrot.slane %v3632_v11, 2  ;;  %v3956_v34 = vcombine.low %v3626_v57, %v3630_v63  ;;  %v10244_v25 = vcombine.high %v14549_v0, %v14549_v0  ;;  %v18071_v28 = vld.sshfl [vmem:[%s16346_s27 + $0xac] sm:$0x33 pattern:$0x76325410] }
 0x23f   : > { %v11460_v47 = vcombine.low %v10750_v62, %v10760_v33  ;;  %v11467_v56 = vrot.slane %v11459_v48, %v16379_v49  ;;  %v18053_v13 = vcombine.high %v14550_v35, %v14550_v35  ;;  %v3633_v30 = vsel %vm16626_vm14, %v3631_v14, %v3632_v11  ;;  %v14552_v57 = vld.sshfl [vmem:[%s16346_s27 + $0x60] sm:$0x33 pattern:$0x76325410] }
 0x240   : > { %v3636_v32 = vsel %vm16626_vm14, %v3634_v19, %v3635_v42  ;;  %v3964_v15 = vrot.slane %v3956_v34, %v16379_v49  ;;  %v10761_v1 = vshrl.u32 %v17723_v55, 16  ;;  %v10767_v51 = vshll.u32 %v17743_v12, 16 }
 0x241   : > { %v11474_v44 = vrot.slane %v11460_v47, %v16379_v49  ;;  %v3957_v5 = vcombine.low %v3633_v30, %v3636_v32  ;;  %v10772_v54 = vshrl.u32 %v14549_v0, 16  ;;  %v10775_v39 = vshll.u32 %v14549_v0, 16 }
 0x242   : > { %v10763_v8 = vrot.slane %v10761_v1, 6  ;;  %v10781_v27 = vshll.u32 %v10244_v25, 16  ;;  %v10785_v31 = vshrl.u32 %v10244_v25, 16  ;;  %v10769_v10 = vrot.slane %v10767_v51, 7 }
 0x243   : > { %v11475_v22 = vcombine.low %v11467_v56, %v11474_v44  ;;  %v3971_v58 = vrot.slane %v3957_v5, %v16379_v49  ;;  %v10774_v16 = vrot.slane %v10772_v54, 6  ;;  %v10777_v60 = vrot.slane %v10775_v39, 7  ;;  %v14551_v51 = vld.sshfl [vmem:[%s16346_s27 + $0x5c] sm:$0x13 pattern:$0x76325410] }
 0x244   : > { %v10764_v55 = vor.u32 %v10763_v8, %v10759_v41  ;;  %v10783_v20 = vrot.slane %v10781_v27, 7  ;;  %v10787_v38 = vrot.slane %v10785_v31, 6  ;;  %v10791_v0 = vshll.u32 %v14550_v35, 16 }
 0x245   : > { %15516 = vmatmul.mubr.msk.bf16.gmra.mrb[8].mxu0 %vm2061_vm7, %v11475_v22  ;;  %v3972_v12 = vcombine.low %v3964_v15, %v3971_v58  ;;  %v10795_v46 = vshrl.u32 %v14550_v35, 16  ;;  %v10801_v37 = vshll.u32 %v18053_v13, 16  ;;  %v10778_v2 = vor.u32 %v10777_v60, %v10774_v16 }
 0x246   : > { %v10765_v36 = vrot.slane %v10764_v55, 2  ;;  %v10788_v29 = vor.u32 %v10787_v38, %v10783_v20  ;;  %v18075_v11 = vcombine.high %v18066_v9, %v18066_v9  ;;  %v10793_v41 = vrot.slane %v10791_v0, 7 }
 0x247   : > { %15299 = vmatprep.mubr.msk.bf16.mxu1 %vm2061_vm7, %v3972_v12  ;;  %v10797_v50 = vrot.slane %v10795_v46, 6  ;;  %v10803_v62 = vrot.slane %v10801_v37, 7  ;;  %v3371_v48 = vcombine.high %v13940_v24, %v13940_v24  ;;  %v10779_v63 = vrot.slane %v10778_v2, 2 }
 0x248   : > { %v10770_v35 = vsel %vm16373_vm6, %v10765_v36, %v10769_v10  ;;  %v10789_v33 = vrot.slane %v10788_v29, 2  ;;  %v3637_v14 = vrot.slane %v3635_v42, 2  ;;  %v3638_v34 = vrot.slane %v18066_v9, 7 }
 0x249   : > { %v10798_v19 = vor.u32 %v10797_v50, %v10793_v41  ;;  %v3641_v47 = vrot.slane %v18075_v11, 7  ;;  %v13960_v56 = vrot.slane %v13940_v24, 9  ;;  %v10784_v25 = vsel %vm16373_vm6, %v10779_v63, %v10783_v20 }
 0x24a   : > { %v10794_v30 = vsel %vm16373_vm6, %v10789_v33, %v10793_v41  ;;  %v3645_v32 = vrot.slane %v3371_v48, 7  ;;  %v3648_v15 = vrot.slane %v18071_v28, 7  ;;  %v11476_v44 = vcombine.low %v10770_v35, %v10784_v25  ;;  %v18105_v48 = vld.sshfl [vmem:[%s16346_s27 + $0xb0] sm:$0x13 pattern:$0x76325410] }
 0x24b   : > { %v10799_v1 = vrot.slane %v10798_v19, 2  ;;  %v3639_v42 = vsel %vm16626_vm14, %v3637_v14, %v3638_v34  ;;  %v3640_v5 = vrot.slane %v3638_v34, 2  ;;  %v10260_v39 = vcombine.high %v14551_v51, %v14551_v51  ;;  %v13943_v25 = vld.sshfl [vmem:[%s16346_s27 + $0xb4] sm:$0x32 pattern:$0x76325410] }
 0x24c   : > { %v3646_v54 = vsel %vm16626_vm14, %v13960_v56, %v3645_v32  ;;  %v3647_v8 = vrot.slane %v3645_v32, 2  ;;  %v10268_v27 = vcombine.high %v14552_v57, %v14552_v57  ;;  %v11484_v24 = vrot.slane %v11476_v44, %v16379_v49 }
 0x24d   : > { %v10804_v31 = vsel %vm16373_vm6, %v10799_v1, %v10803_v62  ;;  %v3642_v22 = vsel %vm16626_vm14, %v3640_v5, %v3641_v47  ;;  %v10805_v58 = vshrl.u32 %v18053_v13, 16  ;;  %v10811_v60 = vshll.u32 %v14551_v51, 16  ;;  %v16060_v1 = vld.sshfl [vmem:[%s16346_s27 + $0x64] sm:$0x33 pattern:$0x76325410] }
 0x24e   : > { %v11477_v10 = vcombine.low %v10794_v30, %v10804_v31  ;;  %v3649_v16 = vsel %vm16626_vm14, %v3647_v8, %v3648_v15  ;;  %v3973_v55 = vcombine.low %v3639_v42, %v3642_v22  ;;  %v10815_v12 = vshrl.u32 %v14551_v51, 16 }
 0x24f   : > { %v3974_v20 = vcombine.low %v3646_v54, %v3649_v16  ;;  %v10807_v38 = vrot.slane %v10805_v58, 6  ;;  %v10821_v0 = vshll.u32 %v10260_v39, 16  ;;  %v10813_v36 = vrot.slane %v10811_v60, 7 }
 0x250   : > { %v11491_v46 = vrot.slane %v11477_v10, %v16379_v49  ;;  %v3981_v37 = vrot.slane %v3973_v55, %v16379_v49  ;;  %v10826_v2 = vshrl.u32 %v14552_v57, 16  ;;  %v10817_v41 = vrot.slane %v10815_v12, 6  ;;  %v14555_v10 = vld.sshfl [vmem:[%s16346_s27 + $0x6c] sm:$0x33 pattern:$0x76325410] }
 0x251   : > { %v3988_v13 = vrot.slane %v3974_v20, %v16379_v49  ;;  %v10808_v29 = vor.u32 %v10807_v38, %v10803_v62  ;;  %v10823_v50 = vrot.slane %v10821_v0, 7  ;;  %v10829_v33 = vshll.u32 %v14552_v57, 16 }
 0x252   : > { %v11492_v35 = vcombine.low %v11484_v24, %v11491_v46  ;;  %v10828_v63 = vrot.slane %v10826_v2, 6  ;;  %v10835_v14 = vshll.u32 %v10268_v27, 16  ;;  %v10818_v47 = vor.u32 %v10817_v41, %v10813_v36  ;;  %v14554_v2 = vld.sshfl [vmem:[%s16346_s27 + $0x68] sm:$0x13 pattern:$0x76325410] }
 0x253   : > { %v3989_v19 = vcombine.low %v3981_v37, %v3988_v13  ;;  %v10809_v34 = vrot.slane %v10808_v29, 2  ;;  %v10839_v56 = vshrl.u32 %v10268_v27, 16  ;;  %v10831_v30 = vrot.slane %v10829_v33, 7 }
 0x254   : > { %15519 = vmatprep.mubr.msk.bf16.mxu0 %vm2061_vm7, %v11492_v35  ;;  %v10837_v32 = vrot.slane %v10835_v14, 7  ;;  %v10845_v62 = vshll.u32 %v16060_v1, 16  ;;  %v18112_v44 = vcombine.high %v18071_v28, %v18071_v28  ;;  %v10819_v42 = vrot.slane %v10818_v47, 2 }
 0x255   : > { %15300 = vmatmul.mubr.msk.bf16.gmra.mrb[32].mxu1 %vm2061_vm7, %v3989_v19  ;;  %v10814_v57 = vsel %vm16373_vm6, %v10809_v34, %v10813_v36  ;;  %v10841_v5 = vrot.slane %v10839_v56, 6  ;;  %v18119_v51 = vcombine.high %v18105_v48, %v18105_v48  ;;  %v10832_v54 = vor.u32 %v10831_v30, %v10828_v63 }
 0x256   : > { %v10847_v8 = vrot.slane %v10845_v62, 7  ;;  %v3395_v39 = vcombine.high %v13943_v25, %v13943_v25  ;;  %v3650_v27 = vrot.slane %v3648_v15, 2  ;;  %v10824_v31 = vsel %vm16373_vm6, %v10819_v42, %v10823_v50  ;;  %v18146_v42 = vld.sshfl [vmem:[%s16346_s27 + $0xb8] sm:$0x33 pattern:$0x76325410] }
 0x257   : > { %v10842_v24 = vor.u32 %v10841_v5, %v10837_v32  ;;  %v3651_v22 = vrot.slane %v18112_v44, 7  ;;  %v3654_v58 = vrot.slane %v18105_v48, 7  ;;  %v10833_v16 = vrot.slane %v10832_v54, 2 }
 0x258   : > { %v11493_v55 = vcombine.low %v10814_v57, %v10824_v31  ;;  %v3657_v60 = vrot.slane %v18119_v51, 7  ;;  %v13961_v20 = vrot.slane %v13943_v25, 9  ;;  %v3661_v36 = vrot.slane %v3395_v39, 7 }
 0x259   : > { %v10843_v38 = vrot.slane %v10842_v24, 2  ;;  %v3652_v12 = vsel %vm16626_vm14, %v3650_v27, %v3651_v22  ;;  %v3653_v15 = vrot.slane %v3651_v22, 2  ;;  %v3656_v0 = vrot.slane %v3654_v58, 2 }
 0x25a   : > { %v10838_v46 = vsel %vm16373_vm6, %v10833_v16, %v10837_v32  ;;  %v11501_v37 = vrot.slane %v11493_v55, %v16379_v49  ;;  %v10276_v13 = vcombine.high %v16060_v1, %v16060_v1  ;;  %v10284_v35 = vcombine.high %v14554_v2, %v14554_v2 }
 0x25b   : > { %v10848_v29 = vsel %vm16373_vm6, %v10843_v38, %v10847_v8  ;;  %v3655_v41 = vsel %vm16626_vm14, %v3653_v15, %v3654_v58  ;;  %v3658_v50 = vsel %vm16626_vm14, %v3656_v0, %v3657_v60  ;;  %v3662_v33 = vsel %vm16626_vm14, %v13961_v20, %v3661_v36  ;;  %v18150_v20 = vld.sshfl [vmem:[%s16346_s27 + $0xbc] sm:$0x13 pattern:$0x76325410] }
 0x25c   : > { %v11494_v63 = vcombine.low %v10838_v46, %v10848_v29  ;;  %v3990_v14 = vcombine.low %v3652_v12, %v3655_v41  ;;  %v18141_v19 = vcombine.high %v14555_v10, %v14555_v10  ;;  %v3991_v34 = vcombine.low %v3658_v50, %v3662_v33 }
 0x25d   : > { %v10849_v47 = vshrl.u32 %v16060_v1, 16  ;;  %v10855_v56 = vshll.u32 %v10276_v13, 16  ;;  %v10859_v25 = vshrl.u32 %v10276_v13, 16  ;;  %v10865_v62 = vshll.u32 %v14554_v2, 16 }
 0x25e   : > { %v11508_v30 = vrot.slane %v11494_v63, %v16379_v49  ;;  %v3998_v32 = vrot.slane %v3990_v14, %v16379_v49  ;;  %v10869_v57 = vshrl.u32 %v14554_v2, 16  ;;  %v4005_v5 = vrot.slane %v3991_v34, %v16379_v49  ;;  %v14556_v14 = vld.sshfl [vmem:[%s16346_s27 + $0x70] sm:$0x33 pattern:$0x76325410] }
 0x25f   : > { %v10851_v54 = vrot.slane %v10849_v47, 6  ;;  %v10857_v39 = vrot.slane %v10855_v56, 7  ;;  %v10861_v27 = vrot.slane %v10859_v25, 6  ;;  %v10867_v24 = vrot.slane %v10865_v62, 7 }
 0x260   : > { %v11509_v31 = vcombine.low %v11501_v37, %v11508_v30  ;;  %v10871_v22 = vrot.slane %v10869_v57, 6  ;;  %v10875_v1 = vshll.u32 %v10284_v35, 16  ;;  %v4006_v58 = vcombine.low %v3998_v32, %v4005_v5 }
 0x261   : > { %v10852_v16 = vor.u32 %v10851_v54, %v10847_v8  ;;  %v10862_v55 = vor.u32 %v10861_v27, %v10857_v39  ;;  %v10880_v60 = vshrl.u32 %v14555_v10, 16  ;;  %v10883_v15 = vshll.u32 %v14555_v10, 16 }
 0x262   : > { %15520 = vmatmul.mubr.msk.bf16.gmra.mrb[12].mxu0 %vm2061_vm7, %v11509_v31  ;;  %v10872_v38 = vor.u32 %v10871_v22, %v10867_v24  ;;  %v10877_v12 = vrot.slane %v10875_v1, 7  ;;  %v10889_v0 = vshll.u32 %v18141_v19, 16  ;;  %15303 = vmatprep.mubr.msk.bf16.mxu1 %vm2061_vm7, %v4006_v58  ;;  %v18157_v8 = vcombine.high %v18146_v42, %v18146_v42 }
 0x263   : > { %v10853_v46 = vrot.slane %v10852_v16, 2  ;;  %v10863_v37 = vrot.slane %v10862_v55, 2  ;;  %v10882_v2 = vrot.slane %v10880_v60, 6  ;;  %v10885_v29 = vrot.slane %v10883_v15, 7 }
 0x264   : > { %v10873_v13 = vrot.slane %v10872_v38, 2  ;;  %v10891_v41 = vrot.slane %v10889_v0, 7  ;;  %v18161_v50 = vcombine.high %v18150_v20, %v18150_v20  ;;  %v3663_v63 = vrot.slane %v3661_v36, 2 }
 0x265   : > { %v10858_v10 = vsel %vm16373_vm6, %v10853_v46, %v10857_v39  ;;  %v10868_v35 = vsel %vm16373_vm6, %v10863_v37, %v10867_v24  ;;  %v3664_v33 = vrot.slane %v18146_v42, 7  ;;  %v10886_v47 = vor.u32 %v10885_v29, %v10882_v2 }
 0x266   : > { %v10878_v34 = vsel %vm16373_vm6, %v10873_v13, %v10877_v12  ;;  %v11510_v56 = vcombine.low %v10858_v10, %v10868_v35  ;;  %v3667_v25 = vrot.slane %v18157_v8, 7  ;;  %v3670_v62 = vrot.slane %v18150_v20, 7  ;;  %v14036_v35 = vld.sshfl [vmem:[%s16346_s27 + $0xc] sm:$0x33 pattern:$0x76325410] }
 0x267   : > { %v3665_v30 = vsel %vm16626_vm14, %v3663_v63, %v3664_v33  ;;  %v3666_v32 = vrot.slane %v3664_v33, 2  ;;  %v3673_v57 = vrot.slane %v18161_v50, 7  ;;  %v10887_v5 = vrot.slane %v10886_v47, 2 }
 0x268   : > { %v11518_v36 = vrot.slane %v11510_v56, %v16379_v49  ;;  %v3669_v54 = vrot.slane %v3667_v25, 2  ;;  %v10300_v39 = vcombine.high %v14556_v14, %v14556_v14  ;;  %v3672_v31 = vrot.slane %v3670_v62, 2  ;;  %v14558_v63 = vld.sshfl [vmem:[%s16346_s27 + $0x78] sm:$0x33 pattern:$0x76325410] }
 0x269   : > { %v3668_v27 = vsel %vm16626_vm14, %v3666_v32, %v3667_v25  ;;  %v10893_v24 = vshrl.u32 %v18141_v19, 16  ;;  %v10899_v22 = vshll.u32 %v14556_v14, 16  ;;  %v10892_v1 = vsel %vm16373_vm6, %v10887_v5, %v10891_v41  ;;  %v14037_v56 = vld.sshfl [vmem:[%s16346_s27 + $0x10] sm:$0x33 pattern:$0x76325410] }
 0x26a   : > { %v3671_v58 = vsel %vm16626_vm14, %v3669_v54, %v3670_v62  ;;  %v4007_v16 = vcombine.low %v3665_v30, %v3668_v27  ;;  %v10903_v55 = vshrl.u32 %v14556_v14, 16  ;;  %v11511_v60 = vcombine.low %v10878_v34, %v10892_v1 }
 0x26b   : > { %v3674_v38 = vsel %vm16626_vm14, %v3672_v31, %v3673_v57  ;;  %v10895_v12 = vrot.slane %v10893_v24, 6  ;;  %v10901_v15 = vrot.slane %v10899_v22, 7  ;;  %v10909_v37 = vshll.u32 %v10300_v39, 16 }
 0x26c   : > { %v4008_v0 = vcombine.low %v3671_v58, %v3674_v38  ;;  %v4015_v19 = vrot.slane %v4007_v16, %v16379_v49  ;;  %v10905_v46 = vrot.slane %v10903_v55, 6  ;;  %v11525_v2 = vrot.slane %v11511_v60, %v16379_v49  ;;  %v14559_v22 = vld.sshfl [vmem:[%s16346_s27 + $0x7c] sm:$0x33 pattern:$0x76325410] }
 0x26d   : > { %v10896_v13 = vor.u32 %v10895_v12, %v10891_v41  ;;  %v10913_v29 = vshrl.u32 %v10300_v39, 16  ;;  %v10919_v10 = vshll.u32 %v17850_v40, 16  ;;  %v10911_v34 = vrot.slane %v10909_v37, 7 }
 0x26e   : > { %v4022_v33 = vrot.slane %v4008_v0, %v16379_v49  ;;  %v10906_v14 = vor.u32 %v10905_v46, %v10901_v15  ;;  %v10923_v47 = vshrl.u32 %v17850_v40, 16  ;;  %v11526_v25 = vcombine.low %v11518_v36, %v11525_v2 }
 0x26f   : > { %v10897_v30 = vrot.slane %v10896_v13, 2  ;;  %v10915_v32 = vrot.slane %v10913_v29, 6  ;;  %v10921_v62 = vrot.slane %v10919_v10, 7  ;;  %v10929_v54 = vshll.u32 %v17857_v4, 16 }
 0x270   : > { %v4023_v57 = vcombine.low %v4015_v19, %v4022_v33  ;;  %v10907_v5 = vrot.slane %v10906_v14, 2  ;;  %v10925_v41 = vrot.slane %v10923_v47, 6  ;;  %15523 = vmatprep.mubr.msk.bf16.mxu0 %vm2061_vm7, %v11526_v25  ;;  %v4448_v31 = vcombine.high %v14036_v35, %v14036_v35  ;;  %v14039_v33 = vld.sshfl [vmem:[%s16346_s27 + $0x18] sm:$0x33 pattern:$0x76325410] }
 0x271   : > { %v10902_v39 = vsel %vm16373_vm6, %v10897_v30, %v10901_v15  ;;  %v10916_v27 = vor.u32 %v10915_v32, %v10911_v34  ;;  %v4456_v24 = vcombine.high %v14037_v56, %v14037_v56  ;;  %v10931_v1 = vrot.slane %v10929_v54, 7 }
 0x272   : > { %15304 = vmatmul.mubr.msk.bf16.gmra.mrb[36].mxu1 %vm2061_vm7, %v4023_v57  ;;  %v10912_v40 = vsel %vm16373_vm6, %v10907_v5, %v10911_v34  ;;  %v10926_v36 = vor.u32 %v10925_v41, %v10921_v62  ;;  %v10316_v58 = vcombine.high %v14558_v63, %v14558_v63  ;;  %v4818_v55 = vcombine.low %v14036_v35, %v4448_v31  ;;  %v18212_v57 = vld.sshfl [vmem:[%s16346_s27 + $0x1c] sm:$0x33 pattern:$0x76325410] }
 0x273   : > { %v10917_v16 = vrot.slane %v10916_v27, 2  ;;  %v11527_v4 = vcombine.low %v10902_v39, %v10912_v40  ;;  %v4819_v60 = vcombine.low %v14037_v56, %v4456_v24  ;;  %v10324_v12 = vcombine.high %v14559_v22, %v14559_v22  ;;  %v14038_v56 = vld.sshfl [vmem:[%s16346_s27 + $0x14] sm:$0x3 pattern:$0x76325410] }
 0x274   : > { %v10927_v38 = vrot.slane %v10926_v36, 2  ;;  %v10934_v15 = vshrl.u32 %v14558_v63, 16  ;;  %v10937_v0 = vshll.u32 %v14558_v63, 16  ;;  %v4826_v37 = vrot.slane %v4818_v55, %v16379_v49 }
 0x275   : > { %v10922_v19 = vsel %vm16373_vm6, %v10917_v16, %v10921_v62  ;;  %v11535_v46 = vrot.slane %v11527_v4, %v16379_v49  ;;  %v4833_v2 = vrot.slane %v4819_v60, %v16379_v49  ;;  %v10943_v35 = vshll.u32 %v10316_v58, 16  ;;  %v14561_v5 = vld.sshfl [vmem:[%s16346_s27 + $0x84] sm:$0x33 pattern:$0x76325410] }
 0x276   : > { %v10932_v13 = vsel %vm16373_vm6, %v10927_v38, %v10931_v1  ;;  %v10936_v29 = vrot.slane %v10934_v15, 6  ;;  %v10939_v10 = vrot.slane %v10937_v0, 7  ;;  %v10947_v34 = vshrl.u32 %v10316_v58, 16 }
 0x277   : > { %v11528_v14 = vcombine.low %v10922_v19, %v10932_v13  ;;  %v4834_v63 = vcombine.low %v4826_v37, %v4833_v2  ;;  %v10953_v47 = vshll.u32 %v14559_v22, 16  ;;  %v10945_v30 = vrot.slane %v10943_v35, 7 }
 0x278   : > { %v10940_v25 = vor.u32 %v10939_v10, %v10936_v29  ;;  %v10957_v32 = vshrl.u32 %v14559_v22, 16  ;;  %v10963_v62 = vshll.u32 %v10324_v12, 16  ;;  %v10949_v54 = vrot.slane %v10947_v34, 6 }
 0x279   : > { %v11542_v41 = vrot.slane %v11528_v14, %v16379_v49  ;;  %15315 = vmatprep.mubr.msk.bf16.mxu1 %vm2061_vm7, %v4834_v63  ;;  %v10955_v39 = vrot.slane %v10953_v47, 7  ;;  %v10967_v27 = vshrl.u32 %v10324_v12, 16  ;;  %v10973_v36 = vshll.u32 %v17892_v53, 16 }
 0x27a   : > { %v10941_v31 = vrot.slane %v10940_v25, 2  ;;  %v10959_v24 = vrot.slane %v10957_v32, 6  ;;  %v10965_v40 = vrot.slane %v10963_v62, 7  ;;  %v10950_v58 = vor.u32 %v10949_v54, %v10945_v30 }
 0x27b   : > { %v11543_v1 = vcombine.low %v11535_v46, %v11542_v41  ;;  %v10969_v22 = vrot.slane %v10967_v27, 6  ;;  %v4471_v16 = vcombine.high %v14039_v33, %v14039_v33  ;;  %v10975_v60 = vrot.slane %v10973_v36, 7  ;;  %v16061_v46 = vld.sshfl [vmem:[%s16346_s27 + $0x80] sm:$0x13 pattern:$0x76325410] }
 0x27c   : > { %v10946_v4 = vsel %vm16373_vm6, %v10941_v31, %v10945_v30  ;;  %v10960_v55 = vor.u32 %v10959_v24, %v10955_v39  ;;  %v4835_v38 = vcombine.low %v14038_v56, %v14039_v33  ;;  %v10951_v15 = vrot.slane %v10950_v58, 2  ;;  %v14041_v36 = vld.sshfl [vmem:[%s16346_s27 + $0x20] sm:$0x3 pattern:$0x76325410] }
 0x27d   : > { %15524 = vmatmul.mubr.msk.bf16.gmra.mrb[16].mxu0 %vm2061_vm7, %v11543_v1  ;;  %v10970_v12 = vor.u32 %v10969_v22, %v10965_v40  ;;  %v4836_v0 = vcombine.low %v4471_v16, %v18212_v57  ;;  %v10340_v19 = vcombine.high %v14561_v5, %v14561_v5  ;;  %v10977_v2 = vshrl.u32 %v16061_v46, 16  ;;  %v18239_v1 = vld.sshfl [vmem:[%s16346_s27 + $0x90] sm:$0x33 pattern:$0x76325410] }
 0x27e   : > { %v10961_v37 = vrot.slane %v10960_v55, 2  ;;  %v4843_v53 = vrot.slane %v4835_v38, %v16379_v49  ;;  %v10983_v13 = vshll.u32 %v17905_v21, 16  ;;  %v10956_v29 = vsel %vm16373_vm6, %v10951_v15, %v10955_v39  ;;  %v14042_v39 = vld.sshfl [vmem:[%s16346_s27 + $0x24] sm:$0x33 pattern:$0x76325410] }
 0x27f   : > { %v10971_v10 = vrot.slane %v10970_v12, 2  ;;  %v4850_v35 = vrot.slane %v4836_v0, %v16379_v49  ;;  %v10988_v33 = vshrl.u32 %v14561_v5, 16  ;;  %v11544_v63 = vcombine.low %v10946_v4, %v10956_v29  ;;  %v16062_v4 = vld [vmem:[#allocation5 + $0x80] sm:$0xff]   ;;  %v16063_v12 = vld [vmem:[#allocation5 + $0x88] sm:$0xff]  }
 0x280   : > { %v10966_v14 = vsel %vm16373_vm6, %v10961_v37, %v10965_v40  ;;  %v10979_v34 = vrot.slane %v10977_v2, 6  ;;  %v10985_v47 = vrot.slane %v10983_v13, 7  ;;  %v10991_v30 = vshll.u32 %v14561_v5, 16 }
 0x281   : > { %v10976_v56 = vsel %vm16373_vm6, %v10971_v10, %v10975_v60  ;;  %v4851_v21 = vcombine.low %v4843_v53, %v4850_v35  ;;  %v10990_v25 = vrot.slane %v10988_v33, 6  ;;  %v11552_v62 = vrot.slane %v11544_v63, %v16379_v49 }
 0x282   : > { %v11545_v32 = vcombine.low %v10966_v14, %v10976_v56  ;;  %v10980_v41 = vor.u32 %v10979_v34, %v10975_v60  ;;  %v10997_v54 = vshll.u32 %v10340_v19, 16  ;;  %v10993_v27 = vrot.slane %v10991_v30, 7  ;;  %v16064_v56 = vld [vmem:[#allocation5 + $0x90] sm:$0xff]  }
 0x283   : > { %15316 = vmatmul.mubr.msk.bf16.vlgmr.msra.gmra.mrb[0].mxu1 %vm2061_vm7, %v4851_v21  ;;  %v11001_v31 = vshrl.u32 %v10340_v19, 16  ;;  %v11007_v24 = vshll.u32 %v17936_v23, 16  ;;  %v11011_v40 = vshrl.u32 %v17936_v23, 16  ;;  %v11017_v16 = vshll.u32 %v17947_v45, 16 }
 0x284   : > { %v11559_v58 = vrot.slane %v11545_v32, %v16379_v49  ;;  %v10981_v5 = vrot.slane %v10980_v41, 2  ;;  %v10999_v22 = vrot.slane %v10997_v54, 7  ;;  %15599 = vmatpush3.bf16.msra.mxu1 %v16062_v4  ;;  %v10994_v55 = vor.u32 %v10993_v27, %v10990_v25  ;;  %v18273_v4 = vld.sshfl [vmem:[%s16346_s27 + $0x30] sm:$0x33 pattern:$0x76325410] }
 0x285   : > { %v11003_v60 = vrot.slane %v11001_v31, 6  ;;  %v11009_v38 = vrot.slane %v11007_v24, 7  ;;  %v11013_v15 = vrot.slane %v11011_v40, 6  ;;  %15596 = vmatprep.subr.bf16.mxu1 %v16063_v12  ;;  %v11019_v19 = vrot.slane %v11017_v16, 7 }
 0x286   : > { %v11560_v0 = vcombine.low %v11552_v62, %v11559_v58  ;;  %v10986_v23 = vsel %vm16373_vm6, %v10981_v5, %v10985_v47  ;;  %v18247_v37 = vcombine.high %v18212_v57, %v18212_v57  ;;  %v10995_v53 = vrot.slane %v10994_v55, 2  ;;  %v18267_v40 = vld.sshfl [vmem:[%s16346_s27 + $0x28] sm:$0x33 pattern:$0x76325410]  ;;  %v16065_v55 = vld [vmem:[#allocation5 + $0x98] sm:$0xff]  }
 0x287   : > { %v11004_v46 = vor.u32 %v11003_v60, %v10999_v22  ;;  %v11014_v2 = vor.u32 %v11013_v15, %v11009_v38  ;;  %v4494_v13 = vcombine.high %v14042_v39, %v14042_v39  ;;  %v10364_v10 = vcombine.high %v18239_v1, %v18239_v1  ;;  %v14044_v16 = vld.sshfl [vmem:[%s16346_s27 + $0x2c] sm:$0x3 pattern:$0x76325410] }
 0x288   : > { %15527 = vmatprep.mubr.msk.bf16.mxu0 %vm2061_vm7, %v11560_v0  ;;  %v4852_v29 = vcombine.low %v18247_v37, %v14041_v36  ;;  %v11021_v35 = vshrl.u32 %v17947_v45, 16  ;;  %v11027_v33 = vshll.u32 %v17940_v7, 16  ;;  %15600 = vmatpush3.bf16.msra.mxu1 %v16063_v12  ;;  %v11000_v14 = vsel %vm16373_vm6, %v10995_v53, %v10999_v22 }
 0x289   : > { %v11005_v63 = vrot.slane %v11004_v46, 2  ;;  %v11015_v34 = vrot.slane %v11014_v2, 2  ;;  %v4853_v47 = vcombine.low %v14042_v39, %v4494_v13  ;;  %15597 = vmatprep.subr.bf16.mxu1 %v16064_v56  ;;  %v11561_v21 = vcombine.low %v10986_v23, %v11000_v14  ;;  %v14567_v14 = vld.sshfl [vmem:[%s16346_s27 + $0x9c] sm:$0x33 pattern:$0x76325410] }
 0x28a   : > { %v4860_v25 = vrot.slane %v4852_v29, %v16379_v49  ;;  %v11023_v30 = vrot.slane %v11021_v35, 6  ;;  %v11029_v32 = vrot.slane %v11027_v33, 7  ;;  %v11031_v54 = vshrl.u32 %v17940_v7, 16 }
 0x28b   : > { %v11010_v45 = vsel %vm16373_vm6, %v11005_v63, %v11009_v38  ;;  %v11020_v62 = vsel %vm16373_vm6, %v11015_v34, %v11019_v19  ;;  %v4867_v41 = vrot.slane %v4853_v47, %v16379_v49  ;;  %v11569_v27 = vrot.slane %v11561_v21, %v16379_v49 }
 0x28c   : > { %v11562_v39 = vcombine.low %v11010_v45, %v11020_v62  ;;  %v11024_v31 = vor.u32 %v11023_v30, %v11019_v19  ;;  %v11037_v24 = vshll.u32 %v17953_v17, 16  ;;  %15601 = vmatpush3.bf16.msra.mxu1 %v16064_v56  ;;  %v11033_v58 = vrot.slane %v11031_v54, 6 }
 0x28d   : > { %v4868_v36 = vcombine.low %v4860_v25, %v4867_v41  ;;  %v11042_v5 = vshrl.u32 %v18239_v1, 16  ;;  %v11045_v22 = vshll.u32 %v18239_v1, 16  ;;  %15598 = vmatprep.subr.bf16.mxu1 %v16065_v55  ;;  %v11051_v17 = vshll.u32 %v10364_v10, 16 }
 0x28e   : > { %v11576_v7 = vrot.slane %v11562_v39, %v16379_v49  ;;  %v11025_v60 = vrot.slane %v11024_v31, 2  ;;  %v11039_v38 = vrot.slane %v11037_v24, 7  ;;  %v11034_v15 = vor.u32 %v11033_v58, %v11029_v32 }
 0x28f   : > { %15319 = vmatprep.mubr.msk.bf16.mxu1 %vm2061_vm7, %v4868_v36  ;;  %v11044_v12 = vrot.slane %v11042_v5, 6  ;;  %v11047_v0 = vrot.slane %v11045_v22, 7  ;;  %v11055_v23 = vshrl.u32 %v10364_v10, 16  ;;  %v11053_v46 = vrot.slane %v11051_v17, 7 }
 0x290   : > { %v11577_v19 = vcombine.low %v11569_v27, %v11576_v7  ;;  %v11030_v53 = vsel %vm16373_vm6, %v11025_v60, %v11029_v32  ;;  %v11061_v2 = vshll.u32 %v17983_v3, 16  ;;  %15602 = vmatpush3.bf16.msra.mxu1 %v16065_v55  ;;  %v11035_v13 = vrot.slane %v11034_v15, 2  ;;  %v18304_v7 = vld.sshfl [vmem:[%s16346_s27 + $0x34] sm:$0x33 pattern:$0x76325410] }
 0x291   : > { %v11048_v29 = vor.u32 %v11047_v0, %v11044_v12  ;;  %v11057_v35 = vrot.slane %v11055_v23, 6  ;;  %v18282_v33 = vcombine.high %v18267_v40, %v18267_v40  ;;  %v4870_v10 = vcombine.low %v14044_v16, %v18273_v4 }
 0x292   : > { %15528 = vmatmul.mubr.msk.bf16.gmra.mrb[20].mxu0 %vm2061_vm7, %v11577_v19  ;;  %v11063_v63 = vrot.slane %v11061_v2, 7  ;;  %v10388_v34 = vcombine.high %v14567_v14, %v14567_v14  ;;  %v11065_v47 = vshrl.u32 %v17983_v3, 16  ;;  %v11040_v56 = vsel %vm16373_vm6, %v11035_v13, %v11039_v38  ;;  %v14047_v2 = vld.sshfl [vmem:[%s16346_s27 + $0x38] sm:$0x3 pattern:$0x76325410] }
 0x293   : > { %v11049_v21 = vrot.slane %v11048_v29, 2  ;;  %v11058_v25 = vor.u32 %v11057_v35, %v11053_v46  ;;  %v4869_v30 = vcombine.low %v18267_v40, %v18282_v33  ;;  %v11578_v32 = vcombine.low %v11030_v53, %v11040_v56 }
 0x294   : > { %v4884_v45 = vrot.slane %v4870_v10, %v16379_v49  ;;  %v11067_v62 = vrot.slane %v11065_v47, 6  ;;  %v11071_v41 = vshll.u32 %v17995_v43, 16  ;;  %v11075_v27 = vshrl.u32 %v17995_v43, 16 }
 0x295   : > { %v11054_v54 = vsel %vm16373_vm6, %v11049_v21, %v11053_v46  ;;  %v11059_v39 = vrot.slane %v11058_v25, 2  ;;  %v4877_v3 = vrot.slane %v4869_v30, %v16379_v49  ;;  %v11586_v31 = vrot.slane %v11578_v32, %v16379_v49 }
 0x296   : > { %v11068_v24 = vor.u32 %v11067_v62, %v11063_v63  ;;  %v11073_v36 = vrot.slane %v11071_v41, 7  ;;  %v11081_v58 = vshll.u32 %v17991_v6, 16  ;;  %v11077_v16 = vrot.slane %v11075_v27, 6 }
 0x297   : > { %v11064_v5 = vsel %vm16373_vm6, %v11059_v39, %v11063_v63  ;;  %v4885_v22 = vcombine.low %v4877_v3, %v4884_v45  ;;  %v11085_v55 = vshrl.u32 %v17991_v6, 16  ;;  %v11091_v43 = vshll.u32 %v18028_v52, 16 }
 0x298   : > { %v11579_v60 = vcombine.low %v11054_v54, %v11064_v5  ;;  %v11069_v38 = vrot.slane %v11068_v24, 2  ;;  %v11083_v17 = vrot.slane %v11081_v58, 7  ;;  %v11078_v15 = vor.u32 %v11077_v16, %v11073_v36  ;;  %v14048_v16 = vld.sshfl [vmem:[%s16346_s27 + $0x3c] sm:$0x33 pattern:$0x76325410] }
 0x299   : > { %15320 = vmatmul.mubr.msk.bf16.gmra.mrb[4].mxu1 %vm2061_vm7, %v4885_v22  ;;  %v11087_v12 = vrot.slane %v11085_v55, 6  ;;  %v11096_v0 = vshrl.u32 %v14567_v14, 16  ;;  %v11099_v23 = vshll.u32 %v14567_v14, 16  ;;  %v11093_v46 = vrot.slane %v11091_v43, 7 }
 0x29a   : > { %v11593_v19 = vrot.slane %v11579_v60, %v16379_v49  ;;  %v11074_v53 = vsel %vm16373_vm6, %v11069_v38, %v11073_v36  ;;  %v11105_v6 = vshll.u32 %v10388_v34, 16  ;;  %v11079_v13 = vrot.slane %v11078_v15, 2  ;;  %v18340_v43 = vld.sshfl [vmem:[%s16346_s27 + $0xa8] sm:$0x33 pattern:$0x76325410] }
 0x29b   : > { %v11088_v29 = vor.u32 %v11087_v12, %v11083_v17  ;;  %v11098_v35 = vrot.slane %v11096_v0, 6  ;;  %v11101_v63 = vrot.slane %v11099_v23, 7  ;;  %v4517_v47 = vcombine.high %v18273_v4, %v18273_v4 }
 0x29c   : > { %v11594_v10 = vcombine.low %v11586_v31, %v11593_v19  ;;  %v11107_v52 = vrot.slane %v11105_v6, 7  ;;  %v18316_v14 = vcombine.high %v18304_v7, %v18304_v7  ;;  %v11084_v56 = vsel %vm16373_vm6, %v11079_v13, %v11083_v17  ;;  %v18337_v17 = vld.sshfl [vmem:[%s16346_s27 + $0x40] sm:$0x33 pattern:$0x76325410] }
 0x29d   : > { %v11089_v21 = vrot.slane %v11088_v29, 2  ;;  %v11102_v25 = vor.u32 %v11101_v63, %v11098_v35  ;;  %v11109_v30 = vshrl.u32 %v10388_v34, 16  ;;  %v11595_v32 = vcombine.low %v11074_v53, %v11084_v56 }
 0x29e   : > { %15531 = vmatprep.mubr.msk.bf16.mxu0 %vm2061_vm7, %v11594_v10  ;;  %v4886_v45 = vcombine.low %v4517_v47, %v18304_v7  ;;  %v4887_v62 = vcombine.low %v18316_v14, %v14047_v2  ;;  %v11115_v4 = vshll.u32 %v18022_v26, 16  ;;  %v11119_v3 = vshrl.u32 %v18022_v26, 16 }
 0x29f   : > { %v11094_v41 = vsel %vm16373_vm6, %v11089_v21, %v11093_v46  ;;  %v11103_v54 = vrot.slane %v11102_v25, 2  ;;  %v11111_v39 = vrot.slane %v11109_v30, 6  ;;  %v11603_v34 = vrot.slane %v11595_v32, %v16379_v49 }
 0x2a0   : > { %v4894_v27 = vrot.slane %v4886_v45, %v16379_v49  ;;  %v4901_v31 = vrot.slane %v4887_v62, %v16379_v49  ;;  %v11117_v24 = vrot.slane %v11115_v4, 7  ;;  %v11121_v5 = vrot.slane %v11119_v3, 6 }
 0x2a1   : > { %v11108_v36 = vsel %vm16373_vm6, %v11103_v54, %v11107_v52  ;;  %v11112_v58 = vor.u32 %v11111_v39, %v11107_v52  ;;  %v11125_v22 = vshll.u32 %v18035_v59, 16  ;;  %v11129_v38 = vshrl.u32 %v18035_v59, 16 }
 0x2a2   : > { %v11596_v55 = vcombine.low %v11094_v41, %v11108_v36  ;;  %v4902_v60 = vcombine.low %v4894_v27, %v4901_v31  ;;  %v11135_v26 = vshll.u32 %v18066_v9, 16  ;;  %v11122_v12 = vor.u32 %v11121_v5, %v11117_v24 }
 0x2a3   : > { %v11113_v15 = vrot.slane %v11112_v58, 2  ;;  %v11127_v0 = vrot.slane %v11125_v22, 7  ;;  %v11139_v23 = vshrl.u32 %v18066_v9, 16  ;;  %v11131_v53 = vrot.slane %v11129_v38, 6 }
 0x2a4   : > { %v11610_v19 = vrot.slane %v11596_v55, %v16379_v49  ;;  %15323 = vmatprep.mubr.msk.bf16.mxu1 %vm2061_vm7, %v4902_v60  ;;  %v11137_v46 = vrot.slane %v11135_v26, 7  ;;  %v11145_v6 = vshll.u32 %v18075_v11, 16  ;;  %v11123_v2 = vrot.slane %v11122_v12, 2 }
 0x2a5   : > { %v11118_v59 = vsel %vm16373_vm6, %v11113_v15, %v11117_v24  ;;  %v11141_v13 = vrot.slane %v11139_v23, 6  ;;  %v4540_v29 = vcombine.high %v14048_v16, %v14048_v16  ;;  %v11132_v63 = vor.u32 %v11131_v53, %v11127_v0  ;;  %v14051_v58 = vld.sshfl [vmem:[%s16346_s27 + $0x48] sm:$0x33 pattern:$0x76325410] }
 0x2a6   : > { %v11611_v35 = vcombine.low %v11603_v34, %v11610_v19  ;;  %v11147_v10 = vrot.slane %v11145_v6, 7  ;;  %v18350_v9 = vcombine.high %v18337_v17, %v18337_v17  ;;  %v11128_v52 = vsel %vm16373_vm6, %v11123_v2, %v11127_v0  ;;  %v14050_v60 = vld.sshfl [vmem:[%s16346_s27 + $0x44] sm:$0x3 pattern:$0x76325410] }
 0x2a7   : > { %v11142_v47 = vor.u32 %v11141_v13, %v11137_v46  ;;  %v4903_v56 = vcombine.low %v14048_v16, %v4540_v29  ;;  %v18356_v11 = vcombine.high %v18340_v43, %v18340_v43  ;;  %v11133_v21 = vrot.slane %v11132_v63, 2  ;;  %v18379_v0 = vld.sshfl [vmem:[%s16346_s27 + $0x4c] sm:$0x33 pattern:$0x76325410] }
 0x2a8   : > { %15532 = vmatmul.mubr.msk.bf16.gmra.mrb[24].mxu0 %vm2061_vm7, %v11611_v35  ;;  %v11612_v25 = vcombine.low %v11118_v59, %v11128_v52  ;;  %v4904_v30 = vcombine.low %v18337_v17, %v18350_v9  ;;  %v11150_v32 = vshrl.u32 %v18340_v43, 16  ;;  %v11153_v4 = vshll.u32 %v18340_v43, 16  ;;  %v18382_v23 = vld.sshfl [vmem:[%s16346_s27 + $0xb4] sm:$0x33 pattern:$0x76325410] }
 0x2a9   : > { %v11143_v45 = vrot.slane %v11142_v47, 2  ;;  %v4911_v62 = vrot.slane %v4903_v56, %v16379_v49  ;;  %v11159_v41 = vshll.u32 %v18356_v11, 16  ;;  %v11138_v54 = vsel %vm16373_vm6, %v11133_v21, %v11137_v46 }
 0x2aa   : > { %v11620_v39 = vrot.slane %v11612_v25, %v16379_v49  ;;  %v4918_v3 = vrot.slane %v4904_v30, %v16379_v49  ;;  %v11152_v34 = vrot.slane %v11150_v32, 6  ;;  %v11155_v31 = vrot.slane %v11153_v4, 7 }
 0x2ab   : > { %v11148_v27 = vsel %vm16373_vm6, %v11143_v45, %v11147_v10  ;;  %v11161_v24 = vrot.slane %v11159_v41, 7  ;;  %v11163_v36 = vshrl.u32 %v18356_v11, 16  ;;  %v11169_v16 = vshll.u32 %v18071_v28, 16 }
 0x2ac   : > { %v11613_v5 = vcombine.low %v11138_v54, %v11148_v27  ;;  %v4919_v22 = vcombine.low %v4911_v62, %v4918_v3  ;;  %v11173_v55 = vshrl.u32 %v18071_v28, 16  ;;  %v11156_v38 = vor.u32 %v11155_v31, %v11152_v34 }
 0x2ad   : > { %v11165_v26 = vrot.slane %v11163_v36, 6  ;;  %v11179_v15 = vshll.u32 %v18112_v44, 16  ;;  %v11183_v12 = vshrl.u32 %v18112_v44, 16  ;;  %v11171_v53 = vrot.slane %v11169_v16, 7 }
 0x2ae   : > { %v11627_v19 = vrot.slane %v11613_v5, %v16379_v49  ;;  %15324 = vmatmul.mubr.msk.bf16.gmra.mrb[8].mxu1 %vm2061_vm7, %v4919_v22  ;;  %v11175_v46 = vrot.slane %v11173_v55, 6  ;;  %v11189_v6 = vshll.u32 %v18105_v48, 16  ;;  %v11157_v28 = vrot.slane %v11156_v38, 2 }
 0x2af   : > { %v11166_v59 = vor.u32 %v11165_v26, %v11161_v24  ;;  %v11181_v2 = vrot.slane %v11179_v15, 7  ;;  %v11185_v13 = vrot.slane %v11183_v12, 6  ;;  %v4563_v44 = vcombine.high %v14051_v58, %v14051_v58  ;;  %v14054_v38 = vld.sshfl [vmem:[%s16346_s27 + $0x54] sm:$0x33 pattern:$0x76325410] }
 0x2b0   : > { %v11628_v29 = vcombine.low %v11620_v39, %v11627_v19  ;;  %v11176_v35 = vor.u32 %v11175_v46, %v11171_v53  ;;  %v11191_v63 = vrot.slane %v11189_v6, 7  ;;  %v11162_v10 = vsel %vm16373_vm6, %v11157_v28, %v11161_v24  ;;  %v18412_v26 = vld.sshfl [vmem:[%s16346_s27 + $0xc0] sm:$0x33 pattern:$0x76325410] }
 0x2b1   : > { %v11167_v52 = vrot.slane %v11166_v59, 2  ;;  %v11186_v47 = vor.u32 %v11185_v13, %v11181_v2  ;;  %v4920_v56 = vcombine.low %v14050_v60, %v14051_v58  ;;  %v4921_v25 = vcombine.low %v4563_v44, %v18379_v0 }
 0x2b2   : > { %15535 = vmatprep.mubr.msk.bf16.mxu0 %vm2061_vm7, %v11628_v29  ;;  %v11177_v21 = vrot.slane %v11176_v35, 2  ;;  %v18393_v30 = vcombine.high %v18382_v23, %v18382_v23  ;;  %v11193_v32 = vshrl.u32 %v18105_v48, 16  ;;  %v11199_v41 = vshll.u32 %v18119_v51, 16 }
 0x2b3   : > { %v11172_v45 = vsel %vm16373_vm6, %v11167_v52, %v11171_v53  ;;  %v11187_v62 = vrot.slane %v11186_v47, 2  ;;  %v4928_v4 = vrot.slane %v4920_v56, %v16379_v49  ;;  %v4935_v3 = vrot.slane %v4921_v25, %v16379_v49 }
 0x2b4   : > { %v11182_v54 = vsel %vm16373_vm6, %v11177_v21, %v11181_v2  ;;  %v11629_v39 = vcombine.low %v11162_v10, %v11172_v45  ;;  %v11195_v34 = vrot.slane %v11193_v32, 6  ;;  %v11201_v27 = vrot.slane %v11199_v41, 7 }
 0x2b5   : > { %v11192_v48 = vsel %vm16373_vm6, %v11187_v62, %v11191_v63  ;;  %v11204_v31 = vshrl.u32 %v18382_v23, 16  ;;  %v11207_v24 = vshll.u32 %v18382_v23, 16  ;;  %v4936_v58 = vcombine.low %v4928_v4, %v4935_v3 }
 0x2b6   : > { %v11630_v36 = vcombine.low %v11182_v54, %v11192_v48  ;;  %v11637_v51 = vrot.slane %v11629_v39, %v16379_v49  ;;  %v11196_v5 = vor.u32 %v11195_v34, %v11191_v63  ;;  %v11213_v55 = vshll.u32 %v18393_v30, 16  ;;  %v14053_v63 = vld.sshfl [vmem:[%s16346_s27 + $0x50] sm:$0x3 pattern:$0x76325410] }
 0x2b7   : > { %v11206_v22 = vrot.slane %v11204_v31, 6  ;;  %v11209_v16 = vrot.slane %v11207_v24, 7  ;;  %v11217_v60 = vshrl.u32 %v18393_v30, 16  ;;  %15327 = vmatprep.mubr.msk.bf16.mxu1 %vm2061_vm7, %v4936_v58  ;;  %v11223_v19 = vshll.u32 %v18146_v42, 16 }
 0x2b8   : > { %v11644_v15 = vrot.slane %v11630_v36, %v16379_v49  ;;  %v11197_v12 = vrot.slane %v11196_v5, 2  ;;  %v11227_v53 = vshrl.u32 %v18146_v42, 16  ;;  %v11215_v6 = vrot.slane %v11213_v55, 7 }
 0x2b9   : > { %v11210_v46 = vor.u32 %v11209_v16, %v11206_v22  ;;  %v11219_v28 = vrot.slane %v11217_v60, 6  ;;  %v11233_v59 = vshll.u32 %v18157_v8, 16  ;;  %v11225_v29 = vrot.slane %v11223_v19, 7 }
 0x2ba   : > { %v11645_v2 = vcombine.low %v11637_v51, %v11644_v15  ;;  %v11202_v13 = vsel %vm16373_vm6, %v11197_v12, %v11201_v27  ;;  %v11229_v35 = vrot.slane %v11227_v53, 6  ;;  %v18424_v47 = vcombine.high %v18379_v0, %v18379_v0  ;;  %v18445_v51 = vld.sshfl [vmem:[%s16346_s27 + $0xc4] sm:$0x33 pattern:$0x76325410] }
 0x2bb   : > { %v11211_v44 = vrot.slane %v11210_v46, 2  ;;  %v11220_v10 = vor.u32 %v11219_v28, %v11215_v6  ;;  %v11235_v52 = vrot.slane %v11233_v59, 7  ;;  %v4586_v56 = vcombine.high %v14054_v38, %v14054_v38  ;;  %v18448_v5 = vld.sshfl [vmem:[%s16346_s27 + $0x58] sm:$0x33 pattern:$0x76325410] }
 0x2bc   : > { %15536 = vmatmul.mubr.msk.bf16.gmra.mrb[28].mxu0 %vm2061_vm7, %v11645_v2  ;;  %v11230_v42 = vor.u32 %v11229_v35, %v11225_v29  ;;  %v18429_v21 = vcombine.high %v18412_v26, %v18412_v26  ;;  %v11237_v25 = vshrl.u32 %v18157_v8, 16  ;;  %v4937_v62 = vcombine.low %v18424_v47, %v14053_v63  ;;  %v18457_v59 = vld.sshfl [vmem:[%s16346_s27 + $0x60] sm:$0x33 pattern:$0x76325410] }
 0x2bd   : > { %v11216_v32 = vsel %vm16373_vm6, %v11211_v44, %v11215_v6  ;;  %v11221_v45 = vrot.slane %v11220_v10, 2  ;;  %v11243_v4 = vshll.u32 %v18150_v20, 16  ;;  %v4938_v39 = vcombine.low %v14054_v38, %v4586_v56 }
 0x2be   : > { %v11231_v41 = vrot.slane %v11230_v42, 2  ;;  %v11646_v54 = vcombine.low %v11202_v13, %v11216_v32  ;;  %v11239_v3 = vrot.slane %v11237_v25, 6  ;;  %v4945_v8 = vrot.slane %v4937_v62, %v16379_v49  ;;  %v14579_v32 = vld.sshfl [vmem:[%s16346_s27 + $0xcc] sm:$0x33 pattern:$0x76325410] }
 0x2bf   : > { %v11226_v34 = vsel %vm16373_vm6, %v11221_v45, %v11225_v29  ;;  %v11245_v48 = vrot.slane %v11243_v4, 7  ;;  %v11247_v27 = vshrl.u32 %v18150_v20, 16  ;;  %v4952_v36 = vrot.slane %v4938_v39, %v16379_v49  ;;  %v14056_v20 = vld.sshfl [vmem:[%s16346_s27 + $0x5c] sm:$0x3 pattern:$0x76325410] }
 0x2c0   : > { %v11236_v31 = vsel %vm16373_vm6, %v11231_v41, %v11235_v52  ;;  %v11654_v24 = vrot.slane %v11646_v54, %v16379_v49  ;;  %v11240_v58 = vor.u32 %v11239_v3, %v11235_v52  ;;  %v11253_v55 = vshll.u32 %v18161_v50, 16  ;;  %v14578_v52 = vld.sshfl [vmem:[%s16346_s27 + $0xc8] sm:$0x13 pattern:$0x76325410] }
 0x2c1   : > { %v11647_v22 = vcombine.low %v11226_v34, %v11236_v31  ;;  %v11249_v16 = vrot.slane %v11247_v27, 6  ;;  %v11258_v60 = vshrl.u32 %v18412_v26, 16  ;;  %v4953_v38 = vcombine.low %v4945_v8, %v4952_v36 }
 0x2c2   : > { %v11241_v15 = vrot.slane %v11240_v58, 2  ;;  %v11261_v12 = vshll.u32 %v18412_v26, 16  ;;  %v11267_v19 = vshll.u32 %v18429_v21, 16  ;;  %v11255_v6 = vrot.slane %v11253_v55, 7 }
 0x2c3   : > { %v11661_v53 = vrot.slane %v11647_v22, %v16379_v49  ;;  %v11250_v46 = vor.u32 %v11249_v16, %v11245_v48  ;;  %v11260_v28 = vrot.slane %v11258_v60, 6  ;;  %15328 = vmatmul.mubr.msk.bf16.gmra.mrb[12].mxu1 %vm2061_vm7, %v4953_v38  ;;  %v11271_v29 = vshrl.u32 %v18429_v21, 16 }
 0x2c4   : > { %v11246_v50 = vsel %vm16373_vm6, %v11241_v15, %v11245_v48  ;;  %v11263_v2 = vrot.slane %v11261_v12, 7  ;;  %v11269_v13 = vrot.slane %v11267_v19, 7  ;;  %v11277_v44 = vshll.u32 %v18445_v51, 16 }
 0x2c5   : > { %v11662_v35 = vcombine.low %v11654_v24, %v11661_v53  ;;  %v11251_v63 = vrot.slane %v11250_v46, 2  ;;  %v18466_v10 = vcombine.high %v18448_v5, %v18448_v5  ;;  %v11273_v56 = vrot.slane %v11271_v29, 6 }
 0x2c6   : > { %v11264_v42 = vor.u32 %v11263_v2, %v11260_v28  ;;  %v4955_v25 = vcombine.low %v14056_v20, %v18457_v59  ;;  %v18473_v45 = vcombine.high %v18445_v51, %v18445_v51  ;;  %v11279_v4 = vrot.slane %v11277_v44, 7  ;;  %v18492_v2 = vld.sshfl [vmem:[%s16346_s27 + $0x64] sm:$0x33 pattern:$0x76325410] }
 0x2c7   : > { %15539 = vmatprep.mubr.msk.bf16.mxu0 %vm2061_vm7, %v11662_v35  ;;  %v11256_v62 = vsel %vm16373_vm6, %v11251_v63, %v11255_v6  ;;  %v4954_v41 = vcombine.low %v18448_v5, %v18466_v10  ;;  %v10476_v54 = vcombine.high %v14578_v52, %v14578_v52  ;;  %v11274_v3 = vor.u32 %v11273_v56, %v11269_v13  ;;  %v14580_v44 = vld.sshfl [vmem:[%s16346_s27 + $0xd0] sm:$0x33 pattern:$0x76325410] }
 0x2c8   : > { %v11265_v39 = vrot.slane %v11264_v42, 2  ;;  %v11663_v34 = vcombine.low %v11246_v50, %v11256_v62  ;;  %v4969_v8 = vrot.slane %v4955_v25, %v16379_v49  ;;  %v10484_v27 = vcombine.high %v14579_v32, %v14579_v32 }
 0x2c9   : > { %v4962_v48 = vrot.slane %v4954_v41, %v16379_v49  ;;  %v11281_v31 = vshrl.u32 %v18445_v51, 16  ;;  %v11287_v24 = vshll.u32 %v18473_v45, 16  ;;  %v11275_v58 = vrot.slane %v11274_v3, 2 }
 0x2ca   : > { %v11270_v36 = vsel %vm16373_vm6, %v11265_v39, %v11269_v13  ;;  %v11671_v22 = vrot.slane %v11663_v34, %v16379_v49  ;;  %v11291_v16 = vshrl.u32 %v18473_v45, 16  ;;  %v11297_v38 = vshll.u32 %v14578_v52, 16 }
 0x2cb   : > { %v4970_v55 = vcombine.low %v4962_v48, %v4969_v8  ;;  %v11283_v60 = vrot.slane %v11281_v31, 6  ;;  %v11289_v20 = vrot.slane %v11287_v24, 7  ;;  %v11280_v15 = vsel %vm16373_vm6, %v11275_v58, %v11279_v4  ;;  %v14581_v58 = vld.sshfl [vmem:[%s16346_s27 + $0xd4] sm:$0x13 pattern:$0x76325410] }
 0x2cc   : > { %v11293_v12 = vrot.slane %v11291_v16, 6  ;;  %v11301_v19 = vshrl.u32 %v14578_v52, 16  ;;  %v11307_v53 = vshll.u32 %v10476_v54, 16  ;;  %v11664_v46 = vcombine.low %v11270_v36, %v11280_v15 }
 0x2cd   : > { %15331 = vmatprep.mubr.msk.bf16.mxu1 %vm2061_vm7, %v4970_v55  ;;  %v11284_v6 = vor.u32 %v11283_v60, %v11279_v4  ;;  %v11299_v28 = vrot.slane %v11297_v38, 7  ;;  %v11312_v50 = vshrl.u32 %v14579_v32, 16  ;;  %v11315_v63 = vshll.u32 %v14579_v32, 16 }
 0x2ce   : > { %v11294_v13 = vor.u32 %v11293_v12, %v11289_v20  ;;  %v11303_v29 = vrot.slane %v11301_v19, 6  ;;  %v11309_v35 = vrot.slane %v11307_v53, 7  ;;  %v11678_v42 = vrot.slane %v11664_v46, %v16379_v49  ;;  %v14059_v4 = vld.sshfl [vmem:[%s16346_s27 + $0x68] sm:$0x3 pattern:$0x76325410] }
 0x2cf   : > { %v11285_v56 = vrot.slane %v11284_v6, 2  ;;  %v11314_v52 = vrot.slane %v11312_v50, 6  ;;  %v11321_v25 = vshll.u32 %v10484_v27, 16  ;;  %v11317_v54 = vrot.slane %v11315_v63, 7 }
 0x2d0   : > { %v11295_v62 = vrot.slane %v11294_v13, 2  ;;  %v11304_v41 = vor.u32 %v11303_v29, %v11299_v28  ;;  %v4609_v39 = vcombine.high %v18457_v59, %v18457_v59  ;;  %v11679_v3 = vcombine.low %v11671_v22, %v11678_v42 }
 0x2d1   : > { %v11290_v34 = vsel %vm16373_vm6, %v11285_v56, %v11289_v20  ;;  %v11323_v8 = vrot.slane %v11321_v25, 7  ;;  %v18503_v32 = vcombine.high %v18492_v2, %v18492_v2  ;;  %v11318_v24 = vor.u32 %v11317_v54, %v11314_v52  ;;  %v18519_v56 = vld.sshfl [vmem:[%s16346_s27 + $0x6c] sm:$0x33 pattern:$0x76325410] }
 0x2d2   : > { %v11300_v48 = vsel %vm16373_vm6, %v11295_v62, %v11299_v28  ;;  %v11305_v31 = vrot.slane %v11304_v41, 2  ;;  %v4971_v36 = vcombine.low %v4609_v39, %v18492_v2  ;;  %15540 = vmatmul.mubr.msk.bf16.gmra.mrb[32].mxu0 %vm2061_vm7, %v11679_v3  ;;  %v10492_v16 = vcombine.high %v14580_v44, %v14580_v44  ;;  %v14654_v41 = vld.sshfl [vmem:[%s16346_s27 + $0x18] sm:$0x32 pattern:$0x76325410] }
 0x2d3   : > { %v11680_v59 = vcombine.low %v11290_v34, %v11300_v48  ;;  %v4972_v22 = vcombine.low %v18503_v32, %v14059_v4  ;;  %v10500_v55 = vcombine.high %v14581_v58, %v14581_v58  ;;  %v11319_v20 = vrot.slane %v11318_v24, 2  ;;  %v18525_v3 = vld.sshfl [vmem:[%s16346_s27 + $0x70] sm:$0x33 pattern:$0x76325410] }
 0x2d4   : > { %v11310_v60 = vsel %vm16373_vm6, %v11305_v31, %v11309_v35  ;;  %v4979_v38 = vrot.slane %v4971_v36, %v16379_v49  ;;  %v11325_v15 = vshrl.u32 %v10484_v27, 16  ;;  %v11331_v53 = vshll.u32 %v14580_v44, 16 }
 0x2d5   : > { %v11688_v12 = vrot.slane %v11680_v59, %v16379_v49  ;;  %v4986_v19 = vrot.slane %v4972_v22, %v16379_v49  ;;  %v11335_v46 = vshrl.u32 %v14580_v44, 16  ;;  %v11324_v6 = vsel %vm16373_vm6, %v11319_v20, %v11323_v8 }
 0x2d6   : > { %v11327_v28 = vrot.slane %v11325_v15, 6  ;;  %v11341_v50 = vshll.u32 %v10492_v16, 16  ;;  %v11345_v13 = vshrl.u32 %v10492_v16, 16  ;;  %v11681_v29 = vcombine.low %v11310_v60, %v11324_v6 }
 0x2d7   : > { %v4987_v35 = vcombine.low %v4979_v38, %v4986_v19  ;;  %v11333_v63 = vrot.slane %v11331_v53, 7  ;;  %v11337_v42 = vrot.slane %v11335_v46, 6  ;;  %v11351_v62 = vshll.u32 %v14581_v58, 16 }
 0x2d8   : > { %v11328_v27 = vor.u32 %v11327_v28, %v11323_v8  ;;  %v11343_v52 = vrot.slane %v11341_v50, 7  ;;  %v11347_v25 = vrot.slane %v11345_v13, 6  ;;  %v11695_v44 = vrot.slane %v11681_v29, %v16379_v49  ;;  %v14656_v8 = vld.sshfl [vmem:[%s16346_s27 + $0x20] sm:$0x13 pattern:$0x76325410] }
 0x2d9   : > { %15332 = vmatmul.mubr.msk.bf16.gmra.mrb[16].mxu1 %vm2061_vm7, %v4987_v35  ;;  %v11338_v54 = vor.u32 %v11337_v42, %v11333_v63  ;;  %v11355_v4 = vshrl.u32 %v14581_v58, 16  ;;  %v11361_v39 = vshll.u32 %v10500_v55, 16  ;;  %v11353_v31 = vrot.slane %v11351_v62, 7 }
 0x2da   : > { %v11329_v34 = vrot.slane %v11328_v27, 2  ;;  %v11348_v48 = vor.u32 %v11347_v25, %v11343_v52  ;;  %v18529_v24 = vcombine.high %v18519_v56, %v18519_v56  ;;  %v11696_v36 = vcombine.low %v11688_v12, %v11695_v44  ;;  %v18554_v62 = vld.sshfl [vmem:[%s16346_s27 + $0x78] sm:$0x33 pattern:$0x76325410] }
 0x2db   : > { %v11339_v59 = vrot.slane %v11338_v54, 2  ;;  %v11357_v22 = vrot.slane %v11355_v4, 6  ;;  %v11363_v16 = vrot.slane %v11361_v39, 7  ;;  %v18536_v58 = vcombine.high %v18525_v3, %v18525_v3 }
 0x2dc   : > { %v11334_v60 = vsel %vm16373_vm6, %v11329_v34, %v11333_v63  ;;  %v11349_v20 = vrot.slane %v11348_v48, 2  ;;  %v4988_v55 = vcombine.low %v18519_v56, %v18529_v24  ;;  %15543 = vmatprep.mubr.msk.bf16.mxu0 %vm2061_vm7, %v11696_v36  ;;  %v12134_v12 = vcombine.high %v14654_v41, %v14654_v41  ;;  %v14062_v63 = vld.sshfl [vmem:[%s16346_s27 + $0x74] sm:$0x3 pattern:$0x76325410] }
 0x2dd   : > { %v11344_v38 = vsel %vm16373_vm6, %v11339_v59, %v11343_v52  ;;  %v11358_v15 = vor.u32 %v11357_v22, %v11353_v31  ;;  %v12150_v19 = vcombine.high %v14656_v8, %v14656_v8  ;;  %v4989_v6 = vcombine.low %v18525_v3, %v18536_v58 }
 0x2de   : > { %v11354_v53 = vsel %vm16373_vm6, %v11349_v20, %v11353_v31  ;;  %v11697_v46 = vcombine.low %v11334_v60, %v11344_v38  ;;  %v4996_v28 = vrot.slane %v4988_v55, %v16379_v49  ;;  %v14702_v13 = vrot.slane %v14654_v41, 9  ;;  %v14659_v38 = vld.sshfl [vmem:[%s16346_s27 + $0x2c] sm:$0x13 pattern:$0x76325410] }
 0x2df   : > { %v11359_v50 = vrot.slane %v11358_v15, 2  ;;  %v12513_v29 = vrot.slane %v12134_v12, 7  ;;  %v12516_v35 = vrot.slane %v18212_v57, 7  ;;  %v5003_v27 = vrot.slane %v4989_v6, %v16379_v49 }
 0x2e0   : > { %v11705_v42 = vrot.slane %v11697_v46, %v16379_v49  ;;  %v12519_v52 = vrot.slane %v18247_v37, 7  ;;  %v12522_v25 = vrot.slane %v14656_v8, 7  ;;  %v18561_v57 = vld.sshfl [vmem:[%s16346_s27 + $0x7c] sm:$0x33 pattern:$0x76325410]  ;;  %v18570_v22 = vcombine.high %v18554_v62, %v18554_v62 }
 0x2e1   : > { %v11364_v44 = vsel %vm16373_vm6, %v11359_v50, %v11363_v16  ;;  %v12514_v41 = vsel %vm16626_vm14, %v14702_v13, %v12513_v29  ;;  %v12515_v54 = vrot.slane %v12513_v29, 2  ;;  %v12518_v4 = vrot.slane %v12516_v35, 2  ;;  %v14657_v37 = vld.sshfl [vmem:[%s16346_s27 + $0x24] sm:$0x32 pattern:$0x76325410] }
 0x2e2   : > { %v11698_v39 = vcombine.low %v11354_v53, %v11364_v44  ;;  %v5004_v34 = vcombine.low %v4996_v28, %v5003_v27  ;;  %v12521_v48 = vrot.slane %v12519_v52, 2  ;;  %v12524_v31 = vrot.slane %v12522_v25, 2  ;;  %v18583_v46 = vld.sshfl [vmem:[%s16346_s27 + $0x84] sm:$0x33 pattern:$0x76325410] }
 0x2e3   : > { %v12517_v8 = vsel %vm16626_vm14, %v12515_v54, %v12516_v35  ;;  %v12520_v36 = vsel %vm16626_vm14, %v12518_v4, %v12519_v52  ;;  %v12525_v59 = vrot.slane %v12150_v19, 7  ;;  %v5005_v55 = vcombine.low %v14062_v63, %v18554_v62  ;;  %v14065_v52 = vld.sshfl [vmem:[%s16346_s27 + $0x80] sm:$0x3 pattern:$0x76325410] }
 0x2e4   : > { %v11712_v16 = vrot.slane %v11698_v39, %v16379_v49  ;;  %15335 = vmatprep.mubr.msk.bf16.mxu1 %vm2061_vm7, %v5004_v34  ;;  %v12523_v60 = vsel %vm16626_vm14, %v12521_v48, %v12522_v25  ;;  %v12776_v20 = vcombine.low %v12514_v41, %v12517_v8  ;;  %v5006_v12 = vcombine.low %v18570_v22, %v18561_v57  ;;  %v14660_v41 = vld.sshfl [vmem:[%s16346_s27 + $0x30] sm:$0x32 pattern:$0x76325410] }
 0x2e5   : > { %v12777_v15 = vcombine.low %v12520_v36, %v12523_v60  ;;  %v12158_v19 = vcombine.high %v14657_v37, %v14657_v37  ;;  %v12526_v53 = vsel %vm16626_vm14, %v12524_v31, %v12525_v59  ;;  %v5013_v50 = vrot.slane %v5005_v55, %v16379_v49  ;;  %v18608_v8 = vld.sshfl [vmem:[%s16346_s27 + $0x88] sm:$0x33 pattern:$0x76325410] }
 0x2e6   : > { %v11713_v6 = vcombine.low %v11705_v42, %v11712_v16  ;;  %v12784_v28 = vrot.slane %v12776_v20, %v16379_v49  ;;  %v14703_v13 = vrot.slane %v14657_v37, 9  ;;  %v5020_v35 = vrot.slane %v5006_v12, %v16379_v49  ;;  %v14068_v20 = vld.sshfl [vmem:[%s16346_s27 + $0x8c] sm:$0x3 pattern:$0x76325410] }
 0x2e7   : > { %v12791_v29 = vrot.slane %v12777_v15, %v16379_v49  ;;  %v12529_v63 = vrot.slane %v12158_v19, 7  ;;  %v12532_v27 = vrot.slane %v18267_v40, 7  ;;  %v12535_v25 = vrot.slane %v18282_v33, 7 }
 0x2e8   : > { %15544 = vmatmul.mubr.msk.bf16.gmra.mrb[36].mxu0 %vm2061_vm7, %v11713_v6  ;;  %v18595_v42 = vcombine.high %v18561_v57, %v18561_v57  ;;  %v18599_v44 = vcombine.high %v18583_v46, %v18583_v46  ;;  %v12174_v54 = vcombine.high %v14659_v38, %v14659_v38  ;;  %v5021_v39 = vcombine.low %v5013_v50, %v5020_v35 }
 0x2e9   : > { %v12792_v4 = vcombine.low %v12784_v28, %v12791_v29  ;;  %v12530_v40 = vsel %vm16626_vm14, %v14703_v13, %v12529_v63  ;;  %v12531_v34 = vrot.slane %v12529_v63, 2  ;;  %v12534_v48 = vrot.slane %v12532_v27, 2  ;;  %v14663_v29 = vld.sshfl [vmem:[%s16346_s27 + $0x3c] sm:$0x32 pattern:$0x76325410] }
 0x2ea   : > { %v12793_v33 = vcombine.low %v12526_v53, %v12530_v40  ;;  %v5022_v31 = vcombine.low %v18595_v42, %v14065_v52  ;;  %v5023_v37 = vcombine.low %v18583_v46, %v18599_v44  ;;  %15336 = vmatmul.mubr.msk.bf16.gmra.mrb[20].mxu1 %vm2061_vm7, %v5021_v39  ;;  %v12182_v59 = vcombine.high %v14660_v41, %v14660_v41  ;;  %v14662_v53 = vld.sshfl [vmem:[%s16346_s27 + $0x38] sm:$0x13 pattern:$0x76325410] }
 0x2eb   : > { %15555 = vmatprep.mubr.msk.bf16.mxu0 %vm2061_vm7, %v12792_v4  ;;  %v12533_v36 = vsel %vm16626_vm14, %v12531_v34, %v12532_v27  ;;  %v12537_v16 = vrot.slane %v12535_v25, 2  ;;  %v12538_v60 = vrot.slane %v14659_v38, 7  ;;  %v12536_v55 = vsel %vm16626_vm14, %v12534_v48, %v12535_v25 }
 0x2ec   : > { %v12801_v15 = vrot.slane %v12793_v33, %v16379_v49  ;;  %v5030_v12 = vrot.slane %v5022_v31, %v16379_v49  ;;  %v5037_v19 = vrot.slane %v5023_v37, %v16379_v49  ;;  %v12794_v6 = vcombine.low %v12533_v36, %v12536_v55 }
 0x2ed   : > { %v12539_v28 = vsel %vm16626_vm14, %v12537_v16, %v12538_v60  ;;  %v12540_v50 = vrot.slane %v12538_v60, 2  ;;  %v12541_v13 = vrot.slane %v12174_v54, 7  ;;  %v14704_v38 = vrot.slane %v14660_v41, 9 }
 0x2ee   : > { %v5038_v35 = vcombine.low %v5030_v12, %v5037_v19  ;;  %v12545_v63 = vrot.slane %v12182_v59, 7  ;;  %v12548_v27 = vrot.slane %v18304_v7, 7  ;;  %v12808_v52 = vrot.slane %v12794_v6, %v16379_v49  ;;  %v18644_v16 = vld.sshfl [vmem:[%s16346_s27 + $0x94] sm:$0x33 pattern:$0x76325410] }
 0x2ef   : > { %v12542_v25 = vsel %vm16626_vm14, %v12540_v50, %v12541_v13  ;;  %v18630_v4 = vcombine.high %v18608_v8, %v18608_v8  ;;  %v5040_v39 = vcombine.low %v14068_v20, %v18239_v1  ;;  %v12198_v7 = vcombine.high %v14662_v53, %v14662_v53  ;;  %v14665_v12 = vld.sshfl [vmem:[%s16346_s27 + $0x44] sm:$0x13 pattern:$0x76325410] }
 0x2f0   : > { %15339 = vmatprep.mubr.msk.bf16.mxu1 %vm2061_vm7, %v5038_v35  ;;  %v12546_v41 = vsel %vm16626_vm14, %v14704_v38, %v12545_v63  ;;  %v12547_v54 = vrot.slane %v12545_v63, 2  ;;  %v12810_v40 = vcombine.low %v12539_v28, %v12542_v25  ;;  %v12809_v34 = vcombine.low %v12801_v15, %v12808_v52  ;;  %v14071_v38 = vld.sshfl [vmem:[%s16346_s27 + $0x98] sm:$0x3 pattern:$0x76325410] }
 0x2f1   : > { %v5039_v48 = vcombine.low %v18608_v8, %v18630_v4  ;;  %v5054_v33 = vrot.slane %v5040_v39, %v16379_v49  ;;  %v12206_v31 = vcombine.high %v14663_v29, %v14663_v29  ;;  %v12550_v36 = vrot.slane %v12548_v27, 2  ;;  %v16066_v63 = vld.sshfl [vmem:[%s16346_s27 + $0x90] sm:$0x33 pattern:$0x76325410] }
 0x2f2   : > { %v12549_v37 = vsel %vm16626_vm14, %v12547_v54, %v12548_v27  ;;  %v12818_v1 = vrot.slane %v12810_v40, %v16379_v49  ;;  %v12551_v59 = vrot.slane %v18316_v14, 7  ;;  %15556 = vmatmul.mubr.msk.bf16.vlgmr.msra.gmra.mrb[0].mxu0 %vm2061_vm7, %v12809_v34  ;;  %v12554_v55 = vrot.slane %v14662_v53, 7 }
 0x2f3   : > { %v12811_v60 = vcombine.low %v12546_v41, %v12549_v37  ;;  %v5047_v20 = vrot.slane %v5039_v48, %v16379_v49  ;;  %v12557_v15 = vrot.slane %v12198_v7, 7  ;;  %v14705_v28 = vrot.slane %v14663_v29, 9 }
 0x2f4   : > { %v12552_v19 = vsel %vm16626_vm14, %v12550_v36, %v12551_v59  ;;  %v12553_v6 = vrot.slane %v12551_v59, 2  ;;  %v12561_v50 = vrot.slane %v12206_v31, 7  ;;  %v12556_v35 = vrot.slane %v12554_v55, 2 }
 0x2f5   : > { %v12825_v13 = vrot.slane %v12811_v60, %v16379_v49  ;;  %v5055_v14 = vcombine.low %v5047_v20, %v5054_v33  ;;  %v4701_v27 = vcombine.high %v16066_v63, %v16066_v63  ;;  %v18660_v25 = vcombine.high %v18644_v16, %v18644_v16  ;;  %v18669_v31 = vld.sshfl [vmem:[%s16346_s27 + $0x9c] sm:$0x33 pattern:$0x76325410] }
 0x2f6   : > { %v12555_v52 = vsel %vm16626_vm14, %v12553_v6, %v12554_v55  ;;  %v12562_v53 = vsel %vm16626_vm14, %v14705_v28, %v12561_v50  ;;  %v12222_v29 = vcombine.high %v14665_v12, %v14665_v12  ;;  %v12558_v41 = vsel %vm16626_vm14, %v12556_v35, %v12557_v15  ;;  %v18676_v60 = vld.sshfl [vmem:[%s16346_s27 + $0xa0] sm:$0x33 pattern:$0x76325410] }
 0x2f7   : > { %v12826_v39 = vcombine.low %v12818_v1, %v12825_v13  ;;  %15340 = vmatmul.mubr.msk.bf16.gmra.mrb[24].mxu1 %vm2061_vm7, %v5055_v14  ;;  %v12827_v54 = vcombine.low %v12552_v19, %v12555_v52  ;;  %v5056_v40 = vcombine.low %v4701_v27, %v18644_v16  ;;  %v12828_v7 = vcombine.low %v12558_v41, %v12562_v53  ;;  %v14666_v19 = vld.sshfl [vmem:[%s16346_s27 + $0x48] sm:$0x32 pattern:$0x76325410] }
 0x2f8   : > { %v5057_v34 = vcombine.low %v18660_v25, %v14071_v38  ;;  %v12563_v48 = vrot.slane %v12561_v50, 2  ;;  %v12564_v33 = vrot.slane %v18337_v17, 7  ;;  %v12567_v36 = vrot.slane %v18350_v9, 7 }
 0x2f9   : > { %15559 = vmatprep.mubr.msk.bf16.mxu0 %vm2061_vm7, %v12826_v39  ;;  %v12835_v37 = vrot.slane %v12827_v54, %v16379_v49  ;;  %v5064_v1 = vrot.slane %v5056_v40, %v16379_v49  ;;  %v12570_v59 = vrot.slane %v14665_v12, 7  ;;  %v12842_v20 = vrot.slane %v12828_v7, %v16379_v49  ;;  %v14668_v38 = vld.sshfl [vmem:[%s16346_s27 + $0x50] sm:$0x13 pattern:$0x76325410] }
 0x2fa   : > { %v5071_v55 = vrot.slane %v5057_v34, %v16379_v49  ;;  %v12565_v17 = vsel %vm16626_vm14, %v12563_v48, %v12564_v33  ;;  %v12566_v15 = vrot.slane %v12564_v33, 2  ;;  %v12569_v6 = vrot.slane %v12567_v36, 2  ;;  %v14074_v7 = vld.sshfl [vmem:[%s16346_s27 + $0xa4] sm:$0x3 pattern:$0x76325410] }
 0x2fb   : > { %v12572_v28 = vrot.slane %v12570_v59, 2  ;;  %v12573_v50 = vrot.slane %v12222_v29, 7  ;;  %v18685_v9 = vcombine.high %v18669_v31, %v18669_v31  ;;  %v12843_v12 = vcombine.low %v12835_v37, %v12842_v20  ;;  %v18701_v29 = vld.sshfl [vmem:[%s16346_s27 + $0xac] sm:$0x33 pattern:$0x76325410] }
 0x2fc   : > { %v5072_v13 = vcombine.low %v5064_v1, %v5071_v55  ;;  %v12568_v14 = vsel %vm16626_vm14, %v12566_v15, %v12567_v36  ;;  %v18691_v35 = vcombine.high %v18676_v60, %v18676_v60  ;;  %v12571_v63 = vsel %vm16626_vm14, %v12569_v6, %v12570_v59 }
 0x2fd   : > { %v12574_v27 = vsel %vm16626_vm14, %v12572_v28, %v12573_v50  ;;  %v12844_v52 = vcombine.low %v12565_v17, %v12568_v14  ;;  %v5073_v53 = vcombine.low %v18669_v31, %v18685_v9  ;;  %15560 = vmatmul.mubr.msk.bf16.gmra.mrb[4].mxu0 %vm2061_vm7, %v12843_v12  ;;  %v12230_v54 = vcombine.high %v14666_v19, %v14666_v19  ;;  %v14669_v50 = vld.sshfl [vmem:[%s16346_s27 + $0x54] sm:$0x32 pattern:$0x76325410] }
 0x2fe   : > { %15343 = vmatprep.mubr.msk.bf16.mxu1 %vm2061_vm7, %v5072_v13  ;;  %v12845_v39 = vcombine.low %v12571_v63, %v12574_v27  ;;  %v5074_v41 = vcombine.low %v18676_v60, %v18691_v35  ;;  %v14706_v40 = vrot.slane %v14666_v19, 9  ;;  %v12580_v33 = vrot.slane %v18379_v0, 7 }
 0x2ff   : > { %v12852_v34 = vrot.slane %v12844_v52, %v16379_v49  ;;  %v5081_v48 = vrot.slane %v5073_v53, %v16379_v49  ;;  %v12583_v37 = vrot.slane %v18424_v47, 7  ;;  %v12577_v59 = vrot.slane %v12230_v54, 7 }
 0x300   : > { %v12859_v1 = vrot.slane %v12845_v39, %v16379_v49  ;;  %v5088_v36 = vrot.slane %v5074_v41, %v16379_v49  ;;  %v12586_v20 = vrot.slane %v14668_v38, 7  ;;  %v12582_v55 = vrot.slane %v12580_v33, 2  ;;  %v14077_v39 = vld.sshfl [vmem:[%s16346_s27 + $0xb0] sm:$0x3 pattern:$0x76325410] }
 0x301   : > { %v12585_v17 = vrot.slane %v12583_v37, 2  ;;  %v5090_v15 = vcombine.low %v14074_v7, %v18340_v43  ;;  %v5091_v19 = vcombine.low %v18356_v11, %v18701_v29  ;;  %v12578_v0 = vsel %vm16626_vm14, %v14706_v40, %v12577_v59  ;;  %v14671_v11 = vld.sshfl [vmem:[%s16346_s27 + $0x5c] sm:$0x13 pattern:$0x76325410] }
 0x302   : > { %v12860_v6 = vcombine.low %v12852_v34, %v12859_v1  ;;  %v5089_v28 = vcombine.low %v5081_v48, %v5088_v36  ;;  %v12579_v47 = vrot.slane %v12577_v59, 2  ;;  %v12584_v12 = vsel %vm16626_vm14, %v12582_v55, %v12583_v37  ;;  %v14672_v34 = vld.sshfl [vmem:[%s16346_s27 + $0x60] sm:$0x32 pattern:$0x76325410] }
 0x303   : > { %v12587_v13 = vsel %vm16626_vm14, %v12585_v17, %v12586_v20  ;;  %v5098_v43 = vrot.slane %v5090_v15, %v16379_v49  ;;  %v5105_v14 = vrot.slane %v5091_v19, %v16379_v49  ;;  %v12246_v52 = vcombine.high %v14668_v38, %v14668_v38 }
 0x304   : > { %15563 = vmatprep.mubr.msk.bf16.mxu0 %vm2061_vm7, %v12860_v6  ;;  %15344 = vmatmul.mubr.msk.bf16.gmra.mrb[28].mxu1 %vm2061_vm7, %v5089_v28  ;;  %v12581_v63 = vsel %vm16626_vm14, %v12579_v47, %v12580_v33  ;;  %v12862_v27 = vcombine.low %v12584_v12, %v12587_v13  ;;  %v12588_v53 = vrot.slane %v12586_v20, 2  ;;  %v12254_v40 = vcombine.high %v14669_v50, %v14669_v50  ;;  %v14675_v12 = vld.sshfl [vmem:[%s16346_s27 + $0x6c] sm:$0x32 pattern:$0x76325410] }
 0x305   : > { %v12861_v41 = vcombine.low %v12578_v0, %v12581_v63  ;;  %v5106_v54 = vcombine.low %v5098_v43, %v5105_v14  ;;  %v14707_v7 = vrot.slane %v14669_v50, 9  ;;  %v12589_v37 = vrot.slane %v12246_v52, 7  ;;  %v14674_v50 = vld.sshfl [vmem:[%s16346_s27 + $0x68] sm:$0x13 pattern:$0x76325410] }
 0x306   : > { %v12876_v48 = vrot.slane %v12862_v27, %v16379_v49  ;;  %v12596_v1 = vrot.slane %v18448_v5, 7  ;;  %v12599_v36 = vrot.slane %v18466_v10, 7  ;;  %v12593_v38 = vrot.slane %v12254_v40, 7 }
 0x307   : > { %v12869_v59 = vrot.slane %v12861_v41, %v16379_v49  ;;  %15347 = vmatprep.mubr.msk.bf16.mxu1 %vm2061_vm7, %v5106_v54  ;;  %v18740_v33 = vcombine.high %v18701_v29, %v18701_v29  ;;  %v5108_v20 = vcombine.low %v18382_v23, %v18393_v30  ;;  %v12590_v55 = vsel %vm16626_vm14, %v12588_v53, %v12589_v37  ;;  %v18759_v27 = vld.sshfl [vmem:[%s16346_s27 + $0xb8] sm:$0x33 pattern:$0x76325410] }
 0x308   : > { %v12598_v5 = vrot.slane %v12596_v1, 2  ;;  %v12270_v17 = vcombine.high %v14671_v11, %v14671_v11  ;;  %v12278_v10 = vcombine.high %v14672_v34, %v14672_v34  ;;  %v12594_v19 = vsel %vm16626_vm14, %v14707_v7, %v12593_v38  ;;  %v14080_v54 = vld.sshfl [vmem:[%s16346_s27 + $0xbc] sm:$0x3 pattern:$0x76325410] }
 0x309   : > { %v12877_v15 = vcombine.low %v12869_v59, %v12876_v48  ;;  %v12595_v6 = vrot.slane %v12593_v38, 2  ;;  %v5107_v28 = vcombine.low %v18740_v33, %v14077_v39  ;;  %v12878_v47 = vcombine.low %v12590_v55, %v12594_v19 }
 0x30a   : > { %v12600_v0 = vsel %vm16626_vm14, %v12598_v5, %v12599_v36  ;;  %v5122_v23 = vrot.slane %v5108_v20, %v16379_v49  ;;  %v12601_v30 = vrot.slane %v12599_v36, 2  ;;  %v12602_v14 = vrot.slane %v14671_v11, 7 }
 0x30b   : > { %15564 = vmatmul.mubr.msk.bf16.gmra.mrb[8].mxu0 %vm2061_vm7, %v12877_v15  ;;  %v12597_v13 = vsel %vm16626_vm14, %v12595_v6, %v12596_v1  ;;  %v5115_v43 = vrot.slane %v5107_v28, %v16379_v49  ;;  %v12605_v63 = vrot.slane %v12270_v17, 7  ;;  %v12886_v53 = vrot.slane %v12878_v47, %v16379_v49 }
 0x30c   : > { %v12879_v52 = vcombine.low %v12597_v13, %v12600_v0  ;;  %v14708_v39 = vrot.slane %v14672_v34, 9  ;;  %v12609_v41 = vrot.slane %v12278_v10, 7  ;;  %v12603_v7 = vsel %vm16626_vm14, %v12601_v30, %v12602_v14  ;;  %v18784_v0 = vld.sshfl [vmem:[%s16346_s27 + $0x74] sm:$0x13 pattern:$0x76325410] }
 0x30d   : > { %v5123_v40 = vcombine.low %v5115_v43, %v5122_v23  ;;  %v12604_v48 = vrot.slane %v12602_v14, 2  ;;  %v12612_v37 = vrot.slane %v18492_v2, 7  ;;  %v18771_v59 = vcombine.high %v18759_v27, %v18759_v27  ;;  %v14083_v13 = vld.sshfl [vmem:[%s16346_s27 + $0xc8] sm:$0x3 pattern:$0x76325410] }
 0x30e   : > { %v12893_v1 = vrot.slane %v12879_v52, %v16379_v49  ;;  %v12610_v11 = vsel %vm16626_vm14, %v14708_v39, %v12609_v41  ;;  %v12611_v36 = vrot.slane %v12609_v41, 2  ;;  %v5125_v38 = vcombine.low %v14080_v54, %v18412_v26 }
 0x30f   : > { %15348 = vmatmul.mubr.msk.bf16.gmra.mrb[32].mxu1 %vm2061_vm7, %v5123_v40  ;;  %v12606_v34 = vsel %vm16626_vm14, %v12604_v48, %v12605_v63  ;;  %v12294_v20 = vcombine.high %v14674_v50, %v14674_v50  ;;  %v12302_v2 = vcombine.high %v14675_v12, %v14675_v12  ;;  %v5124_v10 = vcombine.low %v18759_v27, %v18771_v59 }
 0x310   : > { %v12894_v55 = vcombine.low %v12886_v53, %v12893_v1  ;;  %v12613_v5 = vsel %vm16626_vm14, %v12611_v36, %v12612_v37  ;;  %v12895_v17 = vcombine.low %v12603_v7, %v12606_v34  ;;  %v5139_v19 = vrot.slane %v5125_v38, %v16379_v49 }
 0x311   : > { %v12896_v15 = vcombine.low %v12610_v11, %v12613_v5  ;;  %v12614_v6 = vrot.slane %v12612_v37, 2  ;;  %v12615_v28 = vrot.slane %v18503_v32, 7  ;;  %v5132_v47 = vrot.slane %v5124_v10, %v16379_v49 }
 0x312   : > { %15567 = vmatprep.mubr.msk.bf16.mxu0 %vm2061_vm7, %v12894_v55  ;;  %v12903_v26 = vrot.slane %v12895_v17, %v16379_v49  ;;  %v12618_v23 = vrot.slane %v14674_v50, 7  ;;  %v12621_v30 = vrot.slane %v12294_v20, 7  ;;  %v14709_v52 = vrot.slane %v14675_v12, 9 }
 0x313   : > { %v12910_v43 = vrot.slane %v12896_v15, %v16379_v49  ;;  %v12616_v14 = vsel %vm16626_vm14, %v12614_v6, %v12615_v28  ;;  %v12617_v63 = vrot.slane %v12615_v28, 2  ;;  %v5140_v53 = vcombine.low %v5132_v47, %v5139_v19 }
 0x314   : > { %v12620_v32 = vrot.slane %v12618_v23, 2  ;;  %v12625_v39 = vrot.slane %v12302_v2, 7  ;;  %v5141_v41 = vcombine.low %v18429_v21, %v18445_v51  ;;  %v5142_v50 = vcombine.low %v18473_v45, %v14083_v13 }
 0x315   : > { %v12911_v54 = vcombine.low %v12903_v26, %v12910_v43  ;;  %v12619_v40 = vsel %vm16626_vm14, %v12617_v63, %v12618_v23  ;;  %v18800_v7 = vcombine.high %v18784_v0, %v18784_v0  ;;  %15351 = vmatprep.mubr.msk.bf16.mxu1 %vm2061_vm7, %v5140_v53  ;;  %v12628_v11 = vrot.slane %v18525_v3, 7 }
 0x316   : > { %v12622_v12 = vsel %vm16626_vm14, %v12620_v32, %v12621_v30  ;;  %v12626_v48 = vsel %vm16626_vm14, %v14709_v52, %v12625_v39  ;;  %v12912_v37 = vcombine.low %v12616_v14, %v12619_v40  ;;  %v5149_v21 = vrot.slane %v5141_v41, %v16379_v49 }
 0x317   : > { %15568 = vmatmul.mubr.msk.bf16.gmra.mrb[12].mxu0 %vm2061_vm7, %v12911_v54  ;;  %v12913_v51 = vcombine.low %v12622_v12, %v12626_v48  ;;  %v5156_v45 = vrot.slane %v5142_v50, %v16379_v49  ;;  %v12627_v1 = vrot.slane %v12625_v39, 2  ;;  %v12631_v34 = vrot.slane %v18536_v58, 7  ;;  %v14678_v48 = vld.sshfl [vmem:[%s16346_s27 + $0x78] sm:$0x32 pattern:$0x76325410] }
 0x318   : > { %v12920_v36 = vrot.slane %v12912_v37, %v16379_v49  ;;  %v12634_v38 = vrot.slane %v18784_v0, 7  ;;  %v12637_v20 = vrot.slane %v18800_v7, 7  ;;  %v12630_v17 = vrot.slane %v12628_v11, 2 }
 0x319   : > { %v12927_v2 = vrot.slane %v12913_v51, %v16379_v49  ;;  %v5157_v55 = vcombine.low %v5149_v21, %v5156_v45  ;;  %v12629_v5 = vsel %vm16626_vm14, %v12627_v1, %v12628_v11  ;;  %v12633_v10 = vrot.slane %v12631_v34, 2 }
 0x31a   : > { %v12636_v15 = vrot.slane %v12634_v38, 2  ;;  %v6388_v19 = vshrl.u32 %v18519_v56, 16  ;;  %v6391_v6 = vshll.u32 %v18519_v56, 16  ;;  %v12632_v26 = vsel %vm16626_vm14, %v12630_v17, %v12631_v34 }
 0x31b   : > { %v12928_v28 = vcombine.low %v12920_v36, %v12927_v2  ;;  %15352 = vmatmul.mubr.msk.bf16.gmra.mrb[36].mxu1 %vm2061_vm7, %v5157_v55  ;;  %v6397_v47 = vshll.u32 %v18529_v24, 16  ;;  %v6401_v23 = vshrl.u32 %v18529_v24, 16  ;;  %v12635_v30 = vsel %vm16626_vm14, %v12633_v10, %v12634_v38  ;;  %v18846_v17 = vld.sshfl [vmem:[%s16346_s27 + $0x80] sm:$0x13 pattern:$0x76325410] }
 0x31c   : > { %v12638_v13 = vsel %vm16626_vm14, %v12636_v15, %v12637_v20  ;;  %v12929_v43 = vcombine.low %v12629_v5, %v12632_v26  ;;  %v6390_v14 = vrot.slane %v6388_v19, 6  ;;  %v6393_v63 = vrot.slane %v6391_v6, 7 }
 0x31d   : > { %15571 = vmatprep.mubr.msk.bf16.mxu0 %vm2061_vm7, %v12928_v28  ;;  %v12930_v56 = vcombine.low %v12635_v30, %v12638_v13  ;;  %v6399_v52 = vrot.slane %v6397_v47, 7  ;;  %v6403_v53 = vrot.slane %v6401_v23, 6  ;;  %v6407_v39 = vshll.u32 %v18525_v3, 16 }
 0x31e   : > { %v12937_v32 = vrot.slane %v12929_v43, %v16379_v49  ;;  %v6411_v24 = vshrl.u32 %v18525_v3, 16  ;;  %v6417_v41 = vshll.u32 %v18536_v58, 16  ;;  %v6394_v40 = vor.u32 %v6393_v63, %v6390_v14 }
 0x31f   : > { %v12944_v54 = vrot.slane %v12930_v56, %v16379_v49  ;;  %v6404_v50 = vor.u32 %v6403_v53, %v6399_v52  ;;  %v6421_v12 = vshrl.u32 %v18536_v58, 16  ;;  %v6409_v37 = vrot.slane %v6407_v39, 7 }
 0x320   : > { %v6413_v21 = vrot.slane %v6411_v24, 6  ;;  %v6419_v51 = vrot.slane %v6417_v41, 7  ;;  %v6427_v45 = vshll.u32 %v18784_v0, 16  ;;  %v6395_v11 = vrot.slane %v6394_v40, 2 }
 0x321   : > { %v12945_v1 = vcombine.low %v12937_v32, %v12944_v54  ;;  %v6405_v36 = vrot.slane %v6404_v50, 2  ;;  %v6423_v34 = vrot.slane %v6421_v12, 6  ;;  %v6431_v20 = vshrl.u32 %v18784_v0, 16 }
 0x322   : > { %v6414_v3 = vor.u32 %v6413_v21, %v6409_v37  ;;  %v6429_v38 = vrot.slane %v6427_v45, 7  ;;  %v6437_v2 = vshll.u32 %v18800_v7, 16  ;;  %v6400_v58 = vsel %vm16373_vm6, %v6395_v11, %v6399_v52 }
 0x323   : > { %15572 = vmatmul.mubr.msk.bf16.gmra.mrb[16].mxu0 %vm2061_vm7, %v12945_v1  ;;  %v6410_v55 = vsel %vm16373_vm6, %v6405_v36, %v6409_v37  ;;  %v6424_v5 = vor.u32 %v6423_v34, %v6419_v51  ;;  %v12326_v10 = vcombine.high %v14678_v48, %v14678_v48  ;;  %v6433_v19 = vrot.slane %v6431_v20, 6 }
 0x324   : > { %v6415_v15 = vrot.slane %v6414_v3, 2  ;;  %v6439_v6 = vrot.slane %v6437_v2, 7  ;;  %v6998_v28 = vcombine.low %v6400_v58, %v6410_v55  ;;  %v14710_v0 = vrot.slane %v14678_v48, 9 }
 0x325   : > { %v6425_v26 = vrot.slane %v6424_v5, 2  ;;  %v12641_v47 = vrot.slane %v12326_v10, 7  ;;  %v12644_v7 = vrot.slane %v18561_v57, 7  ;;  %v6434_v30 = vor.u32 %v6433_v19, %v6429_v38 }
 0x326   : > { %v6420_v23 = vsel %vm16373_vm6, %v6415_v15, %v6419_v51  ;;  %v7006_v13 = vrot.slane %v6998_v28, %v16379_v49  ;;  %v12647_v43 = vrot.slane %v18595_v42, 7  ;;  %v12650_v24 = vrot.slane %v18846_v17, 7 }
 0x327   : > { %v6430_v14 = vsel %vm16373_vm6, %v6425_v26, %v6429_v38  ;;  %v12642_v56 = vsel %vm16626_vm14, %v14710_v0, %v12641_v47  ;;  %v12643_v63 = vrot.slane %v12641_v47, 2  ;;  %v12646_v52 = vrot.slane %v12644_v7, 2  ;;  %v14681_v38 = vld.sshfl [vmem:[%s16346_s27 + $0x84] sm:$0x32 pattern:$0x76325410] }
 0x328   : > { %v6435_v53 = vrot.slane %v6434_v30, 2  ;;  %v6999_v32 = vcombine.low %v6420_v23, %v6430_v14  ;;  %v12649_v39 = vrot.slane %v12647_v43, 2  ;;  %v6442_v40 = vshrl.u32 %v18554_v62, 16 }
 0x329   : > { %v12645_v41 = vsel %vm16626_vm14, %v12643_v63, %v12644_v7  ;;  %v12648_v54 = vsel %vm16626_vm14, %v12646_v52, %v12647_v43  ;;  %v6445_v50 = vshll.u32 %v18554_v62, 16  ;;  %v6451_v11 = vshll.u32 %v18570_v22, 16 }
 0x32a   : > { %v7013_v12 = vrot.slane %v6999_v32, %v16379_v49  ;;  %v12651_v48 = vsel %vm16626_vm14, %v12649_v39, %v12650_v24  ;;  %v12946_v37 = vcombine.low %v12642_v56, %v12645_v41  ;;  %v6440_v21 = vsel %vm16373_vm6, %v6435_v53, %v6439_v6 }
 0x32b   : > { %v12947_v51 = vcombine.low %v12648_v54, %v12651_v48  ;;  %v6444_v45 = vrot.slane %v6442_v40, 6  ;;  %v6447_v1 = vrot.slane %v6445_v50, 7  ;;  %v6455_v3 = vshrl.u32 %v18570_v22, 16 }
 0x32c   : > { %v7014_v36 = vcombine.low %v7006_v13, %v7013_v12  ;;  %v12954_v34 = vrot.slane %v12946_v37, %v16379_v49  ;;  %v6461_v62 = vshll.u32 %v18561_v57, 16  ;;  %v6453_v58 = vrot.slane %v6451_v11, 7 }
 0x32d   : > { %v12961_v20 = vrot.slane %v12947_v51, %v16379_v49  ;;  %v6448_v2 = vor.u32 %v6447_v1, %v6444_v45  ;;  %v6465_v55 = vshrl.u32 %v18561_v57, 16  ;;  %v6457_v5 = vrot.slane %v6455_v3, 6 }
 0x32e   : > { %15383 = vmatprep.mubr.msk.bf16.mxu1 %vm2061_vm7, %v7014_v36  ;;  %v6463_v10 = vrot.slane %v6461_v62, 7  ;;  %v6471_v15 = vshll.u32 %v18595_v42, 16  ;;  %v12342_v19 = vcombine.high %v18846_v17, %v18846_v17  ;;  %v12350_v26 = vcombine.high %v14681_v38, %v14681_v38 }
 0x32f   : > { %v12962_v6 = vcombine.low %v12954_v34, %v12961_v20  ;;  %v6449_v22 = vrot.slane %v6448_v2, 2  ;;  %v6467_v28 = vrot.slane %v6465_v55, 6  ;;  %v6458_v0 = vor.u32 %v6457_v5, %v6453_v58 }
 0x330   : > { %v6473_v47 = vrot.slane %v6471_v15, 7  ;;  %v12652_v7 = vrot.slane %v12650_v24, 2  ;;  %v12653_v23 = vrot.slane %v12342_v19, 7  ;;  %v14711_v13 = vrot.slane %v14681_v38, 9 }
 0x331   : > { %15575 = vmatprep.mubr.msk.bf16.mxu0 %vm2061_vm7, %v12962_v6  ;;  %v6454_v57 = vsel %vm16373_vm6, %v6449_v22, %v6453_v58  ;;  %v6468_v30 = vor.u32 %v6467_v28, %v6463_v10  ;;  %v12657_v43 = vrot.slane %v12350_v26, 7  ;;  %v6459_v14 = vrot.slane %v6458_v0, 2  ;;  %v18908_v15 = vld.sshfl [vmem:[%s16346_s27 + $0x8c] sm:$0x13 pattern:$0x76325410] }
 0x332   : > { %v7015_v56 = vcombine.low %v6440_v21, %v6454_v57  ;;  %v12654_v63 = vsel %vm16626_vm14, %v12652_v7, %v12653_v23  ;;  %v12660_v52 = vrot.slane %v18608_v8, 7  ;;  %v12663_v24 = vrot.slane %v18630_v4, 7 }
 0x333   : > { %v6469_v53 = vrot.slane %v6468_v30, 2  ;;  %v12658_v32 = vsel %vm16626_vm14, %v14711_v13, %v12657_v43  ;;  %v12659_v39 = vrot.slane %v12657_v43, 2  ;;  %v6464_v41 = vsel %vm16373_vm6, %v6459_v14, %v6463_v10 }
 0x334   : > { %v7023_v54 = vrot.slane %v7015_v56, %v16379_v49  ;;  %v12662_v40 = vrot.slane %v12660_v52, 2  ;;  %v12963_v50 = vcombine.low %v12654_v63, %v12658_v32  ;;  %v6475_v37 = vshrl.u32 %v18595_v42, 16 }
 0x335   : > { %v6474_v12 = vsel %vm16373_vm6, %v6469_v53, %v6473_v47  ;;  %v12661_v48 = vsel %vm16626_vm14, %v12659_v39, %v12660_v52  ;;  %v6481_v21 = vshll.u32 %v18846_v17, 16  ;;  %v6485_v11 = vshrl.u32 %v18846_v17, 16 }
 0x336   : > { %v7016_v51 = vcombine.low %v6464_v41, %v6474_v12  ;;  %v12664_v45 = vsel %vm16626_vm14, %v12662_v40, %v12663_v24  ;;  %v12971_v1 = vrot.slane %v12963_v50, %v16379_v49  ;;  %v6477_v34 = vrot.slane %v6475_v37, 6 }
 0x337   : > { %v12964_v36 = vcombine.low %v12661_v48, %v12664_v45  ;;  %v6483_v3 = vrot.slane %v6481_v21, 7  ;;  %v6491_v62 = vshll.u32 %v12342_v19, 16  ;;  %v6487_v20 = vrot.slane %v6485_v11, 6 }
 0x338   : > { %v7030_v38 = vrot.slane %v7016_v51, %v16379_v49  ;;  %v6496_v42 = vshrl.u32 %v18583_v46, 16  ;;  %v6499_v2 = vshll.u32 %v18583_v46, 16  ;;  %v6478_v55 = vor.u32 %v6477_v34, %v6473_v47  ;;  %v14684_v19 = vld.sshfl [vmem:[%s16346_s27 + $0x90] sm:$0x32 pattern:$0x76325410] }
 0x339   : > { %v12978_v58 = vrot.slane %v12964_v36, %v16379_v49  ;;  %v6493_v5 = vrot.slane %v6491_v62, 7  ;;  %v6505_v10 = vshll.u32 %v18599_v44, 16  ;;  %v6488_v6 = vor.u32 %v6487_v20, %v6483_v3 }
 0x33a   : > { %v7031_v17 = vcombine.low %v7023_v54, %v7030_v38  ;;  %v6498_v22 = vrot.slane %v6496_v42, 6  ;;  %v6501_v28 = vrot.slane %v6499_v2, 7  ;;  %v6479_v0 = vrot.slane %v6478_v55, 2 }
 0x33b   : > { %v12979_v26 = vcombine.low %v12971_v1, %v12978_v58  ;;  %v6507_v7 = vrot.slane %v6505_v10, 7  ;;  %v6509_v23 = vshrl.u32 %v18599_v44, 16  ;;  %v6489_v46 = vrot.slane %v6488_v6, 2 }
 0x33c   : > { %15384 = vmatmul.mubr.msk.bf16.vlgmr.msra.gmra.mrb[20].mxu1 %vm2061_vm7, %v7031_v17  ;;  %v6502_v57 = vor.u32 %v6501_v28, %v6498_v22  ;;  %v6515_v47 = vshll.u32 %v18608_v8, 16  ;;  %v12366_v30 = vcombine.high %v18908_v15, %v18908_v15  ;;  %v6484_v13 = vsel %vm16373_vm6, %v6479_v0, %v6483_v3 }
 0x33d   : > { %15576 = vmatmul.mubr.msk.bf16.gmra.mrb[20].mxu0 %vm2061_vm7, %v12979_v26  ;;  %v6511_v43 = vrot.slane %v6509_v23, 6  ;;  %v12374_v14 = vcombine.high %v14684_v19, %v14684_v19  ;;  %v12665_v56 = vrot.slane %v12663_v24, 2  ;;  %v6494_v44 = vsel %vm16373_vm6, %v6489_v46, %v6493_v5  ;;  %v14189_v24 = vld.sshfl [vmem:[%s16346_s27 + $0x90] sm:$0x33 pattern:$0x76325410] }
 0x33e   : > { %v6503_v63 = vrot.slane %v6502_v57, 2  ;;  %v6517_v52 = vrot.slane %v6515_v47, 7  ;;  %v12666_v53 = vrot.slane %v18908_v15, 7  ;;  %v7032_v39 = vcombine.low %v6484_v13, %v6494_v44 }
 0x33f   : > { %v6512_v32 = vor.u32 %v6511_v43, %v6507_v7  ;;  %v12669_v41 = vrot.slane %v12366_v30, 7  ;;  %v14712_v54 = vrot.slane %v14684_v19, 9  ;;  %v12673_v48 = vrot.slane %v12374_v14, 7 }
 0x340   : > { %v6508_v40 = vsel %vm16373_vm6, %v6503_v63, %v6507_v7  ;;  %v12667_v50 = vsel %vm16626_vm14, %v12665_v56, %v12666_v53  ;;  %v12668_v12 = vrot.slane %v12666_v53, 2  ;;  %v7040_v21 = vrot.slane %v7032_v39, %v16379_v49  ;;  %v14687_v46 = vld.sshfl [vmem:[%s16346_s27 + $0x9c] sm:$0x32 pattern:$0x76325410] }
 0x341   : > { %v6513_v37 = vrot.slane %v6512_v32, 2  ;;  %v12676_v51 = vrot.slane %v18644_v16, 7  ;;  %v18929_v45 = vcombine.high %v14189_v24, %v14189_v24  ;;  %v12674_v11 = vsel %vm16626_vm14, %v14712_v54, %v12673_v48 }
 0x342   : > { %v12670_v1 = vsel %vm16626_vm14, %v12668_v12, %v12669_v41  ;;  %v12675_v36 = vrot.slane %v12673_v48, 2  ;;  %v6519_v34 = vshrl.u32 %v18608_v8, 16  ;;  %v6525_v38 = vshll.u32 %v18630_v4, 16 }
 0x343   : > { %v6518_v3 = vsel %vm16373_vm6, %v6513_v37, %v6517_v52  ;;  %v12980_v62 = vcombine.low %v12667_v50, %v12670_v1  ;;  %v6529_v20 = vshrl.u32 %v18630_v4, 16  ;;  %v6535_v55 = vshll.u32 %v18908_v15, 16  ;;  %v18947_v4 = vld.sshfl [vmem:[%s16346_s27 + $0x98] sm:$0x13 pattern:$0x76325410] }
 0x344   : > { %v7033_v42 = vcombine.low %v6508_v40, %v6518_v3  ;;  %v12677_v2 = vsel %vm16626_vm14, %v12675_v36, %v12676_v51  ;;  %v6521_v58 = vrot.slane %v6519_v34, 6  ;;  %v6527_v10 = vrot.slane %v6525_v38, 7 }
 0x345   : > { %v12981_v5 = vcombine.low %v12674_v11, %v12677_v2  ;;  %v12988_v8 = vrot.slane %v12980_v62, %v16379_v49  ;;  %v6531_v17 = vrot.slane %v6529_v20, 6  ;;  %v6537_v28 = vrot.slane %v6535_v55, 7 }
 0x346   : > { %v7047_v6 = vrot.slane %v7033_v42, %v16379_v49  ;;  %v6522_v22 = vor.u32 %v6521_v58, %v6517_v52  ;;  %v6539_v19 = vshrl.u32 %v18908_v15, 16  ;;  %v6545_v7 = vshll.u32 %v12366_v30, 16 }
 0x347   : > { %v12995_v26 = vrot.slane %v12981_v5, %v16379_v49  ;;  %v6532_v0 = vor.u32 %v6531_v17, %v6527_v10  ;;  %v6550_v23 = vshrl.u32 %v14189_v24, 16  ;;  %v6553_v43 = vshll.u32 %v14189_v24, 16 }
 0x348   : > { %v7048_v57 = vcombine.low %v7040_v21, %v7047_v6  ;;  %v6523_v47 = vrot.slane %v6522_v22, 2  ;;  %v6541_v13 = vrot.slane %v6539_v19, 6  ;;  %v6547_v44 = vrot.slane %v6545_v7, 7 }
 0x349   : > { %v12996_v14 = vcombine.low %v12988_v8, %v12995_v26  ;;  %v6533_v56 = vrot.slane %v6532_v0, 2  ;;  %v6552_v63 = vrot.slane %v6550_v23, 6  ;;  %v6555_v53 = vrot.slane %v6553_v43, 7 }
 0x34a   : > { %15387 = vmatprep.mubr.msk.bf16.mxu1 %vm2061_vm7, %v7048_v57  ;;  %v6528_v15 = vsel %vm16373_vm6, %v6523_v47, %v6527_v10  ;;  %v6542_v52 = vor.u32 %v6541_v13, %v6537_v28  ;;  %v6559_v32 = vshll.u32 %v18929_v45, 16  ;;  %v12390_v39 = vcombine.high %v18947_v4, %v18947_v4  ;;  %v18985_v47 = vld.sshfl [vmem:[%s16346_s27 + $0xa4] sm:$0x13 pattern:$0x76325410] }
 0x34b   : > { %15579 = vmatprep.mubr.msk.bf16.mxu0 %vm2061_vm7, %v12996_v14  ;;  %v6538_v30 = vsel %vm16373_vm6, %v6533_v56, %v6537_v28  ;;  %v12398_v41 = vcombine.high %v14687_v46, %v14687_v46  ;;  %v12678_v54 = vrot.slane %v12676_v51, 2  ;;  %v6556_v50 = vor.u32 %v6555_v53, %v6552_v63 }
 0x34c   : > { %v6543_v40 = vrot.slane %v6542_v52, 2  ;;  %v6561_v12 = vrot.slane %v6559_v32, 7  ;;  %v7049_v48 = vcombine.low %v6528_v15, %v6538_v30  ;;  %v12679_v24 = vrot.slane %v18660_v25, 7 }
 0x34d   : > { %v12682_v37 = vrot.slane %v18947_v4, 7  ;;  %v12685_v21 = vrot.slane %v12390_v39, 7  ;;  %v14713_v1 = vrot.slane %v14687_v46, 9  ;;  %v6557_v36 = vrot.slane %v6556_v50, 2 }
 0x34e   : > { %v6548_v11 = vsel %vm16373_vm6, %v6543_v40, %v6547_v44  ;;  %v7057_v34 = vrot.slane %v7049_v48, %v16379_v49  ;;  %v12689_v3 = vrot.slane %v12398_v41, 7  ;;  %v12680_v51 = vsel %vm16626_vm14, %v12678_v54, %v12679_v24 }
 0x34f   : > { %v12681_v62 = vrot.slane %v12679_v24, 2  ;;  %v12684_v38 = vrot.slane %v12682_v37, 2  ;;  %v6563_v20 = vshrl.u32 %v18929_v45, 16  ;;  %v6562_v42 = vsel %vm16373_vm6, %v6557_v36, %v6561_v12 }
 0x350   : > { %v12690_v2 = vsel %vm16626_vm14, %v14713_v1, %v12689_v3  ;;  %v6569_v58 = vshll.u32 %v18644_v16, 16  ;;  %v6573_v55 = vshrl.u32 %v18644_v16, 16  ;;  %v7050_v5 = vcombine.low %v6548_v11, %v6562_v42 }
 0x351   : > { %v12683_v8 = vsel %vm16626_vm14, %v12681_v62, %v12682_v37  ;;  %v12686_v10 = vsel %vm16626_vm14, %v12684_v38, %v12685_v21  ;;  %v6565_v17 = vrot.slane %v6563_v20, 6  ;;  %v6579_v0 = vshll.u32 %v18660_v25, 16 }
 0x352   : > { %v12997_v45 = vcombine.low %v12680_v51, %v12683_v8  ;;  %v12998_v6 = vcombine.low %v12686_v10, %v12690_v2  ;;  %v6571_v22 = vrot.slane %v6569_v58, 7  ;;  %v6575_v28 = vrot.slane %v6573_v55, 6 }
 0x353   : > { %v7064_v19 = vrot.slane %v7050_v5, %v16379_v49  ;;  %v6566_v26 = vor.u32 %v6565_v17, %v6561_v12  ;;  %v6583_v16 = vshrl.u32 %v18660_v25, 16  ;;  %v6589_v57 = vshll.u32 %v18947_v4, 16 }
 0x354   : > { %v13005_v7 = vrot.slane %v12997_v45, %v16379_v49  ;;  %v13012_v23 = vrot.slane %v12998_v6, %v16379_v49  ;;  %v6576_v46 = vor.u32 %v6575_v28, %v6571_v22  ;;  %v6581_v14 = vrot.slane %v6579_v0, 7 }
 0x355   : > { %v7065_v13 = vcombine.low %v7057_v34, %v7064_v19  ;;  %v6567_v43 = vrot.slane %v6566_v26, 2  ;;  %v6585_v56 = vrot.slane %v6583_v16, 6  ;;  %v6591_v15 = vrot.slane %v6589_v57, 7 }
 0x356   : > { %v13013_v44 = vcombine.low %v13005_v7, %v13012_v23  ;;  %v6577_v63 = vrot.slane %v6576_v46, 2  ;;  %v6593_v52 = vshrl.u32 %v18947_v4, 16  ;;  %v18988_v53 = vpop.f32.mrb[0].mxu1  ;;  %v6599_v30 = vshll.u32 %v12390_v39, 16 }
 0x357   : > { %15388 = vmatmul.mubr.msk.bf16.gmra.mrb[24].mxu1 %vm2061_vm7, %v7065_v13  ;;  %v6572_v25 = vsel %vm16373_vm6, %v6567_v43, %v6571_v22  ;;  %v6586_v32 = vor.u32 %v6585_v56, %v6581_v14  ;;  %v18995_v41 = vcombine.high %v18985_v47, %v18985_v47  ;;  %v18997_v54 = vpop.f32.mrb[1].mxu1  ;;  %v12691_v50 = vrot.slane %v12689_v3, 2 }
 0x358   : > { %15580 = vmatmul.mubr.msk.bf16.gmra.mrb[24].mxu0 %vm2061_vm7, %v13013_v44  ;;  %v6582_v4 = vsel %vm16373_vm6, %v6577_v63, %v6581_v14  ;;  %v6595_v40 = vrot.slane %v6593_v52, 6  ;;  %v12692_v12 = vrot.slane %v18676_v60, 7  ;;  %v19003_v48 = vpop.f32.mrb[2].mxu1  ;;  %v6601_v37 = vrot.slane %v6599_v30, 7 }
 0x359   : > { %v6587_v24 = vrot.slane %v6586_v32, 2  ;;  %v7066_v39 = vcombine.low %v6572_v25, %v6582_v4  ;;  %v12695_v21 = vrot.slane %v18691_v35, 7  ;;  %v19006_v1 = vpop.f32.mrb[3].mxu1  ;;  %v12698_v51 = vrot.slane %v18985_v47, 7 }
 0x35a   : > { %v6596_v11 = vor.u32 %v6595_v40, %v6591_v15  ;;  %v12693_v36 = vsel %vm16626_vm14, %v12691_v50, %v12692_v12  ;;  %v12694_v34 = vrot.slane %v12692_v12, 2  ;;  %v12701_v20 = vrot.slane %v18995_v41, 7  ;;  %v19036_v4 = vld.sshfl [vmem:[%s16346_s27 + $0xb0] sm:$0x13 pattern:$0x76325410] }
 0x35b   : > { %v6592_v3 = vsel %vm16373_vm6, %v6587_v24, %v6591_v15  ;;  %v7074_v62 = vrot.slane %v7066_v39, %v16379_v49  ;;  %v12697_v38 = vrot.slane %v12695_v21, 2  ;;  %v12700_v58 = vrot.slane %v12698_v51, 2 }
 0x35c   : > { %v6597_v42 = vrot.slane %v6596_v11, 2  ;;  %v12696_v2 = vsel %vm16626_vm14, %v12694_v34, %v12695_v21  ;;  %v6604_v55 = vshrl.u32 %v18669_v31, 16  ;;  %v6607_v10 = vshll.u32 %v18669_v31, 16 }
 0x35d   : > { %v12699_v5 = vsel %vm16626_vm14, %v12697_v38, %v12698_v51  ;;  %v13014_v8 = vcombine.low %v12693_v36, %v12696_v2  ;;  %v6613_v17 = vshll.u32 %v18685_v9, 16  ;;  %v12702_v6 = vsel %vm16626_vm14, %v12700_v58, %v12701_v20  ;;  %v14195_v21 = vld.sshfl [vmem:[%s16346_s27 + $0xa8] sm:$0x33 pattern:$0x76325410] }
 0x35e   : > { %v6602_v45 = vsel %vm16373_vm6, %v6597_v42, %v6601_v37  ;;  %v6606_v22 = vrot.slane %v6604_v55, 6  ;;  %v6617_v28 = vshrl.u32 %v18685_v9, 16  ;;  %v13015_v26 = vcombine.low %v12699_v5, %v12702_v6  ;;  %v14690_v9 = vld.sshfl [vmem:[%s16346_s27 + $0xa8] sm:$0x32 pattern:$0x76325410] }
 0x35f   : > { %v7067_v19 = vcombine.low %v6592_v3, %v6602_v45  ;;  %v13022_v0 = vrot.slane %v13014_v8, %v16379_v49  ;;  %v6609_v16 = vrot.slane %v6607_v10, 7  ;;  %v6615_v7 = vrot.slane %v6613_v17, 7 }
 0x360   : > { %v6619_v23 = vrot.slane %v6617_v28, 6  ;;  %v6623_v31 = vshll.u32 %v18676_v60, 16  ;;  %v6627_v46 = vshrl.u32 %v18676_v60, 16  ;;  %v13029_v13 = vrot.slane %v13015_v26, %v16379_v49 }
 0x361   : > { %v7081_v57 = vrot.slane %v7067_v19, %v16379_v49  ;;  %v6610_v43 = vor.u32 %v6609_v16, %v6606_v22  ;;  %v6633_v14 = vshll.u32 %v18691_v35, 16  ;;  %v6637_v15 = vshrl.u32 %v18691_v35, 16 }
 0x362   : > { %v6620_v56 = vor.u32 %v6619_v23, %v6615_v7  ;;  %v6625_v44 = vrot.slane %v6623_v31, 7  ;;  %v6629_v63 = vrot.slane %v6627_v46, 6  ;;  %v13030_v25 = vcombine.low %v13022_v0, %v13029_v13 }
 0x363   : > { %v7082_v52 = vcombine.low %v7074_v62, %v7081_v57  ;;  %v6611_v32 = vrot.slane %v6610_v43, 2  ;;  %v6635_v30 = vrot.slane %v6633_v14, 7  ;;  %v6639_v50 = vrot.slane %v6637_v15, 6 }
 0x364   : > { %v6621_v60 = vrot.slane %v6620_v56, 2  ;;  %v6630_v40 = vor.u32 %v6629_v63, %v6625_v44  ;;  %v6643_v12 = vshll.u32 %v18985_v47, 16  ;;  %15583 = vmatprep.mubr.msk.bf16.mxu0 %vm2061_vm7, %v13030_v25  ;;  %v12422_v35 = vcombine.high %v14690_v9, %v14690_v9 }
 0x365   : > { %15391 = vmatprep.mubr.msk.bf16.mxu1 %vm2061_vm7, %v7082_v52  ;;  %v6616_v24 = vsel %vm16373_vm6, %v6611_v32, %v6615_v7  ;;  %v14714_v37 = vrot.slane %v14690_v9, 9  ;;  %v12708_v39 = vrot.slane %v18701_v29, 7  ;;  %v6640_v34 = vor.u32 %v6639_v50, %v6635_v30 }
 0x366   : > { %v6626_v11 = vsel %vm16373_vm6, %v6621_v60, %v6625_v44  ;;  %v6631_v36 = vrot.slane %v6630_v40, 2  ;;  %v6645_v51 = vrot.slane %v6643_v12, 7  ;;  %v12705_v62 = vrot.slane %v12422_v35, 7 }
 0x367   : > { %v7083_v3 = vcombine.low %v6616_v24, %v6626_v11  ;;  %v12710_v38 = vrot.slane %v12708_v39, 2  ;;  %v12711_v20 = vrot.slane %v18740_v33, 7  ;;  %v6641_v2 = vrot.slane %v6640_v34, 2 }
 0x368   : > { %v6636_v42 = vsel %vm16373_vm6, %v6631_v36, %v6635_v30  ;;  %v12714_v58 = vrot.slane %v19036_v4, 7  ;;  %v5890_v55 = vcombine.high %v14195_v21, %v14195_v21  ;;  %v12706_v8 = vsel %vm16626_vm14, %v14714_v37, %v12705_v62  ;;  %v14693_v60 = vld.sshfl [vmem:[%s16346_s27 + $0xb4] sm:$0x32 pattern:$0x76325410] }
 0x369   : > { %v7091_v5 = vrot.slane %v7083_v3, %v16379_v49  ;;  %v12707_v10 = vrot.slane %v12705_v62, 2  ;;  %v12712_v17 = vsel %vm16626_vm14, %v12710_v38, %v12711_v20  ;;  %v6646_v45 = vsel %vm16373_vm6, %v6641_v2, %v6645_v51  ;;  %v16067_v35 = vld.sshfl [vmem:[%s16346_s27 + $0xac] sm:$0x33 pattern:$0x76325410] }
 0x36a   : > { %v12713_v6 = vrot.slane %v12711_v20, 2  ;;  %v6647_v22 = vshrl.u32 %v18985_v47, 16  ;;  %v6653_v28 = vshll.u32 %v18995_v41, 16  ;;  %v7084_v19 = vcombine.low %v6636_v42, %v6646_v45 }
 0x36b   : > { %v12709_v26 = vsel %vm16626_vm14, %v12707_v10, %v12708_v39  ;;  %v6658_v0 = vshrl.u32 %v14195_v21, 16  ;;  %v6661_v16 = vshll.u32 %v14195_v21, 16  ;;  %v6667_v44 = vshll.u32 %v5890_v55, 16 }
 0x36c   : > { %v12715_v7 = vsel %vm16626_vm14, %v12713_v6, %v12714_v58  ;;  %v13031_v23 = vcombine.low %v12706_v8, %v12709_v26  ;;  %v6649_v31 = vrot.slane %v6647_v22, 6  ;;  %v6655_v46 = vrot.slane %v6653_v28, 7  ;;  %v19064_v57 = vpop.f32.mrb[4].mxu1 }
 0x36d   : > { %v7098_v13 = vrot.slane %v7084_v19, %v16379_v49  ;;  %v13032_v47 = vcombine.low %v12712_v17, %v12715_v7  ;;  %v6660_v43 = vrot.slane %v6658_v0, 6  ;;  %v6663_v41 = vrot.slane %v6661_v16, 7  ;;  %v19067_v14 = vpop.f32.mrb[5].mxu1 }
 0x36e   : > { %v13039_v9 = vrot.slane %v13031_v23, %v16379_v49  ;;  %v6650_v56 = vor.u32 %v6649_v31, %v6645_v51  ;;  %v6671_v63 = vshrl.u32 %v5890_v55, 16  ;;  %v19070_v15 = vpop.f32.mrb[6].mxu1  ;;  %v6677_v30 = vshll.u32 %v18701_v29, 16 }
 0x36f   : > { %v7099_v52 = vcombine.low %v7091_v5, %v7098_v13  ;;  %v13046_v25 = vrot.slane %v13032_v47, %v16379_v49  ;;  %v6664_v32 = vor.u32 %v6663_v41, %v6660_v43  ;;  %v19075_v40 = vpop.f32.mrb[7].mxu1  ;;  %v6669_v12 = vrot.slane %v6667_v44, 7  ;;  %v14198_v10 = vld.sshfl [vmem:[%s16346_s27 + $0xb4] sm:$0x33 pattern:$0x76325410] }
 0x370   : > { %v6651_v50 = vrot.slane %v6650_v56, 2  ;;  %v6673_v24 = vrot.slane %v6671_v63, 6  ;;  %v6681_v37 = vshrl.u32 %v16067_v35, 16  ;;  %v6679_v11 = vrot.slane %v6677_v30, 7 }
 0x371   : > { %15392 = vmatmul.mubr.msk.bf16.gmra.mrb[28].mxu1 %vm2061_vm7, %v7099_v52  ;;  %v13047_v39 = vcombine.low %v13039_v9, %v13046_v25  ;;  %v6665_v21 = vrot.slane %v6664_v32, 2  ;;  %v6687_v36 = vshll.u32 %v18740_v33, 16  ;;  %v12438_v3 = vcombine.high %v19036_v4, %v19036_v4  ;;  %v19110_v35 = vld.sshfl [vmem:[%s16346_s27 + $0xbc] sm:$0x13 pattern:$0x76325410] }
 0x372   : > { %v6656_v34 = vsel %vm16373_vm6, %v6651_v50, %v6655_v46  ;;  %v6674_v29 = vor.u32 %v6673_v24, %v6669_v12  ;;  %v6683_v51 = vrot.slane %v6681_v37, 6  ;;  %v12446_v20 = vcombine.high %v14693_v60, %v14693_v60 }
 0x373   : > { %15584 = vmatmul.mubr.msk.bf16.gmra.mrb[28].mxu0 %vm2061_vm7, %v13047_v39  ;;  %v6670_v62 = vsel %vm16373_vm6, %v6665_v21, %v6669_v12  ;;  %v6689_v38 = vrot.slane %v6687_v36, 7  ;;  %v12716_v42 = vrot.slane %v12714_v58, 2  ;;  %v12717_v8 = vrot.slane %v12438_v3, 7 }
 0x374   : > { %v6675_v2 = vrot.slane %v6674_v29, 2  ;;  %v6684_v55 = vor.u32 %v6683_v51, %v6679_v11  ;;  %v7100_v5 = vcombine.low %v6656_v34, %v6670_v62  ;;  %v14715_v17 = vrot.slane %v14693_v60, 9 }
 0x375   : > { %v12721_v45 = vrot.slane %v12446_v20, 7  ;;  %v12724_v6 = vrot.slane %v18759_v27, 7  ;;  %v12727_v22 = vrot.slane %v18771_v59, 7  ;;  %v12718_v58 = vsel %vm16626_vm14, %v12716_v42, %v12717_v8 }
 0x376   : > { %v6680_v28 = vsel %vm16373_vm6, %v6675_v2, %v6679_v11  ;;  %v6685_v19 = vrot.slane %v6684_v55, 2  ;;  %v7108_v26 = vrot.slane %v7100_v5, %v16379_v49  ;;  %v5914_v23 = vcombine.high %v14198_v10, %v14198_v10  ;;  %v14696_v11 = vld.sshfl [vmem:[%s16346_s27 + $0xc0] sm:$0x32 pattern:$0x76325410] }
 0x377   : > { %v12722_v0 = vsel %vm16626_vm14, %v14715_v17, %v12721_v45  ;;  %v12723_v16 = vrot.slane %v12721_v45, 2  ;;  %v12726_v7 = vrot.slane %v12724_v6, 2  ;;  %v6691_v59 = vshrl.u32 %v18740_v33, 16 }
 0x378   : > { %v6690_v31 = vsel %vm16373_vm6, %v6685_v19, %v6689_v38  ;;  %v13048_v46 = vcombine.low %v12718_v58, %v12722_v0  ;;  %v6697_v13 = vshll.u32 %v19036_v4, 16  ;;  %v6701_v9 = vshrl.u32 %v19036_v4, 16  ;;  %v19121_v55 = vld.sshfl [vmem:[%s16346_s27 + $0xc4] sm:$0x33 pattern:$0x76325410] }
 0x379   : > { %v7101_v47 = vcombine.low %v6680_v28, %v6690_v31  ;;  %v12725_v43 = vsel %vm16626_vm14, %v12723_v16, %v12724_v6  ;;  %v12728_v41 = vsel %vm16626_vm14, %v12726_v7, %v12727_v22  ;;  %v6693_v63 = vrot.slane %v6691_v59, 6  ;;  %v14201_v6 = vld.sshfl [vmem:[%s16346_s27 + $0xc0] sm:$0x33 pattern:$0x76325410] }
 0x37a   : > { %v13049_v56 = vcombine.low %v12725_v43, %v12728_v41  ;;  %v13056_v44 = vrot.slane %v13048_v46, %v16379_v49  ;;  %v6699_v52 = vrot.slane %v6697_v13, 7  ;;  %v6703_v25 = vrot.slane %v6701_v9, 6  ;;  %v16068_v43 = vld.sshfl [vmem:[%s16346_s27 + $0xb8] sm:$0x33 pattern:$0x76325410] }
 0x37b   : > { %v7115_v33 = vrot.slane %v7101_v47, %v16379_v49  ;;  %v6707_v32 = vshll.u32 %v12438_v3, 16  ;;  %v6712_v30 = vshrl.u32 %v14198_v10, 16  ;;  %v6694_v50 = vor.u32 %v6693_v63, %v6689_v38 }
 0x37c   : > { %v13063_v60 = vrot.slane %v13049_v56, %v16379_v49  ;;  %v6715_v12 = vshll.u32 %v14198_v10, 16  ;;  %v6721_v24 = vshll.u32 %v5914_v23, 16  ;;  %v6704_v4 = vor.u32 %v6703_v25, %v6699_v52 }
 0x37d   : > { %v7116_v37 = vcombine.low %v7108_v26, %v7115_v33  ;;  %v6709_v39 = vrot.slane %v6707_v32, 7  ;;  %v6714_v21 = vrot.slane %v6712_v30, 6  ;;  %v6695_v34 = vrot.slane %v6694_v50, 2 }
 0x37e   : > { %v13064_v36 = vcombine.low %v13056_v44, %v13063_v60  ;;  %v6717_v29 = vrot.slane %v6715_v12, 7  ;;  %v6723_v51 = vrot.slane %v6721_v24, 7  ;;  %v6705_v3 = vrot.slane %v6704_v4, 2 }
 0x37f   : > { %15395 = vmatprep.mubr.msk.bf16.mxu1 %vm2061_vm7, %v7116_v37  ;;  %v6725_v62 = vshrl.u32 %v5914_v23, 16  ;;  %v6731_v38 = vshll.u32 %v18759_v27, 16  ;;  %v12462_v20 = vcombine.high %v19110_v35, %v19110_v35  ;;  %v6700_v42 = vsel %vm16373_vm6, %v6695_v34, %v6699_v52 }
 0x380   : > { %15587 = vmatprep.mubr.msk.bf16.mxu0 %vm2061_vm7, %v13064_v36  ;;  %v6718_v2 = vor.u32 %v6717_v29, %v6714_v21  ;;  %v12470_v5 = vcombine.high %v14696_v11, %v14696_v11  ;;  %v12729_v8 = vrot.slane %v12727_v22, 2  ;;  %v6710_v10 = vsel %vm16373_vm6, %v6705_v3, %v6709_v39 }
 0x381   : > { %v6727_v17 = vrot.slane %v6725_v62, 6  ;;  %v6733_v45 = vrot.slane %v6731_v38, 7  ;;  %v12730_v27 = vrot.slane %v19110_v35, 7  ;;  %v19127_v28 = vpop.f32.mrb[8].mxu1  ;;  %v7117_v26 = vcombine.low %v6700_v42, %v6710_v10 }
 0x382   : > { %v6719_v19 = vrot.slane %v6718_v2, 2  ;;  %v12733_v58 = vrot.slane %v12462_v20, 7  ;;  %v14716_v0 = vrot.slane %v14696_v11, 9  ;;  %v19129_v16 = vpop.f32.mrb[9].mxu1  ;;  %v12737_v31 = vrot.slane %v12470_v5, 7 }
 0x383   : > { %v6728_v7 = vor.u32 %v6727_v17, %v6723_v51  ;;  %v12731_v22 = vsel %vm16626_vm14, %v12729_v8, %v12730_v27  ;;  %v12732_v23 = vrot.slane %v12730_v27, 2  ;;  %v19133_v46 = vpop.f32.mrb[10].mxu1  ;;  %v7125_v13 = vrot.slane %v7117_v26, %v16379_v49  ;;  %v19158_v10 = vld.sshfl [vmem:[%s16346_s27 + $0xc8] sm:$0x13 pattern:$0x76325410] }
 0x384   : > { %v6724_v59 = vsel %vm16373_vm6, %v6719_v19, %v6723_v51  ;;  %v12740_v47 = vrot.slane %v19121_v55, 7  ;;  %v5922_v41 = vcombine.high %v16068_v43, %v16068_v43  ;;  %v19140_v9 = vpop.f32.mrb[11].mxu1  ;;  %v12738_v63 = vsel %vm16626_vm14, %v14716_v0, %v12737_v31 }
 0x385   : > { %v6729_v56 = vrot.slane %v6728_v7, 2  ;;  %v12734_v44 = vsel %vm16626_vm14, %v12732_v23, %v12733_v58  ;;  %v12739_v52 = vrot.slane %v12737_v31, 2  ;;  %v19146_v25 = vcombine.high %v14201_v6, %v14201_v6  ;;  %v14699_v58 = vld.sshfl [vmem:[%s16346_s27 + $0xcc] sm:$0x32 pattern:$0x76325410] }
 0x386   : > { %v13065_v33 = vcombine.low %v12731_v22, %v12734_v44  ;;  %v6735_v32 = vshrl.u32 %v16068_v43, 16  ;;  %v6741_v30 = vshll.u32 %v5922_v41, 16  ;;  %v6745_v12 = vshrl.u32 %v5922_v41, 16 }
 0x387   : > { %v6734_v60 = vsel %vm16373_vm6, %v6729_v56, %v6733_v45  ;;  %v12741_v50 = vsel %vm16626_vm14, %v12739_v52, %v12740_v47  ;;  %v6751_v24 = vshll.u32 %v19110_v35, 16  ;;  %v6755_v29 = vshrl.u32 %v19110_v35, 16 }
 0x388   : > { %v7118_v37 = vcombine.low %v6724_v59, %v6734_v60  ;;  %v13066_v4 = vcombine.low %v12738_v63, %v12741_v50  ;;  %v13073_v39 = vrot.slane %v13065_v33, %v16379_v49  ;;  %v6737_v21 = vrot.slane %v6735_v32, 6 }
 0x389   : > { %v6743_v11 = vrot.slane %v6741_v30, 7  ;;  %v6747_v36 = vrot.slane %v6745_v12, 6  ;;  %v6753_v34 = vrot.slane %v6751_v24, 7  ;;  %v6761_v38 = vshll.u32 %v12462_v20, 16 }
 0x38a   : > { %v7132_v51 = vrot.slane %v7118_v37, %v16379_v49  ;;  %v13080_v3 = vrot.slane %v13066_v4, %v16379_v49  ;;  %v6738_v62 = vor.u32 %v6737_v21, %v6733_v45  ;;  %v6757_v2 = vrot.slane %v6755_v29, 6 }
 0x38b   : > { %v6748_v42 = vor.u32 %v6747_v36, %v6743_v11  ;;  %v6766_v5 = vshrl.u32 %v14201_v6, 16  ;;  %v6769_v8 = vshll.u32 %v14201_v6, 16  ;;  %v6763_v26 = vrot.slane %v6761_v38, 7 }
 0x38c   : > { %v7133_v17 = vcombine.low %v7125_v13, %v7132_v51  ;;  %v13081_v27 = vcombine.low %v13073_v39, %v13080_v3  ;;  %v6739_v19 = vrot.slane %v6738_v62, 2  ;;  %v6758_v7 = vor.u32 %v6757_v2, %v6753_v34 }
 0x38d   : > { %v6749_v0 = vrot.slane %v6748_v42, 2  ;;  %v6768_v35 = vrot.slane %v6766_v5, 6  ;;  %v6771_v22 = vrot.slane %v6769_v8, 7  ;;  %v6775_v45 = vshll.u32 %v19146_v25, 16 }
 0x38e   : > { %15396 = vmatmul.mubr.msk.bf16.gmra.mrb[32].mxu1 %vm2061_vm7, %v7133_v17  ;;  %15588 = vmatmul.mubr.msk.bf16.gmra.mrb[32].mxu0 %vm2061_vm7, %v13081_v27  ;;  %v6744_v20 = vsel %vm16373_vm6, %v6739_v19, %v6743_v11  ;;  %v12478_v6 = vcombine.high %v19121_v55, %v19121_v55  ;;  %v19170_v23 = vcombine.high %v19158_v10, %v19158_v10  ;;  %v6759_v59 = vrot.slane %v6758_v7, 2  ;;  %v14700_v5 = vld.sshfl [vmem:[%s16346_s27 + $0xd0] sm:$0x33 pattern:$0x76325410] }
 0x38f   : > { %v6754_v31 = vsel %vm16373_vm6, %v6749_v0, %v6753_v34  ;;  %v6772_v13 = vor.u32 %v6771_v22, %v6768_v35  ;;  %v12494_v43 = vcombine.high %v14699_v58, %v14699_v58  ;;  %v6777_v41 = vrot.slane %v6775_v45, 7  ;;  %v14701_v35 = vld.sshfl [vmem:[%s16346_s27 + $0xd4] sm:$0x13 pattern:$0x76325410] }
 0x390   : > { %v7134_v56 = vcombine.low %v6744_v20, %v6754_v31  ;;  %v12742_v44 = vrot.slane %v12740_v47, 2  ;;  %v12743_v63 = vrot.slane %v12478_v6, 7  ;;  %v6764_v52 = vsel %vm16373_vm6, %v6759_v59, %v6763_v26 }
 0x391   : > { %v6773_v33 = vrot.slane %v6772_v13, 2  ;;  %v12746_v32 = vrot.slane %v19158_v10, 7  ;;  %v12749_v30 = vrot.slane %v19170_v23, 7  ;;  %v14717_v24 = vrot.slane %v14699_v58, 9 }
 0x392   : > { %v7142_v60 = vrot.slane %v7134_v56, %v16379_v49  ;;  %v12744_v50 = vsel %vm16626_vm14, %v12742_v44, %v12743_v63  ;;  %v12745_v12 = vrot.slane %v12743_v63, 2  ;;  %v12753_v4 = vrot.slane %v12494_v43, 7 }
 0x393   : > { %v6778_v37 = vsel %vm16373_vm6, %v6773_v33, %v6777_v41  ;;  %v12748_v47 = vrot.slane %v12746_v32, 2  ;;  %v6779_v39 = vshrl.u32 %v19146_v25, 16  ;;  %v6785_v36 = vshll.u32 %v19121_v55, 16 }
 0x394   : > { %v7135_v21 = vcombine.low %v6764_v52, %v6778_v37  ;;  %v12747_v11 = vsel %vm16626_vm14, %v12745_v12, %v12746_v32  ;;  %v6789_v34 = vshrl.u32 %v19121_v55, 16  ;;  %v12754_v51 = vsel %vm16626_vm14, %v14717_v24, %v12753_v4 }
 0x395   : > { %v12750_v29 = vsel %vm16626_vm14, %v12748_v47, %v12749_v30  ;;  %v13082_v3 = vcombine.low %v12744_v50, %v12747_v11  ;;  %v6781_v62 = vrot.slane %v6779_v39, 6  ;;  %v6787_v42 = vrot.slane %v6785_v36, 7 }
 0x396   : > { %v7149_v38 = vrot.slane %v7135_v21, %v16379_v49  ;;  %v13083_v25 = vcombine.low %v12750_v29, %v12754_v51  ;;  %v6791_v2 = vrot.slane %v6789_v34, 6  ;;  %v6795_v27 = vshll.u32 %v12478_v6, 16  ;;  %v19195_v19 = vpop.f32.mrb[12].mxu1 }
 0x397   : > { %v13090_v8 = vrot.slane %v13082_v3, %v16379_v49  ;;  %v6782_v17 = vor.u32 %v6781_v62, %v6777_v41  ;;  %v6799_v55 = vshrl.u32 %v12478_v6, 16  ;;  %v6805_v7 = vshll.u32 %v19158_v10, 16  ;;  %v19200_v22 = vpop.f32.mrb[13].mxu1 }
 0x398   : > { %v7150_v26 = vcombine.low %v7142_v60, %v7149_v38  ;;  %v13097_v58 = vrot.slane %v13083_v25, %v16379_v49  ;;  %v6792_v0 = vor.u32 %v6791_v2, %v6787_v42  ;;  %v6797_v45 = vrot.slane %v6795_v27, 7  ;;  %v19203_v13 = vpop.f32.mrb[14].mxu1 }
 0x399   : > { %v6783_v20 = vrot.slane %v6782_v17, 2  ;;  %v6801_v31 = vrot.slane %v6799_v55, 6  ;;  %v6809_v59 = vshrl.u32 %v19158_v10, 16  ;;  %v6807_v41 = vrot.slane %v6805_v7, 7  ;;  %v19207_v44 = vpop.f32.mrb[15].mxu1 }
 0x39a   : > { %15399 = vmatprep.mubr.msk.bf16.mxu1 %vm2061_vm7, %v7150_v26  ;;  %v13098_v6 = vcombine.low %v13090_v8, %v13097_v58  ;;  %v6793_v43 = vrot.slane %v6792_v0, 2  ;;  %v6815_v56 = vshll.u32 %v19170_v23, 16  ;;  %v12502_v32 = vcombine.high %v14700_v5, %v14700_v5 }
 0x39b   : > { %v6788_v63 = vsel %vm16373_vm6, %v6783_v20, %v6787_v42  ;;  %v6802_v52 = vor.u32 %v6801_v31, %v6797_v45  ;;  %v6811_v33 = vrot.slane %v6809_v59, 6  ;;  %v12510_v60 = vcombine.high %v14701_v35, %v14701_v35 }
 0x39c   : > { %15591 = vmatprep.mubr.msk.bf16.mxu0 %vm2061_vm7, %v13098_v6  ;;  %v6798_v10 = vsel %vm16373_vm6, %v6793_v43, %v6797_v45  ;;  %v6817_v30 = vrot.slane %v6815_v56, 7  ;;  %v12755_v50 = vrot.slane %v12753_v4, 2  ;;  %v12756_v23 = vrot.slane %v14700_v5, 7 }
 0x39d   : > { %v6803_v12 = vrot.slane %v6802_v52, 2  ;;  %v6812_v24 = vor.u32 %v6811_v33, %v6807_v41  ;;  %v7151_v37 = vcombine.low %v6788_v63, %v6798_v10  ;;  %v12759_v47 = vrot.slane %v12502_v32, 7 }
 0x39e   : > { %v12762_v39 = vrot.slane %v14701_v35, 7  ;;  %v12765_v21 = vrot.slane %v12510_v60, 7  ;;  %v12757_v34 = vsel %vm16626_vm14, %v12755_v50, %v12756_v23  ;;  %v12758_v29 = vrot.slane %v12756_v23, 2 }
 0x39f   : > { %v6808_v11 = vsel %vm16373_vm6, %v6803_v12, %v6807_v41  ;;  %v6813_v36 = vrot.slane %v6812_v24, 2  ;;  %v12761_v51 = vrot.slane %v12759_v47, 2  ;;  %v7159_v62 = vrot.slane %v7151_v37, %v16379_v49 }
 0x3a0   : > { %v12764_v3 = vrot.slane %v12762_v39, 2  ;;  %v12760_v25 = vsel %vm16626_vm14, %v12758_v29, %v12759_v47 }
 0x3a1   : > { %v6818_v4 = vsel %vm16373_vm6, %v6813_v36, %v6817_v30  ;;  %v12763_v42 = vsel %vm16626_vm14, %v12761_v51, %v12762_v39  ;;  %v13099_v5 = vcombine.low %v12757_v34, %v12760_v25 }
 0x3a2   : > { %v7152_v38 = vcombine.low %v6808_v11, %v6818_v4  ;;  %v12766_v2 = vsel %vm16626_vm14, %v12764_v3, %v12765_v21 }
 0x3a3   : > { %v13100_v8 = vcombine.low %v12763_v42, %v12766_v2  ;;  %v13107_v18 = vrot.slane %v13099_v5, %v16379_v49 }
 0x3a4   : > { %v7166_v17 = vrot.slane %v7152_v38, %v16379_v49 }
 0x3a5   : > { %v13114_v27 = vrot.slane %v13100_v8, %v16379_v49  ;;  %v19245_v49 = vld [vmem:[%s19384_s2] ss:$0 sm:$0xff] }
 0x3a6   : > { %v7167_v55 = vcombine.low %v7159_v62, %v7166_v17 }
 0x3a7   : > { %v13115_v26 = vcombine.low %v13107_v18, %v13114_v27 }
 0x3a8   : > { %15400 = vmatmul.mubr.msk.bf16.gmra.mrb[36].mxu1 %vm2061_vm7, %v7167_v55 }
 0x3a9   : > { %15592 = vmatmul.mubr.msk.bf16.gmra.mrb[36].mxu0 %vm2061_vm7, %v13115_v26 }
 0x3ac   : > { %v19232_v58 = vpop.f32.mrb[16].mxu1 }
 0x3ad   : > { %v19234_v0 = vpop.f32.mrb[17].mxu1 }
 0x3ae   : > { %v19236_v61 = vpop.f32.mrb[18].mxu1 }
 0x3af   : > { %v19238_v7 = vpop.f32.mrb[19].mxu1 }
 0x3c5   : > { %v15557_v35 = vpop.f32.mrb[0].mxu0 }
 0x3c6   : > { %v15603_v20 = vadd.f32 %v15557_v35, %v18988_v53  ;;  %v13234_v45 = vpop.f32.mrb[1].mxu0 }
 0x3c7   : > { %v15604_v31 = vadd.f32 %v13234_v45, %v18997_v54  ;;  %v15558_v59 = vpop.f32.mrb[2].mxu0 }
 0x3c8   : > { %v15605_v6 = vadd.f32 %v15558_v59, %v19003_v48  ;;  %v13237_v43 = vpop.f32.mrb[3].mxu0  ;;  %v13442_v56 = vadd.f32 %v15603_v20, %v19245_v49 }
 0x3c9   : > { %v15606_v41 = vadd.f32 %v13237_v43, %v19006_v1  ;;  %v13440_v63 = vadd.f32 %v15604_v31, %v19245_v49 }
 0x3ca   : > { %v13443_v53 = vadd.f32 %v15605_v6, %v19245_v49 }
 0x3cb   : > { %v13441_v52 = vadd.f32 %v15606_v41, %v19245_v49 }
 0x3cc   : > { %v14836_v33 = vpack.c.bf16 %v13443_v53, %v13442_v56 }
 0x3cd   : > { %v14831_v32 = vpack.c.bf16 %v13441_v52, %v13440_v63 }
 0x3ce   : > { %14928 = vst [vmem:[%s19256_s19 + $0x8] sm:$0xff] %v14836_v33  }
 0x3cf   : > { %14832 = vst [vmem:[%s19256_s19] sm:$0xff] %v14831_v32  }
 0x3d0   : > { %v15561_v54 = vpop.f32.mrb[4].mxu0 }
 0x3d1   : > { %v15607_v48 = vadd.f32 %v15561_v54, %v19064_v57  ;;  %v13250_v1 = vpop.f32.mrb[5].mxu0 }
 0x3d2   : > { %v15608_v10 = vadd.f32 %v13250_v1, %v19067_v14  ;;  %v15562_v30 = vpop.f32.mrb[6].mxu0 }
 0x3d3   : > { %v15609_v60 = vadd.f32 %v15562_v30, %v19070_v15  ;;  %v13253_v50 = vpop.f32.mrb[7].mxu0  ;;  %v13446_v24 = vadd.f32 %v15607_v48, %v19245_v49 }
 0x3d4   : > { %v15610_v12 = vadd.f32 %v13253_v50, %v19075_v40  ;;  %v13444_v23 = vadd.f32 %v15608_v10, %v19245_v49 }
 0x3d5   : > { %v13447_v37 = vadd.f32 %v15609_v60, %v19245_v49 }
 0x3d6   : > { %v13445_v47 = vadd.f32 %v15610_v12, %v19245_v49 }
 0x3d7   : > { %v14846_v39 = vpack.c.bf16 %v13447_v37, %v13446_v24 }
 0x3d8   : > { %v14841_v21 = vpack.c.bf16 %v13445_v47, %v13444_v23 }
 0x3d9   : > { %14930 = vst [vmem:[%s19256_s19 + $0x18] sm:$0xff] %v14846_v39  }
 0x3da   : > { %14929 = vst [vmem:[%s19256_s19 + $0x10] sm:$0xff] %v14841_v21  }
 0x3de   : > { %v15565_v57 = vpop.f32.mrb[8].mxu0 }
 0x3df   : > { %v15611_v14 = vadd.f32 %v15565_v57, %v19127_v28  ;;  %v13266_v15 = vpop.f32.mrb[9].mxu0 }
 0x3e0   : > { %v15612_v40 = vadd.f32 %v13266_v15, %v19129_v16  ;;  %v15566_v11 = vpop.f32.mrb[10].mxu0 }
 0x3e1   : > { %v15613_v36 = vadd.f32 %v15566_v11, %v19133_v46  ;;  %v13269_v34 = vpop.f32.mrb[11].mxu0  ;;  %v13450_v51 = vadd.f32 %v15611_v14, %v19245_v49 }
 0x3e2   : > { %v15614_v29 = vadd.f32 %v13269_v34, %v19140_v9  ;;  %v13448_v4 = vadd.f32 %v15612_v40, %v19245_v49 }
 0x3e3   : > { %v13451_v3 = vadd.f32 %v15613_v36, %v19245_v49 }
 0x3e4   : > { %v13449_v62 = vadd.f32 %v15614_v29, %v19245_v49 }
 0x3e5   : > { %v14856_v38 = vpack.c.bf16 %v13451_v3, %v13450_v51 }
 0x3e6   : > { %v14851_v25 = vpack.c.bf16 %v13449_v62, %v13448_v4 }
 0x3e7   : > { %14932 = vst [vmem:[%s19256_s19 + $0x28] sm:$0xff] %v14856_v38  }
 0x3e8   : > { %14931 = vst [vmem:[%s19256_s19 + $0x20] sm:$0xff] %v14851_v25  }
 0x3ea   : > { %v15569_v28 = vpop.f32.mrb[12].mxu0 }
 0x3eb   : > { %v15615_v16 = vadd.f32 %v15569_v28, %v19195_v19  ;;  %v13282_v46 = vpop.f32.mrb[13].mxu0 }
 0x3ec   : > { %v15616_v9 = vadd.f32 %v13282_v46, %v19200_v22  ;;  %v15570_v42 = vpop.f32.mrb[14].mxu0 }
 0x3ed   : > { %v15617_v2 = vadd.f32 %v15570_v42, %v19203_v13  ;;  %v13285_v5 = vpop.f32.mrb[15].mxu0  ;;  %v13454_v17 = vadd.f32 %v15615_v16, %v19245_v49 }
 0x3ee   : > { %v15618_v8 = vadd.f32 %v13285_v5, %v19207_v44  ;;  %v13452_v27 = vadd.f32 %v15616_v9, %v19245_v49 }
 0x3ef   : > { %v13455_v18 = vadd.f32 %v15617_v2, %v19245_v49 }
 0x3f0   : > { %v13453_v55 = vadd.f32 %v15618_v8, %v19245_v49 }
 0x3f1   : > { %v14866_v26 = vpack.c.bf16 %v13455_v18, %v13454_v17 }
 0x3f2   : > { %v14861_v35 = vpack.c.bf16 %v13453_v55, %v13452_v27 }
 0x3f3   : > { %14934 = vst [vmem:[%s19256_s19 + $0x38] sm:$0xff] %v14866_v26  }
 0x3f4   : > { %14933 = vst [vmem:[%s19256_s19 + $0x30] sm:$0xff] %v14861_v35  }
 0x3f6   : > { %v15573_v19 = vpop.f32.mrb[16].mxu0 }
 0x3f7   : > { %v15619_v22 = vadd.f32 %v15573_v19, %v19232_v58  ;;  %v13298_v13 = vpop.f32.mrb[17].mxu0 }
 0x3f8   : > { %v15620_v44 = vadd.f32 %v13298_v13, %v19234_v0  ;;  %v15574_v20 = vpop.f32.mrb[18].mxu0 }
 0x3f9   : > { %v15621_v45 = vadd.f32 %v15574_v20, %v19236_v61  ;;  %v13301_v31 = vpop.f32.mrb[19].mxu0  ;;  %v13458_v6 = vadd.f32 %v15619_v22, %v19245_v49 }
 0x3fa   : > { %v15622_v59 = vadd.f32 %v13301_v31, %v19238_v7  ;;  %v13456_v41 = vadd.f32 %v15620_v44, %v19245_v49 }
 0x3fb   : > { %v13459_v43 = vadd.f32 %v15621_v45, %v19245_v49 }
 0x3fc   : > { %v13457_v56 = vadd.f32 %v15622_v59, %v19245_v49 }
 0x3fd   : > { %v14876_v53 = vpack.c.bf16 %v13459_v43, %v13458_v6 }
 0x3fe   : > { %v14871_v63 = vpack.c.bf16 %v13457_v56, %v13456_v41 }
 0x3ff   : > { %14936 = vst [vmem:[%s19256_s19 + $0x48] sm:$0xff] %v14876_v53  }
 0x400   : > { %14935 = vst [vmem:[%s19256_s19 + $0x40] sm:$0xff] %v14871_v63  }
 0x40f   : > { %v15385_v58 = vpop.f32.mrb[20].mxu1 }
 0x410   : > { %v15577_v0 = vpop.f32.mrb[20].mxu0  ;;  %v7366_v52 = vpop.f32.mrb[21].mxu1 }
 0x411   : > { %v15623_v61 = vadd.f32 %v15577_v0, %v15385_v58  ;;  %v13314_v33 = vpop.f32.mrb[21].mxu0  ;;  %v15386_v7 = vpop.f32.mrb[22].mxu1 }
 0x412   : > { %v15624_v32 = vadd.f32 %v13314_v33, %v7366_v52  ;;  %v15578_v54 = vpop.f32.mrb[22].mxu0  ;;  %v7369_v48 = vpop.f32.mrb[23].mxu1 }
 0x413   : > { %v15625_v1 = vadd.f32 %v15578_v54, %v15386_v7  ;;  %v13317_v10 = vpop.f32.mrb[23].mxu0  ;;  %v13462_v60 = vadd.f32 %v15623_v61, %v19245_v49 }
 0x414   : > { %v15626_v30 = vadd.f32 %v13317_v10, %v7369_v48  ;;  %v13460_v12 = vadd.f32 %v15624_v32, %v19245_v49 }
 0x415   : > { %v13463_v50 = vadd.f32 %v15625_v1, %v19245_v49 }
 0x416   : > { %v13461_v24 = vadd.f32 %v15626_v30, %v19245_v49 }
 0x417   : > { %v14886_v37 = vpack.c.bf16 %v13463_v50, %v13462_v60 }
 0x418   : > { %v14881_v23 = vpack.c.bf16 %v13461_v24, %v13460_v12 }
 0x419   : > { %14938 = vst [vmem:[%s19256_s19 + $0x58] sm:$0xff] %v14886_v37  }
 0x41a   : > { %14937 = vst [vmem:[%s19256_s19 + $0x50] sm:$0xff] %v14881_v23  }
 0x42a   : > { %v15389_v47 = vpop.f32.mrb[24].mxu1 }
 0x42b   : > { %v15581_v39 = vpop.f32.mrb[24].mxu0  ;;  %v7382_v21 = vpop.f32.mrb[25].mxu1 }
 0x42c   : > { %v15627_v57 = vadd.f32 %v15581_v39, %v15389_v47  ;;  %v13330_v14 = vpop.f32.mrb[25].mxu0  ;;  %v15390_v15 = vpop.f32.mrb[26].mxu1 }
 0x42d   : > { %v15628_v40 = vadd.f32 %v13330_v14, %v7382_v21  ;;  %v15582_v11 = vpop.f32.mrb[26].mxu0  ;;  %v7385_v36 = vpop.f32.mrb[27].mxu1 }
 0x42e   : > { %v15629_v34 = vadd.f32 %v15582_v11, %v15390_v15  ;;  %v13333_v29 = vpop.f32.mrb[27].mxu0  ;;  %v13466_v3 = vadd.f32 %v15627_v57, %v19245_v49 }
 0x42f   : > { %v15630_v51 = vadd.f32 %v13333_v29, %v7385_v36  ;;  %v13464_v62 = vadd.f32 %v15628_v40, %v19245_v49 }
 0x430   : > { %v13467_v4 = vadd.f32 %v15629_v34, %v19245_v49 }
 0x431   : > { %v13465_v38 = vadd.f32 %v15630_v51, %v19245_v49 }
 0x432   : > { %v14896_v25 = vpack.c.bf16 %v13467_v4, %v13466_v3 }
 0x433   : > { %v14891_v28 = vpack.c.bf16 %v13465_v38, %v13464_v62 }
 0x434   : > { %14940 = vst [vmem:[%s19256_s19 + $0x68] sm:$0xff] %v14896_v25  }
 0x435   : > { %14939 = vst [vmem:[%s19256_s19 + $0x60] sm:$0xff] %v14891_v28  }
 0x444   : > { %v15393_v16 = vpop.f32.mrb[28].mxu1 }
 0x445   : > { %v7398_v46 = vpop.f32.mrb[29].mxu1 }
 0x446   : > { %v15585_v9 = vpop.f32.mrb[28].mxu0  ;;  %v15394_v42 = vpop.f32.mrb[30].mxu1 }
 0x447   : > { %v15631_v2 = vadd.f32 %v15585_v9, %v15393_v16  ;;  %v13346_v5 = vpop.f32.mrb[29].mxu0  ;;  %v7401_v8 = vpop.f32.mrb[31].mxu1 }
 0x448   : > { %v15632_v17 = vadd.f32 %v13346_v5, %v7398_v46  ;;  %v15586_v18 = vpop.f32.mrb[30].mxu0 }
 0x449   : > { %v15633_v27 = vadd.f32 %v15586_v18, %v15394_v42  ;;  %v13349_v55 = vpop.f32.mrb[31].mxu0  ;;  %v13470_v35 = vadd.f32 %v15631_v2, %v19245_v49 }
 0x44a   : > { %v15634_v26 = vadd.f32 %v13349_v55, %v7401_v8  ;;  %v13468_v22 = vadd.f32 %v15632_v17, %v19245_v49 }
 0x44b   : > { %v13471_v19 = vadd.f32 %v15633_v27, %v19245_v49 }
 0x44c   : > { %v13469_v13 = vadd.f32 %v15634_v26, %v19245_v49 }
 0x44d   : > { %v14906_v44 = vpack.c.bf16 %v13471_v19, %v13470_v35 }
 0x44e   : > { %v14901_v20 = vpack.c.bf16 %v13469_v13, %v13468_v22 }
 0x44f   : > { %14942 = vst [vmem:[%s19256_s19 + $0x78] sm:$0xff] %v14906_v44  }
 0x450   : > { %14941 = vst [vmem:[%s19256_s19 + $0x70] sm:$0xff] %v14901_v20  }
 0x461   : > { %v15397_v45 = vpop.f32.mrb[32].mxu1  ;;  %v15589_v31 = vpop.f32.mrb[32].mxu0 }
 0x462   : > { %v15635_v59 = vadd.f32 %v15589_v31, %v15397_v45  ;;  %v7414_v6 = vpop.f32.mrb[33].mxu1  ;;  %v13362_v43 = vpop.f32.mrb[33].mxu0 }
 0x463   : > { %v15636_v41 = vadd.f32 %v13362_v43, %v7414_v6  ;;  %v15398_v56 = vpop.f32.mrb[34].mxu1  ;;  %v15590_v53 = vpop.f32.mrb[34].mxu0 }
 0x464   : > { %v15637_v63 = vadd.f32 %v15590_v53, %v15398_v56  ;;  %v7417_v58 = vpop.f32.mrb[35].mxu1  ;;  %v13365_v0 = vpop.f32.mrb[35].mxu0  ;;  %v13474_v61 = vadd.f32 %v15635_v59, %v19245_v49 }
 0x465   : > { %v15638_v52 = vadd.f32 %v13365_v0, %v7417_v58  ;;  %v13472_v7 = vadd.f32 %v15636_v41, %v19245_v49 }
 0x466   : > { %v13475_v33 = vadd.f32 %v15637_v63, %v19245_v49 }
 0x467   : > { %v13473_v32 = vadd.f32 %v15638_v52, %v19245_v49 }
 0x468   : > { %v14916_v54 = vpack.c.bf16 %v13475_v33, %v13474_v61 }
 0x469   : > { %v14911_v48 = vpack.c.bf16 %v13473_v32, %v13472_v7 }
 0x46a   : > { %14944 = vst [vmem:[%s19256_s19 + $0x88] sm:$0xff] %v14916_v54  }
 0x46b   : > { %14943 = vst [vmem:[%s19256_s19 + $0x80] sm:$0xff] %v14911_v48  }
 0x47b   : > { %v15401_v1 = vpop.f32.mrb[36].mxu1 }
 0x47c   : > { %v15593_v10 = vpop.f32.mrb[36].mxu0  ;;  %v7430_v30 = vpop.f32.mrb[37].mxu1 }
 0x47d   : > { %v15639_v60 = vadd.f32 %v15593_v10, %v15401_v1  ;;  %v13378_v50 = vpop.f32.mrb[37].mxu0  ;;  %v15402_v12 = vpop.f32.mrb[38].mxu1 }
 0x47e   : > { %v15640_v24 = vadd.f32 %v13378_v50, %v7430_v30  ;;  %v15594_v37 = vpop.f32.mrb[38].mxu0  ;;  %v7433_v23 = vpop.f32.mrb[39].mxu1 }
 0x47f   : > { %v15641_v47 = vadd.f32 %v15594_v37, %v15402_v12  ;;  %v13381_v39 = vpop.f32.mrb[39].mxu0  ;;  %v13478_v57 = vadd.f32 %v15639_v60, %v19245_v49 }
 0x480   : > { %v15642_v21 = vadd.f32 %v13381_v39, %v7433_v23  ;;  %v13476_v15 = vadd.f32 %v15640_v24, %v19245_v49 }
 0x481   : > { %v13479_v14 = vadd.f32 %v15641_v47, %v19245_v49 }
 0x482   : > { %v13477_v40 = vadd.f32 %v15642_v21, %v19245_v49 }
 0x483   : > { %v14926_v11 = vpack.c.bf16 %v13479_v14, %v13478_v57 }
 0x484   : > { %v14921_v36 = vpack.c.bf16 %v13477_v40, %v13476_v15 }
 0x485   : > { %14946 = vst [vmem:[%s19256_s19 + $0x98] sm:$0xff] %v14926_v11  }
 0x486   : > { %14945 = vst [vmem:[%s19256_s19 + $0x90] sm:$0xff] %v14921_v36  }
 0x487   : > { %16138 = shalt.err (!%p16135_p8)
}
 0x488   : > { %s16139_s8 = scalar_lea.hbm %s19333_s4, 2560  ;;  %s16143_s27 = scalar_lea.hbm %s19385_s3, 5120 }
 0x489   : > { %p16140_p11 = scmp.ne.s32.totalorder %s19333_s4, %s16139_s8  ;;  %p16144_p0 = scmp.lt.u32.totalorder %s19333_s4, %s19385_s3 }
 0x48a   : > { %p16145_p6 = scmp.lt.u32.totalorder %s16143_s27, %s16139_s8  ;;  %p16147_p12 = scmp.lt.u32.totalorder %s16139_s8, %s19333_s4 }
 0x48b   : > { %p16141_p13 = pnand %p16140_p11, %p19447_p10 }
 0x48c   : > { %p16146_p9 = por %p16145_p6, %p16144_p0 }
 0x48d   : > { %p16142_p5 = pneg %p16141_p13 }
 0x48e   : > { %p16148_p1 = por %p16147_p12, %p16146_p9 }
 0x490   : > { %p16149_p2 = pnand %p16148_p1, %p16142_p5 }
 0x492   : > { %16152 = shalt.err (!%p16149_p2)
}
 0x493   : > { %s16203_s11 = smov 64   ;;  %s16204_s17 = smov 4  }
 0x494   : > { %15932 = dma.vmem_to_hbm [thread:$0]  (%p19447_p10), %s19335_s25, 2560, %s19333_s4, %s19341_s16, %s16203_s11, %s16203_s11, %s16204_s17  }
 0x495 PF: > { %p15949_p3 = scmp.ge.s32.totalorder %s16195_s15, 2  ;;  %s13709_s19 = sand.u32 1, %s16183_s12  }
 0x496   : > { %p19448_p4 = scmp.ne.s32.totalorder %s19405_s23, 0  ;;  %s13710_s20 = scalar_lea.sflag [#allocation4], %s13709_s19 }
 0x498   : > { %p15942_p7 = pnand %p15949_p3, %p19448_p4 }
 0x49a   : > { %16178 = dma.done.wait (!%p15942_p7), %s13710_s20, 2560  }
 0x49b   : > { %16180 = vsyncadd (!%p15942_p7), %s13710_s20, 4294964736  ;;  %p15_p8 = scmp.ge.s32.totalorder %s16250_s18, 4   ;;  %s19449_s12 = smov %s16187_s13 }
 0x49c   : > { %s19450_s13 = smov %s16191_s14  ;;  %s19451_s14 = smov %s16261_s21 }
 0x49d   : > { %s19452_s15 = smov %s16250_s18  ;;  %17 = sbr.rel (!%p15_p8) target bundleno = 5 (0x5), region = 84 }
 0x4a4   :  { %13715 = vsyncpa [#allocation3], 1 }
 0x4a5   :  { %13717 = vsyncpa [#allocation3 + $0x1], 1 }
 0x4a6   :  { %13718 = vsyncpa [#allocation6], 1 }
 0x4a7   :  { %13719 = vsyncpa [#allocation4], 1 }
 0x4a8   :  { %13721 = vsyncpa [#allocation4 + $0x1], 1 }

</bundles_post_ra>
